<compile_context>
chip_gen: v7x
topology: tpu7x:2x2x1
jax: 0.10.0
libtpu: 0.0.40
codegen_flags: <defaults>
</compile_context>

<pallas_src>
import jax
import jax.numpy as jnp
from jax import lax
from jax.experimental import pallas as pl
from jax.experimental.pallas import tpu as pltpu


def _round_up(x, m):
    return (x + m - 1) // m * m


def _pad_to(x, axis, left, total):
    """Left-pad by `left` zeros, then right-pad (or crop) the axis to exactly `total`."""
    pad = [(0, 0)] * x.ndim
    pad[axis] = (left, max(total - x.shape[axis] - left, 0))
    x = jnp.pad(x, pad)
    if x.shape[axis] != total:
        x = lax.slice_in_dim(x, 0, total, axis=axis)
    return x


# ---------------------------------------------------------------------------
# Fused Conv3d (+folded BN bias, +optional residual, +ReLU) Pallas kernel
# ---------------------------------------------------------------------------

def _make_conv_kernel(cin, kd, kh, kw, sd, sh, sw, n_wphase, w_pitch, do_out,
                      m_w, k_taps, k_pad, *, relu, has_res):
    """grid=(N,): one sample per grid step.  In-kernel pl.loop over the Do output depth
    slices; per slice the kd*kh*kw taps are staged into one lane-dense (K, Mw_pad) VMEM
    slab and fed to the MXU as a single big-K matmul.  Bias (+residual) + ReLU fused."""

    def kernel(*refs):
        if has_res:
            x_ref, w_ref, b_ref, r_ref, o_ref, rhs_ref = refs
        else:
            x_ref, w_ref, b_ref, o_ref, rhs_ref = refs
            r_ref = None

        if k_pad > k_taps:
            # zero the K padding rows once per step (scratch is otherwise uninitialised;
            # padded weight columns are zero so these rows never contribute).
            rhs_ref[k_taps:, :] = jnp.zeros((k_pad - k_taps, m_w), jnp.bfloat16)

        @pl.loop(0, do_out)
        def _per_depth(d):
            row = 0
            for dz in range(kd):
                xd = x_ref[d * sd + dz]                           # (G*Cin, Lin) bf16
                for dy in range(kh):
                    for dx in range(kw):
                        g = (dy % sh) * n_wphase + (dx % sw)      # stride phase group
                        start = (dy // sh) * w_pitch + (dx // sw)  # flat (H,W) tap offset
                        rhs_ref[row:row + cin, :] = xd[g * cin:(g + 1) * cin,
                                                       start:start + m_w]
                        row += cin
            # One (Cout, K_pad) @ (K_pad, Mw_pad) MXU matmul, f32 accumulation.
            y = jnp.dot(w_ref[...], rhs_ref[...],
                        preferred_element_type=jnp.float32) + b_ref[...]
            if has_res:
                y = y + r_ref[d].astype(jnp.float32)              # fused residual add
            if relu:
                y = jnp.maximum(y, 0.0)
            o_ref[d] = y.astype(o_ref.dtype)

    return kernel


def conv3d_block(x, w, b, stride, *, relu=True, residual=None):
    """Fused Conv3d('same', stride) + bias (+ residual) (+ ReLU), channels-first per depth slice.

    x        : (N, D, Cin, H, W)       bf16/f32 feature map (W on the lane axis)
    w        : (kd, kh, kw, Cout, Cin)
    b        : (Cout,) float32         (folded eval-mode BatchNorm)
    residual : (N, Do, Cout, Ho, Wo)   optional, fused into the epilogue
    returns  : (N, Do, Cout, Ho, Wo)   bfloat16
    """
    N, D, Cin, H, W = x.shape
    kd, kh, kw, Cout, Cin2 = w.shape
    assert Cin == Cin2, (Cin, Cin2)
    sd, sh, sw = stride
    pad_d, pad_h, pad_w = kd // 2, kh // 2, kw // 2
    Do = (D + 2 * pad_d - kd) // sd + 1
    Ho = (H + 2 * pad_h - kh) // sh + 1
    Wo = (W + 2 * pad_w - kw) // sw + 1

    Sh, Sw = min(kh, sh), min(kw, sw)      # stride phases actually referenced by the taps
    Hp = Ho + (kh - 1) // sh               # per-phase rows needed by valid outputs
    Wp = Wo + (kw - 1) // sw               # per-phase cols == output row pitch
    Dp = (Do - 1) * sd + kd                # padded depth extent indexed in-kernel
    Mw = Ho * Wp                           # valid flattened output width
    Mw_pad = _round_up(Mw, 128)            # lane-dense store width (multiple of 128)
    max_start = ((kh - 1) // sh) * Wp + (kw - 1) // sw
    Lin = _round_up(max(Hp * Wp, max_start + Mw_pad), 128)   # input flat width (keeps taps in-bounds)
    K = kd * kh * kw * Cin
    K_pad = _round_up(K, 8)
    GCin = Sh * Sw * Cin

    xb = x.astype(jnp.bfloat16)
    xb = _pad_to(xb, 1, pad_d, Dp)
    xb = _pad_to(xb, 3, pad_h, sh * Hp)
    xb = _pad_to(xb, 4, pad_w, sw * Wp)
    # Split H/W into stride phases, fold the used phases into the channel axis and flatten (H, W)
    # so every (dy, dx) tap is a single contiguous lane slice inside the kernel.
    xb = xb.reshape(N, Dp, Cin, Hp, sh, Wp, sw)[:, :, :, :, :Sh, :, :Sw]
    xb = jnp.transpose(xb, (0, 1, 4, 6, 2, 3, 5)).reshape(N, Dp, GCin, Hp * Wp)
    xb = jnp.pad(xb, ((0, 0), (0, 0), (0, 0), (0, Lin - Hp * Wp)))

    # Restack weights to (Cout, K): row order (dz, dy, dx, cin) matches the staging slab.
    w2 = jnp.transpose(w.astype(jnp.bfloat16), (3, 0, 1, 2, 4)).reshape(Cout, K)
    if K_pad > K:
        w2 = jnp.pad(w2, ((0, 0), (0, K_pad - K)))
    b2 = b.reshape(Cout, 1).astype(jnp.float32)

    args = [xb, w2, b2]
    in_specs = [
        pl.BlockSpec((None, Dp, GCin, Lin), lambda n: (n, 0, 0, 0)),
        pl.BlockSpec((Cout, K_pad), lambda n: (0, 0)),   # grid-invariant: DMA'd once
        pl.BlockSpec((Cout, 1), lambda n: (0, 0)),
    ]
    if residual is not None:
        assert residual.shape == (N, Do, Cout, Ho, Wo), residual.shape
        res = jnp.pad(residual.astype(jnp.bfloat16),
                      ((0, 0), (0, 0), (0, 0), (0, 0), (0, Wp - Wo)))
        res = res.reshape(N, Do, Cout, Mw)
        res = jnp.pad(res, ((0, 0), (0, 0), (0, 0), (0, Mw_pad - Mw)))
        args.append(res)
        in_specs.append(pl.BlockSpec((None, Do, Cout, Mw_pad), lambda n: (n, 0, 0, 0)))

    kernel = _make_conv_kernel(Cin, kd, kh, kw, sd, sh, sw, Sw, Wp, Do,
                               Mw_pad, K, K_pad, relu=relu, has_res=residual is not None)
    out_wide = pl.pallas_call(
        kernel,
        out_shape=jax.ShapeDtypeStruct((N, Do, Cout, Mw_pad), jnp.bfloat16),
        grid_spec=pltpu.PrefetchScalarGridSpec(
            num_scalar_prefetch=0,
            grid=(N,),
            in_specs=in_specs,
            out_specs=pl.BlockSpec((None, Do, Cout, Mw_pad), lambda n: (n, 0, 0, 0)),
            scratch_shapes=[pltpu.VMEM((K_pad, Mw_pad), jnp.bfloat16)],
        ),
        compiler_params=pltpu.CompilerParams(
            dimension_semantics=("parallel",),
            vmem_limit_bytes=32 * 1024 * 1024),
    )(*args)
    # Drop the Mw_pad-Mw / Wp-Wo junk columns; this slice fuses into the next layer's prep.
    return out_wide[..., :Mw].reshape(N, Do, Cout, Ho, Wp)[..., :Wo]


# ---------------------------------------------------------------------------
# Fused normalize_tensor (channel-L2) + L1Loss kernel: one step, whole features
# ---------------------------------------------------------------------------

def _norm_l1_kernel(fx_ref, fy_ref, o_ref):
    x = fx_ref[...].astype(jnp.float32)          # (N*Do, C, Ho*Wo): C on sublanes
    y = fy_ref[...].astype(jnp.float32)
    inv_x = pl.reciprocal(jnp.sqrt(jnp.sum(x * x, axis=1, keepdims=True)) + 1e-10,
                          approx=True)           # EUP; keeps normalize_tensor eps=1e-10 placement
    inv_y = pl.reciprocal(jnp.sqrt(jnp.sum(y * y, axis=1, keepdims=True)) + 1e-10,
                          approx=True)
    diff = x * inv_x - y * inv_y
    o_ref[...] = jnp.sum(jnp.abs(diff)).reshape(1, 1)


def normalized_l1(fx, fy):
    """L1Loss(normalize_tensor(fx), normalize_tensor(fy)) — single-step fused kernel."""
    assert fx.shape == fy.shape
    N, Do, C, Ho, Wo = fx.shape
    B, S = N * Do, Ho * Wo
    fx2 = fx.reshape(B, C, S)
    fy2 = fy.reshape(B, C, S)
    total = pl.pallas_call(
        _norm_l1_kernel,
        out_shape=jax.ShapeDtypeStruct((1, 1), jnp.float32),
        grid=(1,),
        in_specs=[pl.BlockSpec((B, C, S), lambda i: (0, 0, 0)),
                  pl.BlockSpec((B, C, S), lambda i: (0, 0, 0))],
        out_specs=pl.BlockSpec((1, 1), lambda i: (0, 0)),
    )(fx2, fy2)
    return total[0, 0] / (N * Do * C * Ho * Wo)


# ---------------------------------------------------------------------------
# Scaled-down frozen ResNet-style 3-D feature extractor (MedicalNet stand-in)
# ---------------------------------------------------------------------------

_STEM_STRIDE = (2, 2, 2)
_BLOCK_CFGS = (
    dict(cin=8, cout=8, stride=(1, 1, 1)),
    dict(cin=8, cout=16, stride=(2, 2, 2)),
    dict(cin=16, cout=32, stride=(2, 2, 2)),
)


def init_params(key):
    def conv_init(k, kshape, cout, cin):
        k_d, k_h, k_w = kshape
        kw_key, kb_key = jax.random.split(k)
        fan_in = float(k_d * k_h * k_w * cin)
        w = jax.random.normal(kw_key, (k_d, k_h, k_w, cout, cin), jnp.float32) * fan_in ** -0.5
        b = jax.random.normal(kb_key, (cout,), jnp.float32) * 0.1   # folded BN scale/shift
        return w.astype(jnp.bfloat16), b

    key, k_stem = jax.random.split(key)
    params = {"stem": {}}
    params["stem"]["w"], params["stem"]["b"] = conv_init(k_stem, (3, 3, 3), 8, 1)
    blocks = []
    for cfg in _BLOCK_CFGS:
        key, k1, k2, k3 = jax.random.split(key, 4)
        blk = {}
        blk["w1"], blk["b1"] = conv_init(k1, (3, 3, 3), cfg["cout"], cfg["cin"])
        blk["w2"], blk["b2"] = conv_init(k2, (3, 3, 3), cfg["cout"], cfg["cout"])
        if cfg["stride"] != (1, 1, 1) or cfg["cin"] != cfg["cout"]:
            blk["wd"], blk["bd"] = conv_init(k3, (1, 1, 1), cfg["cout"], cfg["cin"])
        blocks.append(blk)
    params["blocks"] = blocks
    return params


def feature_extractor(vol, params):
    """Frozen (eval-mode) residual 3-D CNN; returns the last feature map."""
    # NCDHW -> (N, D, C, H, W): depth-major, then channels, then H/W (W on the lane axis).
    x = jnp.transpose(vol, (0, 2, 1, 3, 4)).astype(jnp.bfloat16)
    # TODO(synk): real MedicalNet resnet10 stem is a 7x7x7 conv + MaxPool3d with 4 stages at
    #             [64,128,256,512] channels and pretrained weights; scaled-down stand-in here.
    x = conv3d_block(x, params["stem"]["w"], params["stem"]["b"], _STEM_STRIDE, relu=True)
    for cfg, blk in zip(_BLOCK_CFGS, params["blocks"]):
        y = conv3d_block(x, blk["w1"], blk["b1"], cfg["stride"], relu=True)
        if "wd" in blk:   # projection shortcut (1x1x1, strided)
            sc = conv3d_block(x, blk["wd"], blk["bd"], cfg["stride"], relu=False)
        else:             # identity shortcut
            sc = x
        x = conv3d_block(y, blk["w2"], blk["b2"], (1, 1, 1), relu=True, residual=sc)
    return x   # (N, Df, Cf, Hf, Wf) bf16


# ---------------------------------------------------------------------------
# MedicalNetL1.forward
# ---------------------------------------------------------------------------

def medicalnet_intensity_normalisation(volume):
    # Global mean / unbiased std over the whole tensor (torch .mean()/.std() defaults).
    # Memory-bound preamble: left to XLA, it fuses into the bf16 cast / conv input prep.
    v = volume.astype(jnp.float32)
    m = jnp.mean(v)
    std = jnp.sqrt(jnp.sum((v - m) ** 2) / (v.size - 1))
    return (v - m) / std


def medicalnet_l1_forward(inp, tgt, params):
    x = medicalnet_intensity_normalisation(inp[:, 0:1])
    y = medicalnet_intensity_normalisation(tgt)
    # Single pass through the frozen CNN: concat along batch (halves pallas_call launches and
    # gives an even "parallel" batch axis for v7x's two TensorCores), split before the loss.
    feats = feature_extractor(jnp.concatenate([x, y], axis=0), params)
    n = x.shape[0]
    return normalized_l1(feats[:n], feats[n:])


if __name__ == "__main__":
    key = jax.random.PRNGKey(0)
    kx, ky, kp = jax.random.split(key, 3)
    # input has 2 channels (forward uses input[:, 0:1]); target is the single-channel volume.
    inp = jax.random.normal(kx, (2, 2, 32, 32, 32), jnp.float32)
    tgt = jax.random.normal(ky, (2, 1, 32, 32, 32), jnp.float32)
    params = init_params(kp)

    fwd = jax.jit(medicalnet_l1_forward)
    loss = jax.block_until_ready(fwd(inp, tgt, params))
    assert loss.shape == () and bool(jnp.isfinite(loss))
    print("KERNEL_OK")
</pallas_src>

<mosaic_0001>
module attributes {stable_mosaic.version = 11 : i64} {
  func.func @kernel(%arg0: i32, %arg1: memref<1x33x4x512xbf16, #tpu.memory_space<vmem>>, %arg2: memref<8x32xbf16, #tpu.memory_space<vmem>>, %arg3: memref<8x1xf32, #tpu.memory_space<vmem>>, %arg4: memref<1x16x8x384xbf16, #tpu.memory_space<vmem>>, %arg5: memref<32x384xbf16, #tpu.memory_space<vmem>>) attributes {dimension_semantics = [#tpu.dimension_semantics<parallel>], iteration_bounds = array<i64: 4>, scalar_prefetch = 0 : i64, scratch_operands = 1 : i64, tpu.core_type = #tpu.core_type<tc>, window_params = [{transform_indices = @transform_0, window_bounds = array<i64: 1, 33, 4, 512>}, {pipeline_mode = #tpu.pipeline_mode<synchronous>, transform_indices = @transform_1, window_bounds = array<i64: 8, 32>}, {pipeline_mode = #tpu.pipeline_mode<synchronous>, transform_indices = @transform_2, window_bounds = array<i64: 8, 1>}, {transform_indices = @transform_3, window_bounds = array<i64: 1, 16, 8, 384>}]} {
    %cst = arith.constant 0.000000e+00 : bf16
    %0 = vector.broadcast %cst : bf16 to vector<5x384xbf16>
    %c27 = arith.constant 27 : index
    %c0 = arith.constant 0 : index
    %1 = vector.load %arg5[%c27, %c0] : memref<32x384xbf16, #tpu.memory_space<vmem>>, vector<5x384xbf16>
    tpu.vector_store %arg5[%c27, %c0], %0 {strides = array<i32>} : memref<32x384xbf16, #tpu.memory_space<vmem>>, vector<5x384xbf16>,
    %c0_i32 = arith.constant 0 : i32
    %c16_i32 = arith.constant 16 : i32
    %2 = arith.addi %c0_i32, %c16_i32 : i32
    %c1_i32 = arith.constant 1 : i32
    scf.for %arg6 = %c0_i32 to %2 step %c1_i32  : i32 {
      %c1_i32_1 = arith.constant 1 : i32
      %3 = arith.muli %arg6, %c1_i32_1 : i32
      %c0_i32_2 = arith.constant 0 : i32
      %4 = arith.addi %c0_i32_2, %3 : i32
      %c2_i32 = arith.constant 2 : i32
      %5 = arith.muli %4, %c2_i32 : i32
      %c0_i32_3 = arith.constant 0 : i32
      %6 = arith.addi %5, %c0_i32_3 : i32
      %c0_4 = arith.constant 0 : index
      %7 = arith.index_cast %6 : i32 to index
      %c0_5 = arith.constant 0 : index
      %c0_6 = arith.constant 0 : index
      %8 = vector.load %arg1[%c0_4, %7, %c0_5, %c0_6] : memref<1x33x4x512xbf16, #tpu.memory_space<vmem>>, vector<1x1x4x512xbf16>
      %9 = vector.shape_cast %8 : vector<1x1x4x512xbf16> to vector<4x512xbf16>
      %10 = vector.extract_strided_slice %9 {offsets = [0, 0], sizes = [1, 384], strides = [1, 1]} : vector<4x512xbf16> to vector<1x384xbf16>
      %c0_7 = arith.constant 0 : index
      %c0_8 = arith.constant 0 : index
      %11 = vector.load %arg5[%c0_7, %c0_8] : memref<32x384xbf16, #tpu.memory_space<vmem>>, vector<1x384xbf16>
      tpu.vector_store %arg5[%c0_7, %c0_8], %10 {strides = array<i32>} : memref<32x384xbf16, #tpu.memory_space<vmem>>, vector<1x384xbf16>,
      %12 = vector.extract_strided_slice %9 {offsets = [1, 0], sizes = [1, 384], strides = [1, 1]} : vector<4x512xbf16> to vector<1x384xbf16>
      %c1 = arith.constant 1 : index
      %c0_9 = arith.constant 0 : index
      %13 = vector.load %arg5[%c1, %c0_9] : memref<32x384xbf16, #tpu.memory_space<vmem>>, vector<1x384xbf16>
      tpu.vector_store %arg5[%c1, %c0_9], %12 {strides = array<i32>} : memref<32x384xbf16, #tpu.memory_space<vmem>>, vector<1x384xbf16>,
      %14 = vector.extract_strided_slice %9 {offsets = [0, 1], sizes = [1, 384], strides = [1, 1]} : vector<4x512xbf16> to vector<1x384xbf16>
      %c2 = arith.constant 2 : index
      %c0_10 = arith.constant 0 : index
      %15 = vector.load %arg5[%c2, %c0_10] : memref<32x384xbf16, #tpu.memory_space<vmem>>, vector<1x384xbf16>
      tpu.vector_store %arg5[%c2, %c0_10], %14 {strides = array<i32>} : memref<32x384xbf16, #tpu.memory_space<vmem>>, vector<1x384xbf16>,
      %16 = vector.extract_strided_slice %9 {offsets = [2, 0], sizes = [1, 384], strides = [1, 1]} : vector<4x512xbf16> to vector<1x384xbf16>
      %c3 = arith.constant 3 : index
      %c0_11 = arith.constant 0 : index
      %17 = vector.load %arg5[%c3, %c0_11] : memref<32x384xbf16, #tpu.memory_space<vmem>>, vector<1x384xbf16>
      tpu.vector_store %arg5[%c3, %c0_11], %16 {strides = array<i32>} : memref<32x384xbf16, #tpu.memory_space<vmem>>, vector<1x384xbf16>,
      %18 = vector.extract_strided_slice %9 {offsets = [3, 0], sizes = [1, 384], strides = [1, 1]} : vector<4x512xbf16> to vector<1x384xbf16>
      %c4 = arith.constant 4 : index
      %c0_12 = arith.constant 0 : index
      %19 = vector.load %arg5[%c4, %c0_12] : memref<32x384xbf16, #tpu.memory_space<vmem>>, vector<1x384xbf16>
      tpu.vector_store %arg5[%c4, %c0_12], %18 {strides = array<i32>} : memref<32x384xbf16, #tpu.memory_space<vmem>>, vector<1x384xbf16>,
      %20 = vector.extract_strided_slice %9 {offsets = [2, 1], sizes = [1, 384], strides = [1, 1]} : vector<4x512xbf16> to vector<1x384xbf16>
      %c5 = arith.constant 5 : index
      %c0_13 = arith.constant 0 : index
      %21 = vector.load %arg5[%c5, %c0_13] : memref<32x384xbf16, #tpu.memory_space<vmem>>, vector<1x384xbf16>
      tpu.vector_store %arg5[%c5, %c0_13], %20 {strides = array<i32>} : memref<32x384xbf16, #tpu.memory_space<vmem>>, vector<1x384xbf16>,
      %22 = vector.extract_strided_slice %9 {offsets = [0, 17], sizes = [1, 384], strides = [1, 1]} : vector<4x512xbf16> to vector<1x384xbf16>
      %c6 = arith.constant 6 : index
      %c0_14 = arith.constant 0 : index
      %23 = vector.load %arg5[%c6, %c0_14] : memref<32x384xbf16, #tpu.memory_space<vmem>>, vector<1x384xbf16>
      tpu.vector_store %arg5[%c6, %c0_14], %22 {strides = array<i32>} : memref<32x384xbf16, #tpu.memory_space<vmem>>, vector<1x384xbf16>,
      %24 = vector.extract_strided_slice %9 {offsets = [1, 17], sizes = [1, 384], strides = [1, 1]} : vector<4x512xbf16> to vector<1x384xbf16>
      %c7 = arith.constant 7 : index
      %c0_15 = arith.constant 0 : index
      %25 = vector.load %arg5[%c7, %c0_15] : memref<32x384xbf16, #tpu.memory_space<vmem>>, vector<1x384xbf16>
      tpu.vector_store %arg5[%c7, %c0_15], %24 {strides = array<i32>} : memref<32x384xbf16, #tpu.memory_space<vmem>>, vector<1x384xbf16>,
      %26 = vector.extract_strided_slice %9 {offsets = [0, 18], sizes = [1, 384], strides = [1, 1]} : vector<4x512xbf16> to vector<1x384xbf16>
      %c8 = arith.constant 8 : index
      %c0_16 = arith.constant 0 : index
      %27 = vector.load %arg5[%c8, %c0_16] : memref<32x384xbf16, #tpu.memory_space<vmem>>, vector<1x384xbf16>
      tpu.vector_store %arg5[%c8, %c0_16], %26 {strides = array<i32>} : memref<32x384xbf16, #tpu.memory_space<vmem>>, vector<1x384xbf16>,
      %c2_i32_17 = arith.constant 2 : i32
      %28 = arith.muli %4, %c2_i32_17 : i32
      %c1_i32_18 = arith.constant 1 : i32
      %29 = arith.addi %28, %c1_i32_18 : i32
      %c0_19 = arith.constant 0 : index
      %30 = arith.index_cast %29 : i32 to index
      %c0_20 = arith.constant 0 : index
      %c0_21 = arith.constant 0 : index
      %31 = vector.load %arg1[%c0_19, %30, %c0_20, %c0_21] : memref<1x33x4x512xbf16, #tpu.memory_space<vmem>>, vector<1x1x4x512xbf16>
      %32 = vector.shape_cast %31 : vector<1x1x4x512xbf16> to vector<4x512xbf16>
      %33 = vector.extract_strided_slice %32 {offsets = [0, 0], sizes = [1, 384], strides = [1, 1]} : vector<4x512xbf16> to vector<1x384xbf16>
      %c9 = arith.constant 9 : index
      %c0_22 = arith.constant 0 : index
      %34 = vector.load %arg5[%c9, %c0_22] : memref<32x384xbf16, #tpu.memory_space<vmem>>, vector<1x384xbf16>
      tpu.vector_store %arg5[%c9, %c0_22], %33 {strides = array<i32>} : memref<32x384xbf16, #tpu.memory_space<vmem>>, vector<1x384xbf16>,
      %35 = vector.extract_strided_slice %32 {offsets = [1, 0], sizes = [1, 384], strides = [1, 1]} : vector<4x512xbf16> to vector<1x384xbf16>
      %c10 = arith.constant 10 : index
      %c0_23 = arith.constant 0 : index
      %36 = vector.load %arg5[%c10, %c0_23] : memref<32x384xbf16, #tpu.memory_space<vmem>>, vector<1x384xbf16>
      tpu.vector_store %arg5[%c10, %c0_23], %35 {strides = array<i32>} : memref<32x384xbf16, #tpu.memory_space<vmem>>, vector<1x384xbf16>,
      %37 = vector.extract_strided_slice %32 {offsets = [0, 1], sizes = [1, 384], strides = [1, 1]} : vector<4x512xbf16> to vector<1x384xbf16>
      %c11 = arith.constant 11 : index
      %c0_24 = arith.constant 0 : index
      %38 = vector.load %arg5[%c11, %c0_24] : memref<32x384xbf16, #tpu.memory_space<vmem>>, vector<1x384xbf16>
      tpu.vector_store %arg5[%c11, %c0_24], %37 {strides = array<i32>} : memref<32x384xbf16, #tpu.memory_space<vmem>>, vector<1x384xbf16>,
      %39 = vector.extract_strided_slice %32 {offsets = [2, 0], sizes = [1, 384], strides = [1, 1]} : vector<4x512xbf16> to vector<1x384xbf16>
      %c12 = arith.constant 12 : index
      %c0_25 = arith.constant 0 : index
      %40 = vector.load %arg5[%c12, %c0_25] : memref<32x384xbf16, #tpu.memory_space<vmem>>, vector<1x384xbf16>
      tpu.vector_store %arg5[%c12, %c0_25], %39 {strides = array<i32>} : memref<32x384xbf16, #tpu.memory_space<vmem>>, vector<1x384xbf16>,
      %41 = vector.extract_strided_slice %32 {offsets = [3, 0], sizes = [1, 384], strides = [1, 1]} : vector<4x512xbf16> to vector<1x384xbf16>
      %c13 = arith.constant 13 : index
      %c0_26 = arith.constant 0 : index
      %42 = vector.load %arg5[%c13, %c0_26] : memref<32x384xbf16, #tpu.memory_space<vmem>>, vector<1x384xbf16>
      tpu.vector_store %arg5[%c13, %c0_26], %41 {strides = array<i32>} : memref<32x384xbf16, #tpu.memory_space<vmem>>, vector<1x384xbf16>,
      %43 = vector.extract_strided_slice %32 {offsets = [2, 1], sizes = [1, 384], strides = [1, 1]} : vector<4x512xbf16> to vector<1x384xbf16>
      %c14 = arith.constant 14 : index
      %c0_27 = arith.constant 0 : index
      %44 = vector.load %arg5[%c14, %c0_27] : memref<32x384xbf16, #tpu.memory_space<vmem>>, vector<1x384xbf16>
      tpu.vector_store %arg5[%c14, %c0_27], %43 {strides = array<i32>} : memref<32x384xbf16, #tpu.memory_space<vmem>>, vector<1x384xbf16>,
      %45 = vector.extract_strided_slice %32 {offsets = [0, 17], sizes = [1, 384], strides = [1, 1]} : vector<4x512xbf16> to vector<1x384xbf16>
      %c15 = arith.constant 15 : index
      %c0_28 = arith.constant 0 : index
      %46 = vector.load %arg5[%c15, %c0_28] : memref<32x384xbf16, #tpu.memory_space<vmem>>, vector<1x384xbf16>
      tpu.vector_store %arg5[%c15, %c0_28], %45 {strides = array<i32>} : memref<32x384xbf16, #tpu.memory_space<vmem>>, vector<1x384xbf16>,
      %47 = vector.extract_strided_slice %32 {offsets = [1, 17], sizes = [1, 384], strides = [1, 1]} : vector<4x512xbf16> to vector<1x384xbf16>
      %c16 = arith.constant 16 : index
      %c0_29 = arith.constant 0 : index
      %48 = vector.load %arg5[%c16, %c0_29] : memref<32x384xbf16, #tpu.memory_space<vmem>>, vector<1x384xbf16>
      tpu.vector_store %arg5[%c16, %c0_29], %47 {strides = array<i32>} : memref<32x384xbf16, #tpu.memory_space<vmem>>, vector<1x384xbf16>,
      %49 = vector.extract_strided_slice %32 {offsets = [0, 18], sizes = [1, 384], strides = [1, 1]} : vector<4x512xbf16> to vector<1x384xbf16>
      %c17 = arith.constant 17 : index
      %c0_30 = arith.constant 0 : index
      %50 = vector.load %arg5[%c17, %c0_30] : memref<32x384xbf16, #tpu.memory_space<vmem>>, vector<1x384xbf16>
      tpu.vector_store %arg5[%c17, %c0_30], %49 {strides = array<i32>} : memref<32x384xbf16, #tpu.memory_space<vmem>>, vector<1x384xbf16>,
      %c2_i32_31 = arith.constant 2 : i32
      %51 = arith.muli %4, %c2_i32_31 : i32
      %c2_i32_32 = arith.constant 2 : i32
      %52 = arith.addi %51, %c2_i32_32 : i32
      %c0_33 = arith.constant 0 : index
      %53 = arith.index_cast %52 : i32 to index
      %c0_34 = arith.constant 0 : index
      %c0_35 = arith.constant 0 : index
      %54 = vector.load %arg1[%c0_33, %53, %c0_34, %c0_35] : memref<1x33x4x512xbf16, #tpu.memory_space<vmem>>, vector<1x1x4x512xbf16>
      %55 = vector.shape_cast %54 : vector<1x1x4x512xbf16> to vector<4x512xbf16>
      %56 = vector.extract_strided_slice %55 {offsets = [0, 0], sizes = [1, 384], strides = [1, 1]} : vector<4x512xbf16> to vector<1x384xbf16>
      %c18 = arith.constant 18 : index
      %c0_36 = arith.constant 0 : index
      %57 = vector.load %arg5[%c18, %c0_36] : memref<32x384xbf16, #tpu.memory_space<vmem>>, vector<1x384xbf16>
      tpu.vector_store %arg5[%c18, %c0_36], %56 {strides = array<i32>} : memref<32x384xbf16, #tpu.memory_space<vmem>>, vector<1x384xbf16>,
      %58 = vector.extract_strided_slice %55 {offsets = [1, 0], sizes = [1, 384], strides = [1, 1]} : vector<4x512xbf16> to vector<1x384xbf16>
      %c19 = arith.constant 19 : index
      %c0_37 = arith.constant 0 : index
      %59 = vector.load %arg5[%c19, %c0_37] : memref<32x384xbf16, #tpu.memory_space<vmem>>, vector<1x384xbf16>
      tpu.vector_store %arg5[%c19, %c0_37], %58 {strides = array<i32>} : memref<32x384xbf16, #tpu.memory_space<vmem>>, vector<1x384xbf16>,
      %60 = vector.extract_strided_slice %55 {offsets = [0, 1], sizes = [1, 384], strides = [1, 1]} : vector<4x512xbf16> to vector<1x384xbf16>
      %c20 = arith.constant 20 : index
      %c0_38 = arith.constant 0 : index
      %61 = vector.load %arg5[%c20, %c0_38] : memref<32x384xbf16, #tpu.memory_space<vmem>>, vector<1x384xbf16>
      tpu.vector_store %arg5[%c20, %c0_38], %60 {strides = array<i32>} : memref<32x384xbf16, #tpu.memory_space<vmem>>, vector<1x384xbf16>,
      %62 = vector.extract_strided_slice %55 {offsets = [2, 0], sizes = [1, 384], strides = [1, 1]} : vector<4x512xbf16> to vector<1x384xbf16>
      %c21 = arith.constant 21 : index
      %c0_39 = arith.constant 0 : index
      %63 = vector.load %arg5[%c21, %c0_39] : memref<32x384xbf16, #tpu.memory_space<vmem>>, vector<1x384xbf16>
      tpu.vector_store %arg5[%c21, %c0_39], %62 {strides = array<i32>} : memref<32x384xbf16, #tpu.memory_space<vmem>>, vector<1x384xbf16>,
      %64 = vector.extract_strided_slice %55 {offsets = [3, 0], sizes = [1, 384], strides = [1, 1]} : vector<4x512xbf16> to vector<1x384xbf16>
      %c22 = arith.constant 22 : index
      %c0_40 = arith.constant 0 : index
      %65 = vector.load %arg5[%c22, %c0_40] : memref<32x384xbf16, #tpu.memory_space<vmem>>, vector<1x384xbf16>
      tpu.vector_store %arg5[%c22, %c0_40], %64 {strides = array<i32>} : memref<32x384xbf16, #tpu.memory_space<vmem>>, vector<1x384xbf16>,
      %66 = vector.extract_strided_slice %55 {offsets = [2, 1], sizes = [1, 384], strides = [1, 1]} : vector<4x512xbf16> to vector<1x384xbf16>
      %c23 = arith.constant 23 : index
      %c0_41 = arith.constant 0 : index
      %67 = vector.load %arg5[%c23, %c0_41] : memref<32x384xbf16, #tpu.memory_space<vmem>>, vector<1x384xbf16>
      tpu.vector_store %arg5[%c23, %c0_41], %66 {strides = array<i32>} : memref<32x384xbf16, #tpu.memory_space<vmem>>, vector<1x384xbf16>,
      %68 = vector.extract_strided_slice %55 {offsets = [0, 17], sizes = [1, 384], strides = [1, 1]} : vector<4x512xbf16> to vector<1x384xbf16>
      %c24 = arith.constant 24 : index
      %c0_42 = arith.constant 0 : index
      %69 = vector.load %arg5[%c24, %c0_42] : memref<32x384xbf16, #tpu.memory_space<vmem>>, vector<1x384xbf16>
      tpu.vector_store %arg5[%c24, %c0_42], %68 {strides = array<i32>} : memref<32x384xbf16, #tpu.memory_space<vmem>>, vector<1x384xbf16>,
      %70 = vector.extract_strided_slice %55 {offsets = [1, 17], sizes = [1, 384], strides = [1, 1]} : vector<4x512xbf16> to vector<1x384xbf16>
      %c25 = arith.constant 25 : index
      %c0_43 = arith.constant 0 : index
      %71 = vector.load %arg5[%c25, %c0_43] : memref<32x384xbf16, #tpu.memory_space<vmem>>, vector<1x384xbf16>
      tpu.vector_store %arg5[%c25, %c0_43], %70 {strides = array<i32>} : memref<32x384xbf16, #tpu.memory_space<vmem>>, vector<1x384xbf16>,
      %72 = vector.extract_strided_slice %55 {offsets = [0, 18], sizes = [1, 384], strides = [1, 1]} : vector<4x512xbf16> to vector<1x384xbf16>
      %c26 = arith.constant 26 : index
      %c0_44 = arith.constant 0 : index
      %73 = vector.load %arg5[%c26, %c0_44] : memref<32x384xbf16, #tpu.memory_space<vmem>>, vector<1x384xbf16>
      tpu.vector_store %arg5[%c26, %c0_44], %72 {strides = array<i32>} : memref<32x384xbf16, #tpu.memory_space<vmem>>, vector<1x384xbf16>,
      %c0_45 = arith.constant 0 : index
      %c0_46 = arith.constant 0 : index
      %74 = vector.load %arg2[%c0_45, %c0_46] : memref<8x32xbf16, #tpu.memory_space<vmem>>, vector<8x32xbf16>
      %c0_47 = arith.constant 0 : index
      %c0_48 = arith.constant 0 : index
      %75 = vector.load %arg5[%c0_47, %c0_48] : memref<32x384xbf16, #tpu.memory_space<vmem>>, vector<32x384xbf16>
      %cst_49 = arith.constant dense<0.000000e+00> : vector<8x384xf32>
      %76 = tpu.matmul %74, %75, %cst_49 {dimension_numbers = #tpu.dot_dimension_numbers<[1], [0], [0], [1], [0, 0, 1, 1], [], []>} : vector<8x32xbf16>, vector<32x384xbf16>, vector<8x384xf32> -> vector<8x384xf32>
      %c0_50 = arith.constant 0 : index
      %c0_51 = arith.constant 0 : index
      %77 = vector.load %arg3[%c0_50, %c0_51] : memref<8x1xf32, #tpu.memory_space<vmem>>, vector<8x1xf32>
      %78 = vector.broadcast %77 : vector<8x1xf32> to vector<8x384xf32>
      %79 = arith.addf %76, %78 : vector<8x384xf32>
      %cst_52 = arith.constant 0.000000e+00 : f32
      %80 = vector.broadcast %cst_52 : f32 to vector<8x384xf32>
      %81 = arith.maximumf %79, %80 : vector<8x384xf32>
      %82 = arith.truncf %81 : vector<8x384xf32> to vector<8x384xbf16>
      %c0_53 = arith.constant 0 : index
      %83 = arith.index_cast %4 : i32 to index
      %c0_54 = arith.constant 0 : index
      %c0_55 = arith.constant 0 : index
      %84 = vector.load %arg4[%c0_53, %83, %c0_54, %c0_55] : memref<1x16x8x384xbf16, #tpu.memory_space<vmem>>, vector<1x1x8x384xbf16>
      %85 = vector.shape_cast %84 : vector<1x1x8x384xbf16> to vector<8x384xbf16>
      %86 = vector.shape_cast %82 : vector<8x384xbf16> to vector<1x1x8x384xbf16>
      tpu.vector_store %arg4[%c0_53, %83, %c0_54, %c0_55], %86 {strides = array<i32>} : memref<1x16x8x384xbf16, #tpu.memory_space<vmem>>, vector<1x1x8x384xbf16>,
    }
    %c16_i32_0 = arith.constant 16 : i32
    return
  }
  func.func @transform_0(%arg0: i32) -> (i32, i32, i32, i32) {
    %c0_i32 = arith.constant 0 : i32
    %c0_i32_0 = arith.constant 0 : i32
    %c0_i32_1 = arith.constant 0 : i32
    %c0_i32_2 = arith.constant 0 : i32
    return %arg0, %c0_i32, %c0_i32_0, %c0_i32_1 : i32, i32, i32, i32
  }
  func.func @transform_1(%arg0: i32) -> (i32, i32) {
    %c0_i32 = arith.constant 0 : i32
    %c0_i32_0 = arith.constant 0 : i32
    %c0_i32_1 = arith.constant 0 : i32
    return %c0_i32, %c0_i32_0 : i32, i32
  }
  func.func @transform_2(%arg0: i32) -> (i32, i32) {
    %c0_i32 = arith.constant 0 : i32
    %c0_i32_0 = arith.constant 0 : i32
    %c0_i32_1 = arith.constant 0 : i32
    return %c0_i32, %c0_i32_0 : i32, i32
  }
  func.func @transform_3(%arg0: i32) -> (i32, i32, i32, i32) {
    %c0_i32 = arith.constant 0 : i32
    %c0_i32_0 = arith.constant 0 : i32
    %c0_i32_1 = arith.constant 0 : i32
    %c0_i32_2 = arith.constant 0 : i32
    return %arg0, %c0_i32, %c0_i32_0, %c0_i32_1 : i32, i32, i32, i32
  }
}

module attributes {stable_mosaic.version = 11 : i64} {
  func.func @kernel(%arg0: i32, %arg1: memref<1x18x8x512xbf16, #tpu.memory_space<vmem>>, %arg2: memref<8x216xbf16, #tpu.memory_space<vmem>>, %arg3: memref<8x1xf32, #tpu.memory_space<vmem>>, %arg4: memref<1x16x8x384xbf16, #tpu.memory_space<vmem>>, %arg5: memref<216x384xbf16, #tpu.memory_space<vmem>>) attributes {dimension_semantics = [#tpu.dimension_semantics<parallel>], iteration_bounds = array<i64: 4>, scalar_prefetch = 0 : i64, scratch_operands = 1 : i64, tpu.core_type = #tpu.core_type<tc>, window_params = [{transform_indices = @transform_0, window_bounds = array<i64: 1, 18, 8, 512>}, {pipeline_mode = #tpu.pipeline_mode<synchronous>, transform_indices = @transform_1, window_bounds = array<i64: 8, 216>}, {pipeline_mode = #tpu.pipeline_mode<synchronous>, transform_indices = @transform_2, window_bounds = array<i64: 8, 1>}, {transform_indices = @transform_3, window_bounds = array<i64: 1, 16, 8, 384>}]} {
    %c0_i32 = arith.constant 0 : i32
    %c16_i32 = arith.constant 16 : i32
    %0 = arith.addi %c0_i32, %c16_i32 : i32
    %c1_i32 = arith.constant 1 : i32
    scf.for %arg6 = %c0_i32 to %0 step %c1_i32  : i32 {
      %c1_i32_1 = arith.constant 1 : i32
      %1 = arith.muli %arg6, %c1_i32_1 : i32
      %c0_i32_2 = arith.constant 0 : i32
      %2 = arith.addi %c0_i32_2, %1 : i32
      %c1_i32_3 = arith.constant 1 : i32
      %3 = arith.muli %2, %c1_i32_3 : i32
      %c0_i32_4 = arith.constant 0 : i32
      %4 = arith.addi %3, %c0_i32_4 : i32
      %c0 = arith.constant 0 : index
      %5 = arith.index_cast %4 : i32 to index
      %c0_5 = arith.constant 0 : index
      %c0_6 = arith.constant 0 : index
      %6 = vector.load %arg1[%c0, %5, %c0_5, %c0_6] : memref<1x18x8x512xbf16, #tpu.memory_space<vmem>>, vector<1x1x8x512xbf16>
      %7 = vector.shape_cast %6 : vector<1x1x8x512xbf16> to vector<8x512xbf16>
      %8 = vector.extract_strided_slice %7 {offsets = [0, 0], sizes = [8, 384], strides = [1, 1]} : vector<8x512xbf16> to vector<8x384xbf16>
      %c0_7 = arith.constant 0 : index
      %c0_8 = arith.constant 0 : index
      %9 = vector.load %arg5[%c0_7, %c0_8] : memref<216x384xbf16, #tpu.memory_space<vmem>>, vector<8x384xbf16>
      tpu.vector_store %arg5[%c0_7, %c0_8], %8 {strides = array<i32>} : memref<216x384xbf16, #tpu.memory_space<vmem>>, vector<8x384xbf16>,
      %10 = vector.extract_strided_slice %7 {offsets = [0, 1], sizes = [8, 384], strides = [1, 1]} : vector<8x512xbf16> to vector<8x384xbf16>
      %c8 = arith.constant 8 : index
      %c0_9 = arith.constant 0 : index
      %11 = vector.load %arg5[%c8, %c0_9] : memref<216x384xbf16, #tpu.memory_space<vmem>>, vector<8x384xbf16>
      tpu.vector_store %arg5[%c8, %c0_9], %10 {strides = array<i32>} : memref<216x384xbf16, #tpu.memory_space<vmem>>, vector<8x384xbf16>,
      %12 = vector.extract_strided_slice %7 {offsets = [0, 2], sizes = [8, 384], strides = [1, 1]} : vector<8x512xbf16> to vector<8x384xbf16>
      %c16 = arith.constant 16 : index
      %c0_10 = arith.constant 0 : index
      %13 = vector.load %arg5[%c16, %c0_10] : memref<216x384xbf16, #tpu.memory_space<vmem>>, vector<8x384xbf16>
      tpu.vector_store %arg5[%c16, %c0_10], %12 {strides = array<i32>} : memref<216x384xbf16, #tpu.memory_space<vmem>>, vector<8x384xbf16>,
      %14 = vector.extract_strided_slice %7 {offsets = [0, 18], sizes = [8, 384], strides = [1, 1]} : vector<8x512xbf16> to vector<8x384xbf16>
      %c24 = arith.constant 24 : index
      %c0_11 = arith.constant 0 : index
      %15 = vector.load %arg5[%c24, %c0_11] : memref<216x384xbf16, #tpu.memory_space<vmem>>, vector<8x384xbf16>
      tpu.vector_store %arg5[%c24, %c0_11], %14 {strides = array<i32>} : memref<216x384xbf16, #tpu.memory_space<vmem>>, vector<8x384xbf16>,
      %16 = vector.extract_strided_slice %7 {offsets = [0, 19], sizes = [8, 384], strides = [1, 1]} : vector<8x512xbf16> to vector<8x384xbf16>
      %c32 = arith.constant 32 : index
      %c0_12 = arith.constant 0 : index
      %17 = vector.load %arg5[%c32, %c0_12] : memref<216x384xbf16, #tpu.memory_space<vmem>>, vector<8x384xbf16>
      tpu.vector_store %arg5[%c32, %c0_12], %16 {strides = array<i32>} : memref<216x384xbf16, #tpu.memory_space<vmem>>, vector<8x384xbf16>,
      %18 = vector.extract_strided_slice %7 {offsets = [0, 20], sizes = [8, 384], strides = [1, 1]} : vector<8x512xbf16> to vector<8x384xbf16>
      %c40 = arith.constant 40 : index
      %c0_13 = arith.constant 0 : index
      %19 = vector.load %arg5[%c40, %c0_13] : memref<216x384xbf16, #tpu.memory_space<vmem>>, vector<8x384xbf16>
      tpu.vector_store %arg5[%c40, %c0_13], %18 {strides = array<i32>} : memref<216x384xbf16, #tpu.memory_space<vmem>>, vector<8x384xbf16>,
      %20 = vector.extract_strided_slice %7 {offsets = [0, 36], sizes = [8, 384], strides = [1, 1]} : vector<8x512xbf16> to vector<8x384xbf16>
      %c48 = arith.constant 48 : index
      %c0_14 = arith.constant 0 : index
      %21 = vector.load %arg5[%c48, %c0_14] : memref<216x384xbf16, #tpu.memory_space<vmem>>, vector<8x384xbf16>
      tpu.vector_store %arg5[%c48, %c0_14], %20 {strides = array<i32>} : memref<216x384xbf16, #tpu.memory_space<vmem>>, vector<8x384xbf16>,
      %22 = vector.extract_strided_slice %7 {offsets = [0, 37], sizes = [8, 384], strides = [1, 1]} : vector<8x512xbf16> to vector<8x384xbf16>
      %c56 = arith.constant 56 : index
      %c0_15 = arith.constant 0 : index
      %23 = vector.load %arg5[%c56, %c0_15] : memref<216x384xbf16, #tpu.memory_space<vmem>>, vector<8x384xbf16>
      tpu.vector_store %arg5[%c56, %c0_15], %22 {strides = array<i32>} : memref<216x384xbf16, #tpu.memory_space<vmem>>, vector<8x384xbf16>,
      %24 = vector.extract_strided_slice %7 {offsets = [0, 38], sizes = [8, 384], strides = [1, 1]} : vector<8x512xbf16> to vector<8x384xbf16>
      %c64 = arith.constant 64 : index
      %c0_16 = arith.constant 0 : index
      %25 = vector.load %arg5[%c64, %c0_16] : memref<216x384xbf16, #tpu.memory_space<vmem>>, vector<8x384xbf16>
      tpu.vector_store %arg5[%c64, %c0_16], %24 {strides = array<i32>} : memref<216x384xbf16, #tpu.memory_space<vmem>>, vector<8x384xbf16>,
      %c1_i32_17 = arith.constant 1 : i32
      %26 = arith.muli %2, %c1_i32_17 : i32
      %c1_i32_18 = arith.constant 1 : i32
      %27 = arith.addi %26, %c1_i32_18 : i32
      %c0_19 = arith.constant 0 : index
      %28 = arith.index_cast %27 : i32 to index
      %c0_20 = arith.constant 0 : index
      %c0_21 = arith.constant 0 : index
      %29 = vector.load %arg1[%c0_19, %28, %c0_20, %c0_21] : memref<1x18x8x512xbf16, #tpu.memory_space<vmem>>, vector<1x1x8x512xbf16>
      %30 = vector.shape_cast %29 : vector<1x1x8x512xbf16> to vector<8x512xbf16>
      %31 = vector.extract_strided_slice %30 {offsets = [0, 0], sizes = [8, 384], strides = [1, 1]} : vector<8x512xbf16> to vector<8x384xbf16>
      %c72 = arith.constant 72 : index
      %c0_22 = arith.constant 0 : index
      %32 = vector.load %arg5[%c72, %c0_22] : memref<216x384xbf16, #tpu.memory_space<vmem>>, vector<8x384xbf16>
      tpu.vector_store %arg5[%c72, %c0_22], %31 {strides = array<i32>} : memref<216x384xbf16, #tpu.memory_space<vmem>>, vector<8x384xbf16>,
      %33 = vector.extract_strided_slice %30 {offsets = [0, 1], sizes = [8, 384], strides = [1, 1]} : vector<8x512xbf16> to vector<8x384xbf16>
      %c80 = arith.constant 80 : index
      %c0_23 = arith.constant 0 : index
      %34 = vector.load %arg5[%c80, %c0_23] : memref<216x384xbf16, #tpu.memory_space<vmem>>, vector<8x384xbf16>
      tpu.vector_store %arg5[%c80, %c0_23], %33 {strides = array<i32>} : memref<216x384xbf16, #tpu.memory_space<vmem>>, vector<8x384xbf16>,
      %35 = vector.extract_strided_slice %30 {offsets = [0, 2], sizes = [8, 384], strides = [1, 1]} : vector<8x512xbf16> to vector<8x384xbf16>
      %c88 = arith.constant 88 : index
      %c0_24 = arith.constant 0 : index
      %36 = vector.load %arg5[%c88, %c0_24] : memref<216x384xbf16, #tpu.memory_space<vmem>>, vector<8x384xbf16>
      tpu.vector_store %arg5[%c88, %c0_24], %35 {strides = array<i32>} : memref<216x384xbf16, #tpu.memory_space<vmem>>, vector<8x384xbf16>,
      %37 = vector.extract_strided_slice %30 {offsets = [0, 18], sizes = [8, 384], strides = [1, 1]} : vector<8x512xbf16> to vector<8x384xbf16>
      %c96 = arith.constant 96 : index
      %c0_25 = arith.constant 0 : index
      %38 = vector.load %arg5[%c96, %c0_25] : memref<216x384xbf16, #tpu.memory_space<vmem>>, vector<8x384xbf16>
      tpu.vector_store %arg5[%c96, %c0_25], %37 {strides = array<i32>} : memref<216x384xbf16, #tpu.memory_space<vmem>>, vector<8x384xbf16>,
      %39 = vector.extract_strided_slice %30 {offsets = [0, 19], sizes = [8, 384], strides = [1, 1]} : vector<8x512xbf16> to vector<8x384xbf16>
      %c104 = arith.constant 104 : index
      %c0_26 = arith.constant 0 : index
      %40 = vector.load %arg5[%c104, %c0_26] : memref<216x384xbf16, #tpu.memory_space<vmem>>, vector<8x384xbf16>
      tpu.vector_store %arg5[%c104, %c0_26], %39 {strides = array<i32>} : memref<216x384xbf16, #tpu.memory_space<vmem>>, vector<8x384xbf16>,
      %41 = vector.extract_strided_slice %30 {offsets = [0, 20], sizes = [8, 384], strides = [1, 1]} : vector<8x512xbf16> to vector<8x384xbf16>
      %c112 = arith.constant 112 : index
      %c0_27 = arith.constant 0 : index
      %42 = vector.load %arg5[%c112, %c0_27] : memref<216x384xbf16, #tpu.memory_space<vmem>>, vector<8x384xbf16>
      tpu.vector_store %arg5[%c112, %c0_27], %41 {strides = array<i32>} : memref<216x384xbf16, #tpu.memory_space<vmem>>, vector<8x384xbf16>,
      %43 = vector.extract_strided_slice %30 {offsets = [0, 36], sizes = [8, 384], strides = [1, 1]} : vector<8x512xbf16> to vector<8x384xbf16>
      %c120 = arith.constant 120 : index
      %c0_28 = arith.constant 0 : index
      %44 = vector.load %arg5[%c120, %c0_28] : memref<216x384xbf16, #tpu.memory_space<vmem>>, vector<8x384xbf16>
      tpu.vector_store %arg5[%c120, %c0_28], %43 {strides = array<i32>} : memref<216x384xbf16, #tpu.memory_space<vmem>>, vector<8x384xbf16>,
      %45 = vector.extract_strided_slice %30 {offsets = [0, 37], sizes = [8, 384], strides = [1, 1]} : vector<8x512xbf16> to vector<8x384xbf16>
      %c128 = arith.constant 128 : index
      %c0_29 = arith.constant 0 : index
      %46 = vector.load %arg5[%c128, %c0_29] : memref<216x384xbf16, #tpu.memory_space<vmem>>, vector<8x384xbf16>
      tpu.vector_store %arg5[%c128, %c0_29], %45 {strides = array<i32>} : memref<216x384xbf16, #tpu.memory_space<vmem>>, vector<8x384xbf16>,
      %47 = vector.extract_strided_slice %30 {offsets = [0, 38], sizes = [8, 384], strides = [1, 1]} : vector<8x512xbf16> to vector<8x384xbf16>
      %c136 = arith.constant 136 : index
      %c0_30 = arith.constant 0 : index
      %48 = vector.load %arg5[%c136, %c0_30] : memref<216x384xbf16, #tpu.memory_space<vmem>>, vector<8x384xbf16>
      tpu.vector_store %arg5[%c136, %c0_30], %47 {strides = array<i32>} : memref<216x384xbf16, #tpu.memory_space<vmem>>, vector<8x384xbf16>,
      %c1_i32_31 = arith.constant 1 : i32
      %49 = arith.muli %2, %c1_i32_31 : i32
      %c2_i32 = arith.constant 2 : i32
      %50 = arith.addi %49, %c2_i32 : i32
      %c0_32 = arith.constant 0 : index
      %51 = arith.index_cast %50 : i32 to index
      %c0_33 = arith.constant 0 : index
      %c0_34 = arith.constant 0 : index
      %52 = vector.load %arg1[%c0_32, %51, %c0_33, %c0_34] : memref<1x18x8x512xbf16, #tpu.memory_space<vmem>>, vector<1x1x8x512xbf16>
      %53 = vector.shape_cast %52 : vector<1x1x8x512xbf16> to vector<8x512xbf16>
      %54 = vector.extract_strided_slice %53 {offsets = [0, 0], sizes = [8, 384], strides = [1, 1]} : vector<8x512xbf16> to vector<8x384xbf16>
      %c144 = arith.constant 144 : index
      %c0_35 = arith.constant 0 : index
      %55 = vector.load %arg5[%c144, %c0_35] : memref<216x384xbf16, #tpu.memory_space<vmem>>, vector<8x384xbf16>
      tpu.vector_store %arg5[%c144, %c0_35], %54 {strides = array<i32>} : memref<216x384xbf16, #tpu.memory_space<vmem>>, vector<8x384xbf16>,
      %56 = vector.extract_strided_slice %53 {offsets = [0, 1], sizes = [8, 384], strides = [1, 1]} : vector<8x512xbf16> to vector<8x384xbf16>
      %c152 = arith.constant 152 : index
      %c0_36 = arith.constant 0 : index
      %57 = vector.load %arg5[%c152, %c0_36] : memref<216x384xbf16, #tpu.memory_space<vmem>>, vector<8x384xbf16>
      tpu.vector_store %arg5[%c152, %c0_36], %56 {strides = array<i32>} : memref<216x384xbf16, #tpu.memory_space<vmem>>, vector<8x384xbf16>,
      %58 = vector.extract_strided_slice %53 {offsets = [0, 2], sizes = [8, 384], strides = [1, 1]} : vector<8x512xbf16> to vector<8x384xbf16>
      %c160 = arith.constant 160 : index
      %c0_37 = arith.constant 0 : index
      %59 = vector.load %arg5[%c160, %c0_37] : memref<216x384xbf16, #tpu.memory_space<vmem>>, vector<8x384xbf16>
      tpu.vector_store %arg5[%c160, %c0_37], %58 {strides = array<i32>} : memref<216x384xbf16, #tpu.memory_space<vmem>>, vector<8x384xbf16>,
      %60 = vector.extract_strided_slice %53 {offsets = [0, 18], sizes = [8, 384], strides = [1, 1]} : vector<8x512xbf16> to vector<8x384xbf16>
      %c168 = arith.constant 168 : index
      %c0_38 = arith.constant 0 : index
      %61 = vector.load %arg5[%c168, %c0_38] : memref<216x384xbf16, #tpu.memory_space<vmem>>, vector<8x384xbf16>
      tpu.vector_store %arg5[%c168, %c0_38], %60 {strides = array<i32>} : memref<216x384xbf16, #tpu.memory_space<vmem>>, vector<8x384xbf16>,
      %62 = vector.extract_strided_slice %53 {offsets = [0, 19], sizes = [8, 384], strides = [1, 1]} : vector<8x512xbf16> to vector<8x384xbf16>
      %c176 = arith.constant 176 : index
      %c0_39 = arith.constant 0 : index
      %63 = vector.load %arg5[%c176, %c0_39] : memref<216x384xbf16, #tpu.memory_space<vmem>>, vector<8x384xbf16>
      tpu.vector_store %arg5[%c176, %c0_39], %62 {strides = array<i32>} : memref<216x384xbf16, #tpu.memory_space<vmem>>, vector<8x384xbf16>,
      %64 = vector.extract_strided_slice %53 {offsets = [0, 20], sizes = [8, 384], strides = [1, 1]} : vector<8x512xbf16> to vector<8x384xbf16>
      %c184 = arith.constant 184 : index
      %c0_40 = arith.constant 0 : index
      %65 = vector.load %arg5[%c184, %c0_40] : memref<216x384xbf16, #tpu.memory_space<vmem>>, vector<8x384xbf16>
      tpu.vector_store %arg5[%c184, %c0_40], %64 {strides = array<i32>} : memref<216x384xbf16, #tpu.memory_space<vmem>>, vector<8x384xbf16>,
      %66 = vector.extract_strided_slice %53 {offsets = [0, 36], sizes = [8, 384], strides = [1, 1]} : vector<8x512xbf16> to vector<8x384xbf16>
      %c192 = arith.constant 192 : index
      %c0_41 = arith.constant 0 : index
      %67 = vector.load %arg5[%c192, %c0_41] : memref<216x384xbf16, #tpu.memory_space<vmem>>, vector<8x384xbf16>
      tpu.vector_store %arg5[%c192, %c0_41], %66 {strides = array<i32>} : memref<216x384xbf16, #tpu.memory_space<vmem>>, vector<8x384xbf16>,
      %68 = vector.extract_strided_slice %53 {offsets = [0, 37], sizes = [8, 384], strides = [1, 1]} : vector<8x512xbf16> to vector<8x384xbf16>
      %c200 = arith.constant 200 : index
      %c0_42 = arith.constant 0 : index
      %69 = vector.load %arg5[%c200, %c0_42] : memref<216x384xbf16, #tpu.memory_space<vmem>>, vector<8x384xbf16>
      tpu.vector_store %arg5[%c200, %c0_42], %68 {strides = array<i32>} : memref<216x384xbf16, #tpu.memory_space<vmem>>, vector<8x384xbf16>,
      %70 = vector.extract_strided_slice %53 {offsets = [0, 38], sizes = [8, 384], strides = [1, 1]} : vector<8x512xbf16> to vector<8x384xbf16>
      %c208 = arith.constant 208 : index
      %c0_43 = arith.constant 0 : index
      %71 = vector.load %arg5[%c208, %c0_43] : memref<216x384xbf16, #tpu.memory_space<vmem>>, vector<8x384xbf16>
      tpu.vector_store %arg5[%c208, %c0_43], %70 {strides = array<i32>} : memref<216x384xbf16, #tpu.memory_space<vmem>>, vector<8x384xbf16>,
      %c0_44 = arith.constant 0 : index
      %c0_45 = arith.constant 0 : index
      %72 = vector.load %arg2[%c0_44, %c0_45] : memref<8x216xbf16, #tpu.memory_space<vmem>>, vector<8x216xbf16>
      %c0_46 = arith.constant 0 : index
      %c0_47 = arith.constant 0 : index
      %73 = vector.load %arg5[%c0_46, %c0_47] : memref<216x384xbf16, #tpu.memory_space<vmem>>, vector<216x384xbf16>
      %cst = arith.constant dense<0.000000e+00> : vector<8x384xf32>
      %74 = tpu.matmul %72, %73, %cst {dimension_numbers = #tpu.dot_dimension_numbers<[1], [0], [0], [1], [0, 0, 1, 1], [], []>} : vector<8x216xbf16>, vector<216x384xbf16>, vector<8x384xf32> -> vector<8x384xf32>
      %c0_48 = arith.constant 0 : index
      %c0_49 = arith.constant 0 : index
      %75 = vector.load %arg3[%c0_48, %c0_49] : memref<8x1xf32, #tpu.memory_space<vmem>>, vector<8x1xf32>
      %76 = vector.broadcast %75 : vector<8x1xf32> to vector<8x384xf32>
      %77 = arith.addf %74, %76 : vector<8x384xf32>
      %cst_50 = arith.constant 0.000000e+00 : f32
      %78 = vector.broadcast %cst_50 : f32 to vector<8x384xf32>
      %79 = arith.maximumf %77, %78 : vector<8x384xf32>
      %80 = arith.truncf %79 : vector<8x384xf32> to vector<8x384xbf16>
      %c0_51 = arith.constant 0 : index
      %81 = arith.index_cast %2 : i32 to index
      %c0_52 = arith.constant 0 : index
      %c0_53 = arith.constant 0 : index
      %82 = vector.load %arg4[%c0_51, %81, %c0_52, %c0_53] : memref<1x16x8x384xbf16, #tpu.memory_space<vmem>>, vector<1x1x8x384xbf16>
      %83 = vector.shape_cast %82 : vector<1x1x8x384xbf16> to vector<8x384xbf16>
      %84 = vector.shape_cast %80 : vector<8x384xbf16> to vector<1x1x8x384xbf16>
      tpu.vector_store %arg4[%c0_51, %81, %c0_52, %c0_53], %84 {strides = array<i32>} : memref<1x16x8x384xbf16, #tpu.memory_space<vmem>>, vector<1x1x8x384xbf16>,
    }
    %c16_i32_0 = arith.constant 16 : i32
    return
  }
  func.func @transform_0(%arg0: i32) -> (i32, i32, i32, i32) {
    %c0_i32 = arith.constant 0 : i32
    %c0_i32_0 = arith.constant 0 : i32
    %c0_i32_1 = arith.constant 0 : i32
    %c0_i32_2 = arith.constant 0 : i32
    return %arg0, %c0_i32, %c0_i32_0, %c0_i32_1 : i32, i32, i32, i32
  }
  func.func @transform_1(%arg0: i32) -> (i32, i32) {
    %c0_i32 = arith.constant 0 : i32
    %c0_i32_0 = arith.constant 0 : i32
    %c0_i32_1 = arith.constant 0 : i32
    return %c0_i32, %c0_i32_0 : i32, i32
  }
  func.func @transform_2(%arg0: i32) -> (i32, i32) {
    %c0_i32 = arith.constant 0 : i32
    %c0_i32_0 = arith.constant 0 : i32
    %c0_i32_1 = arith.constant 0 : i32
    return %c0_i32, %c0_i32_0 : i32, i32
  }
  func.func @transform_3(%arg0: i32) -> (i32, i32, i32, i32) {
    %c0_i32 = arith.constant 0 : i32
    %c0_i32_0 = arith.constant 0 : i32
    %c0_i32_1 = arith.constant 0 : i32
    %c0_i32_2 = arith.constant 0 : i32
    return %arg0, %c0_i32, %c0_i32_0, %c0_i32_1 : i32, i32, i32, i32
  }
}

module attributes {stable_mosaic.version = 11 : i64} {
  func.func @kernel(%arg0: i32, %arg1: memref<1x18x8x512xbf16, #tpu.memory_space<vmem>>, %arg2: memref<8x216xbf16, #tpu.memory_space<vmem>>, %arg3: memref<8x1xf32, #tpu.memory_space<vmem>>, %arg4: memref<1x16x8x384xbf16, #tpu.memory_space<vmem>>, %arg5: memref<1x16x8x384xbf16, #tpu.memory_space<vmem>>, %arg6: memref<216x384xbf16, #tpu.memory_space<vmem>>) attributes {dimension_semantics = [#tpu.dimension_semantics<parallel>], iteration_bounds = array<i64: 4>, scalar_prefetch = 0 : i64, scratch_operands = 1 : i64, tpu.core_type = #tpu.core_type<tc>, window_params = [{transform_indices = @transform_0, window_bounds = array<i64: 1, 18, 8, 512>}, {pipeline_mode = #tpu.pipeline_mode<synchronous>, transform_indices = @transform_1, window_bounds = array<i64: 8, 216>}, {pipeline_mode = #tpu.pipeline_mode<synchronous>, transform_indices = @transform_2, window_bounds = array<i64: 8, 1>}, {transform_indices = @transform_3, window_bounds = array<i64: 1, 16, 8, 384>}, {transform_indices = @transform_4, window_bounds = array<i64: 1, 16, 8, 384>}]} {
    %c0_i32 = arith.constant 0 : i32
    %c16_i32 = arith.constant 16 : i32
    %0 = arith.addi %c0_i32, %c16_i32 : i32
    %c1_i32 = arith.constant 1 : i32
    scf.for %arg7 = %c0_i32 to %0 step %c1_i32  : i32 {
      %c1_i32_1 = arith.constant 1 : i32
      %1 = arith.muli %arg7, %c1_i32_1 : i32
      %c0_i32_2 = arith.constant 0 : i32
      %2 = arith.addi %c0_i32_2, %1 : i32
      %c1_i32_3 = arith.constant 1 : i32
      %3 = arith.muli %2, %c1_i32_3 : i32
      %c0_i32_4 = arith.constant 0 : i32
      %4 = arith.addi %3, %c0_i32_4 : i32
      %c0 = arith.constant 0 : index
      %5 = arith.index_cast %4 : i32 to index
      %c0_5 = arith.constant 0 : index
      %c0_6 = arith.constant 0 : index
      %6 = vector.load %arg1[%c0, %5, %c0_5, %c0_6] : memref<1x18x8x512xbf16, #tpu.memory_space<vmem>>, vector<1x1x8x512xbf16>
      %7 = vector.shape_cast %6 : vector<1x1x8x512xbf16> to vector<8x512xbf16>
      %8 = vector.extract_strided_slice %7 {offsets = [0, 0], sizes = [8, 384], strides = [1, 1]} : vector<8x512xbf16> to vector<8x384xbf16>
      %c0_7 = arith.constant 0 : index
      %c0_8 = arith.constant 0 : index
      %9 = vector.load %arg6[%c0_7, %c0_8] : memref<216x384xbf16, #tpu.memory_space<vmem>>, vector<8x384xbf16>
      tpu.vector_store %arg6[%c0_7, %c0_8], %8 {strides = array<i32>} : memref<216x384xbf16, #tpu.memory_space<vmem>>, vector<8x384xbf16>,
      %10 = vector.extract_strided_slice %7 {offsets = [0, 1], sizes = [8, 384], strides = [1, 1]} : vector<8x512xbf16> to vector<8x384xbf16>
      %c8 = arith.constant 8 : index
      %c0_9 = arith.constant 0 : index
      %11 = vector.load %arg6[%c8, %c0_9] : memref<216x384xbf16, #tpu.memory_space<vmem>>, vector<8x384xbf16>
      tpu.vector_store %arg6[%c8, %c0_9], %10 {strides = array<i32>} : memref<216x384xbf16, #tpu.memory_space<vmem>>, vector<8x384xbf16>,
      %12 = vector.extract_strided_slice %7 {offsets = [0, 2], sizes = [8, 384], strides = [1, 1]} : vector<8x512xbf16> to vector<8x384xbf16>
      %c16 = arith.constant 16 : index
      %c0_10 = arith.constant 0 : index
      %13 = vector.load %arg6[%c16, %c0_10] : memref<216x384xbf16, #tpu.memory_space<vmem>>, vector<8x384xbf16>
      tpu.vector_store %arg6[%c16, %c0_10], %12 {strides = array<i32>} : memref<216x384xbf16, #tpu.memory_space<vmem>>, vector<8x384xbf16>,
      %14 = vector.extract_strided_slice %7 {offsets = [0, 18], sizes = [8, 384], strides = [1, 1]} : vector<8x512xbf16> to vector<8x384xbf16>
      %c24 = arith.constant 24 : index
      %c0_11 = arith.constant 0 : index
      %15 = vector.load %arg6[%c24, %c0_11] : memref<216x384xbf16, #tpu.memory_space<vmem>>, vector<8x384xbf16>
      tpu.vector_store %arg6[%c24, %c0_11], %14 {strides = array<i32>} : memref<216x384xbf16, #tpu.memory_space<vmem>>, vector<8x384xbf16>,
      %16 = vector.extract_strided_slice %7 {offsets = [0, 19], sizes = [8, 384], strides = [1, 1]} : vector<8x512xbf16> to vector<8x384xbf16>
      %c32 = arith.constant 32 : index
      %c0_12 = arith.constant 0 : index
      %17 = vector.load %arg6[%c32, %c0_12] : memref<216x384xbf16, #tpu.memory_space<vmem>>, vector<8x384xbf16>
      tpu.vector_store %arg6[%c32, %c0_12], %16 {strides = array<i32>} : memref<216x384xbf16, #tpu.memory_space<vmem>>, vector<8x384xbf16>,
      %18 = vector.extract_strided_slice %7 {offsets = [0, 20], sizes = [8, 384], strides = [1, 1]} : vector<8x512xbf16> to vector<8x384xbf16>
      %c40 = arith.constant 40 : index
      %c0_13 = arith.constant 0 : index
      %19 = vector.load %arg6[%c40, %c0_13] : memref<216x384xbf16, #tpu.memory_space<vmem>>, vector<8x384xbf16>
      tpu.vector_store %arg6[%c40, %c0_13], %18 {strides = array<i32>} : memref<216x384xbf16, #tpu.memory_space<vmem>>, vector<8x384xbf16>,
      %20 = vector.extract_strided_slice %7 {offsets = [0, 36], sizes = [8, 384], strides = [1, 1]} : vector<8x512xbf16> to vector<8x384xbf16>
      %c48 = arith.constant 48 : index
      %c0_14 = arith.constant 0 : index
      %21 = vector.load %arg6[%c48, %c0_14] : memref<216x384xbf16, #tpu.memory_space<vmem>>, vector<8x384xbf16>
      tpu.vector_store %arg6[%c48, %c0_14], %20 {strides = array<i32>} : memref<216x384xbf16, #tpu.memory_space<vmem>>, vector<8x384xbf16>,
      %22 = vector.extract_strided_slice %7 {offsets = [0, 37], sizes = [8, 384], strides = [1, 1]} : vector<8x512xbf16> to vector<8x384xbf16>
      %c56 = arith.constant 56 : index
      %c0_15 = arith.constant 0 : index
      %23 = vector.load %arg6[%c56, %c0_15] : memref<216x384xbf16, #tpu.memory_space<vmem>>, vector<8x384xbf16>
      tpu.vector_store %arg6[%c56, %c0_15], %22 {strides = array<i32>} : memref<216x384xbf16, #tpu.memory_space<vmem>>, vector<8x384xbf16>,
      %24 = vector.extract_strided_slice %7 {offsets = [0, 38], sizes = [8, 384], strides = [1, 1]} : vector<8x512xbf16> to vector<8x384xbf16>
      %c64 = arith.constant 64 : index
      %c0_16 = arith.constant 0 : index
      %25 = vector.load %arg6[%c64, %c0_16] : memref<216x384xbf16, #tpu.memory_space<vmem>>, vector<8x384xbf16>
      tpu.vector_store %arg6[%c64, %c0_16], %24 {strides = array<i32>} : memref<216x384xbf16, #tpu.memory_space<vmem>>, vector<8x384xbf16>,
      %c1_i32_17 = arith.constant 1 : i32
      %26 = arith.muli %2, %c1_i32_17 : i32
      %c1_i32_18 = arith.constant 1 : i32
      %27 = arith.addi %26, %c1_i32_18 : i32
      %c0_19 = arith.constant 0 : index
      %28 = arith.index_cast %27 : i32 to index
      %c0_20 = arith.constant 0 : index
      %c0_21 = arith.constant 0 : index
      %29 = vector.load %arg1[%c0_19, %28, %c0_20, %c0_21] : memref<1x18x8x512xbf16, #tpu.memory_space<vmem>>, vector<1x1x8x512xbf16>
      %30 = vector.shape_cast %29 : vector<1x1x8x512xbf16> to vector<8x512xbf16>
      %31 = vector.extract_strided_slice %30 {offsets = [0, 0], sizes = [8, 384], strides = [1, 1]} : vector<8x512xbf16> to vector<8x384xbf16>
      %c72 = arith.constant 72 : index
      %c0_22 = arith.constant 0 : index
      %32 = vector.load %arg6[%c72, %c0_22] : memref<216x384xbf16, #tpu.memory_space<vmem>>, vector<8x384xbf16>
      tpu.vector_store %arg6[%c72, %c0_22], %31 {strides = array<i32>} : memref<216x384xbf16, #tpu.memory_space<vmem>>, vector<8x384xbf16>,
      %33 = vector.extract_strided_slice %30 {offsets = [0, 1], sizes = [8, 384], strides = [1, 1]} : vector<8x512xbf16> to vector<8x384xbf16>
      %c80 = arith.constant 80 : index
      %c0_23 = arith.constant 0 : index
      %34 = vector.load %arg6[%c80, %c0_23] : memref<216x384xbf16, #tpu.memory_space<vmem>>, vector<8x384xbf16>
      tpu.vector_store %arg6[%c80, %c0_23], %33 {strides = array<i32>} : memref<216x384xbf16, #tpu.memory_space<vmem>>, vector<8x384xbf16>,
      %35 = vector.extract_strided_slice %30 {offsets = [0, 2], sizes = [8, 384], strides = [1, 1]} : vector<8x512xbf16> to vector<8x384xbf16>
      %c88 = arith.constant 88 : index
      %c0_24 = arith.constant 0 : index
      %36 = vector.load %arg6[%c88, %c0_24] : memref<216x384xbf16, #tpu.memory_space<vmem>>, vector<8x384xbf16>
      tpu.vector_store %arg6[%c88, %c0_24], %35 {strides = array<i32>} : memref<216x384xbf16, #tpu.memory_space<vmem>>, vector<8x384xbf16>,
      %37 = vector.extract_strided_slice %30 {offsets = [0, 18], sizes = [8, 384], strides = [1, 1]} : vector<8x512xbf16> to vector<8x384xbf16>
      %c96 = arith.constant 96 : index
      %c0_25 = arith.constant 0 : index
      %38 = vector.load %arg6[%c96, %c0_25] : memref<216x384xbf16, #tpu.memory_space<vmem>>, vector<8x384xbf16>
      tpu.vector_store %arg6[%c96, %c0_25], %37 {strides = array<i32>} : memref<216x384xbf16, #tpu.memory_space<vmem>>, vector<8x384xbf16>,
      %39 = vector.extract_strided_slice %30 {offsets = [0, 19], sizes = [8, 384], strides = [1, 1]} : vector<8x512xbf16> to vector<8x384xbf16>
      %c104 = arith.constant 104 : index
      %c0_26 = arith.constant 0 : index
      %40 = vector.load %arg6[%c104, %c0_26] : memref<216x384xbf16, #tpu.memory_space<vmem>>, vector<8x384xbf16>
      tpu.vector_store %arg6[%c104, %c0_26], %39 {strides = array<i32>} : memref<216x384xbf16, #tpu.memory_space<vmem>>, vector<8x384xbf16>,
      %41 = vector.extract_strided_slice %30 {offsets = [0, 20], sizes = [8, 384], strides = [1, 1]} : vector<8x512xbf16> to vector<8x384xbf16>
      %c112 = arith.constant 112 : index
      %c0_27 = arith.constant 0 : index
      %42 = vector.load %arg6[%c112, %c0_27] : memref<216x384xbf16, #tpu.memory_space<vmem>>, vector<8x384xbf16>
      tpu.vector_store %arg6[%c112, %c0_27], %41 {strides = array<i32>} : memref<216x384xbf16, #tpu.memory_space<vmem>>, vector<8x384xbf16>,
      %43 = vector.extract_strided_slice %30 {offsets = [0, 36], sizes = [8, 384], strides = [1, 1]} : vector<8x512xbf16> to vector<8x384xbf16>
      %c120 = arith.constant 120 : index
      %c0_28 = arith.constant 0 : index
      %44 = vector.load %arg6[%c120, %c0_28] : memref<216x384xbf16, #tpu.memory_space<vmem>>, vector<8x384xbf16>
      tpu.vector_store %arg6[%c120, %c0_28], %43 {strides = array<i32>} : memref<216x384xbf16, #tpu.memory_space<vmem>>, vector<8x384xbf16>,
      %45 = vector.extract_strided_slice %30 {offsets = [0, 37], sizes = [8, 384], strides = [1, 1]} : vector<8x512xbf16> to vector<8x384xbf16>
      %c128 = arith.constant 128 : index
      %c0_29 = arith.constant 0 : index
      %46 = vector.load %arg6[%c128, %c0_29] : memref<216x384xbf16, #tpu.memory_space<vmem>>, vector<8x384xbf16>
      tpu.vector_store %arg6[%c128, %c0_29], %45 {strides = array<i32>} : memref<216x384xbf16, #tpu.memory_space<vmem>>, vector<8x384xbf16>,
      %47 = vector.extract_strided_slice %30 {offsets = [0, 38], sizes = [8, 384], strides = [1, 1]} : vector<8x512xbf16> to vector<8x384xbf16>
      %c136 = arith.constant 136 : index
      %c0_30 = arith.constant 0 : index
      %48 = vector.load %arg6[%c136, %c0_30] : memref<216x384xbf16, #tpu.memory_space<vmem>>, vector<8x384xbf16>
      tpu.vector_store %arg6[%c136, %c0_30], %47 {strides = array<i32>} : memref<216x384xbf16, #tpu.memory_space<vmem>>, vector<8x384xbf16>,
      %c1_i32_31 = arith.constant 1 : i32
      %49 = arith.muli %2, %c1_i32_31 : i32
      %c2_i32 = arith.constant 2 : i32
      %50 = arith.addi %49, %c2_i32 : i32
      %c0_32 = arith.constant 0 : index
      %51 = arith.index_cast %50 : i32 to index
      %c0_33 = arith.constant 0 : index
      %c0_34 = arith.constant 0 : index
      %52 = vector.load %arg1[%c0_32, %51, %c0_33, %c0_34] : memref<1x18x8x512xbf16, #tpu.memory_space<vmem>>, vector<1x1x8x512xbf16>
      %53 = vector.shape_cast %52 : vector<1x1x8x512xbf16> to vector<8x512xbf16>
      %54 = vector.extract_strided_slice %53 {offsets = [0, 0], sizes = [8, 384], strides = [1, 1]} : vector<8x512xbf16> to vector<8x384xbf16>
      %c144 = arith.constant 144 : index
      %c0_35 = arith.constant 0 : index
      %55 = vector.load %arg6[%c144, %c0_35] : memref<216x384xbf16, #tpu.memory_space<vmem>>, vector<8x384xbf16>
      tpu.vector_store %arg6[%c144, %c0_35], %54 {strides = array<i32>} : memref<216x384xbf16, #tpu.memory_space<vmem>>, vector<8x384xbf16>,
      %56 = vector.extract_strided_slice %53 {offsets = [0, 1], sizes = [8, 384], strides = [1, 1]} : vector<8x512xbf16> to vector<8x384xbf16>
      %c152 = arith.constant 152 : index
      %c0_36 = arith.constant 0 : index
      %57 = vector.load %arg6[%c152, %c0_36] : memref<216x384xbf16, #tpu.memory_space<vmem>>, vector<8x384xbf16>
      tpu.vector_store %arg6[%c152, %c0_36], %56 {strides = array<i32>} : memref<216x384xbf16, #tpu.memory_space<vmem>>, vector<8x384xbf16>,
      %58 = vector.extract_strided_slice %53 {offsets = [0, 2], sizes = [8, 384], strides = [1, 1]} : vector<8x512xbf16> to vector<8x384xbf16>
      %c160 = arith.constant 160 : index
      %c0_37 = arith.constant 0 : index
      %59 = vector.load %arg6[%c160, %c0_37] : memref<216x384xbf16, #tpu.memory_space<vmem>>, vector<8x384xbf16>
      tpu.vector_store %arg6[%c160, %c0_37], %58 {strides = array<i32>} : memref<216x384xbf16, #tpu.memory_space<vmem>>, vector<8x384xbf16>,
      %60 = vector.extract_strided_slice %53 {offsets = [0, 18], sizes = [8, 384], strides = [1, 1]} : vector<8x512xbf16> to vector<8x384xbf16>
      %c168 = arith.constant 168 : index
      %c0_38 = arith.constant 0 : index
      %61 = vector.load %arg6[%c168, %c0_38] : memref<216x384xbf16, #tpu.memory_space<vmem>>, vector<8x384xbf16>
      tpu.vector_store %arg6[%c168, %c0_38], %60 {strides = array<i32>} : memref<216x384xbf16, #tpu.memory_space<vmem>>, vector<8x384xbf16>,
      %62 = vector.extract_strided_slice %53 {offsets = [0, 19], sizes = [8, 384], strides = [1, 1]} : vector<8x512xbf16> to vector<8x384xbf16>
      %c176 = arith.constant 176 : index
      %c0_39 = arith.constant 0 : index
      %63 = vector.load %arg6[%c176, %c0_39] : memref<216x384xbf16, #tpu.memory_space<vmem>>, vector<8x384xbf16>
      tpu.vector_store %arg6[%c176, %c0_39], %62 {strides = array<i32>} : memref<216x384xbf16, #tpu.memory_space<vmem>>, vector<8x384xbf16>,
      %64 = vector.extract_strided_slice %53 {offsets = [0, 20], sizes = [8, 384], strides = [1, 1]} : vector<8x512xbf16> to vector<8x384xbf16>
      %c184 = arith.constant 184 : index
      %c0_40 = arith.constant 0 : index
      %65 = vector.load %arg6[%c184, %c0_40] : memref<216x384xbf16, #tpu.memory_space<vmem>>, vector<8x384xbf16>
      tpu.vector_store %arg6[%c184, %c0_40], %64 {strides = array<i32>} : memref<216x384xbf16, #tpu.memory_space<vmem>>, vector<8x384xbf16>,
      %66 = vector.extract_strided_slice %53 {offsets = [0, 36], sizes = [8, 384], strides = [1, 1]} : vector<8x512xbf16> to vector<8x384xbf16>
      %c192 = arith.constant 192 : index
      %c0_41 = arith.constant 0 : index
      %67 = vector.load %arg6[%c192, %c0_41] : memref<216x384xbf16, #tpu.memory_space<vmem>>, vector<8x384xbf16>
      tpu.vector_store %arg6[%c192, %c0_41], %66 {strides = array<i32>} : memref<216x384xbf16, #tpu.memory_space<vmem>>, vector<8x384xbf16>,
      %68 = vector.extract_strided_slice %53 {offsets = [0, 37], sizes = [8, 384], strides = [1, 1]} : vector<8x512xbf16> to vector<8x384xbf16>
      %c200 = arith.constant 200 : index
      %c0_42 = arith.constant 0 : index
      %69 = vector.load %arg6[%c200, %c0_42] : memref<216x384xbf16, #tpu.memory_space<vmem>>, vector<8x384xbf16>
      tpu.vector_store %arg6[%c200, %c0_42], %68 {strides = array<i32>} : memref<216x384xbf16, #tpu.memory_space<vmem>>, vector<8x384xbf16>,
      %70 = vector.extract_strided_slice %53 {offsets = [0, 38], sizes = [8, 384], strides = [1, 1]} : vector<8x512xbf16> to vector<8x384xbf16>
      %c208 = arith.constant 208 : index
      %c0_43 = arith.constant 0 : index
      %71 = vector.load %arg6[%c208, %c0_43] : memref<216x384xbf16, #tpu.memory_space<vmem>>, vector<8x384xbf16>
      tpu.vector_store %arg6[%c208, %c0_43], %70 {strides = array<i32>} : memref<216x384xbf16, #tpu.memory_space<vmem>>, vector<8x384xbf16>,
      %c0_44 = arith.constant 0 : index
      %c0_45 = arith.constant 0 : index
      %72 = vector.load %arg2[%c0_44, %c0_45] : memref<8x216xbf16, #tpu.memory_space<vmem>>, vector<8x216xbf16>
      %c0_46 = arith.constant 0 : index
      %c0_47 = arith.constant 0 : index
      %73 = vector.load %arg6[%c0_46, %c0_47] : memref<216x384xbf16, #tpu.memory_space<vmem>>, vector<216x384xbf16>
      %cst = arith.constant dense<0.000000e+00> : vector<8x384xf32>
      %74 = tpu.matmul %72, %73, %cst {dimension_numbers = #tpu.dot_dimension_numbers<[1], [0], [0], [1], [0, 0, 1, 1], [], []>} : vector<8x216xbf16>, vector<216x384xbf16>, vector<8x384xf32> -> vector<8x384xf32>
      %c0_48 = arith.constant 0 : index
      %c0_49 = arith.constant 0 : index
      %75 = vector.load %arg3[%c0_48, %c0_49] : memref<8x1xf32, #tpu.memory_space<vmem>>, vector<8x1xf32>
      %76 = vector.broadcast %75 : vector<8x1xf32> to vector<8x384xf32>
      %77 = arith.addf %74, %76 : vector<8x384xf32>
      %c0_50 = arith.constant 0 : index
      %78 = arith.index_cast %2 : i32 to index
      %c0_51 = arith.constant 0 : index
      %c0_52 = arith.constant 0 : index
      %79 = vector.load %arg4[%c0_50, %78, %c0_51, %c0_52] : memref<1x16x8x384xbf16, #tpu.memory_space<vmem>>, vector<1x1x8x384xbf16>
      %80 = vector.shape_cast %79 : vector<1x1x8x384xbf16> to vector<8x384xbf16>
      %81 = arith.extf %80 : vector<8x384xbf16> to vector<8x384xf32>
      %82 = arith.addf %77, %81 : vector<8x384xf32>
      %cst_53 = arith.constant 0.000000e+00 : f32
      %83 = vector.broadcast %cst_53 : f32 to vector<8x384xf32>
      %84 = arith.maximumf %82, %83 : vector<8x384xf32>
      %85 = arith.truncf %84 : vector<8x384xf32> to vector<8x384xbf16>
      %c0_54 = arith.constant 0 : index
      %86 = arith.index_cast %2 : i32 to index
      %c0_55 = arith.constant 0 : index
      %c0_56 = arith.constant 0 : index
      %87 = vector.load %arg5[%c0_54, %86, %c0_55, %c0_56] : memref<1x16x8x384xbf16, #tpu.memory_space<vmem>>, vector<1x1x8x384xbf16>
      %88 = vector.shape_cast %87 : vector<1x1x8x384xbf16> to vector<8x384xbf16>
      %89 = vector.shape_cast %85 : vector<8x384xbf16> to vector<1x1x8x384xbf16>
      tpu.vector_store %arg5[%c0_54, %86, %c0_55, %c0_56], %89 {strides = array<i32>} : memref<1x16x8x384xbf16, #tpu.memory_space<vmem>>, vector<1x1x8x384xbf16>,
    }
    %c16_i32_0 = arith.constant 16 : i32
    return
  }
  func.func @transform_0(%arg0: i32) -> (i32, i32, i32, i32) {
    %c0_i32 = arith.constant 0 : i32
    %c0_i32_0 = arith.constant 0 : i32
    %c0_i32_1 = arith.constant 0 : i32
    %c0_i32_2 = arith.constant 0 : i32
    return %arg0, %c0_i32, %c0_i32_0, %c0_i32_1 : i32, i32, i32, i32
  }
  func.func @transform_1(%arg0: i32) -> (i32, i32) {
    %c0_i32 = arith.constant 0 : i32
    %c0_i32_0 = arith.constant 0 : i32
    %c0_i32_1 = arith.constant 0 : i32
    return %c0_i32, %c0_i32_0 : i32, i32
  }
  func.func @transform_2(%arg0: i32) -> (i32, i32) {
    %c0_i32 = arith.constant 0 : i32
    %c0_i32_0 = arith.constant 0 : i32
    %c0_i32_1 = arith.constant 0 : i32
    return %c0_i32, %c0_i32_0 : i32, i32
  }
  func.func @transform_3(%arg0: i32) -> (i32, i32, i32, i32) {
    %c0_i32 = arith.constant 0 : i32
    %c0_i32_0 = arith.constant 0 : i32
    %c0_i32_1 = arith.constant 0 : i32
    %c0_i32_2 = arith.constant 0 : i32
    return %arg0, %c0_i32, %c0_i32_0, %c0_i32_1 : i32, i32, i32, i32
  }
  func.func @transform_4(%arg0: i32) -> (i32, i32, i32, i32) {
    %c0_i32 = arith.constant 0 : i32
    %c0_i32_0 = arith.constant 0 : i32
    %c0_i32_1 = arith.constant 0 : i32
    %c0_i32_2 = arith.constant 0 : i32
    return %arg0, %c0_i32, %c0_i32_0, %c0_i32_1 : i32, i32, i32, i32
  }
}

module attributes {stable_mosaic.version = 11 : i64} {
  func.func @kernel(%arg0: i32, %arg1: memref<1x15x8x128xbf16, #tpu.memory_space<vmem>>, %arg2: memref<16x8xbf16, #tpu.memory_space<vmem>>, %arg3: memref<16x1xf32, #tpu.memory_space<vmem>>, %arg4: memref<1x8x16x128xbf16, #tpu.memory_space<vmem>>, %arg5: memref<8x128xbf16, #tpu.memory_space<vmem>>) attributes {dimension_semantics = [#tpu.dimension_semantics<parallel>], iteration_bounds = array<i64: 4>, scalar_prefetch = 0 : i64, scratch_operands = 1 : i64, tpu.core_type = #tpu.core_type<tc>, window_params = [{transform_indices = @transform_0, window_bounds = array<i64: 1, 15, 8, 128>}, {pipeline_mode = #tpu.pipeline_mode<synchronous>, transform_indices = @transform_1, window_bounds = array<i64: 16, 8>}, {pipeline_mode = #tpu.pipeline_mode<synchronous>, transform_indices = @transform_2, window_bounds = array<i64: 16, 1>}, {transform_indices = @transform_3, window_bounds = array<i64: 1, 8, 16, 128>}]} {
    %c0_i32 = arith.constant 0 : i32
    %c8_i32 = arith.constant 8 : i32
    %0 = arith.addi %c0_i32, %c8_i32 : i32
    %c1_i32 = arith.constant 1 : i32
    scf.for %arg6 = %c0_i32 to %0 step %c1_i32  : i32 {
      %c1_i32_1 = arith.constant 1 : i32
      %1 = arith.muli %arg6, %c1_i32_1 : i32
      %c0_i32_2 = arith.constant 0 : i32
      %2 = arith.addi %c0_i32_2, %1 : i32
      %c2_i32 = arith.constant 2 : i32
      %3 = arith.muli %2, %c2_i32 : i32
      %c0_i32_3 = arith.constant 0 : i32
      %4 = arith.addi %3, %c0_i32_3 : i32
      %c0 = arith.constant 0 : index
      %5 = arith.index_cast %4 : i32 to index
      %c0_4 = arith.constant 0 : index
      %c0_5 = arith.constant 0 : index
      %6 = vector.load %arg1[%c0, %5, %c0_4, %c0_5] : memref<1x15x8x128xbf16, #tpu.memory_space<vmem>>, vector<1x1x8x128xbf16>
      %7 = vector.shape_cast %6 : vector<1x1x8x128xbf16> to vector<8x128xbf16>
      %c0_6 = arith.constant 0 : index
      %c0_7 = arith.constant 0 : index
      %8 = vector.load %arg5[%c0_6, %c0_7] : memref<8x128xbf16, #tpu.memory_space<vmem>>, vector<8x128xbf16>
      tpu.vector_store %arg5[%c0_6, %c0_7], %7 {strides = array<i32>} : memref<8x128xbf16, #tpu.memory_space<vmem>>, vector<8x128xbf16>,
      %c0_8 = arith.constant 0 : index
      %c0_9 = arith.constant 0 : index
      %9 = vector.load %arg2[%c0_8, %c0_9] : memref<16x8xbf16, #tpu.memory_space<vmem>>, vector<16x8xbf16>
      %c0_10 = arith.constant 0 : index
      %c0_11 = arith.constant 0 : index
      %10 = vector.load %arg5[%c0_10, %c0_11] : memref<8x128xbf16, #tpu.memory_space<vmem>>, vector<8x128xbf16>
      %cst = arith.constant dense<0.000000e+00> : vector<16x128xf32>
      %11 = tpu.matmul %9, %10, %cst {dimension_numbers = #tpu.dot_dimension_numbers<[1], [0], [0], [1], [0, 0, 1, 1], [], []>} : vector<16x8xbf16>, vector<8x128xbf16>, vector<16x128xf32> -> vector<16x128xf32>
      %c0_12 = arith.constant 0 : index
      %c0_13 = arith.constant 0 : index
      %12 = vector.load %arg3[%c0_12, %c0_13] : memref<16x1xf32, #tpu.memory_space<vmem>>, vector<16x1xf32>
      %13 = vector.broadcast %12 : vector<16x1xf32> to vector<16x128xf32>
      %14 = arith.addf %11, %13 : vector<16x128xf32>
      %15 = arith.truncf %14 : vector<16x128xf32> to vector<16x128xbf16>
      %c0_14 = arith.constant 0 : index
      %16 = arith.index_cast %2 : i32 to index
      %c0_15 = arith.constant 0 : index
      %c0_16 = arith.constant 0 : index
      %17 = vector.load %arg4[%c0_14, %16, %c0_15, %c0_16] : memref<1x8x16x128xbf16, #tpu.memory_space<vmem>>, vector<1x1x16x128xbf16>
      %18 = vector.shape_cast %17 : vector<1x1x16x128xbf16> to vector<16x128xbf16>
      %19 = vector.shape_cast %15 : vector<16x128xbf16> to vector<1x1x16x128xbf16>
      tpu.vector_store %arg4[%c0_14, %16, %c0_15, %c0_16], %19 {strides = array<i32>} : memref<1x8x16x128xbf16, #tpu.memory_space<vmem>>, vector<1x1x16x128xbf16>,
    }
    %c8_i32_0 = arith.constant 8 : i32
    return
  }
  func.func @transform_0(%arg0: i32) -> (i32, i32, i32, i32) {
    %c0_i32 = arith.constant 0 : i32
    %c0_i32_0 = arith.constant 0 : i32
    %c0_i32_1 = arith.constant 0 : i32
    %c0_i32_2 = arith.constant 0 : i32
    return %arg0, %c0_i32, %c0_i32_0, %c0_i32_1 : i32, i32, i32, i32
  }
  func.func @transform_1(%arg0: i32) -> (i32, i32) {
    %c0_i32 = arith.constant 0 : i32
    %c0_i32_0 = arith.constant 0 : i32
    %c0_i32_1 = arith.constant 0 : i32
    return %c0_i32, %c0_i32_0 : i32, i32
  }
  func.func @transform_2(%arg0: i32) -> (i32, i32) {
    %c0_i32 = arith.constant 0 : i32
    %c0_i32_0 = arith.constant 0 : i32
    %c0_i32_1 = arith.constant 0 : i32
    return %c0_i32, %c0_i32_0 : i32, i32
  }
  func.func @transform_3(%arg0: i32) -> (i32, i32, i32, i32) {
    %c0_i32 = arith.constant 0 : i32
    %c0_i32_0 = arith.constant 0 : i32
    %c0_i32_1 = arith.constant 0 : i32
    %c0_i32_2 = arith.constant 0 : i32
    return %arg0, %c0_i32, %c0_i32_0, %c0_i32_1 : i32, i32, i32, i32
  }
}

module attributes {stable_mosaic.version = 11 : i64} {
  func.func @kernel(%arg0: i32, %arg1: memref<1x17x32x256xbf16, #tpu.memory_space<vmem>>, %arg2: memref<16x216xbf16, #tpu.memory_space<vmem>>, %arg3: memref<16x1xf32, #tpu.memory_space<vmem>>, %arg4: memref<1x8x16x128xbf16, #tpu.memory_space<vmem>>, %arg5: memref<216x128xbf16, #tpu.memory_space<vmem>>) attributes {dimension_semantics = [#tpu.dimension_semantics<parallel>], iteration_bounds = array<i64: 4>, scalar_prefetch = 0 : i64, scratch_operands = 1 : i64, tpu.core_type = #tpu.core_type<tc>, window_params = [{transform_indices = @transform_0, window_bounds = array<i64: 1, 17, 32, 256>}, {pipeline_mode = #tpu.pipeline_mode<synchronous>, transform_indices = @transform_1, window_bounds = array<i64: 16, 216>}, {pipeline_mode = #tpu.pipeline_mode<synchronous>, transform_indices = @transform_2, window_bounds = array<i64: 16, 1>}, {transform_indices = @transform_3, window_bounds = array<i64: 1, 8, 16, 128>}]} {
    %c0_i32 = arith.constant 0 : i32
    %c8_i32 = arith.constant 8 : i32
    %0 = arith.addi %c0_i32, %c8_i32 : i32
    %c1_i32 = arith.constant 1 : i32
    scf.for %arg6 = %c0_i32 to %0 step %c1_i32  : i32 {
      %c1_i32_1 = arith.constant 1 : i32
      %1 = arith.muli %arg6, %c1_i32_1 : i32
      %c0_i32_2 = arith.constant 0 : i32
      %2 = arith.addi %c0_i32_2, %1 : i32
      %c2_i32 = arith.constant 2 : i32
      %3 = arith.muli %2, %c2_i32 : i32
      %c0_i32_3 = arith.constant 0 : i32
      %4 = arith.addi %3, %c0_i32_3 : i32
      %c0 = arith.constant 0 : index
      %5 = arith.index_cast %4 : i32 to index
      %c0_4 = arith.constant 0 : index
      %c0_5 = arith.constant 0 : index
      %6 = vector.load %arg1[%c0, %5, %c0_4, %c0_5] : memref<1x17x32x256xbf16, #tpu.memory_space<vmem>>, vector<1x1x32x256xbf16>
      %7 = vector.shape_cast %6 : vector<1x1x32x256xbf16> to vector<32x256xbf16>
      %8 = vector.extract_strided_slice %7 {offsets = [0, 0], sizes = [8, 128], strides = [1, 1]} : vector<32x256xbf16> to vector<8x128xbf16>
      %c0_6 = arith.constant 0 : index
      %c0_7 = arith.constant 0 : index
      %9 = vector.load %arg5[%c0_6, %c0_7] : memref<216x128xbf16, #tpu.memory_space<vmem>>, vector<8x128xbf16>
      tpu.vector_store %arg5[%c0_6, %c0_7], %8 {strides = array<i32>} : memref<216x128xbf16, #tpu.memory_space<vmem>>, vector<8x128xbf16>,
      %10 = vector.extract_strided_slice %7 {offsets = [8, 0], sizes = [8, 128], strides = [1, 1]} : vector<32x256xbf16> to vector<8x128xbf16>
      %c8 = arith.constant 8 : index
      %c0_8 = arith.constant 0 : index
      %11 = vector.load %arg5[%c8, %c0_8] : memref<216x128xbf16, #tpu.memory_space<vmem>>, vector<8x128xbf16>
      tpu.vector_store %arg5[%c8, %c0_8], %10 {strides = array<i32>} : memref<216x128xbf16, #tpu.memory_space<vmem>>, vector<8x128xbf16>,
      %12 = vector.extract_strided_slice %7 {offsets = [0, 1], sizes = [8, 128], strides = [1, 1]} : vector<32x256xbf16> to vector<8x128xbf16>
      %c16 = arith.constant 16 : index
      %c0_9 = arith.constant 0 : index
      %13 = vector.load %arg5[%c16, %c0_9] : memref<216x128xbf16, #tpu.memory_space<vmem>>, vector<8x128xbf16>
      tpu.vector_store %arg5[%c16, %c0_9], %12 {strides = array<i32>} : memref<216x128xbf16, #tpu.memory_space<vmem>>, vector<8x128xbf16>,
      %14 = vector.extract_strided_slice %7 {offsets = [16, 0], sizes = [8, 128], strides = [1, 1]} : vector<32x256xbf16> to vector<8x128xbf16>
      %c24 = arith.constant 24 : index
      %c0_10 = arith.constant 0 : index
      %15 = vector.load %arg5[%c24, %c0_10] : memref<216x128xbf16, #tpu.memory_space<vmem>>, vector<8x128xbf16>
      tpu.vector_store %arg5[%c24, %c0_10], %14 {strides = array<i32>} : memref<216x128xbf16, #tpu.memory_space<vmem>>, vector<8x128xbf16>,
      %16 = vector.extract_strided_slice %7 {offsets = [24, 0], sizes = [8, 128], strides = [1, 1]} : vector<32x256xbf16> to vector<8x128xbf16>
      %c32 = arith.constant 32 : index
      %c0_11 = arith.constant 0 : index
      %17 = vector.load %arg5[%c32, %c0_11] : memref<216x128xbf16, #tpu.memory_space<vmem>>, vector<8x128xbf16>
      tpu.vector_store %arg5[%c32, %c0_11], %16 {strides = array<i32>} : memref<216x128xbf16, #tpu.memory_space<vmem>>, vector<8x128xbf16>,
      %18 = vector.extract_strided_slice %7 {offsets = [16, 1], sizes = [8, 128], strides = [1, 1]} : vector<32x256xbf16> to vector<8x128xbf16>
      %c40 = arith.constant 40 : index
      %c0_12 = arith.constant 0 : index
      %19 = vector.load %arg5[%c40, %c0_12] : memref<216x128xbf16, #tpu.memory_space<vmem>>, vector<8x128xbf16>
      tpu.vector_store %arg5[%c40, %c0_12], %18 {strides = array<i32>} : memref<216x128xbf16, #tpu.memory_space<vmem>>, vector<8x128xbf16>,
      %20 = vector.extract_strided_slice %7 {offsets = [0, 9], sizes = [8, 128], strides = [1, 1]} : vector<32x256xbf16> to vector<8x128xbf16>
      %c48 = arith.constant 48 : index
      %c0_13 = arith.constant 0 : index
      %21 = vector.load %arg5[%c48, %c0_13] : memref<216x128xbf16, #tpu.memory_space<vmem>>, vector<8x128xbf16>
      tpu.vector_store %arg5[%c48, %c0_13], %20 {strides = array<i32>} : memref<216x128xbf16, #tpu.memory_space<vmem>>, vector<8x128xbf16>,
      %22 = vector.extract_strided_slice %7 {offsets = [8, 9], sizes = [8, 128], strides = [1, 1]} : vector<32x256xbf16> to vector<8x128xbf16>
      %c56 = arith.constant 56 : index
      %c0_14 = arith.constant 0 : index
      %23 = vector.load %arg5[%c56, %c0_14] : memref<216x128xbf16, #tpu.memory_space<vmem>>, vector<8x128xbf16>
      tpu.vector_store %arg5[%c56, %c0_14], %22 {strides = array<i32>} : memref<216x128xbf16, #tpu.memory_space<vmem>>, vector<8x128xbf16>,
      %24 = vector.extract_strided_slice %7 {offsets = [0, 10], sizes = [8, 128], strides = [1, 1]} : vector<32x256xbf16> to vector<8x128xbf16>
      %c64 = arith.constant 64 : index
      %c0_15 = arith.constant 0 : index
      %25 = vector.load %arg5[%c64, %c0_15] : memref<216x128xbf16, #tpu.memory_space<vmem>>, vector<8x128xbf16>
      tpu.vector_store %arg5[%c64, %c0_15], %24 {strides = array<i32>} : memref<216x128xbf16, #tpu.memory_space<vmem>>, vector<8x128xbf16>,
      %c2_i32_16 = arith.constant 2 : i32
      %26 = arith.muli %2, %c2_i32_16 : i32
      %c1_i32_17 = arith.constant 1 : i32
      %27 = arith.addi %26, %c1_i32_17 : i32
      %c0_18 = arith.constant 0 : index
      %28 = arith.index_cast %27 : i32 to index
      %c0_19 = arith.constant 0 : index
      %c0_20 = arith.constant 0 : index
      %29 = vector.load %arg1[%c0_18, %28, %c0_19, %c0_20] : memref<1x17x32x256xbf16, #tpu.memory_space<vmem>>, vector<1x1x32x256xbf16>
      %30 = vector.shape_cast %29 : vector<1x1x32x256xbf16> to vector<32x256xbf16>
      %31 = vector.extract_strided_slice %30 {offsets = [0, 0], sizes = [8, 128], strides = [1, 1]} : vector<32x256xbf16> to vector<8x128xbf16>
      %c72 = arith.constant 72 : index
      %c0_21 = arith.constant 0 : index
      %32 = vector.load %arg5[%c72, %c0_21] : memref<216x128xbf16, #tpu.memory_space<vmem>>, vector<8x128xbf16>
      tpu.vector_store %arg5[%c72, %c0_21], %31 {strides = array<i32>} : memref<216x128xbf16, #tpu.memory_space<vmem>>, vector<8x128xbf16>,
      %33 = vector.extract_strided_slice %30 {offsets = [8, 0], sizes = [8, 128], strides = [1, 1]} : vector<32x256xbf16> to vector<8x128xbf16>
      %c80 = arith.constant 80 : index
      %c0_22 = arith.constant 0 : index
      %34 = vector.load %arg5[%c80, %c0_22] : memref<216x128xbf16, #tpu.memory_space<vmem>>, vector<8x128xbf16>
      tpu.vector_store %arg5[%c80, %c0_22], %33 {strides = array<i32>} : memref<216x128xbf16, #tpu.memory_space<vmem>>, vector<8x128xbf16>,
      %35 = vector.extract_strided_slice %30 {offsets = [0, 1], sizes = [8, 128], strides = [1, 1]} : vector<32x256xbf16> to vector<8x128xbf16>
      %c88 = arith.constant 88 : index
      %c0_23 = arith.constant 0 : index
      %36 = vector.load %arg5[%c88, %c0_23] : memref<216x128xbf16, #tpu.memory_space<vmem>>, vector<8x128xbf16>
      tpu.vector_store %arg5[%c88, %c0_23], %35 {strides = array<i32>} : memref<216x128xbf16, #tpu.memory_space<vmem>>, vector<8x128xbf16>,
      %37 = vector.extract_strided_slice %30 {offsets = [16, 0], sizes = [8, 128], strides = [1, 1]} : vector<32x256xbf16> to vector<8x128xbf16>
      %c96 = arith.constant 96 : index
      %c0_24 = arith.constant 0 : index
      %38 = vector.load %arg5[%c96, %c0_24] : memref<216x128xbf16, #tpu.memory_space<vmem>>, vector<8x128xbf16>
      tpu.vector_store %arg5[%c96, %c0_24], %37 {strides = array<i32>} : memref<216x128xbf16, #tpu.memory_space<vmem>>, vector<8x128xbf16>,
      %39 = vector.extract_strided_slice %30 {offsets = [24, 0], sizes = [8, 128], strides = [1, 1]} : vector<32x256xbf16> to vector<8x128xbf16>
      %c104 = arith.constant 104 : index
      %c0_25 = arith.constant 0 : index
      %40 = vector.load %arg5[%c104, %c0_25] : memref<216x128xbf16, #tpu.memory_space<vmem>>, vector<8x128xbf16>
      tpu.vector_store %arg5[%c104, %c0_25], %39 {strides = array<i32>} : memref<216x128xbf16, #tpu.memory_space<vmem>>, vector<8x128xbf16>,
      %41 = vector.extract_strided_slice %30 {offsets = [16, 1], sizes = [8, 128], strides = [1, 1]} : vector<32x256xbf16> to vector<8x128xbf16>
      %c112 = arith.constant 112 : index
      %c0_26 = arith.constant 0 : index
      %42 = vector.load %arg5[%c112, %c0_26] : memref<216x128xbf16, #tpu.memory_space<vmem>>, vector<8x128xbf16>
      tpu.vector_store %arg5[%c112, %c0_26], %41 {strides = array<i32>} : memref<216x128xbf16, #tpu.memory_space<vmem>>, vector<8x128xbf16>,
      %43 = vector.extract_strided_slice %30 {offsets = [0, 9], sizes = [8, 128], strides = [1, 1]} : vector<32x256xbf16> to vector<8x128xbf16>
      %c120 = arith.constant 120 : index
      %c0_27 = arith.constant 0 : index
      %44 = vector.load %arg5[%c120, %c0_27] : memref<216x128xbf16, #tpu.memory_space<vmem>>, vector<8x128xbf16>
      tpu.vector_store %arg5[%c120, %c0_27], %43 {strides = array<i32>} : memref<216x128xbf16, #tpu.memory_space<vmem>>, vector<8x128xbf16>,
      %45 = vector.extract_strided_slice %30 {offsets = [8, 9], sizes = [8, 128], strides = [1, 1]} : vector<32x256xbf16> to vector<8x128xbf16>
      %c128 = arith.constant 128 : index
      %c0_28 = arith.constant 0 : index
      %46 = vector.load %arg5[%c128, %c0_28] : memref<216x128xbf16, #tpu.memory_space<vmem>>, vector<8x128xbf16>
      tpu.vector_store %arg5[%c128, %c0_28], %45 {strides = array<i32>} : memref<216x128xbf16, #tpu.memory_space<vmem>>, vector<8x128xbf16>,
      %47 = vector.extract_strided_slice %30 {offsets = [0, 10], sizes = [8, 128], strides = [1, 1]} : vector<32x256xbf16> to vector<8x128xbf16>
      %c136 = arith.constant 136 : index
      %c0_29 = arith.constant 0 : index
      %48 = vector.load %arg5[%c136, %c0_29] : memref<216x128xbf16, #tpu.memory_space<vmem>>, vector<8x128xbf16>
      tpu.vector_store %arg5[%c136, %c0_29], %47 {strides = array<i32>} : memref<216x128xbf16, #tpu.memory_space<vmem>>, vector<8x128xbf16>,
      %c2_i32_30 = arith.constant 2 : i32
      %49 = arith.muli %2, %c2_i32_30 : i32
      %c2_i32_31 = arith.constant 2 : i32
      %50 = arith.addi %49, %c2_i32_31 : i32
      %c0_32 = arith.constant 0 : index
      %51 = arith.index_cast %50 : i32 to index
      %c0_33 = arith.constant 0 : index
      %c0_34 = arith.constant 0 : index
      %52 = vector.load %arg1[%c0_32, %51, %c0_33, %c0_34] : memref<1x17x32x256xbf16, #tpu.memory_space<vmem>>, vector<1x1x32x256xbf16>
      %53 = vector.shape_cast %52 : vector<1x1x32x256xbf16> to vector<32x256xbf16>
      %54 = vector.extract_strided_slice %53 {offsets = [0, 0], sizes = [8, 128], strides = [1, 1]} : vector<32x256xbf16> to vector<8x128xbf16>
      %c144 = arith.constant 144 : index
      %c0_35 = arith.constant 0 : index
      %55 = vector.load %arg5[%c144, %c0_35] : memref<216x128xbf16, #tpu.memory_space<vmem>>, vector<8x128xbf16>
      tpu.vector_store %arg5[%c144, %c0_35], %54 {strides = array<i32>} : memref<216x128xbf16, #tpu.memory_space<vmem>>, vector<8x128xbf16>,
      %56 = vector.extract_strided_slice %53 {offsets = [8, 0], sizes = [8, 128], strides = [1, 1]} : vector<32x256xbf16> to vector<8x128xbf16>
      %c152 = arith.constant 152 : index
      %c0_36 = arith.constant 0 : index
      %57 = vector.load %arg5[%c152, %c0_36] : memref<216x128xbf16, #tpu.memory_space<vmem>>, vector<8x128xbf16>
      tpu.vector_store %arg5[%c152, %c0_36], %56 {strides = array<i32>} : memref<216x128xbf16, #tpu.memory_space<vmem>>, vector<8x128xbf16>,
      %58 = vector.extract_strided_slice %53 {offsets = [0, 1], sizes = [8, 128], strides = [1, 1]} : vector<32x256xbf16> to vector<8x128xbf16>
      %c160 = arith.constant 160 : index
      %c0_37 = arith.constant 0 : index
      %59 = vector.load %arg5[%c160, %c0_37] : memref<216x128xbf16, #tpu.memory_space<vmem>>, vector<8x128xbf16>
      tpu.vector_store %arg5[%c160, %c0_37], %58 {strides = array<i32>} : memref<216x128xbf16, #tpu.memory_space<vmem>>, vector<8x128xbf16>,
      %60 = vector.extract_strided_slice %53 {offsets = [16, 0], sizes = [8, 128], strides = [1, 1]} : vector<32x256xbf16> to vector<8x128xbf16>
      %c168 = arith.constant 168 : index
      %c0_38 = arith.constant 0 : index
      %61 = vector.load %arg5[%c168, %c0_38] : memref<216x128xbf16, #tpu.memory_space<vmem>>, vector<8x128xbf16>
      tpu.vector_store %arg5[%c168, %c0_38], %60 {strides = array<i32>} : memref<216x128xbf16, #tpu.memory_space<vmem>>, vector<8x128xbf16>,
      %62 = vector.extract_strided_slice %53 {offsets = [24, 0], sizes = [8, 128], strides = [1, 1]} : vector<32x256xbf16> to vector<8x128xbf16>
      %c176 = arith.constant 176 : index
      %c0_39 = arith.constant 0 : index
      %63 = vector.load %arg5[%c176, %c0_39] : memref<216x128xbf16, #tpu.memory_space<vmem>>, vector<8x128xbf16>
      tpu.vector_store %arg5[%c176, %c0_39], %62 {strides = array<i32>} : memref<216x128xbf16, #tpu.memory_space<vmem>>, vector<8x128xbf16>,
      %64 = vector.extract_strided_slice %53 {offsets = [16, 1], sizes = [8, 128], strides = [1, 1]} : vector<32x256xbf16> to vector<8x128xbf16>
      %c184 = arith.constant 184 : index
      %c0_40 = arith.constant 0 : index
      %65 = vector.load %arg5[%c184, %c0_40] : memref<216x128xbf16, #tpu.memory_space<vmem>>, vector<8x128xbf16>
      tpu.vector_store %arg5[%c184, %c0_40], %64 {strides = array<i32>} : memref<216x128xbf16, #tpu.memory_space<vmem>>, vector<8x128xbf16>,
      %66 = vector.extract_strided_slice %53 {offsets = [0, 9], sizes = [8, 128], strides = [1, 1]} : vector<32x256xbf16> to vector<8x128xbf16>
      %c192 = arith.constant 192 : index
      %c0_41 = arith.constant 0 : index
      %67 = vector.load %arg5[%c192, %c0_41] : memref<216x128xbf16, #tpu.memory_space<vmem>>, vector<8x128xbf16>
      tpu.vector_store %arg5[%c192, %c0_41], %66 {strides = array<i32>} : memref<216x128xbf16, #tpu.memory_space<vmem>>, vector<8x128xbf16>,
      %68 = vector.extract_strided_slice %53 {offsets = [8, 9], sizes = [8, 128], strides = [1, 1]} : vector<32x256xbf16> to vector<8x128xbf16>
      %c200 = arith.constant 200 : index
      %c0_42 = arith.constant 0 : index
      %69 = vector.load %arg5[%c200, %c0_42] : memref<216x128xbf16, #tpu.memory_space<vmem>>, vector<8x128xbf16>
      tpu.vector_store %arg5[%c200, %c0_42], %68 {strides = array<i32>} : memref<216x128xbf16, #tpu.memory_space<vmem>>, vector<8x128xbf16>,
      %70 = vector.extract_strided_slice %53 {offsets = [0, 10], sizes = [8, 128], strides = [1, 1]} : vector<32x256xbf16> to vector<8x128xbf16>
      %c208 = arith.constant 208 : index
      %c0_43 = arith.constant 0 : index
      %71 = vector.load %arg5[%c208, %c0_43] : memref<216x128xbf16, #tpu.memory_space<vmem>>, vector<8x128xbf16>
      tpu.vector_store %arg5[%c208, %c0_43], %70 {strides = array<i32>} : memref<216x128xbf16, #tpu.memory_space<vmem>>, vector<8x128xbf16>,
      %c0_44 = arith.constant 0 : index
      %c0_45 = arith.constant 0 : index
      %72 = vector.load %arg2[%c0_44, %c0_45] : memref<16x216xbf16, #tpu.memory_space<vmem>>, vector<16x216xbf16>
      %c0_46 = arith.constant 0 : index
      %c0_47 = arith.constant 0 : index
      %73 = vector.load %arg5[%c0_46, %c0_47] : memref<216x128xbf16, #tpu.memory_space<vmem>>, vector<216x128xbf16>
      %cst = arith.constant dense<0.000000e+00> : vector<16x128xf32>
      %74 = tpu.matmul %72, %73, %cst {dimension_numbers = #tpu.dot_dimension_numbers<[1], [0], [0], [1], [0, 0, 1, 1], [], []>} : vector<16x216xbf16>, vector<216x128xbf16>, vector<16x128xf32> -> vector<16x128xf32>
      %c0_48 = arith.constant 0 : index
      %c0_49 = arith.constant 0 : index
      %75 = vector.load %arg3[%c0_48, %c0_49] : memref<16x1xf32, #tpu.memory_space<vmem>>, vector<16x1xf32>
      %76 = vector.broadcast %75 : vector<16x1xf32> to vector<16x128xf32>
      %77 = arith.addf %74, %76 : vector<16x128xf32>
      %cst_50 = arith.constant 0.000000e+00 : f32
      %78 = vector.broadcast %cst_50 : f32 to vector<16x128xf32>
      %79 = arith.maximumf %77, %78 : vector<16x128xf32>
      %80 = arith.truncf %79 : vector<16x128xf32> to vector<16x128xbf16>
      %c0_51 = arith.constant 0 : index
      %81 = arith.index_cast %2 : i32 to index
      %c0_52 = arith.constant 0 : index
      %c0_53 = arith.constant 0 : index
      %82 = vector.load %arg4[%c0_51, %81, %c0_52, %c0_53] : memref<1x8x16x128xbf16, #tpu.memory_space<vmem>>, vector<1x1x16x128xbf16>
      %83 = vector.shape_cast %82 : vector<1x1x16x128xbf16> to vector<16x128xbf16>
      %84 = vector.shape_cast %80 : vector<16x128xbf16> to vector<1x1x16x128xbf16>
      tpu.vector_store %arg4[%c0_51, %81, %c0_52, %c0_53], %84 {strides = array<i32>} : memref<1x8x16x128xbf16, #tpu.memory_space<vmem>>, vector<1x1x16x128xbf16>,
    }
    %c8_i32_0 = arith.constant 8 : i32
    return
  }
  func.func @transform_0(%arg0: i32) -> (i32, i32, i32, i32) {
    %c0_i32 = arith.constant 0 : i32
    %c0_i32_0 = arith.constant 0 : i32
    %c0_i32_1 = arith.constant 0 : i32
    %c0_i32_2 = arith.constant 0 : i32
    return %arg0, %c0_i32, %c0_i32_0, %c0_i32_1 : i32, i32, i32, i32
  }
  func.func @transform_1(%arg0: i32) -> (i32, i32) {
    %c0_i32 = arith.constant 0 : i32
    %c0_i32_0 = arith.constant 0 : i32
    %c0_i32_1 = arith.constant 0 : i32
    return %c0_i32, %c0_i32_0 : i32, i32
  }
  func.func @transform_2(%arg0: i32) -> (i32, i32) {
    %c0_i32 = arith.constant 0 : i32
    %c0_i32_0 = arith.constant 0 : i32
    %c0_i32_1 = arith.constant 0 : i32
    return %c0_i32, %c0_i32_0 : i32, i32
  }
  func.func @transform_3(%arg0: i32) -> (i32, i32, i32, i32) {
    %c0_i32 = arith.constant 0 : i32
    %c0_i32_0 = arith.constant 0 : i32
    %c0_i32_1 = arith.constant 0 : i32
    %c0_i32_2 = arith.constant 0 : i32
    return %arg0, %c0_i32, %c0_i32_0, %c0_i32_1 : i32, i32, i32, i32
  }
}

module attributes {stable_mosaic.version = 11 : i64} {
  func.func @kernel(%arg0: i32, %arg1: memref<1x10x16x256xbf16, #tpu.memory_space<vmem>>, %arg2: memref<16x432xbf16, #tpu.memory_space<vmem>>, %arg3: memref<16x1xf32, #tpu.memory_space<vmem>>, %arg4: memref<1x8x16x128xbf16, #tpu.memory_space<vmem>>, %arg5: memref<1x8x16x128xbf16, #tpu.memory_space<vmem>>, %arg6: memref<432x128xbf16, #tpu.memory_space<vmem>>) attributes {dimension_semantics = [#tpu.dimension_semantics<parallel>], iteration_bounds = array<i64: 4>, scalar_prefetch = 0 : i64, scratch_operands = 1 : i64, tpu.core_type = #tpu.core_type<tc>, window_params = [{transform_indices = @transform_0, window_bounds = array<i64: 1, 10, 16, 256>}, {pipeline_mode = #tpu.pipeline_mode<synchronous>, transform_indices = @transform_1, window_bounds = array<i64: 16, 432>}, {pipeline_mode = #tpu.pipeline_mode<synchronous>, transform_indices = @transform_2, window_bounds = array<i64: 16, 1>}, {transform_indices = @transform_3, window_bounds = array<i64: 1, 8, 16, 128>}, {transform_indices = @transform_4, window_bounds = array<i64: 1, 8, 16, 128>}]} {
    %c0_i32 = arith.constant 0 : i32
    %c8_i32 = arith.constant 8 : i32
    %0 = arith.addi %c0_i32, %c8_i32 : i32
    %c1_i32 = arith.constant 1 : i32
    scf.for %arg7 = %c0_i32 to %0 step %c1_i32  : i32 {
      %c1_i32_1 = arith.constant 1 : i32
      %1 = arith.muli %arg7, %c1_i32_1 : i32
      %c0_i32_2 = arith.constant 0 : i32
      %2 = arith.addi %c0_i32_2, %1 : i32
      %c1_i32_3 = arith.constant 1 : i32
      %3 = arith.muli %2, %c1_i32_3 : i32
      %c0_i32_4 = arith.constant 0 : i32
      %4 = arith.addi %3, %c0_i32_4 : i32
      %c0 = arith.constant 0 : index
      %5 = arith.index_cast %4 : i32 to index
      %c0_5 = arith.constant 0 : index
      %c0_6 = arith.constant 0 : index
      %6 = vector.load %arg1[%c0, %5, %c0_5, %c0_6] : memref<1x10x16x256xbf16, #tpu.memory_space<vmem>>, vector<1x1x16x256xbf16>
      %7 = vector.shape_cast %6 : vector<1x1x16x256xbf16> to vector<16x256xbf16>
      %8 = vector.extract_strided_slice %7 {offsets = [0, 0], sizes = [16, 128], strides = [1, 1]} : vector<16x256xbf16> to vector<16x128xbf16>
      %c0_7 = arith.constant 0 : index
      %c0_8 = arith.constant 0 : index
      %9 = vector.load %arg6[%c0_7, %c0_8] : memref<432x128xbf16, #tpu.memory_space<vmem>>, vector<16x128xbf16>
      tpu.vector_store %arg6[%c0_7, %c0_8], %8 {strides = array<i32>} : memref<432x128xbf16, #tpu.memory_space<vmem>>, vector<16x128xbf16>,
      %10 = vector.extract_strided_slice %7 {offsets = [0, 1], sizes = [16, 128], strides = [1, 1]} : vector<16x256xbf16> to vector<16x128xbf16>
      %c16 = arith.constant 16 : index
      %c0_9 = arith.constant 0 : index
      %11 = vector.load %arg6[%c16, %c0_9] : memref<432x128xbf16, #tpu.memory_space<vmem>>, vector<16x128xbf16>
      tpu.vector_store %arg6[%c16, %c0_9], %10 {strides = array<i32>} : memref<432x128xbf16, #tpu.memory_space<vmem>>, vector<16x128xbf16>,
      %12 = vector.extract_strided_slice %7 {offsets = [0, 2], sizes = [16, 128], strides = [1, 1]} : vector<16x256xbf16> to vector<16x128xbf16>
      %c32 = arith.constant 32 : index
      %c0_10 = arith.constant 0 : index
      %13 = vector.load %arg6[%c32, %c0_10] : memref<432x128xbf16, #tpu.memory_space<vmem>>, vector<16x128xbf16>
      tpu.vector_store %arg6[%c32, %c0_10], %12 {strides = array<i32>} : memref<432x128xbf16, #tpu.memory_space<vmem>>, vector<16x128xbf16>,
      %14 = vector.extract_strided_slice %7 {offsets = [0, 10], sizes = [16, 128], strides = [1, 1]} : vector<16x256xbf16> to vector<16x128xbf16>
      %c48 = arith.constant 48 : index
      %c0_11 = arith.constant 0 : index
      %15 = vector.load %arg6[%c48, %c0_11] : memref<432x128xbf16, #tpu.memory_space<vmem>>, vector<16x128xbf16>
      tpu.vector_store %arg6[%c48, %c0_11], %14 {strides = array<i32>} : memref<432x128xbf16, #tpu.memory_space<vmem>>, vector<16x128xbf16>,
      %16 = vector.extract_strided_slice %7 {offsets = [0, 11], sizes = [16, 128], strides = [1, 1]} : vector<16x256xbf16> to vector<16x128xbf16>
      %c64 = arith.constant 64 : index
      %c0_12 = arith.constant 0 : index
      %17 = vector.load %arg6[%c64, %c0_12] : memref<432x128xbf16, #tpu.memory_space<vmem>>, vector<16x128xbf16>
      tpu.vector_store %arg6[%c64, %c0_12], %16 {strides = array<i32>} : memref<432x128xbf16, #tpu.memory_space<vmem>>, vector<16x128xbf16>,
      %18 = vector.extract_strided_slice %7 {offsets = [0, 12], sizes = [16, 128], strides = [1, 1]} : vector<16x256xbf16> to vector<16x128xbf16>
      %c80 = arith.constant 80 : index
      %c0_13 = arith.constant 0 : index
      %19 = vector.load %arg6[%c80, %c0_13] : memref<432x128xbf16, #tpu.memory_space<vmem>>, vector<16x128xbf16>
      tpu.vector_store %arg6[%c80, %c0_13], %18 {strides = array<i32>} : memref<432x128xbf16, #tpu.memory_space<vmem>>, vector<16x128xbf16>,
      %20 = vector.extract_strided_slice %7 {offsets = [0, 20], sizes = [16, 128], strides = [1, 1]} : vector<16x256xbf16> to vector<16x128xbf16>
      %c96 = arith.constant 96 : index
      %c0_14 = arith.constant 0 : index
      %21 = vector.load %arg6[%c96, %c0_14] : memref<432x128xbf16, #tpu.memory_space<vmem>>, vector<16x128xbf16>
      tpu.vector_store %arg6[%c96, %c0_14], %20 {strides = array<i32>} : memref<432x128xbf16, #tpu.memory_space<vmem>>, vector<16x128xbf16>,
      %22 = vector.extract_strided_slice %7 {offsets = [0, 21], sizes = [16, 128], strides = [1, 1]} : vector<16x256xbf16> to vector<16x128xbf16>
      %c112 = arith.constant 112 : index
      %c0_15 = arith.constant 0 : index
      %23 = vector.load %arg6[%c112, %c0_15] : memref<432x128xbf16, #tpu.memory_space<vmem>>, vector<16x128xbf16>
      tpu.vector_store %arg6[%c112, %c0_15], %22 {strides = array<i32>} : memref<432x128xbf16, #tpu.memory_space<vmem>>, vector<16x128xbf16>,
      %24 = vector.extract_strided_slice %7 {offsets = [0, 22], sizes = [16, 128], strides = [1, 1]} : vector<16x256xbf16> to vector<16x128xbf16>
      %c128 = arith.constant 128 : index
      %c0_16 = arith.constant 0 : index
      %25 = vector.load %arg6[%c128, %c0_16] : memref<432x128xbf16, #tpu.memory_space<vmem>>, vector<16x128xbf16>
      tpu.vector_store %arg6[%c128, %c0_16], %24 {strides = array<i32>} : memref<432x128xbf16, #tpu.memory_space<vmem>>, vector<16x128xbf16>,
      %c1_i32_17 = arith.constant 1 : i32
      %26 = arith.muli %2, %c1_i32_17 : i32
      %c1_i32_18 = arith.constant 1 : i32
      %27 = arith.addi %26, %c1_i32_18 : i32
      %c0_19 = arith.constant 0 : index
      %28 = arith.index_cast %27 : i32 to index
      %c0_20 = arith.constant 0 : index
      %c0_21 = arith.constant 0 : index
      %29 = vector.load %arg1[%c0_19, %28, %c0_20, %c0_21] : memref<1x10x16x256xbf16, #tpu.memory_space<vmem>>, vector<1x1x16x256xbf16>
      %30 = vector.shape_cast %29 : vector<1x1x16x256xbf16> to vector<16x256xbf16>
      %31 = vector.extract_strided_slice %30 {offsets = [0, 0], sizes = [16, 128], strides = [1, 1]} : vector<16x256xbf16> to vector<16x128xbf16>
      %c144 = arith.constant 144 : index
      %c0_22 = arith.constant 0 : index
      %32 = vector.load %arg6[%c144, %c0_22] : memref<432x128xbf16, #tpu.memory_space<vmem>>, vector<16x128xbf16>
      tpu.vector_store %arg6[%c144, %c0_22], %31 {strides = array<i32>} : memref<432x128xbf16, #tpu.memory_space<vmem>>, vector<16x128xbf16>,
      %33 = vector.extract_strided_slice %30 {offsets = [0, 1], sizes = [16, 128], strides = [1, 1]} : vector<16x256xbf16> to vector<16x128xbf16>
      %c160 = arith.constant 160 : index
      %c0_23 = arith.constant 0 : index
      %34 = vector.load %arg6[%c160, %c0_23] : memref<432x128xbf16, #tpu.memory_space<vmem>>, vector<16x128xbf16>
      tpu.vector_store %arg6[%c160, %c0_23], %33 {strides = array<i32>} : memref<432x128xbf16, #tpu.memory_space<vmem>>, vector<16x128xbf16>,
      %35 = vector.extract_strided_slice %30 {offsets = [0, 2], sizes = [16, 128], strides = [1, 1]} : vector<16x256xbf16> to vector<16x128xbf16>
      %c176 = arith.constant 176 : index
      %c0_24 = arith.constant 0 : index
      %36 = vector.load %arg6[%c176, %c0_24] : memref<432x128xbf16, #tpu.memory_space<vmem>>, vector<16x128xbf16>
      tpu.vector_store %arg6[%c176, %c0_24], %35 {strides = array<i32>} : memref<432x128xbf16, #tpu.memory_space<vmem>>, vector<16x128xbf16>,
      %37 = vector.extract_strided_slice %30 {offsets = [0, 10], sizes = [16, 128], strides = [1, 1]} : vector<16x256xbf16> to vector<16x128xbf16>
      %c192 = arith.constant 192 : index
      %c0_25 = arith.constant 0 : index
      %38 = vector.load %arg6[%c192, %c0_25] : memref<432x128xbf16, #tpu.memory_space<vmem>>, vector<16x128xbf16>
      tpu.vector_store %arg6[%c192, %c0_25], %37 {strides = array<i32>} : memref<432x128xbf16, #tpu.memory_space<vmem>>, vector<16x128xbf16>,
      %39 = vector.extract_strided_slice %30 {offsets = [0, 11], sizes = [16, 128], strides = [1, 1]} : vector<16x256xbf16> to vector<16x128xbf16>
      %c208 = arith.constant 208 : index
      %c0_26 = arith.constant 0 : index
      %40 = vector.load %arg6[%c208, %c0_26] : memref<432x128xbf16, #tpu.memory_space<vmem>>, vector<16x128xbf16>
      tpu.vector_store %arg6[%c208, %c0_26], %39 {strides = array<i32>} : memref<432x128xbf16, #tpu.memory_space<vmem>>, vector<16x128xbf16>,
      %41 = vector.extract_strided_slice %30 {offsets = [0, 12], sizes = [16, 128], strides = [1, 1]} : vector<16x256xbf16> to vector<16x128xbf16>
      %c224 = arith.constant 224 : index
      %c0_27 = arith.constant 0 : index
      %42 = vector.load %arg6[%c224, %c0_27] : memref<432x128xbf16, #tpu.memory_space<vmem>>, vector<16x128xbf16>
      tpu.vector_store %arg6[%c224, %c0_27], %41 {strides = array<i32>} : memref<432x128xbf16, #tpu.memory_space<vmem>>, vector<16x128xbf16>,
      %43 = vector.extract_strided_slice %30 {offsets = [0, 20], sizes = [16, 128], strides = [1, 1]} : vector<16x256xbf16> to vector<16x128xbf16>
      %c240 = arith.constant 240 : index
      %c0_28 = arith.constant 0 : index
      %44 = vector.load %arg6[%c240, %c0_28] : memref<432x128xbf16, #tpu.memory_space<vmem>>, vector<16x128xbf16>
      tpu.vector_store %arg6[%c240, %c0_28], %43 {strides = array<i32>} : memref<432x128xbf16, #tpu.memory_space<vmem>>, vector<16x128xbf16>,
      %45 = vector.extract_strided_slice %30 {offsets = [0, 21], sizes = [16, 128], strides = [1, 1]} : vector<16x256xbf16> to vector<16x128xbf16>
      %c256 = arith.constant 256 : index
      %c0_29 = arith.constant 0 : index
      %46 = vector.load %arg6[%c256, %c0_29] : memref<432x128xbf16, #tpu.memory_space<vmem>>, vector<16x128xbf16>
      tpu.vector_store %arg6[%c256, %c0_29], %45 {strides = array<i32>} : memref<432x128xbf16, #tpu.memory_space<vmem>>, vector<16x128xbf16>,
      %47 = vector.extract_strided_slice %30 {offsets = [0, 22], sizes = [16, 128], strides = [1, 1]} : vector<16x256xbf16> to vector<16x128xbf16>
      %c272 = arith.constant 272 : index
      %c0_30 = arith.constant 0 : index
      %48 = vector.load %arg6[%c272, %c0_30] : memref<432x128xbf16, #tpu.memory_space<vmem>>, vector<16x128xbf16>
      tpu.vector_store %arg6[%c272, %c0_30], %47 {strides = array<i32>} : memref<432x128xbf16, #tpu.memory_space<vmem>>, vector<16x128xbf16>,
      %c1_i32_31 = arith.constant 1 : i32
      %49 = arith.muli %2, %c1_i32_31 : i32
      %c2_i32 = arith.constant 2 : i32
      %50 = arith.addi %49, %c2_i32 : i32
      %c0_32 = arith.constant 0 : index
      %51 = arith.index_cast %50 : i32 to index
      %c0_33 = arith.constant 0 : index
      %c0_34 = arith.constant 0 : index
      %52 = vector.load %arg1[%c0_32, %51, %c0_33, %c0_34] : memref<1x10x16x256xbf16, #tpu.memory_space<vmem>>, vector<1x1x16x256xbf16>
      %53 = vector.shape_cast %52 : vector<1x1x16x256xbf16> to vector<16x256xbf16>
      %54 = vector.extract_strided_slice %53 {offsets = [0, 0], sizes = [16, 128], strides = [1, 1]} : vector<16x256xbf16> to vector<16x128xbf16>
      %c288 = arith.constant 288 : index
      %c0_35 = arith.constant 0 : index
      %55 = vector.load %arg6[%c288, %c0_35] : memref<432x128xbf16, #tpu.memory_space<vmem>>, vector<16x128xbf16>
      tpu.vector_store %arg6[%c288, %c0_35], %54 {strides = array<i32>} : memref<432x128xbf16, #tpu.memory_space<vmem>>, vector<16x128xbf16>,
      %56 = vector.extract_strided_slice %53 {offsets = [0, 1], sizes = [16, 128], strides = [1, 1]} : vector<16x256xbf16> to vector<16x128xbf16>
      %c304 = arith.constant 304 : index
      %c0_36 = arith.constant 0 : index
      %57 = vector.load %arg6[%c304, %c0_36] : memref<432x128xbf16, #tpu.memory_space<vmem>>, vector<16x128xbf16>
      tpu.vector_store %arg6[%c304, %c0_36], %56 {strides = array<i32>} : memref<432x128xbf16, #tpu.memory_space<vmem>>, vector<16x128xbf16>,
      %58 = vector.extract_strided_slice %53 {offsets = [0, 2], sizes = [16, 128], strides = [1, 1]} : vector<16x256xbf16> to vector<16x128xbf16>
      %c320 = arith.constant 320 : index
      %c0_37 = arith.constant 0 : index
      %59 = vector.load %arg6[%c320, %c0_37] : memref<432x128xbf16, #tpu.memory_space<vmem>>, vector<16x128xbf16>
      tpu.vector_store %arg6[%c320, %c0_37], %58 {strides = array<i32>} : memref<432x128xbf16, #tpu.memory_space<vmem>>, vector<16x128xbf16>,
      %60 = vector.extract_strided_slice %53 {offsets = [0, 10], sizes = [16, 128], strides = [1, 1]} : vector<16x256xbf16> to vector<16x128xbf16>
      %c336 = arith.constant 336 : index
      %c0_38 = arith.constant 0 : index
      %61 = vector.load %arg6[%c336, %c0_38] : memref<432x128xbf16, #tpu.memory_space<vmem>>, vector<16x128xbf16>
      tpu.vector_store %arg6[%c336, %c0_38], %60 {strides = array<i32>} : memref<432x128xbf16, #tpu.memory_space<vmem>>, vector<16x128xbf16>,
      %62 = vector.extract_strided_slice %53 {offsets = [0, 11], sizes = [16, 128], strides = [1, 1]} : vector<16x256xbf16> to vector<16x128xbf16>
      %c352 = arith.constant 352 : index
      %c0_39 = arith.constant 0 : index
      %63 = vector.load %arg6[%c352, %c0_39] : memref<432x128xbf16, #tpu.memory_space<vmem>>, vector<16x128xbf16>
      tpu.vector_store %arg6[%c352, %c0_39], %62 {strides = array<i32>} : memref<432x128xbf16, #tpu.memory_space<vmem>>, vector<16x128xbf16>,
      %64 = vector.extract_strided_slice %53 {offsets = [0, 12], sizes = [16, 128], strides = [1, 1]} : vector<16x256xbf16> to vector<16x128xbf16>
      %c368 = arith.constant 368 : index
      %c0_40 = arith.constant 0 : index
      %65 = vector.load %arg6[%c368, %c0_40] : memref<432x128xbf16, #tpu.memory_space<vmem>>, vector<16x128xbf16>
      tpu.vector_store %arg6[%c368, %c0_40], %64 {strides = array<i32>} : memref<432x128xbf16, #tpu.memory_space<vmem>>, vector<16x128xbf16>,
      %66 = vector.extract_strided_slice %53 {offsets = [0, 20], sizes = [16, 128], strides = [1, 1]} : vector<16x256xbf16> to vector<16x128xbf16>
      %c384 = arith.constant 384 : index
      %c0_41 = arith.constant 0 : index
      %67 = vector.load %arg6[%c384, %c0_41] : memref<432x128xbf16, #tpu.memory_space<vmem>>, vector<16x128xbf16>
      tpu.vector_store %arg6[%c384, %c0_41], %66 {strides = array<i32>} : memref<432x128xbf16, #tpu.memory_space<vmem>>, vector<16x128xbf16>,
      %68 = vector.extract_strided_slice %53 {offsets = [0, 21], sizes = [16, 128], strides = [1, 1]} : vector<16x256xbf16> to vector<16x128xbf16>
      %c400 = arith.constant 400 : index
      %c0_42 = arith.constant 0 : index
      %69 = vector.load %arg6[%c400, %c0_42] : memref<432x128xbf16, #tpu.memory_space<vmem>>, vector<16x128xbf16>
      tpu.vector_store %arg6[%c400, %c0_42], %68 {strides = array<i32>} : memref<432x128xbf16, #tpu.memory_space<vmem>>, vector<16x128xbf16>,
      %70 = vector.extract_strided_slice %53 {offsets = [0, 22], sizes = [16, 128], strides = [1, 1]} : vector<16x256xbf16> to vector<16x128xbf16>
      %c416 = arith.constant 416 : index
      %c0_43 = arith.constant 0 : index
      %71 = vector.load %arg6[%c416, %c0_43] : memref<432x128xbf16, #tpu.memory_space<vmem>>, vector<16x128xbf16>
      tpu.vector_store %arg6[%c416, %c0_43], %70 {strides = array<i32>} : memref<432x128xbf16, #tpu.memory_space<vmem>>, vector<16x128xbf16>,
      %c0_44 = arith.constant 0 : index
      %c0_45 = arith.constant 0 : index
      %72 = vector.load %arg2[%c0_44, %c0_45] : memref<16x432xbf16, #tpu.memory_space<vmem>>, vector<16x432xbf16>
      %c0_46 = arith.constant 0 : index
      %c0_47 = arith.constant 0 : index
      %73 = vector.load %arg6[%c0_46, %c0_47] : memref<432x128xbf16, #tpu.memory_space<vmem>>, vector<432x128xbf16>
      %cst = arith.constant dense<0.000000e+00> : vector<16x128xf32>
      %74 = tpu.matmul %72, %73, %cst {dimension_numbers = #tpu.dot_dimension_numbers<[1], [0], [0], [1], [0, 0, 1, 1], [], []>} : vector<16x432xbf16>, vector<432x128xbf16>, vector<16x128xf32> -> vector<16x128xf32>
      %c0_48 = arith.constant 0 : index
      %c0_49 = arith.constant 0 : index
      %75 = vector.load %arg3[%c0_48, %c0_49] : memref<16x1xf32, #tpu.memory_space<vmem>>, vector<16x1xf32>
      %76 = vector.broadcast %75 : vector<16x1xf32> to vector<16x128xf32>
      %77 = arith.addf %74, %76 : vector<16x128xf32>
      %c0_50 = arith.constant 0 : index
      %78 = arith.index_cast %2 : i32 to index
      %c0_51 = arith.constant 0 : index
      %c0_52 = arith.constant 0 : index
      %79 = vector.load %arg4[%c0_50, %78, %c0_51, %c0_52] : memref<1x8x16x128xbf16, #tpu.memory_space<vmem>>, vector<1x1x16x128xbf16>
      %80 = vector.shape_cast %79 : vector<1x1x16x128xbf16> to vector<16x128xbf16>
      %81 = arith.extf %80 : vector<16x128xbf16> to vector<16x128xf32>
      %82 = arith.addf %77, %81 : vector<16x128xf32>
      %cst_53 = arith.constant 0.000000e+00 : f32
      %83 = vector.broadcast %cst_53 : f32 to vector<16x128xf32>
      %84 = arith.maximumf %82, %83 : vector<16x128xf32>
      %85 = arith.truncf %84 : vector<16x128xf32> to vector<16x128xbf16>
      %c0_54 = arith.constant 0 : index
      %86 = arith.index_cast %2 : i32 to index
      %c0_55 = arith.constant 0 : index
      %c0_56 = arith.constant 0 : index
      %87 = vector.load %arg5[%c0_54, %86, %c0_55, %c0_56] : memref<1x8x16x128xbf16, #tpu.memory_space<vmem>>, vector<1x1x16x128xbf16>
      %88 = vector.shape_cast %87 : vector<1x1x16x128xbf16> to vector<16x128xbf16>
      %89 = vector.shape_cast %85 : vector<16x128xbf16> to vector<1x1x16x128xbf16>
      tpu.vector_store %arg5[%c0_54, %86, %c0_55, %c0_56], %89 {strides = array<i32>} : memref<1x8x16x128xbf16, #tpu.memory_space<vmem>>, vector<1x1x16x128xbf16>,
    }
    %c8_i32_0 = arith.constant 8 : i32
    return
  }
  func.func @transform_0(%arg0: i32) -> (i32, i32, i32, i32) {
    %c0_i32 = arith.constant 0 : i32
    %c0_i32_0 = arith.constant 0 : i32
    %c0_i32_1 = arith.constant 0 : i32
    %c0_i32_2 = arith.constant 0 : i32
    return %arg0, %c0_i32, %c0_i32_0, %c0_i32_1 : i32, i32, i32, i32
  }
  func.func @transform_1(%arg0: i32) -> (i32, i32) {
    %c0_i32 = arith.constant 0 : i32
    %c0_i32_0 = arith.constant 0 : i32
    %c0_i32_1 = arith.constant 0 : i32
    return %c0_i32, %c0_i32_0 : i32, i32
  }
  func.func @transform_2(%arg0: i32) -> (i32, i32) {
    %c0_i32 = arith.constant 0 : i32
    %c0_i32_0 = arith.constant 0 : i32
    %c0_i32_1 = arith.constant 0 : i32
    return %c0_i32, %c0_i32_0 : i32, i32
  }
  func.func @transform_3(%arg0: i32) -> (i32, i32, i32, i32) {
    %c0_i32 = arith.constant 0 : i32
    %c0_i32_0 = arith.constant 0 : i32
    %c0_i32_1 = arith.constant 0 : i32
    %c0_i32_2 = arith.constant 0 : i32
    return %arg0, %c0_i32, %c0_i32_0, %c0_i32_1 : i32, i32, i32, i32
  }
  func.func @transform_4(%arg0: i32) -> (i32, i32, i32, i32) {
    %c0_i32 = arith.constant 0 : i32
    %c0_i32_0 = arith.constant 0 : i32
    %c0_i32_1 = arith.constant 0 : i32
    %c0_i32_2 = arith.constant 0 : i32
    return %arg0, %c0_i32, %c0_i32_0, %c0_i32_1 : i32, i32, i32, i32
  }
}

module attributes {stable_mosaic.version = 11 : i64} {
  func.func @kernel(%arg0: i32, %arg1: memref<1x9x64x256xbf16, #tpu.memory_space<vmem>>, %arg2: memref<32x432xbf16, #tpu.memory_space<vmem>>, %arg3: memref<32x1xf32, #tpu.memory_space<vmem>>, %arg4: memref<1x4x32x128xbf16, #tpu.memory_space<vmem>>, %arg5: memref<432x128xbf16, #tpu.memory_space<vmem>>) attributes {dimension_semantics = [#tpu.dimension_semantics<parallel>], iteration_bounds = array<i64: 4>, scalar_prefetch = 0 : i64, scratch_operands = 1 : i64, tpu.core_type = #tpu.core_type<tc>, window_params = [{transform_indices = @transform_0, window_bounds = array<i64: 1, 9, 64, 256>}, {pipeline_mode = #tpu.pipeline_mode<synchronous>, transform_indices = @transform_1, window_bounds = array<i64: 32, 432>}, {pipeline_mode = #tpu.pipeline_mode<synchronous>, transform_indices = @transform_2, window_bounds = array<i64: 32, 1>}, {transform_indices = @transform_3, window_bounds = array<i64: 1, 4, 32, 128>}]} {
    %c0_i32 = arith.constant 0 : i32
    %c4_i32 = arith.constant 4 : i32
    %0 = arith.addi %c0_i32, %c4_i32 : i32
    %c1_i32 = arith.constant 1 : i32
    scf.for %arg6 = %c0_i32 to %0 step %c1_i32  : i32 {
      %c1_i32_1 = arith.constant 1 : i32
      %1 = arith.muli %arg6, %c1_i32_1 : i32
      %c0_i32_2 = arith.constant 0 : i32
      %2 = arith.addi %c0_i32_2, %1 : i32
      %c2_i32 = arith.constant 2 : i32
      %3 = arith.muli %2, %c2_i32 : i32
      %c0_i32_3 = arith.constant 0 : i32
      %4 = arith.addi %3, %c0_i32_3 : i32
      %c0 = arith.constant 0 : index
      %5 = arith.index_cast %4 : i32 to index
      %c0_4 = arith.constant 0 : index
      %c0_5 = arith.constant 0 : index
      %6 = vector.load %arg1[%c0, %5, %c0_4, %c0_5] : memref<1x9x64x256xbf16, #tpu.memory_space<vmem>>, vector<1x1x64x256xbf16>
      %7 = vector.shape_cast %6 : vector<1x1x64x256xbf16> to vector<64x256xbf16>
      %8 = vector.extract_strided_slice %7 {offsets = [0, 0], sizes = [16, 128], strides = [1, 1]} : vector<64x256xbf16> to vector<16x128xbf16>
      %c0_6 = arith.constant 0 : index
      %c0_7 = arith.constant 0 : index
      %9 = vector.load %arg5[%c0_6, %c0_7] : memref<432x128xbf16, #tpu.memory_space<vmem>>, vector<16x128xbf16>
      tpu.vector_store %arg5[%c0_6, %c0_7], %8 {strides = array<i32>} : memref<432x128xbf16, #tpu.memory_space<vmem>>, vector<16x128xbf16>,
      %10 = vector.extract_strided_slice %7 {offsets = [16, 0], sizes = [16, 128], strides = [1, 1]} : vector<64x256xbf16> to vector<16x128xbf16>
      %c16 = arith.constant 16 : index
      %c0_8 = arith.constant 0 : index
      %11 = vector.load %arg5[%c16, %c0_8] : memref<432x128xbf16, #tpu.memory_space<vmem>>, vector<16x128xbf16>
      tpu.vector_store %arg5[%c16, %c0_8], %10 {strides = array<i32>} : memref<432x128xbf16, #tpu.memory_space<vmem>>, vector<16x128xbf16>,
      %12 = vector.extract_strided_slice %7 {offsets = [0, 1], sizes = [16, 128], strides = [1, 1]} : vector<64x256xbf16> to vector<16x128xbf16>
      %c32 = arith.constant 32 : index
      %c0_9 = arith.constant 0 : index
      %13 = vector.load %arg5[%c32, %c0_9] : memref<432x128xbf16, #tpu.memory_space<vmem>>, vector<16x128xbf16>
      tpu.vector_store %arg5[%c32, %c0_9], %12 {strides = array<i32>} : memref<432x128xbf16, #tpu.memory_space<vmem>>, vector<16x128xbf16>,
      %14 = vector.extract_strided_slice %7 {offsets = [32, 0], sizes = [16, 128], strides = [1, 1]} : vector<64x256xbf16> to vector<16x128xbf16>
      %c48 = arith.constant 48 : index
      %c0_10 = arith.constant 0 : index
      %15 = vector.load %arg5[%c48, %c0_10] : memref<432x128xbf16, #tpu.memory_space<vmem>>, vector<16x128xbf16>
      tpu.vector_store %arg5[%c48, %c0_10], %14 {strides = array<i32>} : memref<432x128xbf16, #tpu.memory_space<vmem>>, vector<16x128xbf16>,
      %16 = vector.extract_strided_slice %7 {offsets = [48, 0], sizes = [16, 128], strides = [1, 1]} : vector<64x256xbf16> to vector<16x128xbf16>
      %c64 = arith.constant 64 : index
      %c0_11 = arith.constant 0 : index
      %17 = vector.load %arg5[%c64, %c0_11] : memref<432x128xbf16, #tpu.memory_space<vmem>>, vector<16x128xbf16>
      tpu.vector_store %arg5[%c64, %c0_11], %16 {strides = array<i32>} : memref<432x128xbf16, #tpu.memory_space<vmem>>, vector<16x128xbf16>,
      %18 = vector.extract_strided_slice %7 {offsets = [32, 1], sizes = [16, 128], strides = [1, 1]} : vector<64x256xbf16> to vector<16x128xbf16>
      %c80 = arith.constant 80 : index
      %c0_12 = arith.constant 0 : index
      %19 = vector.load %arg5[%c80, %c0_12] : memref<432x128xbf16, #tpu.memory_space<vmem>>, vector<16x128xbf16>
      tpu.vector_store %arg5[%c80, %c0_12], %18 {strides = array<i32>} : memref<432x128xbf16, #tpu.memory_space<vmem>>, vector<16x128xbf16>,
      %20 = vector.extract_strided_slice %7 {offsets = [0, 5], sizes = [16, 128], strides = [1, 1]} : vector<64x256xbf16> to vector<16x128xbf16>
      %c96 = arith.constant 96 : index
      %c0_13 = arith.constant 0 : index
      %21 = vector.load %arg5[%c96, %c0_13] : memref<432x128xbf16, #tpu.memory_space<vmem>>, vector<16x128xbf16>
      tpu.vector_store %arg5[%c96, %c0_13], %20 {strides = array<i32>} : memref<432x128xbf16, #tpu.memory_space<vmem>>, vector<16x128xbf16>,
      %22 = vector.extract_strided_slice %7 {offsets = [16, 5], sizes = [16, 128], strides = [1, 1]} : vector<64x256xbf16> to vector<16x128xbf16>
      %c112 = arith.constant 112 : index
      %c0_14 = arith.constant 0 : index
      %23 = vector.load %arg5[%c112, %c0_14] : memref<432x128xbf16, #tpu.memory_space<vmem>>, vector<16x128xbf16>
      tpu.vector_store %arg5[%c112, %c0_14], %22 {strides = array<i32>} : memref<432x128xbf16, #tpu.memory_space<vmem>>, vector<16x128xbf16>,
      %24 = vector.extract_strided_slice %7 {offsets = [0, 6], sizes = [16, 128], strides = [1, 1]} : vector<64x256xbf16> to vector<16x128xbf16>
      %c128 = arith.constant 128 : index
      %c0_15 = arith.constant 0 : index
      %25 = vector.load %arg5[%c128, %c0_15] : memref<432x128xbf16, #tpu.memory_space<vmem>>, vector<16x128xbf16>
      tpu.vector_store %arg5[%c128, %c0_15], %24 {strides = array<i32>} : memref<432x128xbf16, #tpu.memory_space<vmem>>, vector<16x128xbf16>,
      %c2_i32_16 = arith.constant 2 : i32
      %26 = arith.muli %2, %c2_i32_16 : i32
      %c1_i32_17 = arith.constant 1 : i32
      %27 = arith.addi %26, %c1_i32_17 : i32
      %c0_18 = arith.constant 0 : index
      %28 = arith.index_cast %27 : i32 to index
      %c0_19 = arith.constant 0 : index
      %c0_20 = arith.constant 0 : index
      %29 = vector.load %arg1[%c0_18, %28, %c0_19, %c0_20] : memref<1x9x64x256xbf16, #tpu.memory_space<vmem>>, vector<1x1x64x256xbf16>
      %30 = vector.shape_cast %29 : vector<1x1x64x256xbf16> to vector<64x256xbf16>
      %31 = vector.extract_strided_slice %30 {offsets = [0, 0], sizes = [16, 128], strides = [1, 1]} : vector<64x256xbf16> to vector<16x128xbf16>
      %c144 = arith.constant 144 : index
      %c0_21 = arith.constant 0 : index
      %32 = vector.load %arg5[%c144, %c0_21] : memref<432x128xbf16, #tpu.memory_space<vmem>>, vector<16x128xbf16>
      tpu.vector_store %arg5[%c144, %c0_21], %31 {strides = array<i32>} : memref<432x128xbf16, #tpu.memory_space<vmem>>, vector<16x128xbf16>,
      %33 = vector.extract_strided_slice %30 {offsets = [16, 0], sizes = [16, 128], strides = [1, 1]} : vector<64x256xbf16> to vector<16x128xbf16>
      %c160 = arith.constant 160 : index
      %c0_22 = arith.constant 0 : index
      %34 = vector.load %arg5[%c160, %c0_22] : memref<432x128xbf16, #tpu.memory_space<vmem>>, vector<16x128xbf16>
      tpu.vector_store %arg5[%c160, %c0_22], %33 {strides = array<i32>} : memref<432x128xbf16, #tpu.memory_space<vmem>>, vector<16x128xbf16>,
      %35 = vector.extract_strided_slice %30 {offsets = [0, 1], sizes = [16, 128], strides = [1, 1]} : vector<64x256xbf16> to vector<16x128xbf16>
      %c176 = arith.constant 176 : index
      %c0_23 = arith.constant 0 : index
      %36 = vector.load %arg5[%c176, %c0_23] : memref<432x128xbf16, #tpu.memory_space<vmem>>, vector<16x128xbf16>
      tpu.vector_store %arg5[%c176, %c0_23], %35 {strides = array<i32>} : memref<432x128xbf16, #tpu.memory_space<vmem>>, vector<16x128xbf16>,
      %37 = vector.extract_strided_slice %30 {offsets = [32, 0], sizes = [16, 128], strides = [1, 1]} : vector<64x256xbf16> to vector<16x128xbf16>
      %c192 = arith.constant 192 : index
      %c0_24 = arith.constant 0 : index
      %38 = vector.load %arg5[%c192, %c0_24] : memref<432x128xbf16, #tpu.memory_space<vmem>>, vector<16x128xbf16>
      tpu.vector_store %arg5[%c192, %c0_24], %37 {strides = array<i32>} : memref<432x128xbf16, #tpu.memory_space<vmem>>, vector<16x128xbf16>,
      %39 = vector.extract_strided_slice %30 {offsets = [48, 0], sizes = [16, 128], strides = [1, 1]} : vector<64x256xbf16> to vector<16x128xbf16>
      %c208 = arith.constant 208 : index
      %c0_25 = arith.constant 0 : index
      %40 = vector.load %arg5[%c208, %c0_25] : memref<432x128xbf16, #tpu.memory_space<vmem>>, vector<16x128xbf16>
      tpu.vector_store %arg5[%c208, %c0_25], %39 {strides = array<i32>} : memref<432x128xbf16, #tpu.memory_space<vmem>>, vector<16x128xbf16>,
      %41 = vector.extract_strided_slice %30 {offsets = [32, 1], sizes = [16, 128], strides = [1, 1]} : vector<64x256xbf16> to vector<16x128xbf16>
      %c224 = arith.constant 224 : index
      %c0_26 = arith.constant 0 : index
      %42 = vector.load %arg5[%c224, %c0_26] : memref<432x128xbf16, #tpu.memory_space<vmem>>, vector<16x128xbf16>
      tpu.vector_store %arg5[%c224, %c0_26], %41 {strides = array<i32>} : memref<432x128xbf16, #tpu.memory_space<vmem>>, vector<16x128xbf16>,
      %43 = vector.extract_strided_slice %30 {offsets = [0, 5], sizes = [16, 128], strides = [1, 1]} : vector<64x256xbf16> to vector<16x128xbf16>
      %c240 = arith.constant 240 : index
      %c0_27 = arith.constant 0 : index
      %44 = vector.load %arg5[%c240, %c0_27] : memref<432x128xbf16, #tpu.memory_space<vmem>>, vector<16x128xbf16>
      tpu.vector_store %arg5[%c240, %c0_27], %43 {strides = array<i32>} : memref<432x128xbf16, #tpu.memory_space<vmem>>, vector<16x128xbf16>,
      %45 = vector.extract_strided_slice %30 {offsets = [16, 5], sizes = [16, 128], strides = [1, 1]} : vector<64x256xbf16> to vector<16x128xbf16>
      %c256 = arith.constant 256 : index
      %c0_28 = arith.constant 0 : index
      %46 = vector.load %arg5[%c256, %c0_28] : memref<432x128xbf16, #tpu.memory_space<vmem>>, vector<16x128xbf16>
      tpu.vector_store %arg5[%c256, %c0_28], %45 {strides = array<i32>} : memref<432x128xbf16, #tpu.memory_space<vmem>>, vector<16x128xbf16>,
      %47 = vector.extract_strided_slice %30 {offsets = [0, 6], sizes = [16, 128], strides = [1, 1]} : vector<64x256xbf16> to vector<16x128xbf16>
      %c272 = arith.constant 272 : index
      %c0_29 = arith.constant 0 : index
      %48 = vector.load %arg5[%c272, %c0_29] : memref<432x128xbf16, #tpu.memory_space<vmem>>, vector<16x128xbf16>
      tpu.vector_store %arg5[%c272, %c0_29], %47 {strides = array<i32>} : memref<432x128xbf16, #tpu.memory_space<vmem>>, vector<16x128xbf16>,
      %c2_i32_30 = arith.constant 2 : i32
      %49 = arith.muli %2, %c2_i32_30 : i32
      %c2_i32_31 = arith.constant 2 : i32
      %50 = arith.addi %49, %c2_i32_31 : i32
      %c0_32 = arith.constant 0 : index
      %51 = arith.index_cast %50 : i32 to index
      %c0_33 = arith.constant 0 : index
      %c0_34 = arith.constant 0 : index
      %52 = vector.load %arg1[%c0_32, %51, %c0_33, %c0_34] : memref<1x9x64x256xbf16, #tpu.memory_space<vmem>>, vector<1x1x64x256xbf16>
      %53 = vector.shape_cast %52 : vector<1x1x64x256xbf16> to vector<64x256xbf16>
      %54 = vector.extract_strided_slice %53 {offsets = [0, 0], sizes = [16, 128], strides = [1, 1]} : vector<64x256xbf16> to vector<16x128xbf16>
      %c288 = arith.constant 288 : index
      %c0_35 = arith.constant 0 : index
      %55 = vector.load %arg5[%c288, %c0_35] : memref<432x128xbf16, #tpu.memory_space<vmem>>, vector<16x128xbf16>
      tpu.vector_store %arg5[%c288, %c0_35], %54 {strides = array<i32>} : memref<432x128xbf16, #tpu.memory_space<vmem>>, vector<16x128xbf16>,
      %56 = vector.extract_strided_slice %53 {offsets = [16, 0], sizes = [16, 128], strides = [1, 1]} : vector<64x256xbf16> to vector<16x128xbf16>
      %c304 = arith.constant 304 : index
      %c0_36 = arith.constant 0 : index
      %57 = vector.load %arg5[%c304, %c0_36] : memref<432x128xbf16, #tpu.memory_space<vmem>>, vector<16x128xbf16>
      tpu.vector_store %arg5[%c304, %c0_36], %56 {strides = array<i32>} : memref<432x128xbf16, #tpu.memory_space<vmem>>, vector<16x128xbf16>,
      %58 = vector.extract_strided_slice %53 {offsets = [0, 1], sizes = [16, 128], strides = [1, 1]} : vector<64x256xbf16> to vector<16x128xbf16>
      %c320 = arith.constant 320 : index
      %c0_37 = arith.constant 0 : index
      %59 = vector.load %arg5[%c320, %c0_37] : memref<432x128xbf16, #tpu.memory_space<vmem>>, vector<16x128xbf16>
      tpu.vector_store %arg5[%c320, %c0_37], %58 {strides = array<i32>} : memref<432x128xbf16, #tpu.memory_space<vmem>>, vector<16x128xbf16>,
      %60 = vector.extract_strided_slice %53 {offsets = [32, 0], sizes = [16, 128], strides = [1, 1]} : vector<64x256xbf16> to vector<16x128xbf16>
      %c336 = arith.constant 336 : index
      %c0_38 = arith.constant 0 : index
      %61 = vector.load %arg5[%c336, %c0_38] : memref<432x128xbf16, #tpu.memory_space<vmem>>, vector<16x128xbf16>
      tpu.vector_store %arg5[%c336, %c0_38], %60 {strides = array<i32>} : memref<432x128xbf16, #tpu.memory_space<vmem>>, vector<16x128xbf16>,
      %62 = vector.extract_strided_slice %53 {offsets = [48, 0], sizes = [16, 128], strides = [1, 1]} : vector<64x256xbf16> to vector<16x128xbf16>
      %c352 = arith.constant 352 : index
      %c0_39 = arith.constant 0 : index
      %63 = vector.load %arg5[%c352, %c0_39] : memref<432x128xbf16, #tpu.memory_space<vmem>>, vector<16x128xbf16>
      tpu.vector_store %arg5[%c352, %c0_39], %62 {strides = array<i32>} : memref<432x128xbf16, #tpu.memory_space<vmem>>, vector<16x128xbf16>,
      %64 = vector.extract_strided_slice %53 {offsets = [32, 1], sizes = [16, 128], strides = [1, 1]} : vector<64x256xbf16> to vector<16x128xbf16>
      %c368 = arith.constant 368 : index
      %c0_40 = arith.constant 0 : index
      %65 = vector.load %arg5[%c368, %c0_40] : memref<432x128xbf16, #tpu.memory_space<vmem>>, vector<16x128xbf16>
      tpu.vector_store %arg5[%c368, %c0_40], %64 {strides = array<i32>} : memref<432x128xbf16, #tpu.memory_space<vmem>>, vector<16x128xbf16>,
      %66 = vector.extract_strided_slice %53 {offsets = [0, 5], sizes = [16, 128], strides = [1, 1]} : vector<64x256xbf16> to vector<16x128xbf16>
      %c384 = arith.constant 384 : index
      %c0_41 = arith.constant 0 : index
      %67 = vector.load %arg5[%c384, %c0_41] : memref<432x128xbf16, #tpu.memory_space<vmem>>, vector<16x128xbf16>
      tpu.vector_store %arg5[%c384, %c0_41], %66 {strides = array<i32>} : memref<432x128xbf16, #tpu.memory_space<vmem>>, vector<16x128xbf16>,
      %68 = vector.extract_strided_slice %53 {offsets = [16, 5], sizes = [16, 128], strides = [1, 1]} : vector<64x256xbf16> to vector<16x128xbf16>
      %c400 = arith.constant 400 : index
      %c0_42 = arith.constant 0 : index
      %69 = vector.load %arg5[%c400, %c0_42] : memref<432x128xbf16, #tpu.memory_space<vmem>>, vector<16x128xbf16>
      tpu.vector_store %arg5[%c400, %c0_42], %68 {strides = array<i32>} : memref<432x128xbf16, #tpu.memory_space<vmem>>, vector<16x128xbf16>,
      %70 = vector.extract_strided_slice %53 {offsets = [0, 6], sizes = [16, 128], strides = [1, 1]} : vector<64x256xbf16> to vector<16x128xbf16>
      %c416 = arith.constant 416 : index
      %c0_43 = arith.constant 0 : index
      %71 = vector.load %arg5[%c416, %c0_43] : memref<432x128xbf16, #tpu.memory_space<vmem>>, vector<16x128xbf16>
      tpu.vector_store %arg5[%c416, %c0_43], %70 {strides = array<i32>} : memref<432x128xbf16, #tpu.memory_space<vmem>>, vector<16x128xbf16>,
      %c0_44 = arith.constant 0 : index
      %c0_45 = arith.constant 0 : index
      %72 = vector.load %arg2[%c0_44, %c0_45] : memref<32x432xbf16, #tpu.memory_space<vmem>>, vector<32x432xbf16>
      %c0_46 = arith.constant 0 : index
      %c0_47 = arith.constant 0 : index
      %73 = vector.load %arg5[%c0_46, %c0_47] : memref<432x128xbf16, #tpu.memory_space<vmem>>, vector<432x128xbf16>
      %cst = arith.constant dense<0.000000e+00> : vector<32x128xf32>
      %74 = tpu.matmul %72, %73, %cst {dimension_numbers = #tpu.dot_dimension_numbers<[1], [0], [0], [1], [0, 0, 1, 1], [], []>} : vector<32x432xbf16>, vector<432x128xbf16>, vector<32x128xf32> -> vector<32x128xf32>
      %c0_48 = arith.constant 0 : index
      %c0_49 = arith.constant 0 : index
      %75 = vector.load %arg3[%c0_48, %c0_49] : memref<32x1xf32, #tpu.memory_space<vmem>>, vector<32x1xf32>
      %76 = vector.broadcast %75 : vector<32x1xf32> to vector<32x128xf32>
      %77 = arith.addf %74, %76 : vector<32x128xf32>
      %cst_50 = arith.constant 0.000000e+00 : f32
      %78 = vector.broadcast %cst_50 : f32 to vector<32x128xf32>
      %79 = arith.maximumf %77, %78 : vector<32x128xf32>
      %80 = arith.truncf %79 : vector<32x128xf32> to vector<32x128xbf16>
      %c0_51 = arith.constant 0 : index
      %81 = arith.index_cast %2 : i32 to index
      %c0_52 = arith.constant 0 : index
      %c0_53 = arith.constant 0 : index
      %82 = vector.load %arg4[%c0_51, %81, %c0_52, %c0_53] : memref<1x4x32x128xbf16, #tpu.memory_space<vmem>>, vector<1x1x32x128xbf16>
      %83 = vector.shape_cast %82 : vector<1x1x32x128xbf16> to vector<32x128xbf16>
      %84 = vector.shape_cast %80 : vector<32x128xbf16> to vector<1x1x32x128xbf16>
      tpu.vector_store %arg4[%c0_51, %81, %c0_52, %c0_53], %84 {strides = array<i32>} : memref<1x4x32x128xbf16, #tpu.memory_space<vmem>>, vector<1x1x32x128xbf16>,
    }
    %c4_i32_0 = arith.constant 4 : i32
    return
  }
  func.func @transform_0(%arg0: i32) -> (i32, i32, i32, i32) {
    %c0_i32 = arith.constant 0 : i32
    %c0_i32_0 = arith.constant 0 : i32
    %c0_i32_1 = arith.constant 0 : i32
    %c0_i32_2 = arith.constant 0 : i32
    return %arg0, %c0_i32, %c0_i32_0, %c0_i32_1 : i32, i32, i32, i32
  }
  func.func @transform_1(%arg0: i32) -> (i32, i32) {
    %c0_i32 = arith.constant 0 : i32
    %c0_i32_0 = arith.constant 0 : i32
    %c0_i32_1 = arith.constant 0 : i32
    return %c0_i32, %c0_i32_0 : i32, i32
  }
  func.func @transform_2(%arg0: i32) -> (i32, i32) {
    %c0_i32 = arith.constant 0 : i32
    %c0_i32_0 = arith.constant 0 : i32
    %c0_i32_1 = arith.constant 0 : i32
    return %c0_i32, %c0_i32_0 : i32, i32
  }
  func.func @transform_3(%arg0: i32) -> (i32, i32, i32, i32) {
    %c0_i32 = arith.constant 0 : i32
    %c0_i32_0 = arith.constant 0 : i32
    %c0_i32_1 = arith.constant 0 : i32
    %c0_i32_2 = arith.constant 0 : i32
    return %arg0, %c0_i32, %c0_i32_0, %c0_i32_1 : i32, i32, i32, i32
  }
}

module attributes {stable_mosaic.version = 11 : i64} {
  func.func @kernel(%arg0: i32, %arg1: memref<1x7x16x128xbf16, #tpu.memory_space<vmem>>, %arg2: memref<32x16xbf16, #tpu.memory_space<vmem>>, %arg3: memref<32x1xf32, #tpu.memory_space<vmem>>, %arg4: memref<1x4x32x128xbf16, #tpu.memory_space<vmem>>, %arg5: memref<16x128xbf16, #tpu.memory_space<vmem>>) attributes {dimension_semantics = [#tpu.dimension_semantics<parallel>], iteration_bounds = array<i64: 4>, scalar_prefetch = 0 : i64, scratch_operands = 1 : i64, tpu.core_type = #tpu.core_type<tc>, window_params = [{transform_indices = @transform_0, window_bounds = array<i64: 1, 7, 16, 128>}, {pipeline_mode = #tpu.pipeline_mode<synchronous>, transform_indices = @transform_1, window_bounds = array<i64: 32, 16>}, {pipeline_mode = #tpu.pipeline_mode<synchronous>, transform_indices = @transform_2, window_bounds = array<i64: 32, 1>}, {transform_indices = @transform_3, window_bounds = array<i64: 1, 4, 32, 128>}]} {
    %c0_i32 = arith.constant 0 : i32
    %c4_i32 = arith.constant 4 : i32
    %0 = arith.addi %c0_i32, %c4_i32 : i32
    %c1_i32 = arith.constant 1 : i32
    scf.for %arg6 = %c0_i32 to %0 step %c1_i32  : i32 {
      %c1_i32_1 = arith.constant 1 : i32
      %1 = arith.muli %arg6, %c1_i32_1 : i32
      %c0_i32_2 = arith.constant 0 : i32
      %2 = arith.addi %c0_i32_2, %1 : i32
      %c2_i32 = arith.constant 2 : i32
      %3 = arith.muli %2, %c2_i32 : i32
      %c0_i32_3 = arith.constant 0 : i32
      %4 = arith.addi %3, %c0_i32_3 : i32
      %c0 = arith.constant 0 : index
      %5 = arith.index_cast %4 : i32 to index
      %c0_4 = arith.constant 0 : index
      %c0_5 = arith.constant 0 : index
      %6 = vector.load %arg1[%c0, %5, %c0_4, %c0_5] : memref<1x7x16x128xbf16, #tpu.memory_space<vmem>>, vector<1x1x16x128xbf16>
      %7 = vector.shape_cast %6 : vector<1x1x16x128xbf16> to vector<16x128xbf16>
      %c0_6 = arith.constant 0 : index
      %c0_7 = arith.constant 0 : index
      %8 = vector.load %arg5[%c0_6, %c0_7] : memref<16x128xbf16, #tpu.memory_space<vmem>>, vector<16x128xbf16>
      tpu.vector_store %arg5[%c0_6, %c0_7], %7 {strides = array<i32>} : memref<16x128xbf16, #tpu.memory_space<vmem>>, vector<16x128xbf16>,
      %c0_8 = arith.constant 0 : index
      %c0_9 = arith.constant 0 : index
      %9 = vector.load %arg2[%c0_8, %c0_9] : memref<32x16xbf16, #tpu.memory_space<vmem>>, vector<32x16xbf16>
      %c0_10 = arith.constant 0 : index
      %c0_11 = arith.constant 0 : index
      %10 = vector.load %arg5[%c0_10, %c0_11] : memref<16x128xbf16, #tpu.memory_space<vmem>>, vector<16x128xbf16>
      %cst = arith.constant dense<0.000000e+00> : vector<32x128xf32>
      %11 = tpu.matmul %9, %10, %cst {dimension_numbers = #tpu.dot_dimension_numbers<[1], [0], [0], [1], [0, 0, 1, 1], [], []>} : vector<32x16xbf16>, vector<16x128xbf16>, vector<32x128xf32> -> vector<32x128xf32>
      %c0_12 = arith.constant 0 : index
      %c0_13 = arith.constant 0 : index
      %12 = vector.load %arg3[%c0_12, %c0_13] : memref<32x1xf32, #tpu.memory_space<vmem>>, vector<32x1xf32>
      %13 = vector.broadcast %12 : vector<32x1xf32> to vector<32x128xf32>
      %14 = arith.addf %11, %13 : vector<32x128xf32>
      %15 = arith.truncf %14 : vector<32x128xf32> to vector<32x128xbf16>
      %c0_14 = arith.constant 0 : index
      %16 = arith.index_cast %2 : i32 to index
      %c0_15 = arith.constant 0 : index
      %c0_16 = arith.constant 0 : index
      %17 = vector.load %arg4[%c0_14, %16, %c0_15, %c0_16] : memref<1x4x32x128xbf16, #tpu.memory_space<vmem>>, vector<1x1x32x128xbf16>
      %18 = vector.shape_cast %17 : vector<1x1x32x128xbf16> to vector<32x128xbf16>
      %19 = vector.shape_cast %15 : vector<32x128xbf16> to vector<1x1x32x128xbf16>
      tpu.vector_store %arg4[%c0_14, %16, %c0_15, %c0_16], %19 {strides = array<i32>} : memref<1x4x32x128xbf16, #tpu.memory_space<vmem>>, vector<1x1x32x128xbf16>,
    }
    %c4_i32_0 = arith.constant 4 : i32
    return
  }
  func.func @transform_0(%arg0: i32) -> (i32, i32, i32, i32) {
    %c0_i32 = arith.constant 0 : i32
    %c0_i32_0 = arith.constant 0 : i32
    %c0_i32_1 = arith.constant 0 : i32
    %c0_i32_2 = arith.constant 0 : i32
    return %arg0, %c0_i32, %c0_i32_0, %c0_i32_1 : i32, i32, i32, i32
  }
  func.func @transform_1(%arg0: i32) -> (i32, i32) {
    %c0_i32 = arith.constant 0 : i32
    %c0_i32_0 = arith.constant 0 : i32
    %c0_i32_1 = arith.constant 0 : i32
    return %c0_i32, %c0_i32_0 : i32, i32
  }
  func.func @transform_2(%arg0: i32) -> (i32, i32) {
    %c0_i32 = arith.constant 0 : i32
    %c0_i32_0 = arith.constant 0 : i32
    %c0_i32_1 = arith.constant 0 : i32
    return %c0_i32, %c0_i32_0 : i32, i32
  }
  func.func @transform_3(%arg0: i32) -> (i32, i32, i32, i32) {
    %c0_i32 = arith.constant 0 : i32
    %c0_i32_0 = arith.constant 0 : i32
    %c0_i32_1 = arith.constant 0 : i32
    %c0_i32_2 = arith.constant 0 : i32
    return %arg0, %c0_i32, %c0_i32_0, %c0_i32_1 : i32, i32, i32, i32
  }
}

module attributes {stable_mosaic.version = 11 : i64} {
  func.func @kernel(%arg0: i32, %arg1: memref<1x6x32x256xbf16, #tpu.memory_space<vmem>>, %arg2: memref<32x864xbf16, #tpu.memory_space<vmem>>, %arg3: memref<32x1xf32, #tpu.memory_space<vmem>>, %arg4: memref<1x4x32x128xbf16, #tpu.memory_space<vmem>>, %arg5: memref<1x4x32x128xbf16, #tpu.memory_space<vmem>>, %arg6: memref<864x128xbf16, #tpu.memory_space<vmem>>) attributes {dimension_semantics = [#tpu.dimension_semantics<parallel>], iteration_bounds = array<i64: 4>, scalar_prefetch = 0 : i64, scratch_operands = 1 : i64, tpu.core_type = #tpu.core_type<tc>, window_params = [{transform_indices = @transform_0, window_bounds = array<i64: 1, 6, 32, 256>}, {pipeline_mode = #tpu.pipeline_mode<synchronous>, transform_indices = @transform_1, window_bounds = array<i64: 32, 864>}, {pipeline_mode = #tpu.pipeline_mode<synchronous>, transform_indices = @transform_2, window_bounds = array<i64: 32, 1>}, {transform_indices = @transform_3, window_bounds = array<i64: 1, 4, 32, 128>}, {transform_indices = @transform_4, window_bounds = array<i64: 1, 4, 32, 128>}]} {
    %c0_i32 = arith.constant 0 : i32
    %c4_i32 = arith.constant 4 : i32
    %0 = arith.addi %c0_i32, %c4_i32 : i32
    %c1_i32 = arith.constant 1 : i32
    scf.for %arg7 = %c0_i32 to %0 step %c1_i32  : i32 {
      %c1_i32_1 = arith.constant 1 : i32
      %1 = arith.muli %arg7, %c1_i32_1 : i32
      %c0_i32_2 = arith.constant 0 : i32
      %2 = arith.addi %c0_i32_2, %1 : i32
      %c1_i32_3 = arith.constant 1 : i32
      %3 = arith.muli %2, %c1_i32_3 : i32
      %c0_i32_4 = arith.constant 0 : i32
      %4 = arith.addi %3, %c0_i32_4 : i32
      %c0 = arith.constant 0 : index
      %5 = arith.index_cast %4 : i32 to index
      %c0_5 = arith.constant 0 : index
      %c0_6 = arith.constant 0 : index
      %6 = vector.load %arg1[%c0, %5, %c0_5, %c0_6] : memref<1x6x32x256xbf16, #tpu.memory_space<vmem>>, vector<1x1x32x256xbf16>
      %7 = vector.shape_cast %6 : vector<1x1x32x256xbf16> to vector<32x256xbf16>
      %8 = vector.extract_strided_slice %7 {offsets = [0, 0], sizes = [32, 128], strides = [1, 1]} : vector<32x256xbf16> to vector<32x128xbf16>
      %c0_7 = arith.constant 0 : index
      %c0_8 = arith.constant 0 : index
      %9 = vector.load %arg6[%c0_7, %c0_8] : memref<864x128xbf16, #tpu.memory_space<vmem>>, vector<32x128xbf16>
      tpu.vector_store %arg6[%c0_7, %c0_8], %8 {strides = array<i32>} : memref<864x128xbf16, #tpu.memory_space<vmem>>, vector<32x128xbf16>,
      %10 = vector.extract_strided_slice %7 {offsets = [0, 1], sizes = [32, 128], strides = [1, 1]} : vector<32x256xbf16> to vector<32x128xbf16>
      %c32 = arith.constant 32 : index
      %c0_9 = arith.constant 0 : index
      %11 = vector.load %arg6[%c32, %c0_9] : memref<864x128xbf16, #tpu.memory_space<vmem>>, vector<32x128xbf16>
      tpu.vector_store %arg6[%c32, %c0_9], %10 {strides = array<i32>} : memref<864x128xbf16, #tpu.memory_space<vmem>>, vector<32x128xbf16>,
      %12 = vector.extract_strided_slice %7 {offsets = [0, 2], sizes = [32, 128], strides = [1, 1]} : vector<32x256xbf16> to vector<32x128xbf16>
      %c64 = arith.constant 64 : index
      %c0_10 = arith.constant 0 : index
      %13 = vector.load %arg6[%c64, %c0_10] : memref<864x128xbf16, #tpu.memory_space<vmem>>, vector<32x128xbf16>
      tpu.vector_store %arg6[%c64, %c0_10], %12 {strides = array<i32>} : memref<864x128xbf16, #tpu.memory_space<vmem>>, vector<32x128xbf16>,
      %14 = vector.extract_strided_slice %7 {offsets = [0, 6], sizes = [32, 128], strides = [1, 1]} : vector<32x256xbf16> to vector<32x128xbf16>
      %c96 = arith.constant 96 : index
      %c0_11 = arith.constant 0 : index
      %15 = vector.load %arg6[%c96, %c0_11] : memref<864x128xbf16, #tpu.memory_space<vmem>>, vector<32x128xbf16>
      tpu.vector_store %arg6[%c96, %c0_11], %14 {strides = array<i32>} : memref<864x128xbf16, #tpu.memory_space<vmem>>, vector<32x128xbf16>,
      %16 = vector.extract_strided_slice %7 {offsets = [0, 7], sizes = [32, 128], strides = [1, 1]} : vector<32x256xbf16> to vector<32x128xbf16>
      %c128 = arith.constant 128 : index
      %c0_12 = arith.constant 0 : index
      %17 = vector.load %arg6[%c128, %c0_12] : memref<864x128xbf16, #tpu.memory_space<vmem>>, vector<32x128xbf16>
      tpu.vector_store %arg6[%c128, %c0_12], %16 {strides = array<i32>} : memref<864x128xbf16, #tpu.memory_space<vmem>>, vector<32x128xbf16>,
      %18 = vector.extract_strided_slice %7 {offsets = [0, 8], sizes = [32, 128], strides = [1, 1]} : vector<32x256xbf16> to vector<32x128xbf16>
      %c160 = arith.constant 160 : index
      %c0_13 = arith.constant 0 : index
      %19 = vector.load %arg6[%c160, %c0_13] : memref<864x128xbf16, #tpu.memory_space<vmem>>, vector<32x128xbf16>
      tpu.vector_store %arg6[%c160, %c0_13], %18 {strides = array<i32>} : memref<864x128xbf16, #tpu.memory_space<vmem>>, vector<32x128xbf16>,
      %20 = vector.extract_strided_slice %7 {offsets = [0, 12], sizes = [32, 128], strides = [1, 1]} : vector<32x256xbf16> to vector<32x128xbf16>
      %c192 = arith.constant 192 : index
      %c0_14 = arith.constant 0 : index
      %21 = vector.load %arg6[%c192, %c0_14] : memref<864x128xbf16, #tpu.memory_space<vmem>>, vector<32x128xbf16>
      tpu.vector_store %arg6[%c192, %c0_14], %20 {strides = array<i32>} : memref<864x128xbf16, #tpu.memory_space<vmem>>, vector<32x128xbf16>,
      %22 = vector.extract_strided_slice %7 {offsets = [0, 13], sizes = [32, 128], strides = [1, 1]} : vector<32x256xbf16> to vector<32x128xbf16>
      %c224 = arith.constant 224 : index
      %c0_15 = arith.constant 0 : index
      %23 = vector.load %arg6[%c224, %c0_15] : memref<864x128xbf16, #tpu.memory_space<vmem>>, vector<32x128xbf16>
      tpu.vector_store %arg6[%c224, %c0_15], %22 {strides = array<i32>} : memref<864x128xbf16, #tpu.memory_space<vmem>>, vector<32x128xbf16>,
      %24 = vector.extract_strided_slice %7 {offsets = [0, 14], sizes = [32, 128], strides = [1, 1]} : vector<32x256xbf16> to vector<32x128xbf16>
      %c256 = arith.constant 256 : index
      %c0_16 = arith.constant 0 : index
      %25 = vector.load %arg6[%c256, %c0_16] : memref<864x128xbf16, #tpu.memory_space<vmem>>, vector<32x128xbf16>
      tpu.vector_store %arg6[%c256, %c0_16], %24 {strides = array<i32>} : memref<864x128xbf16, #tpu.memory_space<vmem>>, vector<32x128xbf16>,
      %c1_i32_17 = arith.constant 1 : i32
      %26 = arith.muli %2, %c1_i32_17 : i32
      %c1_i32_18 = arith.constant 1 : i32
      %27 = arith.addi %26, %c1_i32_18 : i32
      %c0_19 = arith.constant 0 : index
      %28 = arith.index_cast %27 : i32 to index
      %c0_20 = arith.constant 0 : index
      %c0_21 = arith.constant 0 : index
      %29 = vector.load %arg1[%c0_19, %28, %c0_20, %c0_21] : memref<1x6x32x256xbf16, #tpu.memory_space<vmem>>, vector<1x1x32x256xbf16>
      %30 = vector.shape_cast %29 : vector<1x1x32x256xbf16> to vector<32x256xbf16>
      %31 = vector.extract_strided_slice %30 {offsets = [0, 0], sizes = [32, 128], strides = [1, 1]} : vector<32x256xbf16> to vector<32x128xbf16>
      %c288 = arith.constant 288 : index
      %c0_22 = arith.constant 0 : index
      %32 = vector.load %arg6[%c288, %c0_22] : memref<864x128xbf16, #tpu.memory_space<vmem>>, vector<32x128xbf16>
      tpu.vector_store %arg6[%c288, %c0_22], %31 {strides = array<i32>} : memref<864x128xbf16, #tpu.memory_space<vmem>>, vector<32x128xbf16>,
      %33 = vector.extract_strided_slice %30 {offsets = [0, 1], sizes = [32, 128], strides = [1, 1]} : vector<32x256xbf16> to vector<32x128xbf16>
      %c320 = arith.constant 320 : index
      %c0_23 = arith.constant 0 : index
      %34 = vector.load %arg6[%c320, %c0_23] : memref<864x128xbf16, #tpu.memory_space<vmem>>, vector<32x128xbf16>
      tpu.vector_store %arg6[%c320, %c0_23], %33 {strides = array<i32>} : memref<864x128xbf16, #tpu.memory_space<vmem>>, vector<32x128xbf16>,
      %35 = vector.extract_strided_slice %30 {offsets = [0, 2], sizes = [32, 128], strides = [1, 1]} : vector<32x256xbf16> to vector<32x128xbf16>
      %c352 = arith.constant 352 : index
      %c0_24 = arith.constant 0 : index
      %36 = vector.load %arg6[%c352, %c0_24] : memref<864x128xbf16, #tpu.memory_space<vmem>>, vector<32x128xbf16>
      tpu.vector_store %arg6[%c352, %c0_24], %35 {strides = array<i32>} : memref<864x128xbf16, #tpu.memory_space<vmem>>, vector<32x128xbf16>,
      %37 = vector.extract_strided_slice %30 {offsets = [0, 6], sizes = [32, 128], strides = [1, 1]} : vector<32x256xbf16> to vector<32x128xbf16>
      %c384 = arith.constant 384 : index
      %c0_25 = arith.constant 0 : index
      %38 = vector.load %arg6[%c384, %c0_25] : memref<864x128xbf16, #tpu.memory_space<vmem>>, vector<32x128xbf16>
      tpu.vector_store %arg6[%c384, %c0_25], %37 {strides = array<i32>} : memref<864x128xbf16, #tpu.memory_space<vmem>>, vector<32x128xbf16>,
      %39 = vector.extract_strided_slice %30 {offsets = [0, 7], sizes = [32, 128], strides = [1, 1]} : vector<32x256xbf16> to vector<32x128xbf16>
      %c416 = arith.constant 416 : index
      %c0_26 = arith.constant 0 : index
      %40 = vector.load %arg6[%c416, %c0_26] : memref<864x128xbf16, #tpu.memory_space<vmem>>, vector<32x128xbf16>
      tpu.vector_store %arg6[%c416, %c0_26], %39 {strides = array<i32>} : memref<864x128xbf16, #tpu.memory_space<vmem>>, vector<32x128xbf16>,
      %41 = vector.extract_strided_slice %30 {offsets = [0, 8], sizes = [32, 128], strides = [1, 1]} : vector<32x256xbf16> to vector<32x128xbf16>
      %c448 = arith.constant 448 : index
      %c0_27 = arith.constant 0 : index
      %42 = vector.load %arg6[%c448, %c0_27] : memref<864x128xbf16, #tpu.memory_space<vmem>>, vector<32x128xbf16>
      tpu.vector_store %arg6[%c448, %c0_27], %41 {strides = array<i32>} : memref<864x128xbf16, #tpu.memory_space<vmem>>, vector<32x128xbf16>,
      %43 = vector.extract_strided_slice %30 {offsets = [0, 12], sizes = [32, 128], strides = [1, 1]} : vector<32x256xbf16> to vector<32x128xbf16>
      %c480 = arith.constant 480 : index
      %c0_28 = arith.constant 0 : index
      %44 = vector.load %arg6[%c480, %c0_28] : memref<864x128xbf16, #tpu.memory_space<vmem>>, vector<32x128xbf16>
      tpu.vector_store %arg6[%c480, %c0_28], %43 {strides = array<i32>} : memref<864x128xbf16, #tpu.memory_space<vmem>>, vector<32x128xbf16>,
      %45 = vector.extract_strided_slice %30 {offsets = [0, 13], sizes = [32, 128], strides = [1, 1]} : vector<32x256xbf16> to vector<32x128xbf16>
      %c512 = arith.constant 512 : index
      %c0_29 = arith.constant 0 : index
      %46 = vector.load %arg6[%c512, %c0_29] : memref<864x128xbf16, #tpu.memory_space<vmem>>, vector<32x128xbf16>
      tpu.vector_store %arg6[%c512, %c0_29], %45 {strides = array<i32>} : memref<864x128xbf16, #tpu.memory_space<vmem>>, vector<32x128xbf16>,
      %47 = vector.extract_strided_slice %30 {offsets = [0, 14], sizes = [32, 128], strides = [1, 1]} : vector<32x256xbf16> to vector<32x128xbf16>
      %c544 = arith.constant 544 : index
      %c0_30 = arith.constant 0 : index
      %48 = vector.load %arg6[%c544, %c0_30] : memref<864x128xbf16, #tpu.memory_space<vmem>>, vector<32x128xbf16>
      tpu.vector_store %arg6[%c544, %c0_30], %47 {strides = array<i32>} : memref<864x128xbf16, #tpu.memory_space<vmem>>, vector<32x128xbf16>,
      %c1_i32_31 = arith.constant 1 : i32
      %49 = arith.muli %2, %c1_i32_31 : i32
      %c2_i32 = arith.constant 2 : i32
      %50 = arith.addi %49, %c2_i32 : i32
      %c0_32 = arith.constant 0 : index
      %51 = arith.index_cast %50 : i32 to index
      %c0_33 = arith.constant 0 : index
      %c0_34 = arith.constant 0 : index
      %52 = vector.load %arg1[%c0_32, %51, %c0_33, %c0_34] : memref<1x6x32x256xbf16, #tpu.memory_space<vmem>>, vector<1x1x32x256xbf16>
      %53 = vector.shape_cast %52 : vector<1x1x32x256xbf16> to vector<32x256xbf16>
      %54 = vector.extract_strided_slice %53 {offsets = [0, 0], sizes = [32, 128], strides = [1, 1]} : vector<32x256xbf16> to vector<32x128xbf16>
      %c576 = arith.constant 576 : index
      %c0_35 = arith.constant 0 : index
      %55 = vector.load %arg6[%c576, %c0_35] : memref<864x128xbf16, #tpu.memory_space<vmem>>, vector<32x128xbf16>
      tpu.vector_store %arg6[%c576, %c0_35], %54 {strides = array<i32>} : memref<864x128xbf16, #tpu.memory_space<vmem>>, vector<32x128xbf16>,
      %56 = vector.extract_strided_slice %53 {offsets = [0, 1], sizes = [32, 128], strides = [1, 1]} : vector<32x256xbf16> to vector<32x128xbf16>
      %c608 = arith.constant 608 : index
      %c0_36 = arith.constant 0 : index
      %57 = vector.load %arg6[%c608, %c0_36] : memref<864x128xbf16, #tpu.memory_space<vmem>>, vector<32x128xbf16>
      tpu.vector_store %arg6[%c608, %c0_36], %56 {strides = array<i32>} : memref<864x128xbf16, #tpu.memory_space<vmem>>, vector<32x128xbf16>,
      %58 = vector.extract_strided_slice %53 {offsets = [0, 2], sizes = [32, 128], strides = [1, 1]} : vector<32x256xbf16> to vector<32x128xbf16>
      %c640 = arith.constant 640 : index
      %c0_37 = arith.constant 0 : index
      %59 = vector.load %arg6[%c640, %c0_37] : memref<864x128xbf16, #tpu.memory_space<vmem>>, vector<32x128xbf16>
      tpu.vector_store %arg6[%c640, %c0_37], %58 {strides = array<i32>} : memref<864x128xbf16, #tpu.memory_space<vmem>>, vector<32x128xbf16>,
      %60 = vector.extract_strided_slice %53 {offsets = [0, 6], sizes = [32, 128], strides = [1, 1]} : vector<32x256xbf16> to vector<32x128xbf16>
      %c672 = arith.constant 672 : index
      %c0_38 = arith.constant 0 : index
      %61 = vector.load %arg6[%c672, %c0_38] : memref<864x128xbf16, #tpu.memory_space<vmem>>, vector<32x128xbf16>
      tpu.vector_store %arg6[%c672, %c0_38], %60 {strides = array<i32>} : memref<864x128xbf16, #tpu.memory_space<vmem>>, vector<32x128xbf16>,
      %62 = vector.extract_strided_slice %53 {offsets = [0, 7], sizes = [32, 128], strides = [1, 1]} : vector<32x256xbf16> to vector<32x128xbf16>
      %c704 = arith.constant 704 : index
      %c0_39 = arith.constant 0 : index
      %63 = vector.load %arg6[%c704, %c0_39] : memref<864x128xbf16, #tpu.memory_space<vmem>>, vector<32x128xbf16>
      tpu.vector_store %arg6[%c704, %c0_39], %62 {strides = array<i32>} : memref<864x128xbf16, #tpu.memory_space<vmem>>, vector<32x128xbf16>,
      %64 = vector.extract_strided_slice %53 {offsets = [0, 8], sizes = [32, 128], strides = [1, 1]} : vector<32x256xbf16> to vector<32x128xbf16>
      %c736 = arith.constant 736 : index
      %c0_40 = arith.constant 0 : index
      %65 = vector.load %arg6[%c736, %c0_40] : memref<864x128xbf16, #tpu.memory_space<vmem>>, vector<32x128xbf16>
      tpu.vector_store %arg6[%c736, %c0_40], %64 {strides = array<i32>} : memref<864x128xbf16, #tpu.memory_space<vmem>>, vector<32x128xbf16>,
      %66 = vector.extract_strided_slice %53 {offsets = [0, 12], sizes = [32, 128], strides = [1, 1]} : vector<32x256xbf16> to vector<32x128xbf16>
      %c768 = arith.constant 768 : index
      %c0_41 = arith.constant 0 : index
      %67 = vector.load %arg6[%c768, %c0_41] : memref<864x128xbf16, #tpu.memory_space<vmem>>, vector<32x128xbf16>
      tpu.vector_store %arg6[%c768, %c0_41], %66 {strides = array<i32>} : memref<864x128xbf16, #tpu.memory_space<vmem>>, vector<32x128xbf16>,
      %68 = vector.extract_strided_slice %53 {offsets = [0, 13], sizes = [32, 128], strides = [1, 1]} : vector<32x256xbf16> to vector<32x128xbf16>
      %c800 = arith.constant 800 : index
      %c0_42 = arith.constant 0 : index
      %69 = vector.load %arg6[%c800, %c0_42] : memref<864x128xbf16, #tpu.memory_space<vmem>>, vector<32x128xbf16>
      tpu.vector_store %arg6[%c800, %c0_42], %68 {strides = array<i32>} : memref<864x128xbf16, #tpu.memory_space<vmem>>, vector<32x128xbf16>,
      %70 = vector.extract_strided_slice %53 {offsets = [0, 14], sizes = [32, 128], strides = [1, 1]} : vector<32x256xbf16> to vector<32x128xbf16>
      %c832 = arith.constant 832 : index
      %c0_43 = arith.constant 0 : index
      %71 = vector.load %arg6[%c832, %c0_43] : memref<864x128xbf16, #tpu.memory_space<vmem>>, vector<32x128xbf16>
      tpu.vector_store %arg6[%c832, %c0_43], %70 {strides = array<i32>} : memref<864x128xbf16, #tpu.memory_space<vmem>>, vector<32x128xbf16>,
      %c0_44 = arith.constant 0 : index
      %c0_45 = arith.constant 0 : index
      %72 = vector.load %arg2[%c0_44, %c0_45] : memref<32x864xbf16, #tpu.memory_space<vmem>>, vector<32x864xbf16>
      %c0_46 = arith.constant 0 : index
      %c0_47 = arith.constant 0 : index
      %73 = vector.load %arg6[%c0_46, %c0_47] : memref<864x128xbf16, #tpu.memory_space<vmem>>, vector<864x128xbf16>
      %cst = arith.constant dense<0.000000e+00> : vector<32x128xf32>
      %74 = tpu.matmul %72, %73, %cst {dimension_numbers = #tpu.dot_dimension_numbers<[1], [0], [0], [1], [0, 0, 1, 1], [], []>} : vector<32x864xbf16>, vector<864x128xbf16>, vector<32x128xf32> -> vector<32x128xf32>
      %c0_48 = arith.constant 0 : index
      %c0_49 = arith.constant 0 : index
      %75 = vector.load %arg3[%c0_48, %c0_49] : memref<32x1xf32, #tpu.memory_space<vmem>>, vector<32x1xf32>
      %76 = vector.broadcast %75 : vector<32x1xf32> to vector<32x128xf32>
      %77 = arith.addf %74, %76 : vector<32x128xf32>
      %c0_50 = arith.constant 0 : index
      %78 = arith.index_cast %2 : i32 to index
      %c0_51 = arith.constant 0 : index
      %c0_52 = arith.constant 0 : index
      %79 = vector.load %arg4[%c0_50, %78, %c0_51, %c0_52] : memref<1x4x32x128xbf16, #tpu.memory_space<vmem>>, vector<1x1x32x128xbf16>
      %80 = vector.shape_cast %79 : vector<1x1x32x128xbf16> to vector<32x128xbf16>
      %81 = arith.extf %80 : vector<32x128xbf16> to vector<32x128xf32>
      %82 = arith.addf %77, %81 : vector<32x128xf32>
      %cst_53 = arith.constant 0.000000e+00 : f32
      %83 = vector.broadcast %cst_53 : f32 to vector<32x128xf32>
      %84 = arith.maximumf %82, %83 : vector<32x128xf32>
      %85 = arith.truncf %84 : vector<32x128xf32> to vector<32x128xbf16>
      %c0_54 = arith.constant 0 : index
      %86 = arith.index_cast %2 : i32 to index
      %c0_55 = arith.constant 0 : index
      %c0_56 = arith.constant 0 : index
      %87 = vector.load %arg5[%c0_54, %86, %c0_55, %c0_56] : memref<1x4x32x128xbf16, #tpu.memory_space<vmem>>, vector<1x1x32x128xbf16>
      %88 = vector.shape_cast %87 : vector<1x1x32x128xbf16> to vector<32x128xbf16>
      %89 = vector.shape_cast %85 : vector<32x128xbf16> to vector<1x1x32x128xbf16>
      tpu.vector_store %arg5[%c0_54, %86, %c0_55, %c0_56], %89 {strides = array<i32>} : memref<1x4x32x128xbf16, #tpu.memory_space<vmem>>, vector<1x1x32x128xbf16>,
    }
    %c4_i32_0 = arith.constant 4 : i32
    return
  }
  func.func @transform_0(%arg0: i32) -> (i32, i32, i32, i32) {
    %c0_i32 = arith.constant 0 : i32
    %c0_i32_0 = arith.constant 0 : i32
    %c0_i32_1 = arith.constant 0 : i32
    %c0_i32_2 = arith.constant 0 : i32
    return %arg0, %c0_i32, %c0_i32_0, %c0_i32_1 : i32, i32, i32, i32
  }
  func.func @transform_1(%arg0: i32) -> (i32, i32) {
    %c0_i32 = arith.constant 0 : i32
    %c0_i32_0 = arith.constant 0 : i32
    %c0_i32_1 = arith.constant 0 : i32
    return %c0_i32, %c0_i32_0 : i32, i32
  }
  func.func @transform_2(%arg0: i32) -> (i32, i32) {
    %c0_i32 = arith.constant 0 : i32
    %c0_i32_0 = arith.constant 0 : i32
    %c0_i32_1 = arith.constant 0 : i32
    return %c0_i32, %c0_i32_0 : i32, i32
  }
  func.func @transform_3(%arg0: i32) -> (i32, i32, i32, i32) {
    %c0_i32 = arith.constant 0 : i32
    %c0_i32_0 = arith.constant 0 : i32
    %c0_i32_1 = arith.constant 0 : i32
    %c0_i32_2 = arith.constant 0 : i32
    return %arg0, %c0_i32, %c0_i32_0, %c0_i32_1 : i32, i32, i32, i32
  }
  func.func @transform_4(%arg0: i32) -> (i32, i32, i32, i32) {
    %c0_i32 = arith.constant 0 : i32
    %c0_i32_0 = arith.constant 0 : i32
    %c0_i32_1 = arith.constant 0 : i32
    %c0_i32_2 = arith.constant 0 : i32
    return %arg0, %c0_i32, %c0_i32_0, %c0_i32_1 : i32, i32, i32, i32
  }
}

module attributes {stable_mosaic.version = 11 : i64} {
  func.func @_norm_l1_kernel(%arg0: i32, %arg1: memref<8x32x16xbf16, #tpu.memory_space<vmem>>, %arg2: memref<8x32x16xbf16, #tpu.memory_space<vmem>>, %arg3: memref<1x1xf32, #tpu.memory_space<vmem>>) attributes {dimension_semantics = [#tpu.dimension_semantics<arbitrary>], iteration_bounds = array<i64: 1>, scalar_prefetch = 0 : i64, scratch_operands = 0 : i64, tpu.core_type = #tpu.core_type<tc>, window_params = [{pipeline_mode = #tpu.pipeline_mode<synchronous>, transform_indices = @transform_0, window_bounds = array<i64: 8, 32, 16>}, {pipeline_mode = #tpu.pipeline_mode<synchronous>, transform_indices = @transform_1, window_bounds = array<i64: 8, 32, 16>}, {pipeline_mode = #tpu.pipeline_mode<synchronous>, transform_indices = @transform_2, window_bounds = array<i64: 1, 1>}]} {
    %c0 = arith.constant 0 : index
    %c0_0 = arith.constant 0 : index
    %c0_1 = arith.constant 0 : index
    %0 = vector.load %arg1[%c0, %c0_0, %c0_1] : memref<8x32x16xbf16, #tpu.memory_space<vmem>>, vector<8x32x16xbf16>
    %1 = arith.extf %0 : vector<8x32x16xbf16> to vector<8x32x16xf32>
    %c0_2 = arith.constant 0 : index
    %c0_3 = arith.constant 0 : index
    %c0_4 = arith.constant 0 : index
    %2 = vector.load %arg2[%c0_2, %c0_3, %c0_4] : memref<8x32x16xbf16, #tpu.memory_space<vmem>>, vector<8x32x16xbf16>
    %3 = arith.extf %2 : vector<8x32x16xbf16> to vector<8x32x16xf32>
    %4 = arith.mulf %1, %1 : vector<8x32x16xf32>
    %cst = arith.constant dense<0.000000e+00> : vector<8x16xf32>
    %5 = vector.multi_reduction <add>, %4, %cst [1] : vector<8x32x16xf32> to vector<8x16xf32>
    %6 = vector.shape_cast %5 : vector<8x16xf32> to vector<8x1x16xf32>
    %7 = math.sqrt %6 : vector<8x1x16xf32>
    %cst_5 = arith.constant 1.000000e-10 : f32
    %8 = vector.broadcast %cst_5 : f32 to vector<8x1x16xf32>
    %9 = arith.addf %7, %8 : vector<8x1x16xf32>
    %10 = tpu.reciprocal %9 {approx = true} : vector<8x1x16xf32> -> vector<8x1x16xf32>
    %11 = arith.mulf %3, %3 : vector<8x32x16xf32>
    %cst_6 = arith.constant dense<0.000000e+00> : vector<8x16xf32>
    %12 = vector.multi_reduction <add>, %11, %cst_6 [1] : vector<8x32x16xf32> to vector<8x16xf32>
    %13 = vector.shape_cast %12 : vector<8x16xf32> to vector<8x1x16xf32>
    %14 = math.sqrt %13 : vector<8x1x16xf32>
    %cst_7 = arith.constant 1.000000e-10 : f32
    %15 = vector.broadcast %cst_7 : f32 to vector<8x1x16xf32>
    %16 = arith.addf %14, %15 : vector<8x1x16xf32>
    %17 = tpu.reciprocal %16 {approx = true} : vector<8x1x16xf32> -> vector<8x1x16xf32>
    %18 = vector.broadcast %10 : vector<8x1x16xf32> to vector<8x32x16xf32>
    %19 = arith.mulf %1, %18 : vector<8x32x16xf32>
    %20 = vector.broadcast %17 : vector<8x1x16xf32> to vector<8x32x16xf32>
    %21 = arith.mulf %3, %20 : vector<8x32x16xf32>
    %22 = arith.subf %19, %21 : vector<8x32x16xf32>
    %23 = math.absf %22 : vector<8x32x16xf32>
    %24 = vector.shape_cast %23 : vector<8x32x16xf32> to vector<1x8x32x16xf32>
    %cst_8 = arith.constant dense<0.000000e+00> : vector<1xf32>
    %25 = vector.multi_reduction <add>, %24, %cst_8 [1, 2, 3] : vector<1x8x32x16xf32> to vector<1xf32>
    %26 = vector.shape_cast %25 : vector<1xf32> to vector<1x1x1x1xf32>
    %27 = vector.extract %26[0, 0, 0, 0] : f32 from vector<1x1x1x1xf32>
    %28 = vector.broadcast %27 : f32 to vector<1x1xf32>
    %c0_9 = arith.constant 0 : index
    %c0_10 = arith.constant 0 : index
    %29 = vector.load %arg3[%c0_9, %c0_10] : memref<1x1xf32, #tpu.memory_space<vmem>>, vector<1x1xf32>
    tpu.vector_store %arg3[%c0_9, %c0_10], %28 {strides = array<i32>} : memref<1x1xf32, #tpu.memory_space<vmem>>, vector<1x1xf32>,
    return
  }
  func.func @transform_0(%arg0: i32) -> (i32, i32, i32) {
    %c0_i32 = arith.constant 0 : i32
    %c0_i32_0 = arith.constant 0 : i32
    %c0_i32_1 = arith.constant 0 : i32
    %c0_i32_2 = arith.constant 0 : i32
    return %c0_i32, %c0_i32_0, %c0_i32_1 : i32, i32, i32
  }
  func.func @transform_1(%arg0: i32) -> (i32, i32, i32) {
    %c0_i32 = arith.constant 0 : i32
    %c0_i32_0 = arith.constant 0 : i32
    %c0_i32_1 = arith.constant 0 : i32
    %c0_i32_2 = arith.constant 0 : i32
    return %c0_i32, %c0_i32_0, %c0_i32_1 : i32, i32, i32
  }
  func.func @transform_2(%arg0: i32) -> (i32, i32) {
    %c0_i32 = arith.constant 0 : i32
    %c0_i32_0 = arith.constant 0 : i32
    %c0_i32_1 = arith.constant 0 : i32
    return %c0_i32, %c0_i32_0 : i32, i32
  }
}

</mosaic_0001>

<bundles_post_ra>
// kernel: medicalnet_l1_forward.10
= control target key start
LH: loop header
LB: loop body
LE: loop exit
PB: predicated region body
PF: predicated region fallthrough
CT: control target
= control target key end

     0   :  { %s1237_s12 = smov 0   ;;  %s1772_s0 = inlined_call_operand.vmem [shape: bf16[4,33,4,512], index: 0, kind: input, shape index: {}]   ;;  %s1773_s1 = inlined_call_operand.vmem [shape: bf16[8,32], index: 1, kind: input, shape index: {}]   ;;  %s1774_s2 = inlined_call_operand.vmem [shape: f32[8,1], index: 2, kind: input, shape index: {}]   ;;  %s1775_s3 = inlined_call_operand.vmem [shape: bf16[4,16,8,384], index: 3, kind: output, shape index: {}]  }
   0x1 LB: > { %s1072_s13 = sadd.s32 4294967295, %s1204_s12   ;;  %p1076_p0 = scmp.ge.s32.totalorder %s1204_s12, 1  ;;  %s1204_s12 = sphi %s1237_s12, %s13_s12  }
   0x2   : > { %p137_p1 = scmp.lt.s32.totalorder %s1204_s12, 5 }
   0x4   : > { %p138_p2 = pnand %p1076_p0, %p137_p1 }
   0x5   : > { %p161_p3 = scmp.lt.s32.totalorder (!%p138_p2), %s1072_s13, 3  ;;  %vm172_vm0 = vcmask (!%p138_p2), 1047557   ;;  %vm1777_vm1 = vsmask.f32 (!%p138_p2), 7958  ;;  %v175_v0 = vld [vmem:[#allocation2 + $0x18] sm:$0xe0] (!%p138_p2) }
   0x6   : > { %141 = sbr.rel (%p138_p2) target bundleno = 456 (0x1c8), region = 32  ;;  %vm174_vm2 = vmand (!%p138_p2), %vm172_vm0, %vm1777_vm1  ;;  %v178_v1 = vld [vmem:[#allocation2 + $0x20] sm:$0xe0] (!%p138_p2)  ;;  %v181_v2 = vld [vmem:[#allocation2 + $0x28] sm:$0xe0] (!%p138_p2)  ;;  %s1256_s22 = smov (!%p138_p2), 0  }
   0x7   : > { %v176_v3 = vsel (!%p138_p2), %vm174_vm2, 0, %v175_v0  ;;  %v179_v4 = vsel (!%p138_p2), %vm174_vm2, 0, %v178_v1  ;;  %v182_v5 = vsel (!%p138_p2), %vm174_vm2, 0, %v181_v2 }
   0x8   : > { %177 = vst [vmem:[#allocation2 + $0x18] sm:$0xe0] (!%p138_p2), %v176_v3  ;;  %180 = vst [vmem:[#allocation2 + $0x20] sm:$0xe0] (!%p138_p2), %v179_v4 }
   0x9   : > { %183 = vst [vmem:[#allocation2 + $0x28] sm:$0xe0] (!%p138_p2), %v182_v5 }
   0xd   : > { %s1815_s13 = smov (!%p161_p3, %s1072_s13), 3 }
   0xe   : > { %s1113_s14 = smul.u32 264, %s1815_s13 }
   0xf   : > { %s1114_s15 = smul.u32 192, %s1815_s13 }
  0x10   : > { %s1249_s18 = scalar_lea.vmem %s1772_s0, %s1113_s14 }
  0x11   : > { %s1254_s21 = scalar_lea.vmem %s1775_s3, %s1114_s15 }
  0x12 LB: >> { %v200_v6 = vlaneseq  ;;  %v1210_v7 = vmov 1983009808   ;;  %s1096_s23 = sshll.u32 %s1208_s22, 4  ;;  %s1211_s25 = smov 110   ;;  %vm481_vm3 = vsmask.f32 5376  ;;  %s1208_s22 = sphi %s1256_s22, %s189_s22  }
  0x13   : >> { %v198_v8 = vunpack.c.l.s4 %v1210_v7  ;;  %s1263_s24 = scalar_lea.vmem %s1249_s18, %s1096_s23  ;;  %vm530_vm4 = vcmask 1046534   ;;  %vm531_vm5 = vsmask.f32 6400  ;;  %s1212_s26 = smov 111   ;;  %vm1776_vm6 = vcmask 1045509  }
  0x14   : >> { %v201_v9 = vshrl.u32 %v200_v6, 7  ;;  %v194_v11 = vld [vmem:[%s1263_s24] sm:$0xff]  ;;  %v1084_v12 = vld [vmem:[%s1263_s24 + $0x8] sm:$0xff]  ;;  %v539_v27 = vld [vmem:[#allocation2 + $0x10] sm:$0x40]  ;;  %s1213_s27 = smov 127  }
  0x15   : >> { %v199_v10 = vunpack.c.0.s8 %v198_v8  ;;  %v196_v14 = vcombine.high %v194_v11, %v194_v11  ;;  %v426_v15 = vcombine.high %v1084_v12, %v1084_v12  ;;  %v553_v22 = vcombine.low %v1084_v12, %v1084_v12  ;;  %v533_v26 = vld [vmem:[#allocation2] sm:$0x40]  ;;  %vm532_vm7 = vmand %vm530_vm4, %vm531_vm5  ;;  %v536_v33 = vld [vmem:[#allocation2 + $0x8] sm:$0x40]  ;;  %s1101_s5 = smul.u32 12, %s1208_s22  ;;  %s189_s22 = sadd.s32 1, %s1208_s22  }
  0x16   : >> { %v489_v34 = vld [vmem:[#allocation2 + $0x10] sm:$0x20]  ;;  %vm1308_vm8 = vmand %vm1776_vm6, %vm481_vm3  ;;  %v486_v36 = vld [vmem:[#allocation2 + $0x8] sm:$0x20]  ;;  %vm542_vm9 = vsmask.f32 7962 }
  0x17   : >> { %v1267_v13 = vsub.s32 %v199_v10, %v201_v9  ;;  %v483_v46 = vld [vmem:[#allocation2] sm:$0x20]  ;;  %vm543_vm10 = vmand %vm530_vm4, %vm542_vm9  ;;  %v1087_v59 = vld [vmem:[%s1263_s24 + $0x10] sm:$0xff]  ;;  %vm258_vm11 = vcmask 1041409   ;;  %vm259_vm12 = vsmask.f32 1280  ;;  %s997_s6 = scalar_lea.vmem %s1254_s21, %s1101_s5 }
  0x18   : >> { %v672_v0 = vcombine.high %v1087_v59, %v1087_v59  ;;  %v694_v7 = vld [vmem:[#allocation2 + $0x18] sm:$0x2]  ;;  %v697_v8 = vld [vmem:[#allocation2 + $0x20] sm:$0x2]  ;;  %v700_v10 = vld [vmem:[#allocation2 + $0x28] sm:$0x2] }
  0x19   : >> { %v1270_v16 = vrot.slane %v194_v11, %v1267_v13  ;;  %v1273_v17 = vrot.slane %v196_v14, %v1267_v13  ;;  %v1276_v18 = vrot.slane %v426_v15, %v1267_v13  ;;  %v1283_v21 = vrot.slane %v1084_v12, %v1267_v13  ;;  %vm1367_vm13 = vmand %vm258_vm11, %vm259_vm12  ;;  %p186_p4 = scmp.ge.s32.totalorder %s189_s22, 16  }
  0x1a   : >> { %v1297_v30 = vrot.slane %v553_v22, %v1267_v13  ;;  %v1348_v63 = vrot.slane %v1087_v59, %v1267_v13  ;;  %v1362_v6 = vrot.slane %v672_v0, %v1267_v13  ;;  %v712_v14 = vcombine.low %v1087_v59, %v1087_v59  ;;  %v218_v22 = vld [vmem:[#allocation2] sm:$0x1] }
  0x1b   : >> { %395 = vrot.lane.b32.xlu0 %v1270_v16, %s1211_s25  ;;  %v351_v19 = vrot.slane %v1273_v17, 5  ;;  %v241_v20 = vrot.slane %v1273_v17, 7  ;;  %v392_v23 = vcombine.low %v1273_v17, %v1273_v17  ;;  %v1290_v24 = vcombine.high %v1283_v21, %v1283_v21 }
  0x1c   : >> { %v524_v25 = vrot.slane %v1283_v21, 3  ;;  %v474_v28 = vshrl.u32 %v1276_v18, 16  ;;  %v526_v29 = vrot.slane %v1276_v18, 3  ;;  %v1301_v31 = vcombine.high %v1270_v16, %v1270_v16 }
  0x1d   : >> { %357 = vrot.lane.b32.xlu1 %v351_v19, %s1212_s26  ;;  %v471_v32 = vshrl.u32 %v1290_v24, 16  ;;  %v525_v37 = vrot.slane %v1290_v24, 3  ;;  %v562_v41 = vcombine.low %v1283_v21, %v1283_v21  ;;  %v468_v43 = vshrl.u32 %v1283_v21, 16 }
  0x1e   : >> { %v534_v38 = vsel %vm532_vm7, %v524_v25, %v533_v26  ;;  %v476_v39 = vrot.slane %v474_v28, 3  ;;  %v540_v40 = vsel %vm532_vm7, %v526_v29, %v539_v27  ;;  %v240_v47 = vrot.slane %v1301_v31, 7  ;;  %v224_v26 = vld [vmem:[#allocation2 + $0x10] sm:$0x1] }
  0x1f   : >> { %247 = vrot.lane.b32.xlu0 %v241_v20, %s1213_s27  ;;  %v473_v42 = vrot.slane %v471_v32, 3  ;;  %535 = vst [vmem:[#allocation2] sm:$0x40] %v534_v38  ;;  %541 = vst [vmem:[#allocation2 + $0x10] sm:$0x40] %v540_v40  ;;  %v537_v44 = vsel %vm532_vm7, %v525_v37, %v536_v33  ;;  %v470_v49 = vrot.slane %v468_v43, 3  ;;  %v391_v60 = vcombine.low %v1270_v16, %v1270_v16 }
  0x20   : >> { %v490_v45 = vsel %vm1308_vm8, %v476_v39, %v489_v34  ;;  %538 = vst [vmem:[#allocation2 + $0x8] sm:$0x40] %v537_v44  ;;  %v350_v50 = vrot.slane %v1301_v31, 5  ;;  %v239_v52 = vrot.slane %v1270_v16, 7  ;;  %v349_v55 = vrot.slane %v1270_v16, 5 }
  0x21   : >> { %397 = vrot.lane.b32.xlu1 %v392_v23, %s1211_s25  ;;  %v487_v48 = vsel %vm1308_vm8, %v473_v42, %v486_v36  ;;  %491 = vst [vmem:[#allocation2 + $0x10] sm:$0x20] %v490_v45  ;;  %v484_v51 = vsel %vm1308_vm8, %v470_v49, %v483_v46  ;;  %v1345_v61 = vcombine.high %v1273_v17, %v1273_v17  ;;  %v688_v9 = vrot.slane %v1348_v63, 7 }
  0x22   : >> { %488 = vst [vmem:[#allocation2 + $0x8] sm:$0x20] %v487_v48  ;;  %485 = vst [vmem:[#allocation2] sm:$0x20] %v484_v51  ;;  %v561_v1 = vcombine.low %v1297_v30, %v1297_v30  ;;  %v1355_v2 = vcombine.high %v1348_v63, %v1348_v63  ;;  %v690_v12 = vrot.slane %v1362_v6, 7  ;;  %vm215_vm14 = vcmask 1040384  }
  0x23   : >> { %565 = vrot.lane.b32.xlu0 %v1297_v30, %s1213_s27  ;;  %v242_v3 = vrot.slane %v1345_v61, 7  ;;  %v352_v5 = vrot.slane %v1345_v61, 5  ;;  %v695_v15 = vsel %vm1367_vm13, %v688_v9, %v694_v7  ;;  %vm216_vm15 = vsmask.f32 256 }
  0x24   : >> { %v689_v4 = vrot.slane %v1355_v2, 7  ;;  %696 = vst [vmem:[#allocation2 + $0x18] sm:$0x2] %v695_v15  ;;  %v701_v20 = vsel %vm1367_vm13, %v690_v12, %v700_v10  ;;  %vm1381_vm0 = vmand %vm215_vm14, %vm216_vm15  ;;  %v719_v27 = vrot.slane %v712_v14, %v1267_v13  ;;  %vm282_vm2 = vsmask.f32 7942 }
  0x25   : >> { %567 = vrot.lane.b32.xlu1 %v562_v41, %s1213_s27  ;;  %702 = vst [vmem:[#allocation2 + $0x28] sm:$0x2] %v701_v20  ;;  %v225_v33 = vsel %vm1381_vm0, %v1273_v17, %v224_v26  ;;  %vm227_vm3 = vsmask.f32 7938  ;;  %vm1403_vm4 = vmand %vm258_vm11, %vm282_vm2  ;;  %v296_v42 = vshrl.u32 %v1301_v31, 16  ;;  %vm1778_vm7 = vcmask 1042434  }
  0x26   : >> { %v544_v53 = vld [vmem:[#allocation2] sm:$0x40]  ;;  %v550_v54 = vld [vmem:[#allocation2 + $0x10] sm:$0x40]  ;;  %v698_v19 = vsel %vm1367_vm13, %v689_v4, %v697_v8  ;;  %226 = vst [vmem:[#allocation2 + $0x10] sm:$0x1] %v225_v33  ;;  %v720_v13 = vcombine.high %v719_v27, %v719_v27  ;;  %vm1417_vm5 = vmand %vm215_vm14, %vm227_vm3  ;;  %v821_v51 = vcombine.low %v1362_v6, %v1362_v6 }
  0x27   : >> { %245 = vrot.lane.b32.xlu0 %v240_v47, %s1213_s27  ;;  %v545_v56 = vsel %vm543_vm10, %v524_v25, %v544_v53  ;;  %v551_v57 = vsel %vm543_vm10, %v526_v29, %v550_v54  ;;  %v547_v58 = vld [vmem:[#allocation2 + $0x8] sm:$0x40]  ;;  %699 = vst [vmem:[#allocation2 + $0x20] sm:$0x2] %v698_v19  ;;  %v221_v25 = vld [vmem:[#allocation2 + $0x8] sm:$0x1]  ;;  %v219_v29 = vsel %vm1381_vm0, %v1270_v16, %v218_v22 }
  0x28   : >> { %546 = vst [vmem:[#allocation2] sm:$0x40] %v545_v56  ;;  %552 = vst [vmem:[#allocation2 + $0x10] sm:$0x40] %v551_v57  ;;  %v548_v62 = vsel %vm543_vm10, %v525_v37, %v547_v58  ;;  %v222_v30 = vsel %vm1381_vm0, %v1301_v31, %v221_v25  ;;  %vm306_vm9 = vsmask.f32 2304  ;;  %v492_v56 = vcombine.high %v1276_v18, %v1276_v18 }
  0x29   : >> { %355 = vrot.lane.b32.xlu1 %v350_v50, %s1212_s26  ;;  %549 = vst [vmem:[#allocation2 + $0x8] sm:$0x40] %v548_v62  ;;  %220 = vst [vmem:[#allocation2] sm:$0x1] %v219_v29  ;;  %v298_v49 = vrot.slane %v296_v42, 7  ;;  %v293_v54 = vshrl.u32 %v1270_v16, 16  ;;  %v820_v62 = vcombine.low %v1348_v63, %v1348_v63 }
  0x2a   : >> { %223 = vst [vmem:[#allocation2 + $0x8] sm:$0x1] %v222_v30  ;;  %v311_v50 = vld [vmem:[#allocation2 + $0x8] sm:$0x4]  ;;  %vm1438_vm10 = vmand %vm1778_vm7, %vm306_vm9  ;;  %v308_v57 = vld [vmem:[#allocation2] sm:$0x4] }
  0x2b   : >> { %243 = vrot.lane.b32.xlu0 %v239_v52, %s1213_s27  ;;  %v703_v36 = vld [vmem:[#allocation2 + $0x18] sm:$0x2]  ;;  %v312_v53 = vsel %vm1438_vm10, %v298_v49, %v311_v50  ;;  %v274_v58 = vshll.u32 %v1301_v31, 16  ;;  %v277_v59 = vshll.u32 %v1273_v17, 16  ;;  %v299_v0 = vshrl.u32 %v1273_v17, 16 }
  0x2c   : >> { %v704_v38 = vsel %vm1403_vm4, %v688_v9, %v703_v36  ;;  %v709_v40 = vld [vmem:[#allocation2 + $0x28] sm:$0x2]  ;;  %313 = vst [vmem:[#allocation2 + $0x8] sm:$0x4] %v312_v53  ;;  %vm1779_vm11 = vcmask 1043459   ;;  %v1480_v14 = vshll.u32 %v1283_v21, 16 }
  0x2d   : >> { %353 = vrot.lane.b32.xlu1 %v349_v55, %s1212_s26  ;;  %705 = vst [vmem:[#allocation2 + $0x18] sm:$0x2] %v704_v38  ;;  %v295_v55 = vrot.slane %v293_v54, 7  ;;  %v318_v7 = vrot.slane %v274_v58, 7  ;;  %vm369_vm12 = vsmask.f32 3328 }
  0x2e   : >> { %v706_v37 = vld [vmem:[#allocation2 + $0x20] sm:$0x2]  ;;  %v314_v8 = vld [vmem:[#allocation2 + $0x10] sm:$0x4]  ;;  %v497_v19 = vshll.u32 %v492_v56, 16  ;;  %vm1483_vm14 = vmand %vm1779_vm11, %vm369_vm12  ;;  %v321_v29 = vshll.u32 %v1345_v61, 16 }
  0x2f   : >> { %393 = vrot.lane.b32.xlu0 %v391_v60, %s1211_s25  ;;  %v707_v39 = vsel %vm1403_vm4, %v689_v4, %v706_v37  ;;  %v309_v60 = vsel %vm1438_vm10, %v295_v55, %v308_v57  ;;  %v1465_v4 = vshll.u32 %v1276_v18, 16  ;;  %v783_v22 = vld [vmem:[#allocation2 + $0x20] sm:$0x8]  ;;  %v589_v38 = vrot.slane %v1480_v14, 1 }
  0x30   : >> { %708 = vst [vmem:[#allocation2 + $0x20] sm:$0x2] %v707_v39  ;;  %v229_v44 = vld [vmem:[#allocation2] sm:$0x1]  ;;  %310 = vst [vmem:[#allocation2] sm:$0x4] %v309_v60 }
  0x31   : >> { %563 = vrot.lane.b32.xlu1 %v561_v1, %s1213_s27  ;;  %v232_v45 = vld [vmem:[#allocation2 + $0x8] sm:$0x1]  ;;  %v230_v46 = vsel %vm1417_vm5, %v1270_v16, %v229_v44  ;;  %v1461_v1 = vshll.u32 %v1290_v24, 16  ;;  %v771_v24 = vshrl.u32 %v1355_v2, 16  ;;  %v495_v10 = vrot.slane %v1465_v4, 3 }
  0x32   : >> { %v233_v47 = vsel %vm1417_vm5, %v1301_v31, %v232_v45  ;;  %231 = vst [vmem:[#allocation2] sm:$0x1] %v230_v46  ;;  %v592_v36 = vrot.slane %v497_v19, 1  ;;  %v768_v39 = vshrl.u32 %v1348_v63, 16  ;;  %v774_v61 = vshrl.u32 %v1362_v6, 16 }
  0x33   : >> { %249 = vrot.lane.b32.xlu0 %v242_v3, %s1213_s27  ;;  %234 = vst [vmem:[#allocation2 + $0x8] sm:$0x1] %v233_v47  ;;  %v618_v3 = vshrl.u32 %v492_v56, 16  ;;  %v494_v9 = vrot.slane %v1461_v1, 3  ;;  %v773_v15 = vrot.slane %v771_v24, 6  ;;  %v590_v26 = vrot.slane %v1461_v1, 1 }
  0x34   : >> { %v749_v42 = vshll.u32 %v1355_v2, 16  ;;  %v753_v45 = vshll.u32 %v1362_v6, 16  ;;  %v776_v46 = vrot.slane %v774_v61, 6  ;;  %v780_v47 = vld [vmem:[#allocation2 + $0x18] sm:$0x8]  ;;  %v1158_v49 = vpack.i.bf16 %v592_v36, %v589_v38 }
  0x35   : >> { %359 = vrot.lane.b32.xlu1 %v352_v5, %s1212_s26  ;;  %v301_v5 = vrot.slane %v299_v0, 7  ;;  %v1143_v30 = vpack.i.bf16 %v495_v10, %v494_v9  ;;  %v789_v56 = vcombine.high %v1362_v6, %v1362_v6  ;;  %v1168_v57 = vpack.i.bf16 %v1465_v4, %v1461_v1  ;;  %v264_v61 = vld [vmem:[#allocation2 + $0x8] sm:$0x2] }
  0x36   : >> { %v791_v54 = vrot.slane %v749_v42, 6  ;;  %v792_v55 = vrot.slane %v753_v45, 6  ;;  %v1214_v60 = vmov 0.0   ;;  %v745_v0 = vshll.u32 %v1348_v63, 16 }
  0x37   : >> { %399 = vrot.lane.b32.xlu0 %v1273_v17, %s1211_s25  ;;  %v315_v18 = vsel %vm1438_vm10, %v301_v5, %v314_v8  ;;  %1105 = vmatprep.subr.bf16.mxu1 %v1214_v60  ;;  %v855_v5 = vrot.slane %v1355_v2, 3  ;;  %v1178_v24 = vpack.i.bf16 %v497_v19, %v1480_v14  ;;  %v857_v10 = vrot.slane %v789_v56, 3 }
  0x38   : >> { %316 = vst [vmem:[#allocation2 + $0x10] sm:$0x4] %v315_v18  ;;  %v854_v18 = vrot.slane %v1348_v63, 3  ;;  %vm1216_vm15 = vmmov 0   ;;  %vm408_vm2 = vcmask 1044484   ;;  %vm401_vm9 = vcmask 900096  }
  0x39   : >> { %569 = vrot.lane.b32.xlu1 %v1283_v21, %s1213_s27  ;;  %v784_v21 = vsel %vm1483_vm14, %v773_v15, %v783_v22  ;;  %v1215_v15 = vmov 0   ;;  %1109 = vmatprep.mubr.msk.bf16.mxu1 %vm1216_vm15, %v1214_v60  ;;  %vm409_vm3 = vsmask.f32 4352  ;;  %vm1780_vm15 = vcmask 1047559  }
  0x3a   : >> { %785 = vst [vmem:[#allocation2 + $0x20] sm:$0x8] %v784_v21  ;;  %930 = vmatprep.mubr.bf16.mxu0 %v1215_v15  ;;  %1188 = vset.pattern.permute.xlu0 %v1215_v15  ;;  %vm1547_vm12 = vmand %vm408_vm2, %vm409_vm3  ;;  %v414_v21 = vld [vmem:[#allocation2 + $0x8] sm:$0x10]  ;;  %vm578_vm6 = vsmask.f32 7424 }
  0x3b   : >> { %622 = vrot.lane.b32.xlu0 %v471_v32, %s1212_s26  ;;  %v710_v32 = vsel %vm1403_vm4, %v690_v12, %v709_v40  ;;  %v271_v12 = vshll.u32 %v1270_v16, 16  ;;  %v323_v40 = vrot.slane %v321_v29, 7  ;;  %vm251_vm1 = vcmask 1039360   ;;  %vm1558_vm7 = vmand %vm1780_vm15, %vm578_vm6 }
  0x3c   : >> { %711 = vst [vmem:[#allocation2 + $0x28] sm:$0x2] %v710_v32  ;;  %v499_v32 = vrot.slane %v497_v19, 3  ;;  %v888_v19 = vld [vmem:[%s1774_s2] sm:$0xff]  ;;  %vm457_vm3 = vsmask.f32 7954 }
  0x3d   : >> { %624 = vrot.lane.b32.xlu1 %v474_v28, %s1212_s26  ;;  %v235_v28 = vld [vmem:[#allocation2 + $0x10] sm:$0x1]  ;;  %v317_v33 = vrot.slane %v271_v12, 7  ;;  %vm361_vm11 = vcmask 908288   ;;  %vm1572_vm6 = vmand %vm408_vm2, %vm457_vm3  ;;  %vm380_vm2 = vsmask.f32 7950 }
  0x3e   : >> { %v236_v48 = vsel %vm1417_vm5, %v1273_v17, %v235_v28  ;;  %v770_v28 = vrot.slane %v768_v39, 6  ;;  %v1163_v53 = vpack.i.bf16 %v499_v32, %v323_v40  ;;  %vm1801_vm3 = vcmask 1043459  }
  0x3f   : >> { %723 = vrot.lane.b32.xlu0 %v720_v13, %s1213_s27  ;;  %237 = vst [vmem:[#allocation2 + $0x10] sm:$0x1] %v236_v48  ;;  %v493_v13 = vrot.slane %v1480_v14, 3  ;;  %v786_v48 = vld [vmem:[#allocation2 + $0x28] sm:$0x8]  ;;  %vm1592_vm15 = vmand %vm1801_vm3, %vm380_vm2  ;;  %vm1811_vm2 = vcmask 1047559  }
  0x40   : >> { %v781_v50 = vsel %vm1483_vm14, %v770_v28, %v780_v47 }
  0x41   : >> { %725 = vrot.lane.b32.xlu1 %v1348_v63, %s1213_s27  ;;  %v1153_v44 = vpack.i.bf16 %v493_v13, %v317_v33  ;;  %782 = vst [vmem:[#allocation2 + $0x18] sm:$0x8] %v781_v50 }
  0x43   : >> { %824 = vrot.lane.b32.xlu0 %v1348_v63, %s1212_s26 }
  0x45   : >> { %826 = vrot.lane.b32.xlu1 %v821_v51, %s1212_s26  ;;  %v787_v51 = vsel %vm1483_vm14, %v776_v46, %v786_v48  ;;  %v374_v46 = vld [vmem:[#allocation2 + $0x8] sm:$0x8] }
  0x46   : >> { %788 = vst [vmem:[#allocation2 + $0x28] sm:$0x8] %v787_v51  ;;  %v261_v51 = vld [vmem:[#allocation2] sm:$0x2] }
  0x47   : >> { %620 = vrot.lane.b32.xlu0 %v468_v43, %s1212_s26  ;;  %v319_v43 = vrot.slane %v277_v59, 7 }
  0x49   : >> { %721 = vrot.lane.b32.xlu1 %v719_v27, %s1213_s27  ;;  %v1138_v25 = vpack.i.bf16 %v319_v43, %v318_v7  ;;  %v591_v27 = vrot.slane %v1465_v4, 1  ;;  %v856_v7 = vrot.slane %v1362_v6, 3  ;;  %v790_v43 = vrot.slane %v745_v0, 6 }
  0x4b   : >> { %822 = vrot.lane.b32.xlu0 %v820_v62, %s1212_s26  ;;  %v1148_v37 = vpack.i.bf16 %v591_v27, %v590_v26  ;;  %v1173_v62 = vpack.i.bf16 %v792_v55, %v791_v54 }
  0x4d   : >> { %626 = vrot.lane.b32.xlu1 %v618_v3, %s1212_s26  ;;  %v794_v3 = vshll.u32 %v789_v56, 16 }
  0x4f   : >> { %727 = vrot.lane.b32.xlu0 %v1355_v2, %s1213_s27  ;;  %v796_v8 = vrot.slane %v794_v3, 6 }
  0x51   : >> { %828 = vrot.lane.b32.xlu1 %v1362_v6, %s1212_s26  ;;  %v1183_v9 = vpack.i.bf16 %v796_v8, %v790_v43 }
  0x53   : >> { %1139 = vrot.lane.b32.xlu0 %v1138_v25, %s1213_s27 }
  0x55   : >> { %1144 = vrot.lane.b32.xlu1 %v1143_v30, %s1213_s27 }
  0x57   : >> { %1149 = vrot.lane.b32.xlu0 %v1148_v37, %s1212_s26  ;;  %v583_v37 = vld [vmem:[#allocation2 + $0x8] sm:$0x80] }
  0x59   : >> { %1154 = vrot.lane.b32.xlu1 %v1153_v44, %s1213_s27  ;;  %v449_v44 = vrot.slane %v1461_v1, 4 }
  0x5b   : >> { %1159 = vrot.lane.b32.xlu0 %v1158_v49, %s1212_s26 }
  0x5d   : >> { %1164 = vrot.lane.b32.xlu1 %v1163_v53, %s1213_s27 }
  0x5f   : >> { %1169 = vrot.lane.b32.xlu0 %v1168_v57, %s1211_s25  ;;  %v371_v57 = vld [vmem:[#allocation2] sm:$0x8] }
  0x61   : >> { %1174 = vrot.lane.b32.xlu1 %v1173_v62, %s1213_s27 }
  0x63   : >> { %860 = vrot.lane.b32.xlu0 %v855_v5, %s1211_s25 }
  0x65   : >> { %862 = vrot.lane.b32.xlu1 %v856_v7, %s1211_s25  ;;  %v411_v7 = vld [vmem:[#allocation2] sm:$0x10] }
  0x67   : >> { %1179 = vrot.lane.b32.xlu0 %v1178_v24, %s1211_s25 }
  0x69   : >> { %1184 = vrot.lane.b32.xlu1 %v1183_v9, %s1213_s27  ;;  %v580_v9 = vld [vmem:[#allocation2] sm:$0x80] }
  0x6b   : >> { %858 = vrot.lane.b32.xlu0 %v854_v18, %s1211_s25 }
  0x6d   : >> { %864 = vrot.lane.b32.xlu1 %v857_v10, %s1211_s25  ;;  %v881_v10 = vld [vmem:[%s1773_s1] sm:$0xf] }
  0x6f   : >> { %891 = vperm.xlu0 %1188, %v888_v19  }
  0x8d   : >> { %v396_v22 = vpop.permute.xlu0 %395 }
  0x8f   : >> { %v1542_v25 = vpop.permute.xlu1 %357 }
  0x91   : >> { %v1544_v26 = vpop.permute.xlu0 %247 }
  0x93   : >> { %v1551_v29 = vpop.permute.xlu1 %397 }
  0x94   : >> { %v403_v30 = vsel %vm401_vm9, %v396_v22, %v1551_v29 }
  0x95   : >> { %v415_v33 = vsel %vm1547_vm12, %v403_v30, %v414_v21  ;;  %v566_v13 = vpop.permute.xlu0 %565 }
  0x96   : >> { %416 = vst [vmem:[#allocation2 + $0x8] sm:$0x10] %v415_v33 }
  0x97   : >> { %v1562_v38 = vpop.permute.xlu1 %567 }
  0x98   : >> { %v572_v39 = vsel %vm251_vm1, %v566_v13, %v1562_v38 }
  0x99   : >> { %v584_v40 = vsel %vm1558_vm7, %v572_v39, %v583_v37  ;;  %v246_v32 = vpop.permute.xlu0 %245 }
  0x9a   : >> { %585 = vst [vmem:[#allocation2 + $0x8] sm:$0x80] %v584_v40  ;;  %v253_v28 = vsel %vm251_vm1, %v246_v32, %v1544_v26  ;;  %v377_v40 = vld [vmem:[#allocation2 + $0x10] sm:$0x8] }
  0x9b   : >> { %v265_v48 = vsel %vm1367_vm13, %v253_v28, %v264_v61  ;;  %v356_v49 = vpop.permute.xlu1 %355  ;;  %v445_v28 = vrot.slane %v1480_v14, 4 }
  0x9c   : >> { %266 = vst [vmem:[#allocation2 + $0x8] sm:$0x2] %v265_v48  ;;  %v363_v50 = vsel %vm361_vm11, %v356_v49, %v1542_v25  ;;  %v417_v48 = vld [vmem:[#allocation2 + $0x10] sm:$0x10] }
  0x9d   : >> { %v462_v1 = vld [vmem:[#allocation2 + $0x8] sm:$0x10]  ;;  %v375_v53 = vsel %vm1483_vm14, %v363_v50, %v374_v46  ;;  %v244_v54 = vpop.permute.xlu0 %243 }
  0x9e   : >> { %v463_v55 = vsel %vm1572_vm6, %v449_v44, %v462_v1  ;;  %376 = vst [vmem:[#allocation2 + $0x8] sm:$0x8] %v375_v53  ;;  %v252_v56 = vsel %vm251_vm1, %v244_v54, %v246_v32 }
  0x9f   : >> { %464 = vst [vmem:[#allocation2 + $0x8] sm:$0x10] %v463_v55  ;;  %v262_v62 = vsel %vm1367_vm13, %v252_v56, %v261_v51  ;;  %v354_v3 = vpop.permute.xlu1 %353 }
  0xa0   : >> { %263 = vst [vmem:[#allocation2] sm:$0x2] %v262_v62  ;;  %v362_v5 = vsel %vm361_vm11, %v354_v3, %v356_v49  ;;  %v453_v62 = vrot.slane %v1465_v4, 4 }
  0xa1   : >> { %v372_v43 = vsel %vm1483_vm14, %v362_v5, %v371_v57  ;;  %v394_v8 = vpop.permute.xlu0 %393 }
  0xa2   : >> { %373 = vst [vmem:[#allocation2] sm:$0x8] %v372_v43  ;;  %v402_v24 = vsel %vm401_vm9, %v394_v8, %v396_v22  ;;  %v267_v22 = vld [vmem:[#allocation2 + $0x10] sm:$0x2]  ;;  %v738_v43 = vld [vmem:[#allocation2 + $0x20] sm:$0x4] }
  0xa3   : >> { %v287_v18 = vld [vmem:[#allocation2 + $0x8] sm:$0x2]  ;;  %v412_v15 = vsel %vm1547_vm12, %v402_v24, %v411_v7  ;;  %v564_v19 = vpop.permute.xlu1 %563 }
  0xa4   : >> { %v288_v21 = vsel %vm1403_vm4, %v274_v58, %v287_v18  ;;  %413 = vst [vmem:[#allocation2] sm:$0x10] %v412_v15  ;;  %v571_v30 = vsel %vm251_vm1, %v564_v19, %v566_v13  ;;  %v634_v19 = vld [vmem:[#allocation2 + $0x18] sm:$0x1] }
  0xa5   : >> { %289 = vst [vmem:[#allocation2 + $0x8] sm:$0x2] %v288_v21  ;;  %v385_v33 = vld [vmem:[#allocation2 + $0x8] sm:$0x8]  ;;  %v581_v37 = vsel %vm1558_vm7, %v571_v30, %v580_v9  ;;  %v250_v39 = vpop.permute.xlu0 %249  ;;  %v839_v9 = vld [vmem:[#allocation2 + $0x20] sm:$0x10] }
  0xa6   : >> { %v386_v61 = vsel %vm1592_vm15, %v363_v50, %v385_v33  ;;  %582 = vst [vmem:[#allocation2] sm:$0x80] %v581_v37  ;;  %v254_v31 = vsel %vm251_vm1, %v1544_v26, %v250_v39  ;;  %v735_v37 = vld [vmem:[#allocation2 + $0x18] sm:$0x4]  ;;  %v875_v39 = vld [vmem:[#allocation2 + $0x20] sm:$0x20] }
  0xa7   : >> { %387 = vst [vmem:[#allocation2 + $0x8] sm:$0x8] %v386_v61  ;;  %v284_v58 = vld [vmem:[#allocation2] sm:$0x2]  ;;  %v268_v13 = vsel %vm1367_vm13, %v254_v31, %v267_v22  ;;  %v360_v32 = vpop.permute.xlu1 %359  ;;  %vm338_vm13 = vsmask.f32 7946 }
  0xa8   : >> { %v285_v44 = vsel %vm1403_vm4, %v271_v12, %v284_v58  ;;  %269 = vst [vmem:[#allocation2 + $0x10] sm:$0x2] %v268_v13  ;;  %v364_v46 = vsel %vm361_vm11, %v1542_v25, %v360_v32  ;;  %v586_v12 = vld [vmem:[#allocation2 + $0x10] sm:$0x80]  ;;  %v751_v22 = vrot.slane %v749_v42, 7 }
  0xa9   : >> { %286 = vst [vmem:[#allocation2] sm:$0x2] %v285_v44  ;;  %v382_v26 = vld [vmem:[#allocation2] sm:$0x8]  ;;  %v378_v49 = vsel %vm1483_vm14, %v364_v46, %v377_v40  ;;  %v400_v11 = vpop.permute.xlu0 %399  ;;  %v836_v58 = vld [vmem:[#allocation2 + $0x18] sm:$0x10] }
  0xaa   : >> { %v383_v50 = vsel %vm1592_vm15, %v362_v5, %v382_v26  ;;  %379 = vst [vmem:[#allocation2 + $0x10] sm:$0x8] %v378_v49  ;;  %v404_v16 = vsel %vm401_vm9, %v1551_v29, %v400_v11  ;;  %v637_v29 = vld [vmem:[#allocation2 + $0x20] sm:$0x1]  ;;  %v741_v49 = vld [vmem:[#allocation2 + $0x28] sm:$0x4] }
  0xab   : >> { %384 = vst [vmem:[#allocation2] sm:$0x8] %v383_v50  ;;  %v459_v14 = vld [vmem:[#allocation2] sm:$0x10]  ;;  %v418_v25 = vsel %vm1547_vm12, %v404_v16, %v417_v48  ;;  %v570_v51 = vpop.permute.xlu1 %569  ;;  %vm1808_vm14 = vcmask 1045509  }
  0xac   : >> { %v460_v1 = vsel %vm1572_vm6, %v445_v28, %v459_v14  ;;  %419 = vst [vmem:[#allocation2 + $0x10] sm:$0x10] %v418_v25  ;;  %v573_v20 = vsel %vm251_vm1, %v1562_v38, %v570_v51  ;;  %v640_v28 = vld [vmem:[#allocation2 + $0x28] sm:$0x1]  ;;  %v842_v51 = vld [vmem:[#allocation2 + $0x28] sm:$0x10] }
  0xad   : >> { %461 = vst [vmem:[#allocation2] sm:$0x10] %v460_v1  ;;  %v587_v53 = vsel %vm1558_vm7, %v573_v20, %v586_v12  ;;  %v623_v54 = vpop.permute.xlu0 %622  ;;  %v747_v12 = vrot.slane %v745_v0, 7 }
  0xae   : >> { %588 = vst [vmem:[#allocation2 + $0x10] sm:$0x80] %v587_v53 }
  0xaf   : >> { %v290_v55 = vld [vmem:[#allocation2 + $0x10] sm:$0x2]  ;;  %v625_v56 = vpop.permute.xlu1 %624 }
  0xb0   : >> { %v291_v57 = vsel %vm1403_vm4, %v277_v59, %v290_v55  ;;  %v629_v3 = vsel %vm361_vm11, %v623_v54, %v625_v56  ;;  %vm1804_vm4 = vcmask 1042434  }
  0xb1   : >> { %292 = vst [vmem:[#allocation2 + $0x10] sm:$0x2] %v291_v57  ;;  %v388_v38 = vld [vmem:[#allocation2 + $0x10] sm:$0x8]  ;;  %v638_v36 = vsel %vm1381_vm0, %v629_v3, %v637_v29  ;;  %v724_v5 = vpop.permute.xlu0 %723  ;;  %vm1654_vm7 = vmand %vm1804_vm4, %vm338_vm13  ;;  %v343_v29 = vld [vmem:[#allocation2 + $0x8] sm:$0x4] }
  0xb2   : >> { %v389_v7 = vsel %vm1592_vm15, %v364_v46, %v388_v38  ;;  %639 = vst [vmem:[#allocation2 + $0x20] sm:$0x1] %v638_v36  ;;  %v518_v36 = vld [vmem:[#allocation2 + $0x8] sm:$0x20] }
  0xb3   : >> { %390 = vst [vmem:[#allocation2 + $0x10] sm:$0x8] %v389_v7  ;;  %v465_v17 = vld [vmem:[#allocation2 + $0x10] sm:$0x10]  ;;  %v726_v8 = vpop.permute.xlu1 %725 }
  0xb4   : >> { %v466_v34 = vsel %vm1572_vm6, %v453_v62, %v465_v17  ;;  %v730_v59 = vsel %vm251_vm1, %v724_v5, %v726_v8 }
  0xb5   : >> { %467 = vst [vmem:[#allocation2 + $0x10] sm:$0x10] %v466_v34  ;;  %v739_v4 = vsel %vm1438_vm10, %v730_v59, %v738_v43  ;;  %v825_v24 = vpop.permute.xlu0 %824 }
  0xb6   : >> { %740 = vst [vmem:[#allocation2 + $0x20] sm:$0x4] %v739_v4 }
  0xb7   : >> { %v827_v18 = vpop.permute.xlu1 %826 }
  0xb8   : >> { %v831_v15 = vsel %vm361_vm11, %v825_v24, %v827_v18 }
  0xb9   : >> { %v840_v21 = vsel %vm1547_vm12, %v831_v15, %v839_v9  ;;  %v621_v30 = vpop.permute.xlu0 %620 }
  0xba   : >> { %841 = vst [vmem:[#allocation2 + $0x20] sm:$0x10] %v840_v21  ;;  %v628_v33 = vsel %vm361_vm11, %v621_v30, %v623_v54  ;;  %v515_v21 = vld [vmem:[#allocation2] sm:$0x20] }
  0xbb   : >> { %v635_v61 = vsel %vm1381_vm0, %v628_v33, %v634_v19  ;;  %v722_v31 = vpop.permute.xlu1 %721  ;;  %v340_v19 = vld [vmem:[#allocation2] sm:$0x4] }
  0xbc   : >> { %636 = vst [vmem:[#allocation2 + $0x18] sm:$0x1] %v635_v61  ;;  %v729_v40 = vsel %vm251_vm1, %v722_v31, %v724_v5 }
  0xbd   : >> { %v762_v13 = vld [vmem:[#allocation2 + $0x20] sm:$0x4]  ;;  %v736_v2 = vsel %vm1438_vm10, %v729_v40, %v735_v37  ;;  %v823_v42 = vpop.permute.xlu0 %822 }
  0xbe   : >> { %v763_v32 = vsel %vm1654_vm7, %v751_v22, %v762_v13  ;;  %737 = vst [vmem:[#allocation2 + $0x18] sm:$0x4] %v736_v2  ;;  %v830_v44 = vsel %vm361_vm11, %v823_v42, %v825_v24 }
  0xbf   : >> { %764 = vst [vmem:[#allocation2 + $0x20] sm:$0x4] %v763_v32  ;;  %v837_v46 = vsel %vm1547_vm12, %v830_v44, %v836_v58  ;;  %v627_v48 = vpop.permute.xlu1 %626 }
  0xc0   : >> { %838 = vst [vmem:[#allocation2 + $0x18] sm:$0x10] %v837_v46  ;;  %v630_v26 = vsel %vm361_vm11, %v625_v56, %v627_v48  ;;  %v755_v56 = vrot.slane %v753_v45, 7  ;;  %v346_v46 = vld [vmem:[#allocation2 + $0x10] sm:$0x4] }
  0xc1   : >> { %v848_v11 = vld [vmem:[#allocation2 + $0x20] sm:$0x10]  ;;  %v641_v50 = vsel %vm1381_vm0, %v630_v26, %v640_v28  ;;  %v728_v16 = vpop.permute.xlu0 %727  ;;  %vm607_vm0 = vsmask.f32 7966  ;;  %v615_v28 = vld [vmem:[#allocation2 + $0x10] sm:$0x80] }
  0xc2   : >> { %v849_v14 = vsel %vm1572_vm6, %v831_v15, %v848_v11  ;;  %642 = vst [vmem:[#allocation2 + $0x28] sm:$0x1] %v641_v50  ;;  %v731_v25 = vsel %vm251_vm1, %v726_v8, %v728_v16  ;;  %vm1701_vm3 = vmand %vm1811_vm2, %vm607_vm0  ;;  %v521_v48 = vld [vmem:[#allocation2 + $0x10] sm:$0x20]  ;;  %v609_v11 = vld [vmem:[#allocation2] sm:$0x80] }
  0xc3   : >> { %850 = vst [vmem:[#allocation2 + $0x20] sm:$0x10] %v849_v14  ;;  %v742_v1 = vsel %vm1438_vm10, %v731_v25, %v741_v49  ;;  %v829_v20 = vpop.permute.xlu1 %828  ;;  %vm1807_vm10 = vsmask.f32 7958 }
  0xc4   : >> { %743 = vst [vmem:[#allocation2 + $0x28] sm:$0x4] %v742_v1  ;;  %v832_v23 = vsel %vm361_vm11, %v827_v18, %v829_v20  ;;  %v612_v18 = vld [vmem:[#allocation2 + $0x8] sm:$0x80] }
  0xc5   : >> { %v759_v53 = vld [vmem:[#allocation2 + $0x18] sm:$0x4]  ;;  %v843_v63 = vsel %vm1547_vm12, %v832_v23, %v842_v51  ;;  %v1681_v0 = vpop.permute.xlu0 %1139  ;;  %vm1694_vm12 = vmand %vm1808_vm14, %vm1807_vm10 }
  0xc6   : >> { %v760_v54 = vsel %vm1654_vm7, %v747_v12, %v759_v53  ;;  %844 = vst [vmem:[#allocation2 + $0x28] sm:$0x10] %v843_v63  ;;  %v1142_v55 = vunpack.i.h.bf16 %v1681_v0  ;;  %v1141_v52 = vunpack.i.l.bf16 %v1681_v0  ;;  %v814_v0 = vld [vmem:[#allocation2 + $0x20] sm:$0x8] }
  0xc7   : >> { %761 = vst [vmem:[#allocation2 + $0x18] sm:$0x4] %v760_v54  ;;  %v845_v57 = vld [vmem:[#allocation2 + $0x18] sm:$0x10]  ;;  %v1145_v62 = vpop.permute.xlu1 %1144 }
  0xc8   : >> { %v846_v27 = vsel %vm1572_vm6, %v830_v44, %v845_v57  ;;  %v333_v3 = vsel %vm251_vm1, %v1141_v52, %v1142_v55  ;;  %v1147_v5 = vunpack.i.h.bf16 %v1145_v62  ;;  %v1146_v7 = vunpack.i.l.bf16 %v1145_v62 }
  0xc9   : >> { %847 = vst [vmem:[#allocation2 + $0x18] sm:$0x10] %v846_v27  ;;  %v344_v6 = vsel %vm1654_vm7, %v333_v3, %v343_v29  ;;  %v1150_v45 = vpop.permute.xlu0 %1149 }
  0xca   : >> { %345 = vst [vmem:[#allocation2 + $0x8] sm:$0x4] %v344_v6  ;;  %v509_v17 = vsel %vm251_vm1, %v1146_v7, %v1147_v5  ;;  %v1152_v8 = vunpack.i.h.bf16 %v1150_v45  ;;  %v1151_v34 = vunpack.i.l.bf16 %v1150_v45 }
  0xcb   : >> { %v765_v59 = vld [vmem:[#allocation2 + $0x28] sm:$0x4]  ;;  %v519_v4 = vsel %vm1694_vm12, %v509_v17, %v518_v36  ;;  %v1155_v24 = vpop.permute.xlu1 %1154  ;;  %v811_v17 = vld [vmem:[#allocation2 + $0x18] sm:$0x8] }
  0xcc   : >> { %v766_v9 = vsel %vm1654_vm7, %v755_v56, %v765_v59  ;;  %520 = vst [vmem:[#allocation2 + $0x8] sm:$0x20] %v519_v4  ;;  %v602_v15 = vsel %vm361_vm11, %v1151_v34, %v1152_v8  ;;  %v1157_v30 = vunpack.i.h.bf16 %v1155_v24  ;;  %v1156_v22 = vunpack.i.l.bf16 %v1155_v24  ;;  %v657_v4 = vld [vmem:[#allocation2 + $0x18] sm:$0x1]  ;;  %v663_v24 = vld [vmem:[#allocation2 + $0x28] sm:$0x1] }
  0xcd   : >> { %767 = vst [vmem:[#allocation2 + $0x28] sm:$0x4] %v766_v9  ;;  %v851_v33 = vld [vmem:[#allocation2 + $0x28] sm:$0x10]  ;;  %v613_v37 = vsel %vm1701_vm3, %v602_v15, %v612_v18  ;;  %v1160_v61 = vpop.permute.xlu0 %1159 }
  0xce   : >> { %v852_v31 = vsel %vm1572_vm6, %v832_v23, %v851_v33  ;;  %614 = vst [vmem:[#allocation2 + $0x8] sm:$0x80] %v613_v37  ;;  %v332_v40 = vsel %vm251_vm1, %v1156_v22, %v1141_v52  ;;  %v508_v58 = vsel %vm251_vm1, %v1157_v30, %v1146_v7  ;;  %v1162_v13 = vunpack.i.h.bf16 %v1160_v61  ;;  %v660_v52 = vld [vmem:[#allocation2 + $0x20] sm:$0x1] }
  0xcf   : >> { %853 = vst [vmem:[#allocation2 + $0x28] sm:$0x10] %v852_v31  ;;  %v341_v2 = vsel %vm1654_vm7, %v332_v40, %v340_v19  ;;  %v516_v42 = vsel %vm1694_vm12, %v508_v58, %v515_v21  ;;  %v1161_v32 = vunpack.i.l.bf16 %v1160_v61  ;;  %v1165_v44 = vpop.permute.xlu1 %1164  ;;  %v872_v21 = vld [vmem:[#allocation2 + $0x18] sm:$0x20]  ;;  %v878_v40 = vld [vmem:[#allocation2 + $0x28] sm:$0x20] }
  0xd0   : >> { %342 = vst [vmem:[#allocation2] sm:$0x4] %v341_v2  ;;  %517 = vst [vmem:[#allocation2] sm:$0x20] %v516_v42  ;;  %v603_v47 = vsel %vm361_vm11, %v1152_v8, %v1162_v13  ;;  %v1167_v26 = vunpack.i.h.bf16 %v1165_v44  ;;  %v1166_v49 = vunpack.i.l.bf16 %v1165_v44  ;;  %v817_v8 = vld [vmem:[#allocation2 + $0x28] sm:$0x8] }
  0xd1   : >> { %v601_v50 = vsel %vm361_vm11, %v1161_v32, %v1151_v34  ;;  %v616_v16 = vsel %vm1701_vm3, %v603_v47, %v615_v28  ;;  %v1170_v12 = vpop.permute.xlu0 %1169 }
  0xd2   : >> { %v610_v14 = vsel %vm1701_vm3, %v601_v50, %v609_v11  ;;  %617 = vst [vmem:[#allocation2 + $0x10] sm:$0x80] %v616_v16  ;;  %v510_v25 = vsel %vm251_vm1, %v1147_v5, %v1167_v26  ;;  %v334_v51 = vsel %vm251_vm1, %v1142_v55, %v1166_v49  ;;  %v1172_v1 = vunpack.i.h.bf16 %v1170_v12 }
  0xd3   : >> { %611 = vst [vmem:[#allocation2] sm:$0x80] %v610_v14  ;;  %v522_v20 = vsel %vm1694_vm12, %v510_v25, %v521_v48  ;;  %v347_v23 = vsel %vm1654_vm7, %v334_v51, %v346_v46  ;;  %v1171_v53 = vunpack.i.l.bf16 %v1170_v12  ;;  %v1175_v63 = vpop.permute.xlu1 %1174 }
  0xd4   : >> { %523 = vst [vmem:[#allocation2 + $0x10] sm:$0x20] %v522_v20  ;;  %348 = vst [vmem:[#allocation2 + $0x10] sm:$0x4] %v347_v23  ;;  %v1177_v54 = vunpack.i.h.bf16 %v1175_v63  ;;  %v1176_v29 = vunpack.i.l.bf16 %v1175_v63 }
  0xd5   : >> { %v652_v56 = vsel %vm401_vm9, %v1171_v53, %v1172_v1  ;;  %v861_v57 = vpop.permute.xlu0 %860  ;;  %v883_v55 = vld [vmem:[#allocation2 + $0x8] sm:$0xff] }
  0xd6   : >> { %v661_v62 = vsel %vm1417_vm5, %v652_v56, %v660_v52  ;;  %v806_v27 = vsel %vm251_vm1, %v1176_v29, %v1177_v54  ;;  %898 = vmatprep.subr.bf16.mxu0 %v883_v55 }
  0xd7   : >> { %662 = vst [vmem:[#allocation2 + $0x20] sm:$0x1] %v661_v62  ;;  %v815_v3 = vsel %vm1592_vm15, %v806_v27, %v814_v0  ;;  %v863_v38 = vpop.permute.xlu1 %862 }
  0xd8   : >> { %816 = vst [vmem:[#allocation2 + $0x20] sm:$0x8] %v815_v3  ;;  %v867_v36 = vsel %vm401_vm9, %v861_v57, %v863_v38 }
  0xd9   : >> { %v876_v5 = vsel %vm1308_vm8, %v867_v36, %v875_v39  ;;  %v1180_v7 = vpop.permute.xlu0 %1179 }
  0xda   : >> { %877 = vst [vmem:[#allocation2 + $0x20] sm:$0x20] %v876_v5  ;;  %v1182_v6 = vunpack.i.h.bf16 %v1180_v7  ;;  %v1181_v45 = vunpack.i.l.bf16 %v1180_v7  ;;  %v882_v43 = vld [vmem:[#allocation2] sm:$0xff] }
  0xdb   : >> { %899 = vmatpush1.bf16.msra.mxu0 %v882_v43  ;;  %v1185_v34 = vpop.permute.xlu1 %1184  ;;  %v884_v59 = vld [vmem:[#allocation2 + $0x10] sm:$0xff] }
  0xdc   : >> { %v651_v9 = vsel %vm401_vm9, %v1181_v45, %v1171_v53  ;;  %v653_v18 = vsel %vm401_vm9, %v1172_v1, %v1182_v6  ;;  %v1187_v15 = vunpack.i.h.bf16 %v1185_v34  ;;  %v1186_v19 = vunpack.i.l.bf16 %v1185_v34  ;;  %1106 = vmatpush3.bf16.msra.mxu1 %v884_v59 }
  0xdd   : >> { %v658_v30 = vsel %vm1417_vm5, %v651_v9, %v657_v4  ;;  %v664_v22 = vsel %vm1417_vm5, %v653_v18, %v663_v24  ;;  %v859_v33 = vpop.permute.xlu0 %858  ;;  %1107 = vmatprep.subr.bf16.mxu1 %v1214_v60 }
  0xde   : >> { %659 = vst [vmem:[#allocation2 + $0x18] sm:$0x1] %v658_v30  ;;  %665 = vst [vmem:[#allocation2 + $0x28] sm:$0x1] %v664_v22  ;;  %v805_v37 = vsel %vm251_vm1, %v1186_v19, %v1176_v29  ;;  %v807_v61 = vsel %vm251_vm1, %v1177_v54, %v1187_v15  ;;  %v866_v31 = vsel %vm401_vm9, %v859_v33, %v861_v57  ;;  %vm894_vm1 = vcmask 261120  }
  0xdf   : >> { %v812_v58 = vsel %vm1592_vm15, %v805_v37, %v811_v17  ;;  %v818_v13 = vsel %vm1592_vm15, %v807_v61, %v817_v8  ;;  %v873_v41 = vsel %vm1308_vm8, %v866_v31, %v872_v21  ;;  %v865_v2 = vpop.permute.xlu1 %864 }
  0xe0   : >> { %813 = vst [vmem:[#allocation2 + $0x18] sm:$0x8] %v812_v58  ;;  %819 = vst [vmem:[#allocation2 + $0x28] sm:$0x8] %v818_v13  ;;  %v868_v60 = vsel %vm401_vm9, %v863_v38, %v865_v2 }
  0xe1   : >> { %874 = vst [vmem:[#allocation2 + $0x18] sm:$0x20] %v873_v41  ;;  %v879_v42 = vsel %vm1308_vm8, %v868_v60, %v878_v40  ;;  %v886_v32 = vld [vmem:[#allocation2 + $0x20] sm:$0xff] }
  0xe2   : >> { %880 = vst [vmem:[#allocation2 + $0x28] sm:$0x20] %v879_v42  ;;  %900 = vmatprep.subr.bf16.mxu0 %v886_v32 }
  0xe8   : >> { %v885_v44 = vld [vmem:[#allocation2 + $0x18] sm:$0xff] }
  0xe9   : >> { %901 = vmatpush1.bf16.msra.mxu0 %v885_v44  ;;  %v887_v28 = vld [vmem:[#allocation2 + $0x28] sm:$0xff] }
  0xea   : >> { %1108 = vmatpush3.bf16.msra.mxu1 %v887_v28 }
  0xec   : >> { %1088 = vmatmul.mubr.msk.bf16.vlgmr.msra.gmra.mrb[0].mxu0 %vm894_vm1, %v881_v10 }
  0xed   : >> { %1110 = vmatmul.mubr.msk.bf16.vlgmr.msra.gmra.mrb[0].mxu1 %vm894_vm1, %v881_v10 }
  0xee   : >> { %v892_v47 = vpop.permute.xlu0 %891 }
 0x1bf   : >> { %v932_v46 = vpop.f32.mrb[0].mxu0 }
 0x1c0   : >> { %v933_v35 = vadd.f32 %v932_v46, %v892_v47  ;;  %v934_v48 = vpop.f32.mrb[1].mxu0  ;;  %v973_v11 = vpop.f32.mrb[0].mxu1 }
 0x1c1   : >> { %v935_v26 = vadd.f32 %v934_v48, %v892_v47  ;;  %v936_v49 = vpop.f32.mrb[2].mxu0  ;;  %v974_v16 = vadd.f32 %v973_v11, %v892_v47  ;;  %v1111_v14 = vpop.f32.mrb[1].mxu1  ;;  %188 = sbr.rel (!%p186_p4) target bundleno = 18 (0x12), region = 73 }
 0x1c2   : >> { %v979_v50 = vmax.f32 %v933_v35, 0.0  ;;  %v937_v12 = vpop.f32.mrb[3].mxu0  ;;  %v976_v51 = vpop.f32.mrb[2].mxu1 }
 0x1c3   : >> { %v980_v25 = vmax.f32 %v935_v26, 0.0  ;;  %v981_v1 = vmax.f32 %v974_v16, 0.0  ;;  %v1112_v20 = vpop.f32.mrb[3].mxu1 }
 0x1c5   : >> { %v1099_v23 = vpack.c.bf16 %v980_v25, %v979_v50  ;;  %v1100_v53 = vpack.c.bf16 %v981_v1, %v981_v1 }
 0x1c7   : >> { %998 = vst [vmem:[%s997_s6] sm:$0xff] %v1099_v23  ;;  %999 = vst [vmem:[%s997_s6 + $0x8] sm:$0xf] %v1100_v53 }
 0x1c8 PF: > { %s13_s12 = sadd.s32 1, %s1204_s12  }
 0x1c9   : > { %p10_p5 = scmp.ge.s32.totalorder %s13_s12, 6  }
 0x1cb   :  { %12 = sbr.rel (!%p10_p5) target bundleno = 1 (0x1), region = 84 }

// kernel: medicalnet_l1_forward.11
= control target key start
LH: loop header
LB: loop body
LE: loop exit
PB: predicated region body
PF: predicated region fallthrough
CT: control target
= control target key end

     0   :  { %s1157_s12 = smov 0   ;;  %s1376_s0 = inlined_call_operand.vmem [shape: bf16[4,18,8,512], index: 0, kind: input, shape index: {}]   ;;  %s1377_s1 = inlined_call_operand.vmem [shape: bf16[8,216], index: 1, kind: input, shape index: {}]   ;;  %s1378_s2 = inlined_call_operand.vmem [shape: f32[8,1], index: 2, kind: input, shape index: {}]   ;;  %s1379_s3 = inlined_call_operand.vmem [shape: bf16[4,16,8,384], index: 3, kind: output, shape index: {}]  }
   0x1 LB: > { %s997_s13 = sadd.s32 4294967295, %s1122_s12   ;;  %p1001_p0 = scmp.ge.s32.totalorder %s1122_s12, 1  ;;  %s1122_s12 = sphi %s1157_s12, %s13_s12  }
   0x2   : > { %p137_p1 = scmp.lt.s32.totalorder %s1122_s12, 5 }
   0x4   : > { %p138_p2 = pnand %p1001_p0, %p137_p1 }
   0x5   : > { %p161_p3 = scmp.lt.s32.totalorder (!%p138_p2), %s997_s13, 3  ;;  %s1175_s22 = smov (!%p138_p2), 0  }
   0x6   : > { %141 = sbr.rel (%p138_p2) target bundleno = 462 (0x1ce), region = 32 }
   0xd   : > { %s1381_s13 = smov (!%p161_p3, %s997_s13), 3 }
   0xe   : > { %s1068_s14 = smul.u32 288, %s1381_s13 }
   0xf   : > { %s1069_s15 = smul.u32 192, %s1381_s13 }
  0x10   : > { %s1168_s18 = scalar_lea.vmem %s1376_s0, %s1068_s14 }
  0x11   : > { %s1173_s21 = scalar_lea.vmem %s1379_s3, %s1069_s15 }
  0x12 LB: >> { %s1064_s23 = sshll.u32 %s1126_s22, 4  ;;  %s1128_s25 = smov 126   ;;  %v1130_v6 = vmov 0   ;;  %v1259_v7 = vld [vmem:[%s1377_s1] sm:$0xff]  ;;  %vm811_vm0 = vcmask 719872   ;;  %vm193_vm1 = vcmask 1043456   ;;  %s1126_s22 = sphi %s1175_s22, %s177_s22  }
  0x13   : >> { %s180_s24 = scalar_lea.vmem %s1168_s18, %s1064_s23  ;;  %s1129_s26 = smov 127   ;;  %866 = vmatprep.subr.bf16.mxu1 %v1130_v6  ;;  %1095 = vset.pattern.permute.xlu0 %v1130_v6  ;;  %v1013_v8 = vcombine.high %v1259_v7, %v1259_v7  ;;  %v583_v9 = vld [vmem:[%s1378_s2] sm:$0xff]  ;;  %vm209_vm2 = vcmask 1031168   ;;  %vm195_vm3 = vcmask 1039360   ;;  %vm223_vm4 = vcmask 900096  }
  0x14   : >> { %v1182_v0 = vld [vmem:[%s180_s24] sm:$0xff]  ;;  %v182_v1 = vld [vmem:[%s180_s24 + $0x8] sm:$0xff]  ;;  %v1008_v2 = vld [vmem:[%s180_s24 + $0x18] sm:$0xff]  ;;  %s1131_s27 = smov 110   ;;  %s1132_s28 = smov 109   ;;  %vm237_vm5 = vcmask 891904  }
  0x15   : >> { %202 = vrot.lane.b32.xlu1 %v1182_v0, %s1128_s25  ;;  %187 = vrot.lane.b32.xlu0 %v1182_v0, %s1129_s26  ;;  %184 = vst [vmem:[#allocation2 + $0x8] sm:$0xf] %v182_v1  ;;  %307 = vst [vmem:[#allocation2 + $0x74] sm:$0xf] %v1008_v2  ;;  %v1188_v3 = vld [vmem:[%s180_s24 + $0x10] sm:$0xff]  ;;  %v1011_v4 = vld [vmem:[%s180_s24 + $0x28] sm:$0xff] }
  0x16   : >> { %421 = vst [vmem:[#allocation2 + $0xe0] sm:$0xf] %v1011_v4  ;;  %v1190_v5 = vld [vmem:[%s180_s24 + $0x20] sm:$0xff]  ;;  %s1133_s29 = smov 108   ;;  %s1134_s30 = smov 92   ;;  %1058 = vmatprep.mubr.msk.bf16.mxu1 %vm811_vm0, %v1013_v8  ;;  %1057 = vmatprep.mubr.msk.bf16.mxu0 %vm811_vm0, %v1013_v8  ;;  %vm251_vm6 = vcmask 883712  }
  0x17   : >> { %s1135_s4 = smov 91   ;;  %s1136_s5 = smov 90   ;;  %vm265_vm7 = vcmask 752640   ;;  %vm279_vm8 = vcmask 744448   ;;  %vm293_vm9 = vcmask 736256  }
  0x18   : >> { %s1067_s10 = smul.u32 12, %s1126_s22  ;;  %s177_s22 = sadd.s32 1, %s1126_s22  }
  0x19   : >> { %204 = vrot.lane.b32.xlu1 %v182_v1, %s1128_s25  ;;  %189 = vrot.lane.b32.xlu0 %v182_v1, %s1129_s26  ;;  %p174_p4 = scmp.ge.s32.totalorder %s177_s22, 16  }
  0x1a   : >> { %s924_s11 = scalar_lea.vmem %s1173_s21, %s1067_s10 }
  0x1d   : >> { %218 = vrot.lane.b32.xlu1 %v182_v1, %s1131_s27  ;;  %216 = vrot.lane.b32.xlu0 %v1182_v0, %s1131_s27 }
  0x21   : >> { %232 = vrot.lane.b32.xlu1 %v182_v1, %s1132_s28  ;;  %230 = vrot.lane.b32.xlu0 %v1182_v0, %s1132_s28 }
  0x25   : >> { %246 = vrot.lane.b32.xlu1 %v182_v1, %s1133_s29  ;;  %244 = vrot.lane.b32.xlu0 %v1182_v0, %s1133_s29 }
  0x29   : >> { %260 = vrot.lane.b32.xlu1 %v182_v1, %s1134_s30  ;;  %258 = vrot.lane.b32.xlu0 %v1182_v0, %s1134_s30 }
  0x2d   : >> { %274 = vrot.lane.b32.xlu1 %v182_v1, %s1135_s4  ;;  %272 = vrot.lane.b32.xlu0 %v1182_v0, %s1135_s4 }
  0x31   : >> { %288 = vrot.lane.b32.xlu1 %v182_v1, %s1136_s5  ;;  %286 = vrot.lane.b32.xlu0 %v1182_v0, %s1136_s5 }
  0x35   : >> { %312 = vrot.lane.b32.xlu1 %v1008_v2, %s1129_s26  ;;  %310 = vrot.lane.b32.xlu0 %v1188_v3, %s1129_s26 }
  0x39   : >> { %325 = vrot.lane.b32.xlu1 %v1008_v2, %s1128_s25  ;;  %323 = vrot.lane.b32.xlu0 %v1188_v3, %s1128_s25 }
  0x3d   : >> { %338 = vrot.lane.b32.xlu1 %v1008_v2, %s1131_s27  ;;  %336 = vrot.lane.b32.xlu0 %v1188_v3, %s1131_s27 }
  0x41   : >> { %351 = vrot.lane.b32.xlu1 %v1008_v2, %s1132_s28  ;;  %349 = vrot.lane.b32.xlu0 %v1188_v3, %s1132_s28 }
  0x45   : >> { %364 = vrot.lane.b32.xlu1 %v1008_v2, %s1133_s29  ;;  %362 = vrot.lane.b32.xlu0 %v1188_v3, %s1133_s29 }
  0x49   : >> { %377 = vrot.lane.b32.xlu1 %v1008_v2, %s1134_s30  ;;  %375 = vrot.lane.b32.xlu0 %v1188_v3, %s1134_s30 }
  0x4d   : >> { %390 = vrot.lane.b32.xlu1 %v1008_v2, %s1135_s4  ;;  %388 = vrot.lane.b32.xlu0 %v1188_v3, %s1135_s4 }
  0x51   : >> { %403 = vrot.lane.b32.xlu1 %v1008_v2, %s1136_s5  ;;  %401 = vrot.lane.b32.xlu0 %v1188_v3, %s1136_s5 }
  0x55   : >> { %426 = vrot.lane.b32.xlu1 %v1011_v4, %s1129_s26  ;;  %424 = vrot.lane.b32.xlu0 %v1190_v5, %s1129_s26 }
  0x59   : >> { %439 = vrot.lane.b32.xlu1 %v1011_v4, %s1128_s25  ;;  %437 = vrot.lane.b32.xlu0 %v1190_v5, %s1128_s25 }
  0x5d   : >> { %452 = vrot.lane.b32.xlu1 %v1011_v4, %s1131_s27  ;;  %450 = vrot.lane.b32.xlu0 %v1190_v5, %s1131_s27 }
  0x61   : >> { %465 = vrot.lane.b32.xlu1 %v1011_v4, %s1132_s28  ;;  %463 = vrot.lane.b32.xlu0 %v1190_v5, %s1132_s28 }
  0x65   : >> { %478 = vrot.lane.b32.xlu1 %v1011_v4, %s1133_s29  ;;  %476 = vrot.lane.b32.xlu0 %v1190_v5, %s1133_s29 }
  0x69   : >> { %491 = vrot.lane.b32.xlu1 %v1011_v4, %s1134_s30  ;;  %489 = vrot.lane.b32.xlu0 %v1190_v5, %s1134_s30 }
  0x6d   : >> { %504 = vrot.lane.b32.xlu1 %v1011_v4, %s1135_s4  ;;  %502 = vrot.lane.b32.xlu0 %v1190_v5, %s1135_s4 }
  0x71   : >> { %517 = vrot.lane.b32.xlu1 %v1011_v4, %s1136_s5  ;;  %515 = vrot.lane.b32.xlu0 %v1190_v5, %s1136_s5 }
  0x75   : >> { %586 = vperm.xlu0 %1095, %v583_v9  }
  0x87   : >> { %v203_v10 = vpop.permute.xlu1 %202  ;;  %v188_v11 = vpop.permute.xlu0 %187 }
  0x88   : >> { %v191_v12 = vrot.slane %v188_v11, 4  ;;  %v206_v15 = vrot.slane %v203_v10, 4 }
  0x8b   : >> { %v205_v13 = vpop.permute.xlu1 %204  ;;  %v190_v14 = vpop.permute.xlu0 %189 }
  0x8c   : >> { %v207_v16 = vrot.slane %v205_v13, 4  ;;  %v192_v17 = vrot.slane %v190_v14, 4 }
  0x8e   : >> { %v208_v18 = vsel %vm193_vm1, %v206_v15, %v207_v16  ;;  %v211_v19 = vsel %vm209_vm2, %v205_v13, %v207_v16  ;;  %v194_v20 = vsel %vm193_vm1, %v191_v12, %v192_v17  ;;  %v197_v21 = vsel %vm195_vm3, %v190_v14, %v192_v17 }
  0x8f   : >> { %v210_v22 = vsel %vm209_vm2, %v203_v10, %v208_v18  ;;  %215 = vst [vmem:[#allocation2 + $0x20] sm:$0xf] %v211_v19  ;;  %v196_v23 = vsel %vm195_vm3, %v188_v11, %v194_v20  ;;  %201 = vst [vmem:[#allocation2 + $0x14] sm:$0xf] %v197_v21  ;;  %v219_v24 = vpop.permute.xlu1 %218  ;;  %v217_v25 = vpop.permute.xlu0 %216 }
  0x90   : >> { %v221_v26 = vrot.slane %v219_v24, 4  ;;  %v220_v27 = vrot.slane %v217_v25, 4  ;;  %v1015_v28 = vcombine.high %v1182_v0, %v196_v23  ;;  %v1014_v29 = vcombine.low %v1182_v0, %v196_v23 }
  0x92   : >> { %v225_v30 = vsel %vm223_vm4, %v219_v24, %v221_v26  ;;  %v222_v31 = vsel %vm193_vm1, %v220_v27, %v221_v26  ;;  %825 = vmatprep.subr.bf16.mxu0 %v1015_v28 }
  0x93   : >> { %229 = vst [vmem:[#allocation2 + $0x2c] sm:$0xf] %v225_v30  ;;  %v224_v32 = vsel %vm223_vm4, %v217_v25, %v222_v31  ;;  %v233_v33 = vpop.permute.xlu1 %232  ;;  %v231_v34 = vpop.permute.xlu0 %230  ;;  %826 = vmatpush1.bf16.msra.mxu0 %v1014_v29 }
  0x94   : >> { %v235_v35 = vrot.slane %v233_v33, 4  ;;  %v234_v36 = vrot.slane %v231_v34, 4  ;;  %v1018_v37 = vcombine.high %v210_v22, %v224_v32  ;;  %v1017_v38 = vcombine.low %v210_v22, %v224_v32 }
  0x96   : >> { %v239_v39 = vsel %vm237_vm5, %v233_v33, %v235_v35  ;;  %v236_v40 = vsel %vm193_vm1, %v234_v36, %v235_v35  ;;  %v1096_v41 = vld [vmem:[#allocation2 + $0x8] ss:$12 sps:$4 sm:$0xff]   ;;  %827 = vmatprep.subr.bf16.mxu0 %v1018_v37 }
  0x97   : >> { %243 = vst [vmem:[#allocation2 + $0x38] sm:$0xf] %v239_v39  ;;  %v238_v42 = vsel %vm237_vm5, %v231_v34, %v236_v40  ;;  %v247_v43 = vpop.permute.xlu1 %246  ;;  %v245_v44 = vpop.permute.xlu0 %244  ;;  %828 = vmatpush1.bf16.msra.mxu0 %v1017_v38  ;;  %867 = vmatpush1.bf16.msra.mxu1 %v1096_v41 }
  0x98   : >> { %v249_v45 = vrot.slane %v247_v43, 4  ;;  %v248_v46 = vrot.slane %v245_v44, 4  ;;  %868 = vmatprep.subr.bf16.mxu1 %v1130_v6 }
  0x9a   : >> { %v253_v47 = vsel %vm251_vm6, %v247_v43, %v249_v45  ;;  %v250_v48 = vsel %vm193_vm1, %v248_v46, %v249_v45  ;;  %v1097_v49 = vld [vmem:[#allocation2 + $0x20] ss:$12 sps:$4 sm:$0xff]  }
  0x9b   : >> { %257 = vst [vmem:[#allocation2 + $0x44] sm:$0xf] %v253_v47  ;;  %v252_v50 = vsel %vm251_vm6, %v245_v44, %v250_v48  ;;  %v261_v51 = vpop.permute.xlu1 %260  ;;  %v259_v52 = vpop.permute.xlu0 %258  ;;  %869 = vmatpush1.bf16.msra.mxu1 %v1097_v49 }
  0x9c   : >> { %v263_v53 = vrot.slane %v261_v51, 4  ;;  %v262_v54 = vrot.slane %v259_v52, 4  ;;  %v1021_v55 = vcombine.high %v238_v42, %v252_v50  ;;  %v1020_v56 = vcombine.low %v238_v42, %v252_v50  ;;  %870 = vmatprep.subr.bf16.mxu1 %v1130_v6 }
  0x9e   : >> { %v267_v57 = vsel %vm265_vm7, %v261_v51, %v263_v53  ;;  %v264_v58 = vsel %vm193_vm1, %v262_v54, %v263_v53  ;;  %829 = vmatprep.subr.bf16.mxu0 %v1021_v55 }
  0x9f   : >> { %271 = vst [vmem:[#allocation2 + $0x50] sm:$0xf] %v267_v57  ;;  %v266_v59 = vsel %vm265_vm7, %v259_v52, %v264_v58  ;;  %v275_v60 = vpop.permute.xlu1 %274  ;;  %v273_v61 = vpop.permute.xlu0 %272  ;;  %830 = vmatpush1.bf16.msra.mxu0 %v1020_v56 }
  0xa0   : >> { %v277_v62 = vrot.slane %v275_v60, 4  ;;  %v276_v63 = vrot.slane %v273_v61, 4 }
  0xa2   : >> { %v281_v0 = vsel %vm279_vm8, %v275_v60, %v277_v62  ;;  %v278_v1 = vsel %vm193_vm1, %v276_v63, %v277_v62  ;;  %v1098_v2 = vld [vmem:[#allocation2 + $0x38] ss:$12 sps:$4 sm:$0xff]  }
  0xa3   : >> { %285 = vst [vmem:[#allocation2 + $0x5c] sm:$0xf] %v281_v0  ;;  %v280_v4 = vsel %vm279_vm8, %v273_v61, %v278_v1  ;;  %v289_v8 = vpop.permute.xlu1 %288  ;;  %v287_v9 = vpop.permute.xlu0 %286  ;;  %871 = vmatpush1.bf16.msra.mxu1 %v1098_v2 }
  0xa4   : >> { %v291_v10 = vrot.slane %v289_v8, 4  ;;  %v290_v11 = vrot.slane %v287_v9, 4  ;;  %v1024_v12 = vcombine.high %v266_v59, %v280_v4  ;;  %v1023_v13 = vcombine.low %v266_v59, %v280_v4  ;;  %872 = vmatprep.subr.bf16.mxu1 %v1130_v6 }
  0xa6   : >> { %v295_v14 = vsel %vm293_vm9, %v289_v8, %v291_v10  ;;  %v292_v15 = vsel %vm193_vm1, %v290_v11, %v291_v10  ;;  %831 = vmatprep.subr.bf16.mxu0 %v1024_v12 }
  0xa7   : >> { %299 = vst [vmem:[#allocation2 + $0x68] sm:$0xf] %v295_v14  ;;  %v294_v16 = vsel %vm293_vm9, %v287_v9, %v292_v15  ;;  %v313_v17 = vpop.permute.xlu1 %312  ;;  %v311_v18 = vpop.permute.xlu0 %310  ;;  %832 = vmatpush1.bf16.msra.mxu0 %v1023_v13 }
  0xa8   : >> { %v315_v19 = vrot.slane %v313_v17, 4  ;;  %v314_v20 = vrot.slane %v311_v18, 4  ;;  %v1027_v21 = vcombine.high %v294_v16, %v1188_v3  ;;  %v1026_v22 = vcombine.low %v294_v16, %v1188_v3 }
  0xaa   : >> { %v318_v23 = vsel %vm195_vm3, %v313_v17, %v315_v19  ;;  %v316_v24 = vsel %vm193_vm1, %v314_v20, %v315_v19  ;;  %v1099_v25 = vld [vmem:[#allocation2 + $0x50] ss:$12 sps:$4 sm:$0xff]   ;;  %833 = vmatprep.subr.bf16.mxu0 %v1027_v21 }
  0xab   : >> { %322 = vst [vmem:[#allocation2 + $0x80] sm:$0xf] %v318_v23  ;;  %v317_v26 = vsel %vm195_vm3, %v311_v18, %v316_v24  ;;  %v326_v27 = vpop.permute.xlu1 %325  ;;  %v324_v28 = vpop.permute.xlu0 %323  ;;  %834 = vmatpush1.bf16.msra.mxu0 %v1026_v22  ;;  %873 = vmatpush1.bf16.msra.mxu1 %v1099_v25 }
  0xac   : >> { %v328_v29 = vrot.slane %v326_v27, 4  ;;  %v327_v30 = vrot.slane %v324_v28, 4  ;;  %874 = vmatprep.subr.bf16.mxu1 %v1130_v6 }
  0xae   : >> { %v331_v31 = vsel %vm209_vm2, %v326_v27, %v328_v29  ;;  %v329_v3 = vsel %vm193_vm1, %v327_v30, %v328_v29  ;;  %v1100_v32 = vld [vmem:[#allocation2 + $0x68] ss:$12 sps:$4 sm:$0xff]  }
  0xaf   : >> { %335 = vst [vmem:[#allocation2 + $0x8c] sm:$0xf] %v331_v31  ;;  %v330_v33 = vsel %vm209_vm2, %v324_v28, %v329_v3  ;;  %v339_v34 = vpop.permute.xlu1 %338  ;;  %v337_v35 = vpop.permute.xlu0 %336  ;;  %875 = vmatpush1.bf16.msra.mxu1 %v1100_v32 }
  0xb0   : >> { %v341_v36 = vrot.slane %v339_v34, 4  ;;  %v340_v37 = vrot.slane %v337_v35, 4  ;;  %v1030_v38 = vcombine.high %v317_v26, %v330_v33  ;;  %v1029_v39 = vcombine.low %v317_v26, %v330_v33  ;;  %876 = vmatprep.subr.bf16.mxu1 %v1130_v6 }
  0xb2   : >> { %v344_v40 = vsel %vm223_vm4, %v339_v34, %v341_v36  ;;  %v342_v41 = vsel %vm193_vm1, %v340_v37, %v341_v36  ;;  %835 = vmatprep.subr.bf16.mxu0 %v1030_v38 }
  0xb3   : >> { %348 = vst [vmem:[#allocation2 + $0x98] sm:$0xf] %v344_v40  ;;  %v343_v42 = vsel %vm223_vm4, %v337_v35, %v342_v41  ;;  %v352_v43 = vpop.permute.xlu1 %351  ;;  %v350_v44 = vpop.permute.xlu0 %349  ;;  %836 = vmatpush1.bf16.msra.mxu0 %v1029_v39 }
  0xb4   : >> { %v354_v45 = vrot.slane %v352_v43, 4  ;;  %v353_v46 = vrot.slane %v350_v44, 4 }
  0xb6   : >> { %v357_v47 = vsel %vm237_vm5, %v352_v43, %v354_v45  ;;  %v355_v48 = vsel %vm193_vm1, %v353_v46, %v354_v45  ;;  %v1101_v49 = vld [vmem:[#allocation2 + $0x80] ss:$12 sps:$4 sm:$0xff]  }
  0xb7   : >> { %361 = vst [vmem:[#allocation2 + $0xa4] sm:$0xf] %v357_v47  ;;  %v356_v50 = vsel %vm237_vm5, %v350_v44, %v355_v48  ;;  %v365_v51 = vpop.permute.xlu1 %364  ;;  %v363_v52 = vpop.permute.xlu0 %362  ;;  %877 = vmatpush1.bf16.msra.mxu1 %v1101_v49 }
  0xb8   : >> { %v367_v53 = vrot.slane %v365_v51, 4  ;;  %v366_v54 = vrot.slane %v363_v52, 4  ;;  %v1033_v55 = vcombine.high %v343_v42, %v356_v50  ;;  %v1032_v56 = vcombine.low %v343_v42, %v356_v50  ;;  %878 = vmatprep.subr.bf16.mxu1 %v1130_v6 }
  0xba   : >> { %v370_v57 = vsel %vm251_vm6, %v365_v51, %v367_v53  ;;  %v368_v58 = vsel %vm193_vm1, %v366_v54, %v367_v53  ;;  %837 = vmatprep.subr.bf16.mxu0 %v1033_v55 }
  0xbb   : >> { %374 = vst [vmem:[#allocation2 + $0xb0] sm:$0xf] %v370_v57  ;;  %v369_v59 = vsel %vm251_vm6, %v363_v52, %v368_v58  ;;  %v378_v60 = vpop.permute.xlu1 %377  ;;  %v376_v61 = vpop.permute.xlu0 %375  ;;  %838 = vmatpush1.bf16.msra.mxu0 %v1032_v56 }
  0xbc   : >> { %v380_v62 = vrot.slane %v378_v60, 4  ;;  %v379_v63 = vrot.slane %v376_v61, 4 }
  0xbe   : >> { %v383_v0 = vsel %vm265_vm7, %v378_v60, %v380_v62  ;;  %v381_v1 = vsel %vm193_vm1, %v379_v63, %v380_v62  ;;  %v1102_v2 = vld [vmem:[#allocation2 + $0x98] ss:$12 sps:$4 sm:$0xff]  }
  0xbf   : >> { %387 = vst [vmem:[#allocation2 + $0xbc] sm:$0xf] %v383_v0  ;;  %v382_v4 = vsel %vm265_vm7, %v376_v61, %v381_v1  ;;  %v391_v8 = vpop.permute.xlu1 %390  ;;  %v389_v9 = vpop.permute.xlu0 %388  ;;  %879 = vmatpush1.bf16.msra.mxu1 %v1102_v2 }
  0xc0   : >> { %v393_v10 = vrot.slane %v391_v8, 4  ;;  %v392_v11 = vrot.slane %v389_v9, 4  ;;  %v1036_v12 = vcombine.high %v369_v59, %v382_v4  ;;  %v1035_v13 = vcombine.low %v369_v59, %v382_v4  ;;  %880 = vmatprep.subr.bf16.mxu1 %v1130_v6 }
  0xc2   : >> { %v396_v14 = vsel %vm279_vm8, %v391_v8, %v393_v10  ;;  %v394_v15 = vsel %vm193_vm1, %v392_v11, %v393_v10  ;;  %839 = vmatprep.subr.bf16.mxu0 %v1036_v12 }
  0xc3   : >> { %400 = vst [vmem:[#allocation2 + $0xc8] sm:$0xf] %v396_v14  ;;  %v395_v16 = vsel %vm279_vm8, %v389_v9, %v394_v15  ;;  %v404_v17 = vpop.permute.xlu1 %403  ;;  %v402_v18 = vpop.permute.xlu0 %401  ;;  %840 = vmatpush1.bf16.msra.mxu0 %v1035_v13 }
  0xc4   : >> { %v406_v19 = vrot.slane %v404_v17, 4  ;;  %v405_v20 = vrot.slane %v402_v18, 4 }
  0xc6   : >> { %v409_v21 = vsel %vm293_vm9, %v404_v17, %v406_v19  ;;  %v407_v22 = vsel %vm193_vm1, %v405_v20, %v406_v19  ;;  %v1103_v23 = vld [vmem:[#allocation2 + $0xb0] ss:$12 sps:$4 sm:$0xff]  }
  0xc7   : >> { %413 = vst [vmem:[#allocation2 + $0xd4] sm:$0xf] %v409_v21  ;;  %v408_v24 = vsel %vm293_vm9, %v402_v18, %v407_v22  ;;  %v427_v25 = vpop.permute.xlu1 %426  ;;  %v425_v26 = vpop.permute.xlu0 %424  ;;  %881 = vmatpush1.bf16.msra.mxu1 %v1103_v23 }
  0xc8   : >> { %v429_v27 = vrot.slane %v427_v25, 4  ;;  %v428_v28 = vrot.slane %v425_v26, 4  ;;  %v1039_v29 = vcombine.high %v395_v16, %v408_v24  ;;  %v1038_v30 = vcombine.low %v395_v16, %v408_v24  ;;  %882 = vmatprep.subr.bf16.mxu1 %v1130_v6 }
  0xca   : >> { %v432_v31 = vsel %vm195_vm3, %v427_v25, %v429_v27  ;;  %v430_v3 = vsel %vm193_vm1, %v428_v28, %v429_v27  ;;  %841 = vmatprep.subr.bf16.mxu0 %v1039_v29 }
  0xcb   : >> { %436 = vst [vmem:[#allocation2 + $0xec] sm:$0xf] %v432_v31  ;;  %v431_v32 = vsel %vm195_vm3, %v425_v26, %v430_v3  ;;  %v440_v33 = vpop.permute.xlu1 %439  ;;  %v438_v34 = vpop.permute.xlu0 %437  ;;  %842 = vmatpush1.bf16.msra.mxu0 %v1038_v30 }
  0xcc   : >> { %v442_v35 = vrot.slane %v440_v33, 4  ;;  %v441_v36 = vrot.slane %v438_v34, 4  ;;  %v1042_v37 = vcombine.high %v1190_v5, %v431_v32  ;;  %v1041_v38 = vcombine.low %v1190_v5, %v431_v32 }
  0xce   : >> { %v445_v39 = vsel %vm209_vm2, %v440_v33, %v442_v35  ;;  %v443_v40 = vsel %vm193_vm1, %v441_v36, %v442_v35  ;;  %v1104_v41 = vld [vmem:[#allocation2 + $0xc8] ss:$12 sps:$4 sm:$0xff]   ;;  %843 = vmatprep.subr.bf16.mxu0 %v1042_v37  ;;  %v1012_v36 = vcombine.low %v1259_v7, %v1259_v7 }
  0xcf   : >> { %449 = vst [vmem:[#allocation2 + $0xf8] sm:$0xf] %v445_v39  ;;  %v444_v42 = vsel %vm209_vm2, %v438_v34, %v443_v40  ;;  %v453_v43 = vpop.permute.xlu1 %452  ;;  %v451_v44 = vpop.permute.xlu0 %450  ;;  %844 = vmatpush1.bf16.msra.mxu0 %v1041_v38  ;;  %883 = vmatpush1.bf16.msra.mxu1 %v1104_v41 }
  0xd0   : >> { %v455_v45 = vrot.slane %v453_v43, 4  ;;  %v454_v46 = vrot.slane %v451_v44, 4  ;;  %884 = vmatprep.subr.bf16.mxu1 %v1130_v6 }
  0xd2   : >> { %v458_v47 = vsel %vm223_vm4, %v453_v43, %v455_v45  ;;  %v456_v5 = vsel %vm193_vm1, %v454_v46, %v455_v45  ;;  %v1105_v48 = vld [vmem:[#allocation2 + $0xe0] ss:$12 sps:$4 sm:$0xff]  }
  0xd3   : >> { %462 = vst [vmem:[#allocation2 + $0x104] sm:$0xf] %v458_v47  ;;  %v457_v49 = vsel %vm223_vm4, %v451_v44, %v456_v5  ;;  %v466_v50 = vpop.permute.xlu1 %465  ;;  %v464_v51 = vpop.permute.xlu0 %463  ;;  %885 = vmatpush1.bf16.msra.mxu1 %v1105_v48 }
  0xd4   : >> { %v468_v52 = vrot.slane %v466_v50, 4  ;;  %v467_v53 = vrot.slane %v464_v51, 4  ;;  %v1045_v54 = vcombine.high %v444_v42, %v457_v49  ;;  %v1044_v55 = vcombine.low %v444_v42, %v457_v49  ;;  %886 = vmatprep.subr.bf16.mxu1 %v1130_v6 }
  0xd6   : >> { %v471_v56 = vsel %vm237_vm5, %v466_v50, %v468_v52  ;;  %v469_v57 = vsel %vm193_vm1, %v467_v53, %v468_v52  ;;  %845 = vmatprep.subr.bf16.mxu0 %v1045_v54 }
  0xd7   : >> { %475 = vst [vmem:[#allocation2 + $0x110] sm:$0xf] %v471_v56  ;;  %v470_v58 = vsel %vm237_vm5, %v464_v51, %v469_v57  ;;  %v479_v59 = vpop.permute.xlu1 %478  ;;  %v477_v60 = vpop.permute.xlu0 %476  ;;  %846 = vmatpush1.bf16.msra.mxu0 %v1044_v55 }
  0xd8   : >> { %v481_v61 = vrot.slane %v479_v59, 4  ;;  %v480_v62 = vrot.slane %v477_v60, 4 }
  0xda   : >> { %v484_v63 = vsel %vm251_vm6, %v479_v59, %v481_v61  ;;  %v482_v0 = vsel %vm193_vm1, %v480_v62, %v481_v61  ;;  %v1106_v1 = vld [vmem:[#allocation2 + $0xf8] ss:$12 sps:$4 sm:$0xff]  }
  0xdb   : >> { %488 = vst [vmem:[#allocation2 + $0x11c] sm:$0xf] %v484_v63  ;;  %v483_v2 = vsel %vm251_vm6, %v477_v60, %v482_v0  ;;  %v492_v4 = vpop.permute.xlu1 %491  ;;  %v490_v8 = vpop.permute.xlu0 %489  ;;  %887 = vmatpush1.bf16.msra.mxu1 %v1106_v1 }
  0xdc   : >> { %v494_v9 = vrot.slane %v492_v4, 4  ;;  %v493_v10 = vrot.slane %v490_v8, 4  ;;  %v1048_v11 = vcombine.high %v470_v58, %v483_v2  ;;  %v1047_v12 = vcombine.low %v470_v58, %v483_v2  ;;  %888 = vmatprep.subr.bf16.mxu1 %v1130_v6 }
  0xde   : >> { %v497_v13 = vsel %vm265_vm7, %v492_v4, %v494_v9  ;;  %v495_v14 = vsel %vm193_vm1, %v493_v10, %v494_v9  ;;  %847 = vmatprep.subr.bf16.mxu0 %v1048_v11 }
  0xdf   : >> { %501 = vst [vmem:[#allocation2 + $0x128] sm:$0xf] %v497_v13  ;;  %v496_v15 = vsel %vm265_vm7, %v490_v8, %v495_v14  ;;  %v505_v16 = vpop.permute.xlu1 %504  ;;  %v503_v17 = vpop.permute.xlu0 %502  ;;  %848 = vmatpush1.bf16.msra.mxu0 %v1047_v12 }
  0xe0   : >> { %v507_v18 = vrot.slane %v505_v16, 4  ;;  %v506_v19 = vrot.slane %v503_v17, 4 }
  0xe2   : >> { %v510_v20 = vsel %vm279_vm8, %v505_v16, %v507_v18  ;;  %v508_v21 = vsel %vm193_vm1, %v506_v19, %v507_v18  ;;  %v1107_v22 = vld [vmem:[#allocation2 + $0x110] ss:$12 sps:$4 sm:$0xff]  }
  0xe3   : >> { %514 = vst [vmem:[#allocation2 + $0x134] sm:$0xf] %v510_v20  ;;  %v509_v23 = vsel %vm279_vm8, %v503_v17, %v508_v21  ;;  %v518_v24 = vpop.permute.xlu1 %517  ;;  %v516_v25 = vpop.permute.xlu0 %515  ;;  %889 = vmatpush1.bf16.msra.mxu1 %v1107_v22 }
  0xe4   : >> { %v520_v26 = vrot.slane %v518_v24, 4  ;;  %v519_v27 = vrot.slane %v516_v25, 4  ;;  %v1051_v28 = vcombine.high %v496_v15, %v509_v23  ;;  %v1050_v29 = vcombine.low %v496_v15, %v509_v23  ;;  %890 = vmatprep.subr.bf16.mxu1 %v1130_v6 }
  0xe6   : >> { %v523_v30 = vsel %vm293_vm9, %v518_v24, %v520_v26  ;;  %v521_v31 = vsel %vm193_vm1, %v519_v27, %v520_v26  ;;  %849 = vmatprep.subr.bf16.mxu0 %v1051_v28 }
  0xe7   : >> { %527 = vst [vmem:[#allocation2 + $0x140] sm:$0xf] %v523_v30  ;;  %v522_v3 = vsel %vm293_vm9, %v516_v25, %v521_v31  ;;  %850 = vmatpush1.bf16.msra.mxu0 %v1050_v29 }
  0xe8   : >> { %v1054_v32 = vcombine.high %v522_v3, %v522_v3  ;;  %v1053_v33 = vcombine.low %v522_v3, %v522_v3 }
  0xea   : >> { %v1108_v34 = vld [vmem:[#allocation2 + $0x128] ss:$12 sps:$4 sm:$0xff]   ;;  %1056 = vmatprep.subr.msk.bf16.mxu0 %vm193_vm1, %v1054_v32  ;;  %v817_v35 = vsel %vm193_vm1, %v1053_v33, 0 }
  0xeb   : >> { %852 = vmatpush1.bf16.msra.mxu0 %v817_v35  ;;  %891 = vmatpush1.bf16.msra.mxu1 %v1108_v34 }
  0xec   : >> { %892 = vmatprep.subr.bf16.mxu1 %v1130_v6 }
  0xee   : >> { %v1109_v37 = vld [vmem:[#allocation2 + $0x140] ss:$0 sps:$4 sm:$0xff]   ;;  %858 = vmatmul.mubr.bf16.vlgmr.msra.gmra.mrb[0].mxu0 %v1012_v36 }
  0xef   : >> { %v823_v38 = vsel %vm193_vm1, %v1109_v37, 0 }
  0xf0   : >> { %893 = vmatpush1.bf16.msra.mxu1 %v823_v38 }
  0xf3   : >> { %899 = vmatmul.mubr.bf16.vlgmr.msra.gmra.mrb[0].mxu1 %v1012_v36 }
  0xf4   : >> { %v587_v39 = vpop.permute.xlu0 %586 }
 0x1c1   : >> { %v859_v40 = vpop.f32.mrb[0].mxu0 }
 0x1c2   : >> { %v860_v41 = vadd.f32 %v859_v40, %v587_v39  ;;  %v861_v42 = vpop.f32.mrb[1].mxu0 }
 0x1c3   : >> { %v862_v43 = vadd.f32 %v861_v42, %v587_v39  ;;  %v863_v44 = vpop.f32.mrb[2].mxu0 }
 0x1c4   : >> { %v906_v45 = vmax.f32 %v860_v41, 0.0  ;;  %v864_v7 = vpop.f32.mrb[3].mxu0 }
 0x1c5   : >> { %v907_v46 = vmax.f32 %v862_v43, 0.0 }
 0x1c6   : >> { %v900_v47 = vpop.f32.mrb[0].mxu1 }
 0x1c7   : >> { %v1065_v6 = vpack.c.bf16 %v907_v46, %v906_v45  ;;  %v902_v5 = vpop.f32.mrb[1].mxu1  ;;  %v901_v48 = vadd.f32 %v900_v47, %v587_v39  ;;  %176 = sbr.rel (!%p174_p4) target bundleno = 18 (0x12), region = 73 }
 0x1c8   : >> { %v903_v49 = vpop.f32.mrb[2].mxu1 }
 0x1c9   : >> { %925 = vst [vmem:[%s924_s11] sm:$0xff] %v1065_v6  ;;  %v908_v50 = vmax.f32 %v901_v48, 0.0  ;;  %v904_v51 = vpop.f32.mrb[3].mxu1 }
 0x1cb   : >> { %v1066_v52 = vpack.c.bf16 %v908_v50, %v908_v50 }
 0x1cd   : >> { %926 = vst [vmem:[%s924_s11 + $0x8] sm:$0xf] %v1066_v52 }
 0x1ce PF: > { %s13_s12 = sadd.s32 1, %s1122_s12  }
 0x1cf   : > { %p10_p5 = scmp.ge.s32.totalorder %s13_s12, 6  }
 0x1d1   :  { %12 = sbr.rel (!%p10_p5) target bundleno = 1 (0x1), region = 84 }

// kernel: medicalnet_l1_forward.12
= control target key start
LH: loop header
LB: loop body
LE: loop exit
PB: predicated region body
PF: predicated region fallthrough
CT: control target
= control target key end

     0   :  { %s1236_s15 = smov 0   ;;  %s1461_s0 = inlined_call_operand.vmem [shape: bf16[4,18,8,512], index: 0, kind: input, shape index: {}]   ;;  %s1462_s1 = inlined_call_operand.vmem [shape: bf16[8,216], index: 1, kind: input, shape index: {}]   ;;  %s1463_s2 = inlined_call_operand.vmem [shape: f32[8,1], index: 2, kind: input, shape index: {}]   ;;  %s1464_s3 = inlined_call_operand.vmem [shape: bf16[4,16,8,384], index: 3, kind: input, shape index: {}]   ;;  %s1465_s4 = inlined_call_operand.vmem [shape: bf16[4,16,8,384], index: 4, kind: output, shape index: {}]  }
   0x1 LB: > { %s1068_s16 = sadd.s32 4294967295, %s1196_s15   ;;  %p1072_p0 = scmp.ge.s32.totalorder %s1196_s15, 1  ;;  %s1196_s15 = sphi %s1236_s15, %s14_s15  }
   0x2   : > { %p172_p1 = scmp.lt.s32.totalorder %s1196_s15, 5 }
   0x4   : > { %p173_p2 = pnand %p1072_p0, %p172_p1 }
   0x5   : > { %p203_p3 = scmp.lt.s32.totalorder (!%p173_p2), %s1068_s16, 3  ;;  %s1259_s28 = smov (!%p173_p2), 0  }
   0x6   : > { %176 = sbr.rel (%p173_p2) target bundleno = 464 (0x1d0), region = 36 }
   0xd   : > { %s1467_s16 = smov (!%p203_p3, %s1068_s16), 3 }
   0xe   : > { %s1142_s17 = smul.u32 288, %s1467_s16 }
   0xf   : > { %s1143_s18 = smul.u32 192, %s1467_s16 }
  0x10   : > { %s1247_s21 = scalar_lea.vmem %s1461_s0, %s1142_s17 }
  0x11   : > { %s1252_s24 = scalar_lea.vmem %s1464_s3, %s1143_s18  ;;  %s1257_s27 = scalar_lea.vmem %s1465_s4, %s1143_s18 }
  0x12 LB: >> { %s1137_s29 = sshll.u32 %s1200_s28, 4  ;;  %s1202_s5 = smov 126   ;;  %v1204_v6 = vmov 0   ;;  %v1343_v7 = vld [vmem:[%s1462_s1] sm:$0xff]  ;;  %vm858_vm0 = vcmask 719872   ;;  %vm240_vm1 = vcmask 1043456   ;;  %s1200_s28 = sphi %s1259_s28, %s224_s28  }
  0x13   : >> { %s227_s30 = scalar_lea.vmem %s1247_s21, %s1137_s29  ;;  %s1203_s6 = smov 127   ;;  %913 = vmatprep.subr.bf16.mxu1 %v1204_v6  ;;  %1169 = vset.pattern.permute.xlu0 %v1204_v6  ;;  %v1085_v8 = vcombine.high %v1343_v7, %v1343_v7  ;;  %v630_v9 = vld [vmem:[%s1463_s2] sm:$0xff]  ;;  %vm256_vm2 = vcmask 1031168   ;;  %vm242_vm3 = vcmask 1039360   ;;  %vm270_vm4 = vcmask 900096  }
  0x14   : >> { %v1266_v0 = vld [vmem:[%s227_s30] sm:$0xff]  ;;  %v229_v1 = vld [vmem:[%s227_s30 + $0x8] sm:$0xff]  ;;  %v1080_v2 = vld [vmem:[%s227_s30 + $0x18] sm:$0xff]  ;;  %s1205_s7 = smov 110   ;;  %s1206_s8 = smov 109   ;;  %vm284_vm5 = vcmask 891904  }
  0x15   : >> { %249 = vrot.lane.b32.xlu1 %v1266_v0, %s1202_s5  ;;  %234 = vrot.lane.b32.xlu0 %v1266_v0, %s1203_s6  ;;  %231 = vst [vmem:[#allocation2 + $0x8] sm:$0xf] %v229_v1  ;;  %354 = vst [vmem:[#allocation2 + $0x74] sm:$0xf] %v1080_v2  ;;  %v1272_v3 = vld [vmem:[%s227_s30 + $0x10] sm:$0xff]  ;;  %v1083_v4 = vld [vmem:[%s227_s30 + $0x28] sm:$0xff] }
  0x16   : >> { %468 = vst [vmem:[#allocation2 + $0xe0] sm:$0xf] %v1083_v4  ;;  %v1274_v5 = vld [vmem:[%s227_s30 + $0x20] sm:$0xff]  ;;  %s1207_s9 = smov 108   ;;  %s1208_s10 = smov 92   ;;  %1130 = vmatprep.mubr.msk.bf16.mxu1 %vm858_vm0, %v1085_v8  ;;  %1129 = vmatprep.mubr.msk.bf16.mxu0 %vm858_vm0, %v1085_v8  ;;  %vm298_vm6 = vcmask 883712  }
  0x17   : >> { %s1209_s11 = smov 91   ;;  %s1210_s12 = smov 90   ;;  %vm312_vm7 = vcmask 752640   ;;  %vm326_vm8 = vcmask 744448   ;;  %vm340_vm9 = vcmask 736256  }
  0x18   : >> { %s1138_s18 = smul.u32 12, %s1200_s28  ;;  %s224_s28 = sadd.s32 1, %s1200_s28  }
  0x19   : >> { %251 = vrot.lane.b32.xlu1 %v229_v1, %s1202_s5  ;;  %236 = vrot.lane.b32.xlu0 %v229_v1, %s1203_s6  ;;  %p221_p4 = scmp.ge.s32.totalorder %s224_s28, 16  }
  0x1a   : >> { %s955_s19 = scalar_lea.vmem %s1252_s24, %s1138_s18  ;;  %s981_s20 = scalar_lea.vmem %s1257_s27, %s1138_s18 }
  0x1d   : >> { %265 = vrot.lane.b32.xlu1 %v229_v1, %s1205_s7  ;;  %263 = vrot.lane.b32.xlu0 %v1266_v0, %s1205_s7 }
  0x21   : >> { %279 = vrot.lane.b32.xlu1 %v229_v1, %s1206_s8  ;;  %277 = vrot.lane.b32.xlu0 %v1266_v0, %s1206_s8 }
  0x25   : >> { %293 = vrot.lane.b32.xlu1 %v229_v1, %s1207_s9  ;;  %291 = vrot.lane.b32.xlu0 %v1266_v0, %s1207_s9 }
  0x29   : >> { %307 = vrot.lane.b32.xlu1 %v229_v1, %s1208_s10  ;;  %305 = vrot.lane.b32.xlu0 %v1266_v0, %s1208_s10 }
  0x2d   : >> { %321 = vrot.lane.b32.xlu1 %v229_v1, %s1209_s11  ;;  %319 = vrot.lane.b32.xlu0 %v1266_v0, %s1209_s11 }
  0x31   : >> { %335 = vrot.lane.b32.xlu1 %v229_v1, %s1210_s12  ;;  %333 = vrot.lane.b32.xlu0 %v1266_v0, %s1210_s12 }
  0x35   : >> { %359 = vrot.lane.b32.xlu1 %v1080_v2, %s1203_s6  ;;  %357 = vrot.lane.b32.xlu0 %v1272_v3, %s1203_s6 }
  0x39   : >> { %372 = vrot.lane.b32.xlu1 %v1080_v2, %s1202_s5  ;;  %370 = vrot.lane.b32.xlu0 %v1272_v3, %s1202_s5 }
  0x3d   : >> { %385 = vrot.lane.b32.xlu1 %v1080_v2, %s1205_s7  ;;  %383 = vrot.lane.b32.xlu0 %v1272_v3, %s1205_s7 }
  0x41   : >> { %398 = vrot.lane.b32.xlu1 %v1080_v2, %s1206_s8  ;;  %396 = vrot.lane.b32.xlu0 %v1272_v3, %s1206_s8 }
  0x45   : >> { %411 = vrot.lane.b32.xlu1 %v1080_v2, %s1207_s9  ;;  %409 = vrot.lane.b32.xlu0 %v1272_v3, %s1207_s9 }
  0x49   : >> { %424 = vrot.lane.b32.xlu1 %v1080_v2, %s1208_s10  ;;  %422 = vrot.lane.b32.xlu0 %v1272_v3, %s1208_s10 }
  0x4d   : >> { %437 = vrot.lane.b32.xlu1 %v1080_v2, %s1209_s11  ;;  %435 = vrot.lane.b32.xlu0 %v1272_v3, %s1209_s11 }
  0x51   : >> { %450 = vrot.lane.b32.xlu1 %v1080_v2, %s1210_s12  ;;  %448 = vrot.lane.b32.xlu0 %v1272_v3, %s1210_s12 }
  0x55   : >> { %473 = vrot.lane.b32.xlu1 %v1083_v4, %s1203_s6  ;;  %471 = vrot.lane.b32.xlu0 %v1274_v5, %s1203_s6 }
  0x59   : >> { %486 = vrot.lane.b32.xlu1 %v1083_v4, %s1202_s5  ;;  %484 = vrot.lane.b32.xlu0 %v1274_v5, %s1202_s5 }
  0x5d   : >> { %499 = vrot.lane.b32.xlu1 %v1083_v4, %s1205_s7  ;;  %497 = vrot.lane.b32.xlu0 %v1274_v5, %s1205_s7 }
  0x61   : >> { %512 = vrot.lane.b32.xlu1 %v1083_v4, %s1206_s8  ;;  %510 = vrot.lane.b32.xlu0 %v1274_v5, %s1206_s8 }
  0x65   : >> { %525 = vrot.lane.b32.xlu1 %v1083_v4, %s1207_s9  ;;  %523 = vrot.lane.b32.xlu0 %v1274_v5, %s1207_s9 }
  0x69   : >> { %538 = vrot.lane.b32.xlu1 %v1083_v4, %s1208_s10  ;;  %536 = vrot.lane.b32.xlu0 %v1274_v5, %s1208_s10 }
  0x6d   : >> { %551 = vrot.lane.b32.xlu1 %v1083_v4, %s1209_s11  ;;  %549 = vrot.lane.b32.xlu0 %v1274_v5, %s1209_s11 }
  0x71   : >> { %564 = vrot.lane.b32.xlu1 %v1083_v4, %s1210_s12  ;;  %562 = vrot.lane.b32.xlu0 %v1274_v5, %s1210_s12 }
  0x75   : >> { %633 = vperm.xlu0 %1169, %v630_v9  }
  0x87   : >> { %v250_v10 = vpop.permute.xlu1 %249  ;;  %v235_v11 = vpop.permute.xlu0 %234 }
  0x88   : >> { %v238_v12 = vrot.slane %v235_v11, 4  ;;  %v253_v15 = vrot.slane %v250_v10, 4 }
  0x8b   : >> { %v252_v13 = vpop.permute.xlu1 %251  ;;  %v237_v14 = vpop.permute.xlu0 %236 }
  0x8c   : >> { %v254_v16 = vrot.slane %v252_v13, 4  ;;  %v239_v17 = vrot.slane %v237_v14, 4 }
  0x8e   : >> { %v255_v18 = vsel %vm240_vm1, %v253_v15, %v254_v16  ;;  %v258_v19 = vsel %vm256_vm2, %v252_v13, %v254_v16  ;;  %v241_v20 = vsel %vm240_vm1, %v238_v12, %v239_v17  ;;  %v244_v21 = vsel %vm242_vm3, %v237_v14, %v239_v17 }
  0x8f   : >> { %v257_v22 = vsel %vm256_vm2, %v250_v10, %v255_v18  ;;  %262 = vst [vmem:[#allocation2 + $0x20] sm:$0xf] %v258_v19  ;;  %v243_v23 = vsel %vm242_vm3, %v235_v11, %v241_v20  ;;  %248 = vst [vmem:[#allocation2 + $0x14] sm:$0xf] %v244_v21  ;;  %v266_v24 = vpop.permute.xlu1 %265  ;;  %v264_v25 = vpop.permute.xlu0 %263 }
  0x90   : >> { %v268_v26 = vrot.slane %v266_v24, 4  ;;  %v267_v27 = vrot.slane %v264_v25, 4  ;;  %v1087_v28 = vcombine.high %v1266_v0, %v243_v23  ;;  %v1086_v29 = vcombine.low %v1266_v0, %v243_v23 }
  0x92   : >> { %v272_v30 = vsel %vm270_vm4, %v266_v24, %v268_v26  ;;  %v269_v31 = vsel %vm240_vm1, %v267_v27, %v268_v26  ;;  %872 = vmatprep.subr.bf16.mxu0 %v1087_v28 }
  0x93   : >> { %276 = vst [vmem:[#allocation2 + $0x2c] sm:$0xf] %v272_v30  ;;  %v271_v32 = vsel %vm270_vm4, %v264_v25, %v269_v31  ;;  %v280_v33 = vpop.permute.xlu1 %279  ;;  %v278_v34 = vpop.permute.xlu0 %277  ;;  %873 = vmatpush1.bf16.msra.mxu0 %v1086_v29 }
  0x94   : >> { %v282_v35 = vrot.slane %v280_v33, 4  ;;  %v281_v36 = vrot.slane %v278_v34, 4  ;;  %v1090_v37 = vcombine.high %v257_v22, %v271_v32  ;;  %v1089_v38 = vcombine.low %v257_v22, %v271_v32 }
  0x96   : >> { %v286_v39 = vsel %vm284_vm5, %v280_v33, %v282_v35  ;;  %v283_v40 = vsel %vm240_vm1, %v281_v36, %v282_v35  ;;  %v1170_v41 = vld [vmem:[#allocation2 + $0x8] ss:$12 sps:$4 sm:$0xff]   ;;  %874 = vmatprep.subr.bf16.mxu0 %v1090_v37 }
  0x97   : >> { %290 = vst [vmem:[#allocation2 + $0x38] sm:$0xf] %v286_v39  ;;  %v285_v42 = vsel %vm284_vm5, %v278_v34, %v283_v40  ;;  %v294_v43 = vpop.permute.xlu1 %293  ;;  %v292_v44 = vpop.permute.xlu0 %291  ;;  %875 = vmatpush1.bf16.msra.mxu0 %v1089_v38  ;;  %914 = vmatpush1.bf16.msra.mxu1 %v1170_v41 }
  0x98   : >> { %v296_v45 = vrot.slane %v294_v43, 4  ;;  %v295_v46 = vrot.slane %v292_v44, 4  ;;  %915 = vmatprep.subr.bf16.mxu1 %v1204_v6 }
  0x9a   : >> { %v300_v47 = vsel %vm298_vm6, %v294_v43, %v296_v45  ;;  %v297_v48 = vsel %vm240_vm1, %v295_v46, %v296_v45  ;;  %v1171_v49 = vld [vmem:[#allocation2 + $0x20] ss:$12 sps:$4 sm:$0xff]  }
  0x9b   : >> { %304 = vst [vmem:[#allocation2 + $0x44] sm:$0xf] %v300_v47  ;;  %v299_v50 = vsel %vm298_vm6, %v292_v44, %v297_v48  ;;  %v308_v51 = vpop.permute.xlu1 %307  ;;  %v306_v52 = vpop.permute.xlu0 %305  ;;  %916 = vmatpush1.bf16.msra.mxu1 %v1171_v49 }
  0x9c   : >> { %v310_v53 = vrot.slane %v308_v51, 4  ;;  %v309_v54 = vrot.slane %v306_v52, 4  ;;  %v1093_v55 = vcombine.high %v285_v42, %v299_v50  ;;  %v1092_v56 = vcombine.low %v285_v42, %v299_v50  ;;  %917 = vmatprep.subr.bf16.mxu1 %v1204_v6 }
  0x9e   : >> { %v314_v57 = vsel %vm312_vm7, %v308_v51, %v310_v53  ;;  %v311_v58 = vsel %vm240_vm1, %v309_v54, %v310_v53  ;;  %876 = vmatprep.subr.bf16.mxu0 %v1093_v55 }
  0x9f   : >> { %318 = vst [vmem:[#allocation2 + $0x50] sm:$0xf] %v314_v57  ;;  %v313_v59 = vsel %vm312_vm7, %v306_v52, %v311_v58  ;;  %v322_v60 = vpop.permute.xlu1 %321  ;;  %v320_v61 = vpop.permute.xlu0 %319  ;;  %877 = vmatpush1.bf16.msra.mxu0 %v1092_v56 }
  0xa0   : >> { %v324_v62 = vrot.slane %v322_v60, 4  ;;  %v323_v63 = vrot.slane %v320_v61, 4 }
  0xa2   : >> { %v328_v0 = vsel %vm326_vm8, %v322_v60, %v324_v62  ;;  %v325_v1 = vsel %vm240_vm1, %v323_v63, %v324_v62  ;;  %v1172_v2 = vld [vmem:[#allocation2 + $0x38] ss:$12 sps:$4 sm:$0xff]  }
  0xa3   : >> { %332 = vst [vmem:[#allocation2 + $0x5c] sm:$0xf] %v328_v0  ;;  %v327_v4 = vsel %vm326_vm8, %v320_v61, %v325_v1  ;;  %v336_v8 = vpop.permute.xlu1 %335  ;;  %v334_v9 = vpop.permute.xlu0 %333  ;;  %918 = vmatpush1.bf16.msra.mxu1 %v1172_v2 }
  0xa4   : >> { %v338_v10 = vrot.slane %v336_v8, 4  ;;  %v337_v11 = vrot.slane %v334_v9, 4  ;;  %v1096_v12 = vcombine.high %v313_v59, %v327_v4  ;;  %v1095_v13 = vcombine.low %v313_v59, %v327_v4  ;;  %919 = vmatprep.subr.bf16.mxu1 %v1204_v6 }
  0xa6   : >> { %v342_v14 = vsel %vm340_vm9, %v336_v8, %v338_v10  ;;  %v339_v15 = vsel %vm240_vm1, %v337_v11, %v338_v10  ;;  %878 = vmatprep.subr.bf16.mxu0 %v1096_v12 }
  0xa7   : >> { %346 = vst [vmem:[#allocation2 + $0x68] sm:$0xf] %v342_v14  ;;  %v341_v16 = vsel %vm340_vm9, %v334_v9, %v339_v15  ;;  %v360_v17 = vpop.permute.xlu1 %359  ;;  %v358_v18 = vpop.permute.xlu0 %357  ;;  %879 = vmatpush1.bf16.msra.mxu0 %v1095_v13 }
  0xa8   : >> { %v362_v19 = vrot.slane %v360_v17, 4  ;;  %v361_v20 = vrot.slane %v358_v18, 4  ;;  %v1099_v21 = vcombine.high %v341_v16, %v1272_v3  ;;  %v1098_v22 = vcombine.low %v341_v16, %v1272_v3 }
  0xaa   : >> { %v365_v23 = vsel %vm242_vm3, %v360_v17, %v362_v19  ;;  %v363_v24 = vsel %vm240_vm1, %v361_v20, %v362_v19  ;;  %v1173_v25 = vld [vmem:[#allocation2 + $0x50] ss:$12 sps:$4 sm:$0xff]   ;;  %880 = vmatprep.subr.bf16.mxu0 %v1099_v21 }
  0xab   : >> { %369 = vst [vmem:[#allocation2 + $0x80] sm:$0xf] %v365_v23  ;;  %v364_v26 = vsel %vm242_vm3, %v358_v18, %v363_v24  ;;  %v373_v27 = vpop.permute.xlu1 %372  ;;  %v371_v28 = vpop.permute.xlu0 %370  ;;  %881 = vmatpush1.bf16.msra.mxu0 %v1098_v22  ;;  %920 = vmatpush1.bf16.msra.mxu1 %v1173_v25 }
  0xac   : >> { %v375_v29 = vrot.slane %v373_v27, 4  ;;  %v374_v30 = vrot.slane %v371_v28, 4  ;;  %921 = vmatprep.subr.bf16.mxu1 %v1204_v6 }
  0xae   : >> { %v378_v31 = vsel %vm256_vm2, %v373_v27, %v375_v29  ;;  %v376_v3 = vsel %vm240_vm1, %v374_v30, %v375_v29  ;;  %v1174_v32 = vld [vmem:[#allocation2 + $0x68] ss:$12 sps:$4 sm:$0xff]  }
  0xaf   : >> { %382 = vst [vmem:[#allocation2 + $0x8c] sm:$0xf] %v378_v31  ;;  %v377_v33 = vsel %vm256_vm2, %v371_v28, %v376_v3  ;;  %v386_v34 = vpop.permute.xlu1 %385  ;;  %v384_v35 = vpop.permute.xlu0 %383  ;;  %922 = vmatpush1.bf16.msra.mxu1 %v1174_v32 }
  0xb0   : >> { %v388_v36 = vrot.slane %v386_v34, 4  ;;  %v387_v37 = vrot.slane %v384_v35, 4  ;;  %v1102_v38 = vcombine.high %v364_v26, %v377_v33  ;;  %v1101_v39 = vcombine.low %v364_v26, %v377_v33  ;;  %923 = vmatprep.subr.bf16.mxu1 %v1204_v6 }
  0xb2   : >> { %v391_v40 = vsel %vm270_vm4, %v386_v34, %v388_v36  ;;  %v389_v41 = vsel %vm240_vm1, %v387_v37, %v388_v36  ;;  %882 = vmatprep.subr.bf16.mxu0 %v1102_v38 }
  0xb3   : >> { %395 = vst [vmem:[#allocation2 + $0x98] sm:$0xf] %v391_v40  ;;  %v390_v42 = vsel %vm270_vm4, %v384_v35, %v389_v41  ;;  %v399_v43 = vpop.permute.xlu1 %398  ;;  %v397_v44 = vpop.permute.xlu0 %396  ;;  %883 = vmatpush1.bf16.msra.mxu0 %v1101_v39 }
  0xb4   : >> { %v401_v45 = vrot.slane %v399_v43, 4  ;;  %v400_v46 = vrot.slane %v397_v44, 4 }
  0xb6   : >> { %v404_v47 = vsel %vm284_vm5, %v399_v43, %v401_v45  ;;  %v402_v48 = vsel %vm240_vm1, %v400_v46, %v401_v45  ;;  %v1175_v49 = vld [vmem:[#allocation2 + $0x80] ss:$12 sps:$4 sm:$0xff]  }
  0xb7   : >> { %408 = vst [vmem:[#allocation2 + $0xa4] sm:$0xf] %v404_v47  ;;  %v403_v50 = vsel %vm284_vm5, %v397_v44, %v402_v48  ;;  %v412_v51 = vpop.permute.xlu1 %411  ;;  %v410_v52 = vpop.permute.xlu0 %409  ;;  %924 = vmatpush1.bf16.msra.mxu1 %v1175_v49 }
  0xb8   : >> { %v414_v53 = vrot.slane %v412_v51, 4  ;;  %v413_v54 = vrot.slane %v410_v52, 4  ;;  %v1105_v55 = vcombine.high %v390_v42, %v403_v50  ;;  %v1104_v56 = vcombine.low %v390_v42, %v403_v50  ;;  %925 = vmatprep.subr.bf16.mxu1 %v1204_v6 }
  0xba   : >> { %v417_v57 = vsel %vm298_vm6, %v412_v51, %v414_v53  ;;  %v415_v58 = vsel %vm240_vm1, %v413_v54, %v414_v53  ;;  %884 = vmatprep.subr.bf16.mxu0 %v1105_v55 }
  0xbb   : >> { %421 = vst [vmem:[#allocation2 + $0xb0] sm:$0xf] %v417_v57  ;;  %v416_v59 = vsel %vm298_vm6, %v410_v52, %v415_v58  ;;  %v425_v60 = vpop.permute.xlu1 %424  ;;  %v423_v61 = vpop.permute.xlu0 %422  ;;  %885 = vmatpush1.bf16.msra.mxu0 %v1104_v56 }
  0xbc   : >> { %v427_v62 = vrot.slane %v425_v60, 4  ;;  %v426_v63 = vrot.slane %v423_v61, 4 }
  0xbe   : >> { %v430_v0 = vsel %vm312_vm7, %v425_v60, %v427_v62  ;;  %v428_v1 = vsel %vm240_vm1, %v426_v63, %v427_v62  ;;  %v1176_v2 = vld [vmem:[#allocation2 + $0x98] ss:$12 sps:$4 sm:$0xff]  }
  0xbf   : >> { %434 = vst [vmem:[#allocation2 + $0xbc] sm:$0xf] %v430_v0  ;;  %v429_v4 = vsel %vm312_vm7, %v423_v61, %v428_v1  ;;  %v438_v8 = vpop.permute.xlu1 %437  ;;  %v436_v9 = vpop.permute.xlu0 %435  ;;  %926 = vmatpush1.bf16.msra.mxu1 %v1176_v2 }
  0xc0   : >> { %v440_v10 = vrot.slane %v438_v8, 4  ;;  %v439_v11 = vrot.slane %v436_v9, 4  ;;  %v1108_v12 = vcombine.high %v416_v59, %v429_v4  ;;  %v1107_v13 = vcombine.low %v416_v59, %v429_v4  ;;  %927 = vmatprep.subr.bf16.mxu1 %v1204_v6 }
  0xc2   : >> { %v443_v14 = vsel %vm326_vm8, %v438_v8, %v440_v10  ;;  %v441_v15 = vsel %vm240_vm1, %v439_v11, %v440_v10  ;;  %886 = vmatprep.subr.bf16.mxu0 %v1108_v12 }
  0xc3   : >> { %447 = vst [vmem:[#allocation2 + $0xc8] sm:$0xf] %v443_v14  ;;  %v442_v16 = vsel %vm326_vm8, %v436_v9, %v441_v15  ;;  %v451_v17 = vpop.permute.xlu1 %450  ;;  %v449_v18 = vpop.permute.xlu0 %448  ;;  %887 = vmatpush1.bf16.msra.mxu0 %v1107_v13 }
  0xc4   : >> { %v453_v19 = vrot.slane %v451_v17, 4  ;;  %v452_v20 = vrot.slane %v449_v18, 4 }
  0xc6   : >> { %v456_v21 = vsel %vm340_vm9, %v451_v17, %v453_v19  ;;  %v454_v22 = vsel %vm240_vm1, %v452_v20, %v453_v19  ;;  %v1177_v23 = vld [vmem:[#allocation2 + $0xb0] ss:$12 sps:$4 sm:$0xff]  }
  0xc7   : >> { %460 = vst [vmem:[#allocation2 + $0xd4] sm:$0xf] %v456_v21  ;;  %v455_v24 = vsel %vm340_vm9, %v449_v18, %v454_v22  ;;  %v474_v25 = vpop.permute.xlu1 %473  ;;  %v472_v26 = vpop.permute.xlu0 %471  ;;  %928 = vmatpush1.bf16.msra.mxu1 %v1177_v23 }
  0xc8   : >> { %v476_v27 = vrot.slane %v474_v25, 4  ;;  %v475_v28 = vrot.slane %v472_v26, 4  ;;  %v1111_v29 = vcombine.high %v442_v16, %v455_v24  ;;  %v1110_v30 = vcombine.low %v442_v16, %v455_v24  ;;  %929 = vmatprep.subr.bf16.mxu1 %v1204_v6 }
  0xca   : >> { %v479_v31 = vsel %vm242_vm3, %v474_v25, %v476_v27  ;;  %v477_v3 = vsel %vm240_vm1, %v475_v28, %v476_v27  ;;  %888 = vmatprep.subr.bf16.mxu0 %v1111_v29 }
  0xcb   : >> { %483 = vst [vmem:[#allocation2 + $0xec] sm:$0xf] %v479_v31  ;;  %v478_v32 = vsel %vm242_vm3, %v472_v26, %v477_v3  ;;  %v487_v33 = vpop.permute.xlu1 %486  ;;  %v485_v34 = vpop.permute.xlu0 %484  ;;  %889 = vmatpush1.bf16.msra.mxu0 %v1110_v30 }
  0xcc   : >> { %v489_v35 = vrot.slane %v487_v33, 4  ;;  %v488_v36 = vrot.slane %v485_v34, 4  ;;  %v1114_v37 = vcombine.high %v1274_v5, %v478_v32  ;;  %v1113_v38 = vcombine.low %v1274_v5, %v478_v32 }
  0xce   : >> { %v492_v39 = vsel %vm256_vm2, %v487_v33, %v489_v35  ;;  %v490_v40 = vsel %vm240_vm1, %v488_v36, %v489_v35  ;;  %v1178_v41 = vld [vmem:[#allocation2 + $0xc8] ss:$12 sps:$4 sm:$0xff]   ;;  %890 = vmatprep.subr.bf16.mxu0 %v1114_v37  ;;  %v1084_v36 = vcombine.low %v1343_v7, %v1343_v7 }
  0xcf   : >> { %496 = vst [vmem:[#allocation2 + $0xf8] sm:$0xf] %v492_v39  ;;  %v491_v42 = vsel %vm256_vm2, %v485_v34, %v490_v40  ;;  %v500_v43 = vpop.permute.xlu1 %499  ;;  %v498_v44 = vpop.permute.xlu0 %497  ;;  %891 = vmatpush1.bf16.msra.mxu0 %v1113_v38  ;;  %930 = vmatpush1.bf16.msra.mxu1 %v1178_v41  ;;  %v956_v39 = vld [vmem:[%s955_s19] sm:$0xff] }
  0xd0   : >> { %v502_v45 = vrot.slane %v500_v43, 4  ;;  %v501_v46 = vrot.slane %v498_v44, 4  ;;  %931 = vmatprep.subr.bf16.mxu1 %v1204_v6  ;;  %v958_v41 = vunpack.c.l.bf16 %v956_v39 }
  0xd2   : >> { %v505_v47 = vsel %vm270_vm4, %v500_v43, %v502_v45  ;;  %v503_v5 = vsel %vm240_vm1, %v501_v46, %v502_v45  ;;  %v1179_v48 = vld [vmem:[#allocation2 + $0xe0] ss:$12 sps:$4 sm:$0xff]   ;;  %v959_v43 = vunpack.c.h.bf16 %v956_v39  ;;  %v957_v45 = vld [vmem:[%s955_s19 + $0x8] sm:$0xf] }
  0xd3   : >> { %509 = vst [vmem:[#allocation2 + $0x104] sm:$0xf] %v505_v47  ;;  %v504_v49 = vsel %vm270_vm4, %v498_v44, %v503_v5  ;;  %v513_v50 = vpop.permute.xlu1 %512  ;;  %v511_v51 = vpop.permute.xlu0 %510  ;;  %932 = vmatpush1.bf16.msra.mxu1 %v1179_v48 }
  0xd4   : >> { %v515_v52 = vrot.slane %v513_v50, 4  ;;  %v514_v53 = vrot.slane %v511_v51, 4  ;;  %v1117_v54 = vcombine.high %v491_v42, %v504_v49  ;;  %v1116_v55 = vcombine.low %v491_v42, %v504_v49  ;;  %933 = vmatprep.subr.bf16.mxu1 %v1204_v6 }
  0xd5   : >> { %v960_v49 = vunpack.c.l.bf16 %v957_v45 }
  0xd6   : >> { %v518_v56 = vsel %vm284_vm5, %v513_v50, %v515_v52  ;;  %v516_v57 = vsel %vm240_vm1, %v514_v53, %v515_v52  ;;  %892 = vmatprep.subr.bf16.mxu0 %v1117_v54 }
  0xd7   : >> { %522 = vst [vmem:[#allocation2 + $0x110] sm:$0xf] %v518_v56  ;;  %v517_v58 = vsel %vm284_vm5, %v511_v51, %v516_v57  ;;  %v526_v59 = vpop.permute.xlu1 %525  ;;  %v524_v60 = vpop.permute.xlu0 %523  ;;  %893 = vmatpush1.bf16.msra.mxu0 %v1116_v55 }
  0xd8   : >> { %v528_v61 = vrot.slane %v526_v59, 4  ;;  %v527_v62 = vrot.slane %v524_v60, 4 }
  0xda   : >> { %v531_v63 = vsel %vm298_vm6, %v526_v59, %v528_v61  ;;  %v529_v0 = vsel %vm240_vm1, %v527_v62, %v528_v61  ;;  %v1180_v1 = vld [vmem:[#allocation2 + $0xf8] ss:$12 sps:$4 sm:$0xff]  }
  0xdb   : >> { %535 = vst [vmem:[#allocation2 + $0x11c] sm:$0xf] %v531_v63  ;;  %v530_v2 = vsel %vm298_vm6, %v524_v60, %v529_v0  ;;  %v539_v4 = vpop.permute.xlu1 %538  ;;  %v537_v8 = vpop.permute.xlu0 %536  ;;  %934 = vmatpush1.bf16.msra.mxu1 %v1180_v1 }
  0xdc   : >> { %v541_v9 = vrot.slane %v539_v4, 4  ;;  %v540_v10 = vrot.slane %v537_v8, 4  ;;  %v1120_v11 = vcombine.high %v517_v58, %v530_v2  ;;  %v1119_v12 = vcombine.low %v517_v58, %v530_v2  ;;  %935 = vmatprep.subr.bf16.mxu1 %v1204_v6 }
  0xde   : >> { %v544_v13 = vsel %vm312_vm7, %v539_v4, %v541_v9  ;;  %v542_v14 = vsel %vm240_vm1, %v540_v10, %v541_v9  ;;  %894 = vmatprep.subr.bf16.mxu0 %v1120_v11 }
  0xdf   : >> { %548 = vst [vmem:[#allocation2 + $0x128] sm:$0xf] %v544_v13  ;;  %v543_v15 = vsel %vm312_vm7, %v537_v8, %v542_v14  ;;  %v552_v16 = vpop.permute.xlu1 %551  ;;  %v550_v17 = vpop.permute.xlu0 %549  ;;  %895 = vmatpush1.bf16.msra.mxu0 %v1119_v12 }
  0xe0   : >> { %v554_v18 = vrot.slane %v552_v16, 4  ;;  %v553_v19 = vrot.slane %v550_v17, 4 }
  0xe2   : >> { %v557_v20 = vsel %vm326_vm8, %v552_v16, %v554_v18  ;;  %v555_v21 = vsel %vm240_vm1, %v553_v19, %v554_v18  ;;  %v1181_v22 = vld [vmem:[#allocation2 + $0x110] ss:$12 sps:$4 sm:$0xff]  }
  0xe3   : >> { %561 = vst [vmem:[#allocation2 + $0x134] sm:$0xf] %v557_v20  ;;  %v556_v23 = vsel %vm326_vm8, %v550_v17, %v555_v21  ;;  %v565_v24 = vpop.permute.xlu1 %564  ;;  %v563_v25 = vpop.permute.xlu0 %562  ;;  %936 = vmatpush1.bf16.msra.mxu1 %v1181_v22 }
  0xe4   : >> { %v567_v26 = vrot.slane %v565_v24, 4  ;;  %v566_v27 = vrot.slane %v563_v25, 4  ;;  %v1123_v28 = vcombine.high %v543_v15, %v556_v23  ;;  %v1122_v29 = vcombine.low %v543_v15, %v556_v23  ;;  %937 = vmatprep.subr.bf16.mxu1 %v1204_v6 }
  0xe6   : >> { %v570_v30 = vsel %vm340_vm9, %v565_v24, %v567_v26  ;;  %v568_v31 = vsel %vm240_vm1, %v566_v27, %v567_v26  ;;  %896 = vmatprep.subr.bf16.mxu0 %v1123_v28 }
  0xe7   : >> { %574 = vst [vmem:[#allocation2 + $0x140] sm:$0xf] %v570_v30  ;;  %v569_v3 = vsel %vm340_vm9, %v563_v25, %v568_v31  ;;  %897 = vmatpush1.bf16.msra.mxu0 %v1122_v29 }
  0xe8   : >> { %v1126_v32 = vcombine.high %v569_v3, %v569_v3  ;;  %v1125_v33 = vcombine.low %v569_v3, %v569_v3 }
  0xea   : >> { %v1182_v34 = vld [vmem:[#allocation2 + $0x128] ss:$12 sps:$4 sm:$0xff]   ;;  %1128 = vmatprep.subr.msk.bf16.mxu0 %vm240_vm1, %v1126_v32  ;;  %v864_v35 = vsel %vm240_vm1, %v1125_v33, 0 }
  0xeb   : >> { %899 = vmatpush1.bf16.msra.mxu0 %v864_v35  ;;  %938 = vmatpush1.bf16.msra.mxu1 %v1182_v34 }
  0xec   : >> { %939 = vmatprep.subr.bf16.mxu1 %v1204_v6 }
  0xee   : >> { %v1183_v37 = vld [vmem:[#allocation2 + $0x140] ss:$0 sps:$4 sm:$0xff]   ;;  %905 = vmatmul.mubr.bf16.vlgmr.msra.gmra.mrb[0].mxu0 %v1084_v36 }
  0xef   : >> { %v870_v38 = vsel %vm240_vm1, %v1183_v37, 0 }
  0xf0   : >> { %940 = vmatpush1.bf16.msra.mxu1 %v870_v38 }
  0xf3   : >> { %946 = vmatmul.mubr.bf16.vlgmr.msra.gmra.mrb[0].mxu1 %v1084_v36 }
  0xf4   : >> { %v634_v40 = vpop.permute.xlu0 %633 }
 0x1c1   : >> { %v906_v42 = vpop.f32.mrb[0].mxu0 }
 0x1c2   : >> { %v907_v44 = vadd.f32 %v906_v42, %v634_v40  ;;  %v908_v7 = vpop.f32.mrb[1].mxu0 }
 0x1c3   : >> { %v909_v46 = vadd.f32 %v908_v7, %v634_v40  ;;  %v910_v47 = vpop.f32.mrb[2].mxu0 }
 0x1c4   : >> { %v961_v6 = vadd.f32 %v958_v41, %v907_v44  ;;  %v911_v5 = vpop.f32.mrb[3].mxu0 }
 0x1c5   : >> { %v962_v48 = vadd.f32 %v959_v43, %v909_v46 }
 0x1c6   : >> { %v964_v50 = vmax.f32 %v961_v6, 0.0  ;;  %v947_v51 = vpop.f32.mrb[0].mxu1 }
 0x1c7   : >> { %v965_v52 = vmax.f32 %v962_v48, 0.0  ;;  %v949_v53 = vpop.f32.mrb[1].mxu1  ;;  %v948_v54 = vadd.f32 %v947_v51, %v634_v40 }
 0x1c8   : >> { %v950_v56 = vpop.f32.mrb[2].mxu1 }
 0x1c9   : >> { %v1139_v55 = vpack.c.bf16 %v965_v52, %v964_v50  ;;  %v963_v57 = vadd.f32 %v960_v49, %v948_v54  ;;  %v951_v58 = vpop.f32.mrb[3].mxu1  ;;  %223 = sbr.rel (!%p221_p4) target bundleno = 18 (0x12), region = 81 }
 0x1cb   : >> { %982 = vst [vmem:[%s981_s20] sm:$0xff] %v1139_v55  ;;  %v966_v59 = vmax.f32 %v963_v57, 0.0 }
 0x1cd   : >> { %v1140_v60 = vpack.c.bf16 %v966_v59, %v966_v59 }
 0x1cf   : >> { %983 = vst [vmem:[%s981_s20 + $0x8] sm:$0xf] %v1140_v60 }
 0x1d0 PF: > { %s14_s15 = sadd.s32 1, %s1196_s15  }
 0x1d1   : > { %p11_p5 = scmp.ge.s32.totalorder %s14_s15, 6  }
 0x1d3   :  { %13 = sbr.rel (!%p11_p5) target bundleno = 1 (0x1), region = 92 }

// kernel: medicalnet_l1_forward.14
= control target key start
LH: loop header
LB: loop body
LE: loop exit
PB: predicated region body
PF: predicated region fallthrough
CT: control target
= control target key end

     0   :  { %s424_s12 = smov 0   ;;  %s465_s0 = inlined_call_operand.vmem [shape: bf16[4,15,8,128], index: 0, kind: input, shape index: {}]   ;;  %s466_s1 = inlined_call_operand.vmem [shape: bf16[16,8], index: 1, kind: input, shape index: {}]   ;;  %s467_s2 = inlined_call_operand.vmem [shape: f32[16,1], index: 2, kind: input, shape index: {}]   ;;  %s468_s3 = inlined_call_operand.vmem [shape: bf16[4,8,16,128], index: 3, kind: output, shape index: {}]  }
   0x1 LB: > { %s328_s13 = sadd.s32 4294967295, %s395_s12   ;;  %p332_p0 = scmp.ge.s32.totalorder %s395_s12, 1  ;;  %s395_s12 = sphi %s424_s12, %s13_s12  }
   0x2   : > { %p137_p1 = scmp.lt.s32.totalorder %s395_s12, 5 }
   0x4   : > { %p138_p2 = pnand %p332_p0, %p137_p1 }
   0x5   : > { %p161_p3 = scmp.lt.s32.totalorder (!%p138_p2), %s328_s13, 3  ;;  %s442_s22 = smov (!%p138_p2), 0  }
   0x6   : > { %141 = sbr.rel (%p138_p2) target bundleno = 251 (0xfb), region = 32 }
   0xd   : > { %s470_s13 = smov (!%p161_p3, %s328_s13), 3 }
   0xe   : > { %s363_s14 = smul.u32 60, %s470_s13  ;;  %s345_s15 = sshll.u32 %s470_s13, 6 }
   0xf   : > { %s435_s18 = scalar_lea.vmem %s468_s3, %s345_s15 }
  0x10   : > { %s440_s21 = scalar_lea.vmem %s465_s0, %s363_s14 }
  0x11 LB: >> { %v401_v0 = vmov 0.0   ;;  %vm402_vm0 = vmmov 0   ;;  %v186_v1 = vld [vmem:[%s467_s2] sm:$0xff]  ;;  %s346_s25 = sshll.u32 %s399_s22, 3  ;;  %v403_v2 = vmov 0   ;;  %v187_v4 = vld [vmem:[%s467_s2 + $0x8] sm:$0xff]  ;;  %s399_s22 = sphi %s442_s22, %s177_s22  }
  0x12   : >> { %357 = vmatprep.subr.bf16.mxu0 %v401_v0  ;;  %359 = vmatprep.mubr.msk.bf16.mxu0 %vm402_vm0, %v401_v0  ;;  %s180_s26 = scalar_lea.vmem %s440_s21, %s346_s25  ;;  %vm207_vm1 = vcmask 1043456   ;;  %v384_v7 = vld [vmem:[%s466_s1] sm:$0xff]   ;;  %vm203_vm2 = vcmask 64512   ;;  %s261_s4 = scalar_lea.vmem %s435_s18, %s346_s25 }
  0x13   : >> { %383 = vset.pattern.permute.xlu0 %v403_v2  ;;  %v181_v3 = vld [vmem:[%s180_s26] sm:$0xf]  ;;  %s177_s22 = sadd.s32 1, %s399_s22  }
  0x14   : >> { %190 = vperm.xlu0 %383, %v186_v1   ;;  %182 = vst [vmem:[#allocation2] sm:$0xf] %v181_v3  ;;  %p174_p4 = scmp.ge.s32.totalorder %s177_s22, 8  }
  0x18   : >> { %195 = vperm.xlu0 %383, %v187_v4  }
  0x1b   : >> { %v185_v5 = vld [vmem:[#allocation2] sm:$0xf] }
  0x1c   : >> { %v209_v6 = vsel %vm207_vm1, %v185_v5, 0 }
  0x1d   : >> { %358 = vmatpush3.bf16.msra.mxu0 %v209_v6 }
  0x20   : >> { %360 = vmatmul.mubr.msk.bf16.vlgmr.msra.gmra.mrb[0].mxu0 %vm203_vm2, %v384_v7 }
  0x93   : >> { %v191_v8 = vpop.permute.xlu0 %190 }
  0x97   : >> { %v196_v11 = vpop.permute.xlu0 %195 }
  0xf3   : >> { %v245_v9 = vpop.f32.mrb[0].mxu0 }
  0xf4   : >> { %v361_v10 = vpop.f32.mrb[1].mxu0  ;;  %v246_v13 = vadd.f32 %v245_v9, %v191_v8  ;;  %176 = sbr.rel (!%p174_p4) target bundleno = 17 (0x11), region = 71 }
  0xf5   : >> { %v248_v12 = vpop.f32.mrb[2].mxu0 }
  0xf6   : >> { %v249_v14 = vadd.f32 %v248_v12, %v196_v11  ;;  %v362_v15 = vpop.f32.mrb[3].mxu0 }
  0xf8   : >> { %v353_v16 = vpack.c.bf16 %v249_v14, %v246_v13 }
  0xfa   : >> { %354 = vst [vmem:[%s261_s4] sm:$0xff] %v353_v16  }
  0xfb PF: > { %s13_s12 = sadd.s32 1, %s395_s12  }
  0xfc   : > { %p10_p5 = scmp.ge.s32.totalorder %s13_s12, 6  }
  0xfe   :  { %12 = sbr.rel (!%p10_p5) target bundleno = 1 (0x1), region = 82 }

// kernel: medicalnet_l1_forward.13
= control target key start
LH: loop header
LB: loop body
LE: loop exit
PB: predicated region body
PF: predicated region fallthrough
CT: control target
= control target key end

     0   :  { %s720_s12 = smov 0   ;;  %s822_s0 = inlined_call_operand.vmem [shape: bf16[4,17,32,256], index: 0, kind: input, shape index: {}]   ;;  %s823_s1 = inlined_call_operand.vmem [shape: bf16[16,216], index: 1, kind: input, shape index: {}]   ;;  %s824_s2 = inlined_call_operand.vmem [shape: f32[16,1], index: 2, kind: input, shape index: {}]   ;;  %s825_s3 = inlined_call_operand.vmem [shape: bf16[4,8,16,128], index: 3, kind: output, shape index: {}]  }
   0x1 LB: > { %s582_s13 = sadd.s32 4294967295, %s690_s12   ;;  %p586_p0 = scmp.ge.s32.totalorder %s690_s12, 1  ;;  %s690_s12 = sphi %s720_s12, %s13_s12  }
   0x2   : > { %p137_p1 = scmp.lt.s32.totalorder %s690_s12, 5 }
   0x4   : > { %p138_p2 = pnand %p586_p0, %p137_p1 }
   0x5   : > { %p161_p3 = scmp.lt.s32.totalorder (!%p138_p2), %s582_s13, 3  ;;  %s738_s22 = smov (!%p138_p2), 0  }
   0x6   : > { %141 = sbr.rel (%p138_p2) target bundleno = 418 (0x1a2), region = 32 }
   0xd   : > { %s827_s13 = smov (!%p161_p3, %s582_s13), 3 }
   0xe   : > { %s640_s14 = smul.u32 544, %s827_s13  ;;  %s627_s15 = sshll.u32 %s827_s13, 6 }
   0xf   : > { %s731_s18 = scalar_lea.vmem %s825_s3, %s627_s15 }
  0x10   : > { %s736_s21 = scalar_lea.vmem %s822_s0, %s640_s14 }
  0x11 LB: >> { %v696_v0 = vmov 0   ;;  %s629_s23 = sshll.u32 %s694_s22, 6  ;;  %s697_s25 = smov 119   ;;  %v679_v14 = vld [vmem:[%s823_s1 + $0x4] ss:$8 sps:$4 sm:$0xff]   ;;  %vm447_vm0 = vcmask 719872   ;;  %s694_s22 = sphi %s738_s22, %s177_s22  }
  0x12   : >> { %455 = vmatprep.subr.bf16.mxu0 %v696_v0  ;;  %661 = vset.pattern.permute.xlu1 %v696_v0  ;;  %s748_s24 = scalar_lea.vmem %s736_s21, %s629_s23  ;;  %s698_s26 = smov 127   ;;  %v345_v15 = vld [vmem:[%s824_s2] sm:$0xff]  ;;  %v346_v16 = vld [vmem:[%s824_s2 + $0x8] sm:$0xff]  ;;  %vm208_vm1 = vcmask 973824   ;;  %vm192_vm2 = vcmask 1039360   ;;  %vm222_vm3 = vcmask 965632  }
  0x13   : >> { %662 = vset.pattern.permute.xlu0 %v696_v0  ;;  %v182_v1 = vld [vmem:[%s748_s24] sm:$0xff]  ;;  %v183_v2 = vld [vmem:[%s748_s24 + $0x8] sm:$0xff]  ;;  %v184_v3 = vld [vmem:[%s748_s24 + $0x10] sm:$0xff]  ;;  %s699_s27 = smov 118   ;;  %621 = vmatprep.mubr.msk.bf16.mxu0 %vm447_vm0, %v679_v14  ;;  %vm451_vm4 = vcmask 1043456   ;;  %s634_s9 = sshll.u32 %s694_s22, 3 }
  0x14   : >> { %205 = vrot.lane.b32.xlu1 %v182_v1, %s697_s25  ;;  %186 = vst [vmem:[#allocation2] sm:$0xf] %v182_v1  ;;  %189 = vrot.lane.b32.xlu0 %v182_v1, %s698_s26  ;;  %187 = vst [vmem:[#allocation2 + $0x4] sm:$0xf] %v183_v2  ;;  %v595_v4 = vld [vmem:[%s748_s24 + $0x20] sm:$0xff]  ;;  %v597_v5 = vld [vmem:[%s748_s24 + $0x30] sm:$0xff]  ;;  %s507_s10 = scalar_lea.vmem %s731_s18, %s634_s9 }
  0x15   : >> { %196 = vst [vmem:[#allocation2 + $0xc] sm:$0xf] %v184_v3  ;;  %234 = vst [vmem:[#allocation2 + $0x24] sm:$0xf] %v595_v4  ;;  %v596_v6 = vld [vmem:[%s748_s24 + $0x28] sm:$0xff]  ;;  %v601_v7 = vld [vmem:[%s748_s24 + $0x40] sm:$0xff] }
  0x16   : >> { %243 = vst [vmem:[#allocation2 + $0x30] sm:$0xf] %v597_v5  ;;  %v603_v8 = vld [vmem:[%s748_s24 + $0x50] sm:$0xff]  ;;  %235 = vst [vmem:[#allocation2 + $0x28] sm:$0xf] %v596_v6  ;;  %v602_v9 = vld [vmem:[%s748_s24 + $0x48] sm:$0xff] }
  0x17   : >> { %279 = vst [vmem:[#allocation2 + $0x48] sm:$0xf] %v601_v7  ;;  %288 = vst [vmem:[#allocation2 + $0x54] sm:$0xf] %v603_v8  ;;  %v185_v10 = vld [vmem:[%s748_s24 + $0x18] sm:$0xff]  ;;  %s177_s22 = sadd.s32 1, %s694_s22  }
  0x18   : >> { %280 = vst [vmem:[#allocation2 + $0x4c] sm:$0xf] %v602_v9  ;;  %197 = vst [vmem:[#allocation2 + $0x10] sm:$0xf] %v185_v10  ;;  %213 = vrot.lane.b32.xlu1 %v183_v2, %s697_s25  ;;  %199 = vrot.lane.b32.xlu0 %v184_v3, %s698_s26  ;;  %v598_v12 = vld [vmem:[%s748_s24 + $0x38] sm:$0xff]  ;;  %p174_p4 = scmp.ge.s32.totalorder %s177_s22, 8  }
  0x19   : >> { %244 = vst [vmem:[#allocation2 + $0x34] sm:$0xf] %v598_v12  ;;  %v604_v13 = vld [vmem:[%s748_s24 + $0x58] sm:$0xff] }
  0x1a   : >> { %289 = vst [vmem:[#allocation2 + $0x58] sm:$0xf] %v604_v13  ;;  %v677_v13 = vld [vmem:[%s823_s1] ss:$8 sps:$4 sm:$0xff]  }
  0x1b   : >> { %v663_v11 = vld [vmem:[#allocation2] sm:$0xff]  }
  0x1c   : >> { %219 = vrot.lane.b32.xlu0 %v182_v1, %s699_s27  ;;  %237 = vrot.lane.b32.xlu1 %v595_v4, %s698_s26 }
  0x1d   : >> { %456 = vmatpush1.bf16.msra.mxu0 %v663_v11 }
  0x1e   : >> { %457 = vmatprep.subr.bf16.mxu0 %v696_v0 }
  0x20   : >> { %252 = vrot.lane.b32.xlu1 %v595_v4, %s697_s25  ;;  %246 = vrot.lane.b32.xlu0 %v597_v5, %s698_s26  ;;  %v669_v2 = vld [vmem:[#allocation2 + $0x30] sm:$0xff]  }
  0x24   : >> { %265 = vrot.lane.b32.xlu1 %v595_v4, %s699_s27  ;;  %259 = vrot.lane.b32.xlu0 %v596_v6, %s697_s25 }
  0x28   : >> { %282 = vrot.lane.b32.xlu0 %v601_v7, %s698_s26  ;;  %291 = vrot.lane.b32.xlu1 %v603_v8, %s698_s26 }
  0x2c   : >> { %304 = vrot.lane.b32.xlu1 %v602_v9, %s697_s25  ;;  %297 = vrot.lane.b32.xlu0 %v601_v7, %s697_s25 }
  0x30   : >> { %310 = vrot.lane.b32.xlu0 %v601_v7, %s699_s27  ;;  %349 = vperm.xlu1 %661, %v345_v15   ;;  %v672_v7 = vld [vmem:[#allocation2 + $0x48] sm:$0xff]  }
  0x34   : >> { %354 = vperm.xlu0 %662, %v346_v16  }
  0x86   : >> { %v206_v17 = vpop.permute.xlu1 %205  ;;  %v190_v18 = vpop.permute.xlu0 %189 }
  0x87   : >> { %v207_v19 = vrot.slane %v206_v17, 4  ;;  %v191_v20 = vrot.slane %v190_v18, 4 }
  0x89   : >> { %v209_v21 = vsel %vm208_vm1, %v206_v17, %v207_v19  ;;  %v193_v22 = vsel %vm192_vm2, %v190_v18, %v191_v20 }
  0x8a   : >> { %211 = vst [vmem:[#allocation2 + $0x18] sm:$0xf] %v209_v21  ;;  %195 = vst [vmem:[#allocation2 + $0x8] sm:$0xf] %v193_v22  ;;  %v214_v23 = vpop.permute.xlu1 %213  ;;  %v200_v24 = vpop.permute.xlu0 %199 }
  0x8b   : >> { %v215_v25 = vrot.slane %v214_v23, 4  ;;  %v201_v26 = vrot.slane %v200_v24, 4 }
  0x8d   : >> { %v216_v27 = vsel %vm208_vm1, %v214_v23, %v215_v25  ;;  %v202_v28 = vsel %vm192_vm2, %v200_v24, %v201_v26 }
  0x8e   : >> { %218 = vst [vmem:[#allocation2 + $0x1c] sm:$0xf] %v216_v27  ;;  %204 = vst [vmem:[#allocation2 + $0x14] sm:$0xf] %v202_v28  ;;  %v220_v29 = vpop.permute.xlu0 %219  ;;  %v238_v30 = vpop.permute.xlu1 %237 }
  0x8f   : >> { %v221_v31 = vrot.slane %v220_v29, 4  ;;  %v239_v32 = vrot.slane %v238_v30, 4 }
  0x91   : >> { %v223_v33 = vsel %vm222_vm3, %v220_v29, %v221_v31  ;;  %v240_v34 = vsel %vm192_vm2, %v238_v30, %v239_v32  ;;  %v664_v35 = vld [vmem:[#allocation2 + $0x8] sm:$0xff]  }
  0x92   : >> { %225 = vst [vmem:[#allocation2 + $0x20] sm:$0xf] %v223_v33  ;;  %242 = vst [vmem:[#allocation2 + $0x2c] sm:$0xf] %v240_v34  ;;  %v253_v36 = vpop.permute.xlu1 %252  ;;  %v247_v37 = vpop.permute.xlu0 %246  ;;  %458 = vmatpush1.bf16.msra.mxu0 %v664_v35 }
  0x93   : >> { %v254_v38 = vrot.slane %v253_v36, 4  ;;  %v248_v39 = vrot.slane %v247_v37, 4  ;;  %459 = vmatprep.subr.bf16.mxu0 %v696_v0 }
  0x95   : >> { %v665_v40 = vld [vmem:[#allocation2 + $0x10] sm:$0xff]   ;;  %v255_v41 = vsel %vm208_vm1, %v253_v36, %v254_v38  ;;  %v249_v42 = vsel %vm192_vm2, %v247_v37, %v248_v39  ;;  %v666_v47 = vld [vmem:[#allocation2 + $0x18] sm:$0xff]  }
  0x96   : >> { %257 = vst [vmem:[#allocation2 + $0x3c] sm:$0xf] %v255_v41  ;;  %251 = vst [vmem:[#allocation2 + $0x38] sm:$0xf] %v249_v42  ;;  %v266_v43 = vpop.permute.xlu1 %265  ;;  %v260_v44 = vpop.permute.xlu0 %259  ;;  %460 = vmatpush1.bf16.msra.mxu0 %v665_v40 }
  0x97   : >> { %v267_v45 = vrot.slane %v266_v43, 4  ;;  %v261_v46 = vrot.slane %v260_v44, 4  ;;  %461 = vmatprep.subr.bf16.mxu0 %v696_v0 }
  0x99   : >> { %v268_v48 = vsel %vm222_vm3, %v266_v43, %v267_v45  ;;  %v262_v49 = vsel %vm208_vm1, %v260_v44, %v261_v46  ;;  %v667_v54 = vld [vmem:[#allocation2 + $0x20] sm:$0xff]   ;;  %v668_v61 = vld [vmem:[#allocation2 + $0x28] sm:$0xff]  }
  0x9a   : >> { %270 = vst [vmem:[#allocation2 + $0x44] sm:$0xf] %v268_v48  ;;  %264 = vst [vmem:[#allocation2 + $0x40] sm:$0xf] %v262_v49  ;;  %v283_v50 = vpop.permute.xlu0 %282  ;;  %v292_v51 = vpop.permute.xlu1 %291  ;;  %462 = vmatpush1.bf16.msra.mxu0 %v666_v47 }
  0x9b   : >> { %v284_v52 = vrot.slane %v283_v50, 4  ;;  %v293_v53 = vrot.slane %v292_v51, 4  ;;  %463 = vmatprep.subr.bf16.mxu0 %v696_v0 }
  0x9d   : >> { %v285_v55 = vsel %vm192_vm2, %v283_v50, %v284_v52  ;;  %v294_v56 = vsel %vm192_vm2, %v292_v51, %v293_v53  ;;  %v670_v5 = vld [vmem:[#allocation2 + $0x38] sm:$0xff]  }
  0x9e   : >> { %287 = vst [vmem:[#allocation2 + $0x50] sm:$0xf] %v285_v55  ;;  %296 = vst [vmem:[#allocation2 + $0x5c] sm:$0xf] %v294_v56  ;;  %v305_v57 = vpop.permute.xlu1 %304  ;;  %v298_v58 = vpop.permute.xlu0 %297  ;;  %464 = vmatpush1.bf16.msra.mxu0 %v667_v54 }
  0x9f   : >> { %v306_v59 = vrot.slane %v305_v57, 4  ;;  %v299_v60 = vrot.slane %v298_v58, 4  ;;  %465 = vmatprep.subr.bf16.mxu0 %v696_v0 }
  0xa1   : >> { %v307_v62 = vsel %vm208_vm1, %v305_v57, %v306_v59  ;;  %v300_v63 = vsel %vm208_vm1, %v298_v58, %v299_v60  ;;  %v671_v6 = vld [vmem:[#allocation2 + $0x40] sm:$0xff]  }
  0xa2   : >> { %309 = vst [vmem:[#allocation2 + $0x64] sm:$0xf] %v307_v62  ;;  %302 = vst [vmem:[#allocation2 + $0x60] sm:$0xf] %v300_v63  ;;  %v311_v1 = vpop.permute.xlu0 %310  ;;  %466 = vmatpush1.bf16.msra.mxu0 %v668_v61 }
  0xa3   : >> { %v312_v3 = vrot.slane %v311_v1, 4  ;;  %467 = vmatprep.subr.bf16.mxu0 %v696_v0 }
  0xa5   : >> { %v313_v4 = vsel %vm222_vm3, %v311_v1, %v312_v3  ;;  %v673_v8 = vld [vmem:[#allocation2 + $0x50] sm:$0xff]   ;;  %v674_v9 = vld [vmem:[#allocation2 + $0x58] sm:$0xff]  }
  0xa6   : >> { %315 = vst [vmem:[#allocation2 + $0x68] sm:$0xf] %v313_v4  ;;  %468 = vmatpush1.bf16.msra.mxu0 %v669_v2 }
  0xa7   : >> { %469 = vmatprep.subr.bf16.mxu0 %v696_v0 }
  0xa9   : >> { %v675_v10 = vld [vmem:[#allocation2 + $0x60] sm:$0xff]  }
  0xaa   : >> { %470 = vmatpush1.bf16.msra.mxu0 %v670_v5 }
  0xab   : >> { %471 = vmatprep.subr.bf16.mxu0 %v696_v0 }
  0xad   : >> { %v676_v11 = vld [vmem:[#allocation2 + $0x68] ss:$0 sps:$4 sm:$0xff]  }
  0xae   : >> { %472 = vmatpush1.bf16.msra.mxu0 %v671_v6  ;;  %v453_v12 = vsel %vm451_vm4, %v676_v11, 0 }
  0xaf   : >> { %473 = vmatprep.subr.bf16.mxu0 %v696_v0  ;;  %v350_v14 = vpop.permute.xlu1 %349 }
  0xb2   : >> { %474 = vmatpush1.bf16.msra.mxu0 %v672_v7 }
  0xb3   : >> { %475 = vmatprep.subr.bf16.mxu0 %v696_v0  ;;  %v355_v16 = vpop.permute.xlu0 %354 }
  0xb6   : >> { %476 = vmatpush1.bf16.msra.mxu0 %v673_v8 }
  0xb7   : >> { %477 = vmatprep.subr.bf16.mxu0 %v696_v0 }
  0xba   : >> { %478 = vmatpush1.bf16.msra.mxu0 %v674_v9 }
  0xbb   : >> { %479 = vmatprep.subr.bf16.mxu0 %v696_v0 }
  0xbe   : >> { %480 = vmatpush1.bf16.msra.mxu0 %v675_v10 }
  0xbf   : >> { %481 = vmatprep.subr.bf16.mxu0 %v696_v0 }
  0xc2   : >> { %482 = vmatpush1.bf16.msra.mxu0 %v453_v12 }
  0xc5   : >> { %488 = vmatmul.mubr.bf16.vlgmr.msra.gmra.mrb[0].mxu0 %v677_v13 }
 0x198   : >> { %v489_v15 = vpop.f32.mrb[0].mxu0 }
 0x199   : >> { %v490_v17 = vadd.f32 %v489_v15, %v350_v14  ;;  %v491_v18 = vpop.f32.mrb[1].mxu0 }
 0x19a   : >> { %v492_v19 = vpop.f32.mrb[2].mxu0 }
 0x19b   : >> { %v493_v20 = vadd.f32 %v492_v19, %v355_v16  ;;  %v494_v21 = vpop.f32.mrb[3].mxu0  ;;  %v496_v22 = vmax.f32 %v490_v17, 0.0  ;;  %176 = sbr.rel (!%p174_p4) target bundleno = 17 (0x11), region = 73 }
 0x19d   : >> { %v497_v23 = vmax.f32 %v493_v20, 0.0 }
 0x19f   : >> { %v638_v0 = vpack.c.bf16 %v497_v23, %v496_v22 }
 0x1a1   : >> { %639 = vst [vmem:[%s507_s10] sm:$0xff] %v638_v0  }
 0x1a2 PF: > { %s13_s12 = sadd.s32 1, %s690_s12  }
 0x1a3   : > { %p10_p5 = scmp.ge.s32.totalorder %s13_s12, 6  }
 0x1a5   :  { %12 = sbr.rel (!%p10_p5) target bundleno = 1 (0x1), region = 84 }

// kernel: medicalnet_l1_forward.15
= control target key start
LH: loop header
LB: loop body
LE: loop exit
PB: predicated region body
PF: predicated region fallthrough
CT: control target
= control target key end

     0   :  { %s870_s15 = smov 0   ;;  %s994_s0 = inlined_call_operand.vmem [shape: bf16[4,10,16,256], index: 0, kind: input, shape index: {}]   ;;  %s995_s1 = inlined_call_operand.vmem [shape: bf16[16,432], index: 1, kind: input, shape index: {}]   ;;  %s996_s2 = inlined_call_operand.vmem [shape: f32[16,1], index: 2, kind: input, shape index: {}]   ;;  %s997_s3 = inlined_call_operand.vmem [shape: bf16[4,8,16,128], index: 3, kind: input, shape index: {}]   ;;  %s998_s4 = inlined_call_operand.vmem [shape: bf16[4,8,16,128], index: 4, kind: output, shape index: {}]  }
   0x1 LB: > { %s703_s16 = sadd.s32 4294967295, %s830_s15   ;;  %p707_p0 = scmp.ge.s32.totalorder %s830_s15, 1  ;;  %s830_s15 = sphi %s870_s15, %s14_s15  }
   0x2   : > { %p172_p1 = scmp.lt.s32.totalorder %s830_s15, 5 }
   0x4   : > { %p173_p2 = pnand %p707_p0, %p172_p1 }
   0x5   : > { %p203_p3 = scmp.lt.s32.totalorder (!%p173_p2), %s703_s16, 3  ;;  %s893_s28 = smov (!%p173_p2), 0  }
   0x6   : > { %176 = sbr.rel (%p173_p2) target bundleno = 454 (0x1c6), region = 36 }
   0xd   : > { %s1000_s16 = smov (!%p203_p3, %s703_s16), 3 }
   0xe   : > { %s777_s17 = smul.u32 160, %s1000_s16  ;;  %s739_s18 = sshll.u32 %s1000_s16, 6 }
   0xf   : > { %s881_s21 = scalar_lea.vmem %s997_s3, %s739_s18  ;;  %s886_s24 = scalar_lea.vmem %s998_s4, %s739_s18 }
  0x10   : > { %s891_s27 = scalar_lea.vmem %s994_s0, %s777_s17 }
  0x11 LB: >> { %v836_v0 = vmov 0   ;;  %s741_s29 = sshll.u32 %s834_s28, 4  ;;  %s837_s5 = smov 106   ;;  %v816_v7 = vld [vmem:[%s995_s1 + $0x4] ss:$16 sps:$4 sm:$0xff]   ;;  %vm510_vm0 = vcmask 392192   ;;  %s834_s28 = sphi %s893_s28, %s224_s28  }
  0x12   : >> { %555 = vmatprep.subr.bf16.mxu1 %v836_v0  ;;  %804 = vset.pattern.permute.xlu1 %v836_v0  ;;  %s227_s30 = scalar_lea.vmem %s891_s27, %s741_s29  ;;  %s838_s6 = smov 107   ;;  %v819_v8 = vld [vmem:[%s995_s1 + $0xc] ss:$16 sps:$4 sm:$0xff]   ;;  %v479_v10 = vld [vmem:[%s996_s2] sm:$0xff]  ;;  %vm292_vm1 = vcmask 875520   ;;  %vm300_vm2 = vcmask 867328  }
  0x13   : >> { %803 = vset.pattern.permute.xlu0 %v836_v0  ;;  %v903_v1 = vld [vmem:[%s227_s30 + $0x10] ss:$8 sps:$4 sm:$0xff]   ;;  %v807_v2 = vld [vmem:[%s227_s30 + $0x14] ss:$8 sps:$4 sm:$0xff]   ;;  %v808_v3 = vld [vmem:[%s227_s30 + $0x4] ss:$8 sps:$4 sm:$0xff]   ;;  %546 = vmatprep.mubr.bf16.mxu0 %v816_v7 }
  0x14   : >> { %369 = vrot.lane.b32.xlu1 %v903_v1, %s837_s5  ;;  %362 = vrot.lane.b32.xlu0 %v903_v1, %s838_s6  ;;  %v911_v4 = vld [vmem:[%s227_s30] ss:$8 sps:$4 sm:$0xff]   ;;  %s839_s7 = smov 127   ;;  %v813_v6 = vld [vmem:[%s227_s30 + $0x24] ss:$8 sps:$4 sm:$0xff]   ;;  %s840_s8 = smov 126  }
  0x15   : >> { %v917_v5 = vld [vmem:[%s227_s30 + $0x20] ss:$8 sps:$4 sm:$0xff]   ;;  %s841_s9 = smov 118   ;;  %s842_s10 = smov 117   ;;  %731 = vmatprep.mubr.msk.bf16.mxu1 %vm510_vm0, %v819_v8  ;;  %vm244_vm3 = vcmask 1039360   ;;  %vm252_vm4 = vcmask 1031168  }
  0x16   : >> { %s843_s11 = smov 116   ;;  %s844_s12 = smov 108   ;;  %v480_v9 = vld [vmem:[%s996_s2 + $0x8] sm:$0xff]  ;;  %vm260_vm5 = vcmask 965632   ;;  %vm268_vm6 = vcmask 957440   ;;  %vm276_vm7 = vcmask 949248  }
  0x17   : >> { %vm284_vm8 = vcmask 883712   ;;  %s742_s30 = sshll.u32 %s834_s28, 3  ;;  %s224_s28 = sadd.s32 1, %s834_s28  }
  0x18   : >> { %371 = vrot.lane.b32.xlu1 %v807_v2, %s837_s5  ;;  %364 = vrot.lane.b32.xlu0 %v807_v2, %s838_s6  ;;  %p221_p4 = scmp.ge.s32.totalorder %s224_s28, 8  }
  0x1c   : >> { %298 = vrot.lane.b32.xlu1 %v808_v3, %s837_s5  ;;  %296 = vrot.lane.b32.xlu0 %v911_v4, %s837_s5 }
  0x20   : >> { %242 = vrot.lane.b32.xlu1 %v808_v3, %s839_s7  ;;  %240 = vrot.lane.b32.xlu0 %v911_v4, %s839_s7 }
  0x24   : >> { %394 = vrot.lane.b32.xlu1 %v813_v6, %s839_s7  ;;  %392 = vrot.lane.b32.xlu0 %v917_v5, %s839_s7 }
  0x28   : >> { %322 = vrot.lane.b32.xlu1 %v807_v2, %s839_s7  ;;  %320 = vrot.lane.b32.xlu0 %v903_v1, %s839_s7 }
  0x2c   : >> { %250 = vrot.lane.b32.xlu1 %v808_v3, %s840_s8  ;;  %248 = vrot.lane.b32.xlu0 %v911_v4, %s840_s8 }
  0x30   : >> { %401 = vrot.lane.b32.xlu1 %v813_v6, %s840_s8  ;;  %399 = vrot.lane.b32.xlu0 %v917_v5, %s840_s8 }
  0x34   : >> { %329 = vrot.lane.b32.xlu1 %v807_v2, %s840_s8  ;;  %327 = vrot.lane.b32.xlu0 %v903_v1, %s840_s8 }
  0x38   : >> { %258 = vrot.lane.b32.xlu1 %v808_v3, %s841_s9  ;;  %256 = vrot.lane.b32.xlu0 %v911_v4, %s841_s9 }
  0x3c   : >> { %408 = vrot.lane.b32.xlu1 %v813_v6, %s841_s9  ;;  %406 = vrot.lane.b32.xlu0 %v917_v5, %s841_s9 }
  0x40   : >> { %336 = vrot.lane.b32.xlu1 %v807_v2, %s841_s9  ;;  %334 = vrot.lane.b32.xlu0 %v903_v1, %s841_s9 }
  0x44   : >> { %266 = vrot.lane.b32.xlu1 %v808_v3, %s842_s10  ;;  %264 = vrot.lane.b32.xlu0 %v911_v4, %s842_s10 }
  0x48   : >> { %415 = vrot.lane.b32.xlu1 %v813_v6, %s842_s10  ;;  %413 = vrot.lane.b32.xlu0 %v917_v5, %s842_s10 }
  0x4c   : >> { %343 = vrot.lane.b32.xlu1 %v807_v2, %s842_s10  ;;  %341 = vrot.lane.b32.xlu0 %v903_v1, %s842_s10 }
  0x50   : >> { %274 = vrot.lane.b32.xlu1 %v808_v3, %s843_s11  ;;  %272 = vrot.lane.b32.xlu0 %v911_v4, %s843_s11 }
  0x54   : >> { %422 = vrot.lane.b32.xlu1 %v813_v6, %s843_s11  ;;  %420 = vrot.lane.b32.xlu0 %v917_v5, %s843_s11 }
  0x58   : >> { %350 = vrot.lane.b32.xlu1 %v807_v2, %s843_s11  ;;  %348 = vrot.lane.b32.xlu0 %v903_v1, %s843_s11 }
  0x5c   : >> { %282 = vrot.lane.b32.xlu1 %v808_v3, %s844_s12  ;;  %280 = vrot.lane.b32.xlu0 %v911_v4, %s844_s12 }
  0x60   : >> { %429 = vrot.lane.b32.xlu1 %v813_v6, %s844_s12  ;;  %427 = vrot.lane.b32.xlu0 %v917_v5, %s844_s12 }
  0x64   : >> { %357 = vrot.lane.b32.xlu1 %v807_v2, %s844_s12  ;;  %355 = vrot.lane.b32.xlu0 %v903_v1, %s844_s12 }
  0x68   : >> { %290 = vrot.lane.b32.xlu1 %v808_v3, %s838_s6  ;;  %288 = vrot.lane.b32.xlu0 %v911_v4, %s838_s6 }
  0x6c   : >> { %436 = vrot.lane.b32.xlu1 %v813_v6, %s838_s6  ;;  %434 = vrot.lane.b32.xlu0 %v917_v5, %s838_s6  ;;  %s616_s6 = scalar_lea.vmem %s886_s24, %s742_s30 }
  0x70   : >> { %443 = vrot.lane.b32.xlu1 %v813_v6, %s837_s5  ;;  %441 = vrot.lane.b32.xlu0 %v917_v5, %s837_s5  ;;  %s598_s5 = scalar_lea.vmem %s881_s21, %s742_s30 }
  0x74   : >> { %488 = vperm.xlu1 %804, %v480_v9   ;;  %483 = vperm.xlu0 %803, %v479_v10  }
  0x86   : >> { %v370_v11 = vpop.permute.xlu1 %369  ;;  %v363_v12 = vpop.permute.xlu0 %362 }
  0x8a   : >> { %v372_v13 = vpop.permute.xlu1 %371  ;;  %v365_v14 = vpop.permute.xlu0 %364 }
  0x8b   : >> { %v366_v15 = vsel %vm292_vm1, %v363_v12, %v365_v14  ;;  %v373_v19 = vsel %vm300_vm2, %v370_v11, %v372_v13  ;;  %v814_v14 = vld [vmem:[%s995_s1] ss:$16 sps:$4 sm:$0xff]  }
  0x8c   : >> { %556 = vmatpush1.bf16.msra.mxu1 %v366_v15 }
  0x8d   : >> { %557 = vmatprep.subr.bf16.mxu1 %v836_v0 }
  0x8e   : >> { %v299_v16 = vpop.permute.xlu1 %298  ;;  %v297_v17 = vpop.permute.xlu0 %296 }
  0x8f   : >> { %v301_v18 = vsel %vm300_vm2, %v297_v17, %v299_v16 }
  0x90   : >> { %755 = vmatprep.subr.bf16.mxu0 %v301_v18  ;;  %558 = vmatpush1.bf16.msra.mxu1 %v373_v19 }
  0x91   : >> { %756 = vmatpush3.bf16.msra.mxu0 %v911_v4  ;;  %559 = vmatprep.subr.bf16.mxu1 %v836_v0 }
  0x92   : >> { %v243_v20 = vpop.permute.xlu1 %242  ;;  %v241_v21 = vpop.permute.xlu0 %240  ;;  %757 = vmatprep.subr.bf16.mxu0 %v903_v1 }
  0x93   : >> { %v245_v22 = vsel %vm244_vm3, %v241_v21, %v243_v20  ;;  %v817_v21 = vld [vmem:[%s995_s1 + $0x8] ss:$16 sps:$4 sm:$0xff]  }
  0x94   : >> { %560 = vmatpush1.bf16.msra.mxu1 %v917_v5 }
  0x95   : >> { %758 = vmatpush3.bf16.msra.mxu0 %v245_v22  ;;  %561 = vmatprep.subr.bf16.mxu1 %v836_v0 }
  0x96   : >> { %v395_v23 = vpop.permute.xlu1 %394  ;;  %v393_v24 = vpop.permute.xlu0 %392 }
  0x97   : >> { %v396_v25 = vsel %vm244_vm3, %v393_v24, %v395_v23 }
  0x98   : >> { %562 = vmatpush1.bf16.msra.mxu1 %v396_v25 }
  0x99   : >> { %563 = vmatprep.subr.bf16.mxu1 %v836_v0 }
  0x9a   : >> { %v323_v26 = vpop.permute.xlu1 %322  ;;  %v321_v27 = vpop.permute.xlu0 %320 }
  0x9b   : >> { %v324_v28 = vsel %vm244_vm3, %v321_v27, %v323_v26 }
  0x9c   : >> { %759 = vmatprep.subr.bf16.mxu0 %v324_v28 }
  0x9e   : >> { %v251_v29 = vpop.permute.xlu1 %250  ;;  %v249_v30 = vpop.permute.xlu0 %248 }
  0x9f   : >> { %v253_v31 = vsel %vm252_vm4, %v249_v30, %v251_v29 }
  0xa0   : >> { %760 = vmatpush3.bf16.msra.mxu0 %v253_v31 }
  0xa2   : >> { %v402_v32 = vpop.permute.xlu1 %401  ;;  %v400_v33 = vpop.permute.xlu0 %399 }
  0xa3   : >> { %v403_v34 = vsel %vm252_vm4, %v400_v33, %v402_v32 }
  0xa4   : >> { %564 = vmatpush1.bf16.msra.mxu1 %v403_v34 }
  0xa5   : >> { %565 = vmatprep.subr.bf16.mxu1 %v836_v0 }
  0xa6   : >> { %v330_v35 = vpop.permute.xlu1 %329  ;;  %v328_v36 = vpop.permute.xlu0 %327 }
  0xa7   : >> { %v331_v37 = vsel %vm252_vm4, %v328_v36, %v330_v35 }
  0xa8   : >> { %761 = vmatprep.subr.bf16.mxu0 %v331_v37 }
  0xaa   : >> { %v259_v38 = vpop.permute.xlu1 %258  ;;  %v257_v39 = vpop.permute.xlu0 %256 }
  0xab   : >> { %v261_v40 = vsel %vm260_vm5, %v257_v39, %v259_v38 }
  0xac   : >> { %762 = vmatpush3.bf16.msra.mxu0 %v261_v40 }
  0xae   : >> { %v409_v41 = vpop.permute.xlu1 %408  ;;  %v407_v42 = vpop.permute.xlu0 %406 }
  0xaf   : >> { %v410_v43 = vsel %vm260_vm5, %v407_v42, %v409_v41 }
  0xb0   : >> { %566 = vmatpush1.bf16.msra.mxu1 %v410_v43 }
  0xb1   : >> { %567 = vmatprep.subr.bf16.mxu1 %v836_v0 }
  0xb2   : >> { %v337_v44 = vpop.permute.xlu1 %336  ;;  %v335_v45 = vpop.permute.xlu0 %334 }
  0xb3   : >> { %v338_v46 = vsel %vm260_vm5, %v335_v45, %v337_v44 }
  0xb4   : >> { %763 = vmatprep.subr.bf16.mxu0 %v338_v46 }
  0xb6   : >> { %v267_v47 = vpop.permute.xlu1 %266  ;;  %v265_v48 = vpop.permute.xlu0 %264 }
  0xb7   : >> { %v269_v49 = vsel %vm268_vm6, %v265_v48, %v267_v47 }
  0xb8   : >> { %764 = vmatpush3.bf16.msra.mxu0 %v269_v49 }
  0xba   : >> { %v416_v50 = vpop.permute.xlu1 %415  ;;  %v414_v51 = vpop.permute.xlu0 %413 }
  0xbb   : >> { %v417_v52 = vsel %vm268_vm6, %v414_v51, %v416_v50 }
  0xbc   : >> { %568 = vmatpush1.bf16.msra.mxu1 %v417_v52 }
  0xbd   : >> { %569 = vmatprep.subr.bf16.mxu1 %v836_v0 }
  0xbe   : >> { %v344_v53 = vpop.permute.xlu1 %343  ;;  %v342_v54 = vpop.permute.xlu0 %341 }
  0xbf   : >> { %v345_v55 = vsel %vm268_vm6, %v342_v54, %v344_v53 }
  0xc0   : >> { %765 = vmatprep.subr.bf16.mxu0 %v345_v55 }
  0xc2   : >> { %v275_v56 = vpop.permute.xlu1 %274  ;;  %v273_v57 = vpop.permute.xlu0 %272 }
  0xc3   : >> { %v277_v58 = vsel %vm276_vm7, %v273_v57, %v275_v56 }
  0xc4   : >> { %766 = vmatpush3.bf16.msra.mxu0 %v277_v58 }
  0xc6   : >> { %v423_v59 = vpop.permute.xlu1 %422  ;;  %v421_v60 = vpop.permute.xlu0 %420 }
  0xc7   : >> { %v424_v61 = vsel %vm276_vm7, %v421_v60, %v423_v59 }
  0xc8   : >> { %570 = vmatpush1.bf16.msra.mxu1 %v424_v61 }
  0xc9   : >> { %571 = vmatprep.subr.bf16.mxu1 %v836_v0 }
  0xca   : >> { %v351_v62 = vpop.permute.xlu1 %350  ;;  %v349_v63 = vpop.permute.xlu0 %348 }
  0xcb   : >> { %v352_v1 = vsel %vm276_vm7, %v349_v63, %v351_v62 }
  0xcc   : >> { %767 = vmatprep.subr.bf16.mxu0 %v352_v1 }
  0xce   : >> { %v283_v2 = vpop.permute.xlu1 %282  ;;  %v281_v3 = vpop.permute.xlu0 %280 }
  0xcf   : >> { %v285_v4 = vsel %vm284_vm8, %v281_v3, %v283_v2 }
  0xd0   : >> { %768 = vmatpush3.bf16.msra.mxu0 %v285_v4 }
  0xd2   : >> { %v430_v5 = vpop.permute.xlu1 %429  ;;  %v428_v6 = vpop.permute.xlu0 %427 }
  0xd3   : >> { %v431_v7 = vsel %vm284_vm8, %v428_v6, %v430_v5 }
  0xd4   : >> { %572 = vmatpush1.bf16.msra.mxu1 %v431_v7 }
  0xd5   : >> { %573 = vmatprep.subr.bf16.mxu1 %v836_v0 }
  0xd6   : >> { %v358_v8 = vpop.permute.xlu1 %357  ;;  %v356_v9 = vpop.permute.xlu0 %355 }
  0xd7   : >> { %v359_v10 = vsel %vm284_vm8, %v356_v9, %v358_v8 }
  0xd8   : >> { %769 = vmatprep.subr.bf16.mxu0 %v359_v10 }
  0xda   : >> { %v291_v11 = vpop.permute.xlu1 %290  ;;  %v289_v12 = vpop.permute.xlu0 %288 }
  0xdb   : >> { %v293_v13 = vsel %vm292_vm1, %v289_v12, %v291_v11 }
  0xdc   : >> { %770 = vmatpush3.bf16.msra.mxu0 %v293_v13 }
  0xde   : >> { %v437_v15 = vpop.permute.xlu1 %436  ;;  %v435_v16 = vpop.permute.xlu0 %434 }
  0xdf   : >> { %547 = vmatmul.mubr.bf16.vlgmr.msra.gmra.mrb[0].mxu0 %v814_v14  ;;  %v438_v17 = vsel %vm292_vm1, %v435_v16, %v437_v15 }
  0xe0   : >> { %574 = vmatpush1.bf16.msra.mxu1 %v438_v17 }
  0xe1   : >> { %575 = vmatprep.subr.bf16.mxu1 %v836_v0  ;;  %v747_v0 = vld [vmem:[%s598_s5] sm:$0xff]  }
  0xe2   : >> { %v444_v18 = vpop.permute.xlu1 %443  ;;  %v442_v19 = vpop.permute.xlu0 %441  ;;  %v748_v31 = vunpack.c.l.bf16 %v747_v0  ;;  %v749_v36 = vunpack.c.h.bf16 %v747_v0 }
  0xe3   : >> { %v445_v20 = vsel %vm300_vm2, %v442_v19, %v444_v18 }
  0xe4   : >> { %576 = vmatpush1.bf16.msra.mxu1 %v445_v20 }
  0xe7   : >> { %588 = vmatmul.mubr.bf16.vlgmr.msra.gmra.mrb[0].mxu1 %v817_v21 }
  0xf3   : >> { %v484_v26 = vpop.permute.xlu0 %483  ;;  %v489_v30 = vpop.permute.xlu1 %488 }
 0x1b2   : >> { %v771_v22 = vpop.f32.mrb[0].mxu0 }
 0x1b3   : >> { %v772_v23 = vpop.f32.mrb[1].mxu0 }
 0x1b4   : >> { %v773_v24 = vadd.f32 %v772_v23, %v771_v22  ;;  %v774_v25 = vpop.f32.mrb[2].mxu0 }
 0x1b5   : >> { %v775_v27 = vpop.f32.mrb[3].mxu0 }
 0x1b6   : >> { %v776_v28 = vadd.f32 %v775_v27, %v774_v25  ;;  %v549_v29 = vadd.f32 %v773_v24, %v484_v26 }
 0x1b8   : >> { %v552_v33 = vadd.f32 %v776_v28, %v489_v30 }
 0x1ba   : >> { %v589_v32 = vpop.f32.mrb[0].mxu1 }
 0x1bb   : >> { %v590_v34 = vadd.f32 %v589_v32, %v549_v29  ;;  %v591_v35 = vpop.f32.mrb[1].mxu1 }
 0x1bc   : >> { %v592_v37 = vpop.f32.mrb[2].mxu1 }
 0x1bd   : >> { %v603_v38 = vadd.f32 %v748_v31, %v590_v34  ;;  %v593_v39 = vadd.f32 %v592_v37, %v552_v33  ;;  %v594_v40 = vpop.f32.mrb[3].mxu1 }
 0x1bf   : >> { %v604_v41 = vadd.f32 %v749_v36, %v593_v39  ;;  %v605_v42 = vmax.f32 %v603_v38, 0.0  ;;  %223 = sbr.rel (!%p221_p4) target bundleno = 17 (0x11), region = 81 }
 0x1c1   : >> { %v606_v43 = vmax.f32 %v604_v41, 0.0 }
 0x1c3   : >> { %v753_v44 = vpack.c.bf16 %v606_v43, %v605_v42 }
 0x1c5   : >> { %754 = vst [vmem:[%s616_s6] sm:$0xff] %v753_v44  }
 0x1c6 PF: > { %s14_s15 = sadd.s32 1, %s830_s15  }
 0x1c7   : > { %p11_p5 = scmp.ge.s32.totalorder %s14_s15, 6  }
 0x1c9   :  { %13 = sbr.rel (!%p11_p5) target bundleno = 1 (0x1), region = 92 }

// kernel: medicalnet_l1_forward.16
= control target key start
LH: loop header
LB: loop body
LE: loop exit
PB: predicated region body
PF: predicated region fallthrough
CT: control target
= control target key end

     0   :  { %s958_s12 = smov 0   ;;  %s1132_s0 = inlined_call_operand.vmem [shape: bf16[4,9,64,256], index: 0, kind: input, shape index: {}]   ;;  %s1133_s1 = inlined_call_operand.vmem [shape: bf16[32,432], index: 1, kind: input, shape index: {}]   ;;  %s1134_s2 = inlined_call_operand.vmem [shape: f32[32,1], index: 2, kind: input, shape index: {}]   ;;  %s1135_s3 = inlined_call_operand.vmem [shape: bf16[4,4,32,128], index: 3, kind: output, shape index: {}]  }
   0x1 LB: > { %s734_s13 = sadd.s32 4294967295, %s928_s12   ;;  %p738_p0 = scmp.ge.s32.totalorder %s928_s12, 1  ;;  %s928_s12 = sphi %s958_s12, %s13_s12  }
   0x2   : > { %p137_p1 = scmp.lt.s32.totalorder %s928_s12, 5 }
   0x4   : > { %p138_p2 = pnand %p738_p0, %p137_p1 }
   0x5   : > { %p161_p3 = scmp.lt.s32.totalorder (!%p138_p2), %s734_s13, 3  ;;  %s976_s22 = smov (!%p138_p2), 0  }
   0x6   : > { %141 = sbr.rel (%p138_p2) target bundleno = 424 (0x1a8), region = 32 }
   0xd   : > { %s1137_s13 = smov (!%p161_p3, %s734_s13), 3 }
   0xe   : > { %s853_s14 = smul.u32 576, %s1137_s13  ;;  %s804_s15 = sshll.u32 %s1137_s13, 6 }
   0xf   : > { %s969_s18 = scalar_lea.vmem %s1135_s3, %s804_s15 }
  0x10   : > { %s974_s21 = scalar_lea.vmem %s1132_s0, %s853_s14 }
  0x11 LB: >> { %v934_v0 = vmov 0   ;;  %s806_s23 = sshll.u32 %s932_s22, 7  ;;  %s935_s25 = smov 123   ;;  %v908_v15 = vld [vmem:[%s1133_s1 + $0x4] ss:$16 sps:$4 sm:$0xff]   ;;  %vm530_vm0 = vcmask 392192   ;;  %s932_s22 = sphi %s976_s22, %s177_s22  }
  0x12   : >> { %586 = vmatprep.subr.bf16.mxu1 %v934_v0  ;;  %875 = vset.pattern.permute.xlu1 %v934_v0  ;;  %s986_s24 = scalar_lea.vmem %s974_s21, %s806_s23  ;;  %s936_s26 = smov 122   ;;  %v913_v18 = vld [vmem:[%s1133_s1 + $0xc] ss:$16 sps:$4 sm:$0xff]   ;;  %v468_v21 = vld [vmem:[%s1134_s2] sm:$0xff]  ;;  %v470_v24 = vld [vmem:[%s1134_s2 + $0x10] sm:$0xff]  ;;  %vm243_vm1 = vcmask 1006592  }
  0x13   : >> { %874 = vset.pattern.permute.xlu0 %v934_v0  ;;  %v989_v1 = vld [vmem:[%s986_s24 + $0x50] ss:$8 sps:$4 sm:$0xff]   ;;  %v878_v2 = vld [vmem:[%s986_s24 + $0x54] ss:$8 sps:$4 sm:$0xff]   ;;  %v995_v3 = vld [vmem:[%s986_s24 + $0x40] ss:$8 sps:$4 sm:$0xff]   ;;  %569 = vmatprep.mubr.bf16.mxu0 %v908_v15 }
  0x14   : >> { %335 = vrot.lane.b32.xlu0 %v989_v1, %s935_s25  ;;  %342 = vrot.lane.b32.xlu1 %v995_v3, %s936_s26  ;;  %v881_v4 = vld [vmem:[%s986_s24 + $0x44] ss:$8 sps:$4 sm:$0xff]   ;;  %v1002_v5 = vld [vmem:[%s986_s24] ss:$8 sps:$4 sm:$0xff]   ;;  %s937_s27 = smov 127   ;;  %vm261_vm2 = vcmask 998400  }
  0x15   : >> { %v882_v6 = vld [vmem:[%s986_s24 + $0x4] ss:$8 sps:$4 sm:$0xff]   ;;  %v1011_v7 = vld [vmem:[%s986_s24 + $0x80] ss:$8 sps:$4 sm:$0xff]   ;;  %v899_v16 = vld [vmem:[%s986_s24 + $0x10] ss:$8 sps:$4 sm:$0xff]   ;;  %794 = vmatprep.mubr.msk.bf16.mxu1 %vm530_vm0, %v913_v18 }
  0x16   : >> { %v887_v8 = vld [vmem:[%s986_s24 + $0x84] ss:$8 sps:$4 sm:$0xff]   ;;  %v1017_v9 = vld [vmem:[%s986_s24 + $0x20] ss:$8 sps:$4 sm:$0xff]   ;;  %v897_v17 = vld [vmem:[%s986_s24 + $0x14] ss:$8 sps:$4 sm:$0xff]  }
  0x17   : >> { %v888_v10 = vld [vmem:[%s986_s24 + $0x24] ss:$8 sps:$4 sm:$0xff]   ;;  %v1022_v11 = vld [vmem:[%s986_s24 + $0xa0] ss:$8 sps:$4 sm:$0xff]   ;;  %v902_v19 = vld [vmem:[%s986_s24 + $0x90] ss:$8 sps:$4 sm:$0xff]  }
  0x18   : >> { %337 = vrot.lane.b32.xlu0 %v878_v2, %s935_s25  ;;  %344 = vrot.lane.b32.xlu1 %v881_v4, %s936_s26  ;;  %v891_v12 = vld [vmem:[%s986_s24 + $0xa4] ss:$8 sps:$4 sm:$0xff]   ;;  %v1027_v13 = vld [vmem:[%s986_s24 + $0x60] ss:$8 sps:$4 sm:$0xff]   ;;  %vm211_vm3 = vcmask 1039360   ;;  %s813_s29 = sshll.u32 %s932_s22, 4 }
  0x19   : >> { %v894_v14 = vld [vmem:[%s986_s24 + $0x64] ss:$8 sps:$4 sm:$0xff]   ;;  %v900_v20 = vld [vmem:[%s986_s24 + $0x94] ss:$8 sps:$4 sm:$0xff]   ;;  %v903_v44 = vld [vmem:[%s986_s24 + $0x30] ss:$8 sps:$4 sm:$0xff]   ;;  %s657_s30 = scalar_lea.vmem %s969_s18, %s813_s29 }
  0x1a   : >> { %v469_v22 = vld [vmem:[%s1134_s2 + $0x8] sm:$0xff]  ;;  %v471_v23 = vld [vmem:[%s1134_s2 + $0x18] sm:$0xff]  ;;  %s177_s22 = sadd.s32 1, %s932_s22  }
  0x1b   : >> { %v904_v46 = vld [vmem:[%s986_s24 + $0x70] ss:$8 sps:$4 sm:$0xff]   ;;  %p174_p4 = scmp.ge.s32.totalorder %s177_s22, 4  }
  0x1c   : >> { %257 = vrot.lane.b32.xlu0 %v1002_v5, %s936_s26  ;;  %259 = vrot.lane.b32.xlu1 %v882_v6, %s936_s26  ;;  %v905_v47 = vld [vmem:[%s986_s24 + $0xb0] ss:$8 sps:$4 sm:$0xff]  }
  0x20   : >> { %207 = vrot.lane.b32.xlu0 %v1002_v5, %s937_s27  ;;  %209 = vrot.lane.b32.xlu1 %v882_v6, %s937_s27 }
  0x24   : >> { %378 = vrot.lane.b32.xlu0 %v1011_v7, %s937_s27  ;;  %380 = vrot.lane.b32.xlu1 %v887_v8, %s937_s27 }
  0x28   : >> { %294 = vrot.lane.b32.xlu0 %v995_v3, %s937_s27  ;;  %296 = vrot.lane.b32.xlu1 %v881_v4, %s937_s27 }
  0x2c   : >> { %232 = vrot.lane.b32.xlu0 %v1017_v9, %s937_s27  ;;  %234 = vrot.lane.b32.xlu1 %v888_v10, %s937_s27 }
  0x30   : >> { %402 = vrot.lane.b32.xlu0 %v1022_v11, %s937_s27  ;;  %404 = vrot.lane.b32.xlu1 %v891_v12, %s937_s27  ;;  %v911_v12 = vld [vmem:[%s1133_s1 + $0x8] ss:$16 sps:$4 sm:$0xff]  }
  0x34   : >> { %318 = vrot.lane.b32.xlu0 %v1027_v13, %s937_s27  ;;  %320 = vrot.lane.b32.xlu1 %v894_v14, %s937_s27  ;;  %v915_v14 = vld [vmem:[%s1133_s1 + $0x2c] ss:$16 sps:$4 sm:$0xff]  }
  0x38   : >> { %239 = vrot.lane.b32.xlu0 %v1002_v5, %s935_s25  ;;  %241 = vrot.lane.b32.xlu1 %v882_v6, %s935_s25  ;;  %v909_v6 = vld [vmem:[%s1133_s1 + $0x24] ss:$16 sps:$4 sm:$0xff]  }
  0x3c   : >> { %409 = vrot.lane.b32.xlu0 %v1011_v7, %s935_s25  ;;  %411 = vrot.lane.b32.xlu1 %v887_v8, %s935_s25 }
  0x40   : >> { %325 = vrot.lane.b32.xlu0 %v995_v3, %s935_s25  ;;  %327 = vrot.lane.b32.xlu1 %v881_v4, %s935_s25  ;;  %v906_v4 = vld [vmem:[%s1133_s1] ss:$16 sps:$4 sm:$0xff]  }
  0x44   : >> { %250 = vrot.lane.b32.xlu0 %v899_v16, %s935_s25  ;;  %252 = vrot.lane.b32.xlu1 %v897_v17, %s935_s25 }
  0x48   : >> { %419 = vrot.lane.b32.xlu0 %v902_v19, %s935_s25  ;;  %421 = vrot.lane.b32.xlu1 %v900_v20, %s935_s25 }
  0x4c   : >> { %426 = vrot.lane.b32.xlu0 %v1011_v7, %s936_s26  ;;  %428 = vrot.lane.b32.xlu1 %v887_v8, %s936_s26 }
  0x50   : >> { %474 = vperm.xlu0 %874, %v468_v21   ;;  %479 = vperm.xlu1 %875, %v469_v22  }
  0x54   : >> { %489 = vperm.xlu0 %874, %v471_v23   ;;  %484 = vperm.xlu1 %875, %v470_v24  }
  0x86   : >> { %v336_v25 = vpop.permute.xlu0 %335  ;;  %v343_v26 = vpop.permute.xlu1 %342 }
  0x8a   : >> { %v338_v27 = vpop.permute.xlu0 %337  ;;  %v345_v29 = vpop.permute.xlu1 %344 }
  0x8b   : >> { %v339_v28 = vsel %vm243_vm1, %v336_v25, %v338_v27  ;;  %v346_v31 = vsel %vm261_vm2, %v343_v26, %v345_v29 }
  0x8c   : >> { %587 = vmatpush1.bf16.msra.mxu1 %v339_v28 }
  0x8d   : >> { %588 = vmatprep.subr.bf16.mxu1 %v934_v0 }
  0x8e   : >> { %v258_v30 = vpop.permute.xlu0 %257  ;;  %v260_v32 = vpop.permute.xlu1 %259 }
  0x8f   : >> { %v262_v33 = vsel %vm261_vm2, %v258_v30, %v260_v32 }
  0x90   : >> { %589 = vmatpush1.bf16.msra.mxu1 %v346_v31  ;;  %825 = vmatprep.subr.bf16.mxu0 %v262_v33 }
  0x91   : >> { %590 = vmatprep.subr.bf16.mxu1 %v934_v0  ;;  %826 = vmatpush3.bf16.msra.mxu0 %v1002_v5 }
  0x92   : >> { %v208_v34 = vpop.permute.xlu0 %207  ;;  %v210_v35 = vpop.permute.xlu1 %209  ;;  %827 = vmatprep.subr.bf16.mxu0 %v995_v3 }
  0x93   : >> { %v212_v38 = vsel %vm211_vm3, %v208_v34, %v210_v35 }
  0x94   : >> { %591 = vmatpush1.bf16.msra.mxu1 %v1011_v7 }
  0x95   : >> { %592 = vmatprep.subr.bf16.mxu1 %v934_v0  ;;  %828 = vmatpush3.bf16.msra.mxu0 %v899_v16 }
  0x96   : >> { %v379_v36 = vpop.permute.xlu0 %378  ;;  %v381_v37 = vpop.permute.xlu1 %380  ;;  %829 = vmatprep.subr.bf16.mxu0 %v989_v1 }
  0x97   : >> { %v382_v40 = vsel %vm211_vm3, %v379_v36, %v381_v37 }
  0x98   : >> { %593 = vmatpush1.bf16.msra.mxu1 %v902_v19 }
  0x99   : >> { %594 = vmatprep.subr.bf16.mxu1 %v934_v0  ;;  %830 = vmatpush3.bf16.msra.mxu0 %v212_v38 }
  0x9a   : >> { %v295_v39 = vpop.permute.xlu0 %294  ;;  %v297_v41 = vpop.permute.xlu1 %296 }
  0x9b   : >> { %v298_v42 = vsel %vm211_vm3, %v295_v39, %v297_v41 }
  0x9c   : >> { %595 = vmatpush1.bf16.msra.mxu1 %v382_v40  ;;  %831 = vmatprep.subr.bf16.mxu0 %v298_v42 }
  0x9d   : >> { %596 = vmatprep.subr.bf16.mxu1 %v934_v0  ;;  %832 = vmatpush3.bf16.msra.mxu0 %v1017_v9 }
  0x9e   : >> { %v233_v43 = vpop.permute.xlu0 %232  ;;  %v235_v45 = vpop.permute.xlu1 %234  ;;  %833 = vmatprep.subr.bf16.mxu0 %v1027_v13  ;;  %v914_v13 = vld [vmem:[%s1133_s1 + $0x20] ss:$16 sps:$4 sm:$0xff]  }
  0x9f   : >> { %v236_v50 = vsel %vm211_vm3, %v233_v43, %v235_v45 }
  0xa0   : >> { %597 = vmatpush1.bf16.msra.mxu1 %v1022_v11 }
  0xa1   : >> { %598 = vmatprep.subr.bf16.mxu1 %v934_v0  ;;  %834 = vmatpush3.bf16.msra.mxu0 %v903_v44 }
  0xa2   : >> { %v403_v48 = vpop.permute.xlu0 %402  ;;  %v405_v49 = vpop.permute.xlu1 %404  ;;  %835 = vmatprep.subr.bf16.mxu0 %v904_v46 }
  0xa3   : >> { %v406_v52 = vsel %vm211_vm3, %v403_v48, %v405_v49 }
  0xa4   : >> { %599 = vmatpush1.bf16.msra.mxu1 %v905_v47 }
  0xa5   : >> { %600 = vmatprep.subr.bf16.mxu1 %v934_v0  ;;  %836 = vmatpush3.bf16.msra.mxu0 %v236_v50 }
  0xa6   : >> { %v319_v51 = vpop.permute.xlu0 %318  ;;  %v321_v53 = vpop.permute.xlu1 %320 }
  0xa7   : >> { %v322_v54 = vsel %vm211_vm3, %v319_v51, %v321_v53 }
  0xa8   : >> { %601 = vmatpush1.bf16.msra.mxu1 %v406_v52  ;;  %837 = vmatprep.subr.bf16.mxu0 %v322_v54 }
  0xa9   : >> { %602 = vmatprep.subr.bf16.mxu1 %v934_v0 }
  0xaa   : >> { %v240_v55 = vpop.permute.xlu0 %239  ;;  %v242_v56 = vpop.permute.xlu1 %241 }
  0xab   : >> { %v244_v57 = vsel %vm243_vm1, %v240_v55, %v242_v56 }
  0xac   : >> { %838 = vmatpush3.bf16.msra.mxu0 %v244_v57 }
  0xae   : >> { %v410_v58 = vpop.permute.xlu0 %409  ;;  %v412_v59 = vpop.permute.xlu1 %411 }
  0xaf   : >> { %v413_v60 = vsel %vm243_vm1, %v410_v58, %v412_v59 }
  0xb0   : >> { %603 = vmatpush1.bf16.msra.mxu1 %v413_v60 }
  0xb1   : >> { %604 = vmatprep.subr.bf16.mxu1 %v934_v0 }
  0xb2   : >> { %v326_v61 = vpop.permute.xlu0 %325  ;;  %v328_v62 = vpop.permute.xlu1 %327 }
  0xb3   : >> { %v329_v63 = vsel %vm243_vm1, %v326_v61, %v328_v62 }
  0xb4   : >> { %839 = vmatprep.subr.bf16.mxu0 %v329_v63 }
  0xb6   : >> { %v251_v1 = vpop.permute.xlu0 %250  ;;  %v253_v2 = vpop.permute.xlu1 %252 }
  0xb7   : >> { %v254_v3 = vsel %vm243_vm1, %v251_v1, %v253_v2 }
  0xb8   : >> { %840 = vmatpush3.bf16.msra.mxu0 %v254_v3 }
  0xba   : >> { %v420_v5 = vpop.permute.xlu0 %419  ;;  %v422_v7 = vpop.permute.xlu1 %421 }
  0xbb   : >> { %570 = vmatmul.mubr.bf16.vlgmr.msra.gmra.mrb[0].mxu0 %v906_v4  ;;  %v423_v8 = vsel %vm243_vm1, %v420_v5, %v422_v7 }
  0xbc   : >> { %605 = vmatpush1.bf16.msra.mxu1 %v423_v8  ;;  %577 = vmatprep.mubr.bf16.mxu0 %v909_v6 }
  0xbd   : >> { %606 = vmatprep.subr.bf16.mxu1 %v934_v0  ;;  %v917_v0 = vld [vmem:[%s1133_s1 + $0x28] ss:$16 sps:$4 sm:$0xff]  }
  0xbe   : >> { %v427_v9 = vpop.permute.xlu0 %426  ;;  %v429_v10 = vpop.permute.xlu1 %428 }
  0xbf   : >> { %v430_v11 = vsel %vm261_vm2, %v427_v9, %v429_v10 }
  0xc0   : >> { %607 = vmatpush1.bf16.msra.mxu1 %v430_v11 }
  0xc3   : >> { %578 = vmatmul.mubr.bf16.gmra.mrb[4].mxu0 %v914_v13  ;;  %619 = vmatmul.mubr.bf16.vlgmr.msra.gmra.mrb[0].mxu1 %v911_v12 }
  0xc4   : >> { %795 = vmatprep.mubr.msk.bf16.mxu1 %vm530_vm0, %v915_v14 }
  0xcb   : >> { %627 = vmatmul.mubr.bf16.gmra.mrb[4].mxu1 %v917_v0 }
  0xcf   : >> { %v475_v19 = vpop.permute.xlu0 %474  ;;  %v480_v23 = vpop.permute.xlu1 %479 }
  0xd3   : >> { %v485_v37 = vpop.permute.xlu1 %484  ;;  %v490_v40 = vpop.permute.xlu0 %489 }
 0x18e   : >> { %v841_v15 = vpop.f32.mrb[0].mxu0 }
 0x18f   : >> { %v842_v16 = vpop.f32.mrb[1].mxu0 }
 0x190   : >> { %v843_v17 = vadd.f32 %v842_v16, %v841_v15  ;;  %v844_v18 = vpop.f32.mrb[2].mxu0 }
 0x191   : >> { %v845_v20 = vpop.f32.mrb[3].mxu0 }
 0x192   : >> { %v846_v21 = vadd.f32 %v845_v20, %v844_v18  ;;  %v572_v22 = vadd.f32 %v843_v17, %v475_v19 }
 0x194   : >> { %v575_v26 = vadd.f32 %v846_v21, %v480_v23 }
 0x196   : >> { %v847_v24 = vpop.f32.mrb[4].mxu0  ;;  %v620_v25 = vpop.f32.mrb[0].mxu1 }
 0x197   : >> { %v621_v27 = vadd.f32 %v620_v25, %v572_v22  ;;  %v848_v28 = vpop.f32.mrb[5].mxu0  ;;  %v622_v29 = vpop.f32.mrb[1].mxu1 }
 0x198   : >> { %v849_v30 = vadd.f32 %v848_v28, %v847_v24  ;;  %v850_v31 = vpop.f32.mrb[6].mxu0  ;;  %v623_v32 = vpop.f32.mrb[2].mxu1 }
 0x199   : >> { %v624_v33 = vadd.f32 %v623_v32, %v575_v26  ;;  %v851_v34 = vpop.f32.mrb[7].mxu0  ;;  %v625_v35 = vpop.f32.mrb[3].mxu1  ;;  %v635_v38 = vmax.f32 %v621_v27, 0.0 }
 0x19a   : >> { %v852_v36 = vadd.f32 %v851_v34, %v850_v31  ;;  %v580_v42 = vadd.f32 %v849_v30, %v485_v37 }
 0x19b   : >> { %v636_v39 = vmax.f32 %v624_v33, 0.0 }
 0x19c   : >> { %v583_v44 = vadd.f32 %v852_v36, %v490_v40 }
 0x19d   : >> { %v817_v41 = vpack.c.bf16 %v636_v39, %v635_v38 }
 0x19e   : >> { %v628_v43 = vpop.f32.mrb[4].mxu1 }
 0x19f   : >> { %818 = vst [vmem:[%s657_s30] sm:$0xff] %v817_v41   ;;  %v629_v45 = vadd.f32 %v628_v43, %v580_v42  ;;  %v630_v46 = vpop.f32.mrb[5].mxu1 }
 0x1a0   : >> { %v631_v47 = vpop.f32.mrb[6].mxu1 }
 0x1a1   : >> { %v632_v48 = vadd.f32 %v631_v47, %v583_v44  ;;  %v633_v49 = vpop.f32.mrb[7].mxu1  ;;  %v637_v50 = vmax.f32 %v629_v45, 0.0  ;;  %176 = sbr.rel (!%p174_p4) target bundleno = 17 (0x11), region = 73 }
 0x1a3   : >> { %v638_v51 = vmax.f32 %v632_v48, 0.0 }
 0x1a5   : >> { %v822_v52 = vpack.c.bf16 %v638_v51, %v637_v50 }
 0x1a7   : >> { %824 = vst [vmem:[%s657_s30 + $0x8] sm:$0xff] %v822_v52  }
 0x1a8 PF: > { %s13_s12 = sadd.s32 1, %s928_s12  }
 0x1a9   : > { %p10_p5 = scmp.ge.s32.totalorder %s13_s12, 6  }
 0x1ab   :  { %12 = sbr.rel (!%p10_p5) target bundleno = 1 (0x1), region = 84 }

// kernel: medicalnet_l1_forward.17
= control target key start
LH: loop header
LB: loop body
LE: loop exit
PB: predicated region body
PF: predicated region fallthrough
CT: control target
= control target key end

     0   :  { %s485_s12 = smov 0   ;;  %s541_s0 = inlined_call_operand.vmem [shape: bf16[4,7,16,128], index: 0, kind: input, shape index: {}]   ;;  %s542_s1 = inlined_call_operand.vmem [shape: bf16[32,16], index: 1, kind: input, shape index: {}]   ;;  %s543_s2 = inlined_call_operand.vmem [shape: f32[32,1], index: 2, kind: input, shape index: {}]   ;;  %s544_s3 = inlined_call_operand.vmem [shape: bf16[4,4,32,128], index: 3, kind: output, shape index: {}]  }
   0x1 LB: > { %s373_s13 = sadd.s32 4294967295, %s458_s12   ;;  %p377_p0 = scmp.ge.s32.totalorder %s458_s12, 1  ;;  %s458_s12 = sphi %s485_s12, %s13_s12  }
   0x2   : > { %p137_p1 = scmp.lt.s32.totalorder %s458_s12, 5 }
   0x4   : > { %p138_p2 = pnand %p377_p0, %p137_p1 }
   0x5   : > { %p161_p3 = scmp.lt.s32.totalorder (!%p138_p2), %s373_s13, 3  ;;  %s503_s22 = smov (!%p138_p2), 0  }
   0x6   : > { %141 = sbr.rel (%p138_p2) target bundleno = 244 (0xf4), region = 32 }
   0xd   : > { %s546_s13 = smov (!%p161_p3, %s373_s13), 3 }
   0xe   : > { %s425_s14 = smul.u32 56, %s546_s13  ;;  %s397_s15 = sshll.u32 %s546_s13, 6 }
   0xf   : > { %s496_s18 = scalar_lea.vmem %s544_s3, %s397_s15 }
  0x10   : > { %s501_s21 = scalar_lea.vmem %s541_s0, %s425_s14 }
  0x11 LB: >> { %v446_v0 = vld [vmem:[%s542_s1] sm:$0xff]   ;;  %vm230_vm0 = vcmask 130048   ;;  %s399_s25 = sshll.u32 %s462_s22, 4  ;;  %v464_v1 = vmov 0   ;;  %v198_v2 = vld [vmem:[%s543_s2 + $0x10] sm:$0xff]  ;;  %v199_v4 = vld [vmem:[%s543_s2 + $0x18] sm:$0xff]  ;;  %s462_s22 = sphi %s503_s22, %s177_s22  }
  0x12   : >> { %421 = vmatprep.mubr.msk.bf16.mxu0 %vm230_vm0, %v446_v0  ;;  %444 = vset.pattern.permute.xlu1 %v464_v1  ;;  %v196_v3 = vld [vmem:[%s543_s2] sm:$0xff]  ;;  %s181_s30 = scalar_lea.vmem %s501_s21, %s399_s25  ;;  %v197_v6 = vld [vmem:[%s543_s2 + $0x8] sm:$0xff]  ;;  %s304_s10 = scalar_lea.vmem %s496_s18, %s399_s25 }
  0x13   : >> { %443 = vset.pattern.permute.xlu0 %v464_v1  ;;  %212 = vperm.xlu1 %444, %v198_v2   ;;  %v445_v5 = vld [vmem:[%s181_s30] sm:$0xff]   ;;  %v447_v7 = vld [vmem:[%s542_s1 + $0x8] sm:$0xff]   ;;  %s177_s22 = sadd.s32 1, %s462_s22  }
  0x14   : >> { %202 = vperm.xlu0 %443, %v196_v3   ;;  %419 = vmatprep.subr.bf16.mxu0 %v445_v5  ;;  %p174_p4 = scmp.ge.s32.totalorder %s177_s22, 4  }
  0x15   : >> { %420 = vmatpush3.bf16.msra.mxu0 %v445_v5 }
  0x17   : >> { %217 = vperm.xlu1 %444, %v199_v4  }
  0x18   : >> { %207 = vperm.xlu0 %443, %v197_v6   ;;  %422 = vmatmul.mubr.msk.bf16.vlgmr.msra.gmra.mrb[0].mxu0 %vm230_vm0, %v447_v7 }
  0x92   : >> { %v213_v8 = vpop.permute.xlu1 %212 }
  0x93   : >> { %v203_v9 = vpop.permute.xlu0 %202 }
  0x96   : >> { %v218_v12 = vpop.permute.xlu1 %217 }
  0x97   : >> { %v208_v14 = vpop.permute.xlu0 %207 }
  0xeb   : >> { %v423_v10 = vpop.f32.mrb[0].mxu0 }
  0xec   : >> { %v271_v11 = vpop.f32.mrb[1].mxu0  ;;  %v280_v15 = vadd.f32 %v423_v10, %v213_v8 }
  0xed   : >> { %v424_v13 = vpop.f32.mrb[2].mxu0  ;;  %v272_v18 = vadd.f32 %v271_v11, %v203_v9  ;;  %176 = sbr.rel (!%p174_p4) target bundleno = 17 (0x11), region = 71 }
  0xee   : >> { %v283_v16 = vadd.f32 %v424_v13, %v218_v12  ;;  %v274_v17 = vpop.f32.mrb[3].mxu0 }
  0xef   : >> { %v275_v19 = vadd.f32 %v274_v17, %v208_v14 }
  0xf0   : >> { %v413_v20 = vpack.c.bf16 %v283_v16, %v280_v15 }
  0xf1   : >> { %v408_v21 = vpack.c.bf16 %v275_v19, %v272_v18 }
  0xf2   : >> { %415 = vst [vmem:[%s304_s10 + $0x8] sm:$0xff] %v413_v20  }
  0xf3   : >> { %409 = vst [vmem:[%s304_s10] sm:$0xff] %v408_v21  }
  0xf4 PF: > { %s13_s12 = sadd.s32 1, %s458_s12  }
  0xf5   : > { %p10_p5 = scmp.ge.s32.totalorder %s13_s12, 6  }
  0xf7   :  { %12 = sbr.rel (!%p10_p5) target bundleno = 1 (0x1), region = 82 }

// kernel: medicalnet_l1_forward.18
= control target key start
LH: loop header
LB: loop body
LE: loop exit
PB: predicated region body
PF: predicated region fallthrough
CT: control target
= control target key end

     0   :  { %s1456_s15 = smov 0   ;;  %s1819_s0 = inlined_call_operand.vmem [shape: bf16[4,6,32,256], index: 0, kind: input, shape index: {}]   ;;  %s1820_s1 = inlined_call_operand.vmem [shape: bf16[32,864], index: 1, kind: input, shape index: {}]   ;;  %s1821_s2 = inlined_call_operand.vmem [shape: f32[32,1], index: 2, kind: input, shape index: {}]   ;;  %s1822_s3 = inlined_call_operand.vmem [shape: bf16[4,4,32,128], index: 3, kind: input, shape index: {}]   ;;  %s1823_s4 = inlined_call_operand.vmem [shape: bf16[4,4,32,128], index: 4, kind: output, shape index: {}]  }
   0x1 LB: > { %s1144_s16 = sadd.s32 4294967295, %s1416_s15   ;;  %p1148_p0 = scmp.ge.s32.totalorder %s1416_s15, 1  ;;  %s1416_s15 = sphi %s1456_s15, %s14_s15  }
   0x2   : > { %p172_p1 = scmp.lt.s32.totalorder %s1416_s15, 5 }
   0x4   : > { %p173_p2 = pnand %p1148_p0, %p172_p1 }
   0x5   : > { %p203_p3 = scmp.lt.s32.totalorder (!%p173_p2), %s1144_s16, 3  ;;  %s1479_s28 = smov (!%p173_p2), 0  }
   0x6   : > { %176 = sbr.rel (%p173_p2) target bundleno = 552 (0x228), region = 36 }
   0xd   : > { %s1825_s16 = smov (!%p203_p3, %s1144_s16), 3 }
   0xe   : > { %s1340_s17 = smul.u32 192, %s1825_s16  ;;  %s1203_s18 = sshll.u32 %s1825_s16, 6 }
   0xf   : > { %s1467_s21 = scalar_lea.vmem %s1822_s3, %s1203_s18  ;;  %s1472_s24 = scalar_lea.vmem %s1823_s4, %s1203_s18 }
  0x10   : > { %s1477_s27 = scalar_lea.vmem %s1819_s0, %s1340_s17 }
  0x11 LB: >> { %s1205_s29 = sshll.u32 %s1420_s28, 5  ;;  %s1422_s5 = smov 121   ;;  %v1388_v8 = vld [vmem:[%s1820_s1 + $0x4] ss:$28 sps:$4 sm:$0xff]   ;;  %vm305_vm0 = vcmask 990208   ;;  %vm320_vm1 = vcmask 982016   ;;  %s1420_s28 = sphi %s1479_s28, %s224_s28  }
  0x12   : >> { %s1486_s30 = scalar_lea.vmem %s1477_s27, %s1205_s29  ;;  %s1423_s6 = smov 120   ;;  %855 = vmatprep.mubr.bf16.mxu0 %v1388_v8  ;;  %vm260_vm2 = vcmask 1039360   ;;  %v1391_v29 = vld [vmem:[%s1820_s1 + $0xc] ss:$28 sps:$4 sm:$0xff]   ;;  %vm335_vm3 = vcmask 949248   ;;  %vm275_vm4 = vcmask 1031168  }
  0x13   : >> { %v1489_v0 = vld [vmem:[%s1486_s30 + $0x10] ss:$8 sps:$4 sm:$0xff]   ;;  %v1492_v1 = vld [vmem:[%s1486_s30] ss:$8 sps:$4 sm:$0xff]   ;;  %v1372_v2 = vld [vmem:[%s1486_s30 + $0x14] ss:$8 sps:$4 sm:$0xff]   ;;  %904 = vmatprep.mubr.bf16.mxu1 %v1391_v29 }
  0x14   : >> { %301 = vrot.lane.b32.xlu1 %v1489_v0, %s1422_s5  ;;  %297 = vrot.lane.b32.xlu0 %v1492_v1, %s1422_s5  ;;  %v1373_v3 = vld [vmem:[%s1486_s30 + $0x4] ss:$8 sps:$4 sm:$0xff]   ;;  %s1424_s7 = smov 127   ;;  %s1425_s8 = smov 116   ;;  %v1527_v5 = vld [vmem:[%s1486_s30 + $0x20] ss:$8 sps:$4 sm:$0xff]  }
  0x15   : >> { %s1426_s9 = smov 126   ;;  %v1522_v4 = vld [vmem:[%s1486_s30 + $0x24] ss:$8 sps:$4 sm:$0xff]   ;;  %s1427_s10 = smov 122   ;;  %v1541_v6 = vld [vmem:[%s1486_s30 + $0x34] ss:$8 sps:$4 sm:$0xff]  }
  0x16   : >> { %s1428_s11 = smov 114   ;;  %s1429_s12 = smov 115   ;;  %v1546_v7 = vld [vmem:[%s1486_s30 + $0x30] ss:$8 sps:$4 sm:$0xff]   ;;  %v1574_v9 = vld [vmem:[%s1486_s30 + $0x44] ss:$8 sps:$4 sm:$0xff]  }
  0x17   : >> { %v1579_v10 = vld [vmem:[%s1486_s30 + $0x40] ss:$8 sps:$4 sm:$0xff]   ;;  %v1592_v11 = vld [vmem:[%s1486_s30 + $0x54] ss:$8 sps:$4 sm:$0xff]   ;;  %v1597_v12 = vld [vmem:[%s1486_s30 + $0x50] ss:$8 sps:$4 sm:$0xff]  }
  0x18   : >> { %303 = vrot.lane.b32.xlu1 %v1372_v2, %s1422_s5  ;;  %299 = vrot.lane.b32.xlu0 %v1373_v3, %s1422_s5  ;;  %vm290_vm5 = vcmask 998400   ;;  %vm365_vm6 = vcmask 932864   ;;  %vm350_vm7 = vcmask 941056   ;;  %vm816_vm8 = vcmask 785408  }
  0x1c   : >> { %314 = vrot.lane.b32.xlu1 %v1373_v3, %s1423_s6  ;;  %312 = vrot.lane.b32.xlu0 %v1492_v1, %s1423_s6 }
  0x20   : >> { %254 = vrot.lane.b32.xlu1 %v1373_v3, %s1424_s7  ;;  %252 = vrot.lane.b32.xlu0 %v1492_v1, %s1424_s7 }
  0x24   : >> { %318 = vrot.lane.b32.xlu1 %v1372_v2, %s1423_s6  ;;  %316 = vrot.lane.b32.xlu0 %v1489_v0, %s1423_s6 }
  0x28   : >> { %258 = vrot.lane.b32.xlu1 %v1372_v2, %s1424_s7  ;;  %256 = vrot.lane.b32.xlu0 %v1489_v0, %s1424_s7 }
  0x2c   : >> { %329 = vrot.lane.b32.xlu1 %v1373_v3, %s1425_s8  ;;  %327 = vrot.lane.b32.xlu0 %v1492_v1, %s1425_s8 }
  0x30   : >> { %269 = vrot.lane.b32.xlu1 %v1373_v3, %s1426_s9  ;;  %267 = vrot.lane.b32.xlu0 %v1492_v1, %s1426_s9 }
  0x34   : >> { %333 = vrot.lane.b32.xlu1 %v1372_v2, %s1425_s8  ;;  %331 = vrot.lane.b32.xlu0 %v1489_v0, %s1425_s8 }
  0x38   : >> { %430 = vrot.lane.b32.xlu1 %v1522_v4, %s1427_s10  ;;  %428 = vrot.lane.b32.xlu0 %v1527_v5, %s1427_s10 }
  0x3c   : >> { %273 = vrot.lane.b32.xlu1 %v1372_v2, %s1426_s9  ;;  %271 = vrot.lane.b32.xlu0 %v1489_v0, %s1426_s9 }
  0x40   : >> { %359 = vrot.lane.b32.xlu1 %v1373_v3, %s1428_s11  ;;  %357 = vrot.lane.b32.xlu0 %v1492_v1, %s1428_s11 }
  0x44   : >> { %344 = vrot.lane.b32.xlu1 %v1373_v3, %s1429_s12  ;;  %342 = vrot.lane.b32.xlu0 %v1492_v1, %s1429_s12 }
  0x48   : >> { %434 = vrot.lane.b32.xlu1 %v1541_v6, %s1427_s10  ;;  %432 = vrot.lane.b32.xlu0 %v1546_v7, %s1427_s10 }
  0x4c   : >> { %284 = vrot.lane.b32.xlu1 %v1373_v3, %s1427_s10  ;;  %282 = vrot.lane.b32.xlu0 %v1492_v1, %s1427_s10 }
  0x50   : >> { %363 = vrot.lane.b32.xlu1 %v1372_v2, %s1428_s11  ;;  %361 = vrot.lane.b32.xlu0 %v1489_v0, %s1428_s11 }
  0x54   : >> { %348 = vrot.lane.b32.xlu1 %v1372_v2, %s1429_s12  ;;  %346 = vrot.lane.b32.xlu0 %v1489_v0, %s1429_s12 }
  0x58   : >> { %444 = vrot.lane.b32.xlu1 %v1522_v4, %s1422_s5  ;;  %442 = vrot.lane.b32.xlu0 %v1527_v5, %s1422_s5 }
  0x5c   : >> { %288 = vrot.lane.b32.xlu1 %v1372_v2, %s1427_s10  ;;  %286 = vrot.lane.b32.xlu0 %v1489_v0, %s1427_s10  ;;  %v1430_v2 = vmov 0  }
  0x5d   : >> { %1367 = vset.pattern.permute.xlu1 %v1430_v2  ;;  %1366 = vset.pattern.permute.xlu0 %v1430_v2 }
  0x60   : >> { %448 = vrot.lane.b32.xlu1 %v1541_v6, %s1422_s5  ;;  %446 = vrot.lane.b32.xlu0 %v1546_v7, %s1422_s5 }
  0x64   : >> { %556 = vrot.lane.b32.xlu1 %v1574_v9, %s1426_s9  ;;  %554 = vrot.lane.b32.xlu0 %v1579_v10, %s1426_s9 }
  0x68   : >> { %486 = vrot.lane.b32.xlu1 %v1522_v4, %s1429_s12  ;;  %484 = vrot.lane.b32.xlu0 %v1527_v5, %s1429_s12 }
  0x6c   : >> { %458 = vrot.lane.b32.xlu1 %v1522_v4, %s1423_s6  ;;  %456 = vrot.lane.b32.xlu0 %v1527_v5, %s1423_s6 }
  0x70   : >> { %560 = vrot.lane.b32.xlu1 %v1592_v11, %s1426_s9  ;;  %558 = vrot.lane.b32.xlu0 %v1597_v12, %s1426_s9 }
  0x74   : >> { %402 = vrot.lane.b32.xlu1 %v1522_v4, %s1424_s7  ;;  %400 = vrot.lane.b32.xlu0 %v1527_v5, %s1424_s7 }
  0x78   : >> { %490 = vrot.lane.b32.xlu1 %v1541_v6, %s1429_s12  ;;  %488 = vrot.lane.b32.xlu0 %v1546_v7, %s1429_s12 }
  0x7c   : >> { %462 = vrot.lane.b32.xlu1 %v1541_v6, %s1423_s6  ;;  %460 = vrot.lane.b32.xlu0 %v1546_v7, %s1423_s6 }
  0x80   : >> { %570 = vrot.lane.b32.xlu1 %v1574_v9, %s1427_s10  ;;  %568 = vrot.lane.b32.xlu0 %v1579_v10, %s1427_s10 }
  0x84   : >> { %406 = vrot.lane.b32.xlu1 %v1541_v6, %s1424_s7  ;;  %404 = vrot.lane.b32.xlu0 %v1546_v7, %s1424_s7 }
  0x86   : >> { %v302_v13 = vpop.permute.xlu1 %301  ;;  %v298_v14 = vpop.permute.xlu0 %297 }
  0x88   : >> { %500 = vrot.lane.b32.xlu1 %v1522_v4, %s1428_s11  ;;  %498 = vrot.lane.b32.xlu0 %v1527_v5, %s1428_s11 }
  0x8a   : >> { %v304_v15 = vpop.permute.xlu1 %303  ;;  %v300_v16 = vpop.permute.xlu0 %299 }
  0x8b   : >> { %v306_v17 = vsel %vm305_vm0, %v298_v14, %v300_v16  ;;  %v307_v19 = vsel %vm305_vm0, %v302_v13, %v304_v15  ;;  %v1386_v14 = vld [vmem:[%s1820_s1] ss:$28 sps:$4 sm:$0xff]  }
  0x8c   : >> { %472 = vrot.lane.b32.xlu1 %v1522_v4, %s1425_s8  ;;  %470 = vrot.lane.b32.xlu0 %v1527_v5, %s1425_s8  ;;  %v722_v16 = vld [vmem:[%s1821_s2] sm:$0xff] }
  0x8d   : >> { %1232 = vmatprep.subr.bf16.mxu0 %v306_v17 }
  0x8e   : >> { %1233 = vmatpush3.bf16.msra.mxu0 %v1492_v1  ;;  %v315_v18 = vpop.permute.xlu1 %314  ;;  %v313_v20 = vpop.permute.xlu0 %312 }
  0x8f   : >> { %1234 = vmatprep.subr.bf16.mxu0 %v307_v19  ;;  %v321_v22 = vsel %vm320_vm1, %v313_v20, %v315_v18  ;;  %v724_v18 = vld [vmem:[%s1821_s2 + $0x10] sm:$0xff] }
  0x90   : >> { %574 = vrot.lane.b32.xlu1 %v1592_v11, %s1427_s10  ;;  %572 = vrot.lane.b32.xlu0 %v1597_v12, %s1427_s10 }
  0x92   : >> { %1235 = vmatpush3.bf16.msra.mxu0 %v1489_v0  ;;  %v255_v21 = vpop.permute.xlu1 %254  ;;  %v253_v23 = vpop.permute.xlu0 %252 }
  0x93   : >> { %1236 = vmatprep.subr.bf16.mxu0 %v321_v22  ;;  %v261_v24 = vsel %vm260_vm2, %v253_v23, %v255_v21  ;;  %v725_v21 = vld [vmem:[%s1821_s2 + $0x18] sm:$0xff] }
  0x94   : >> { %416 = vrot.lane.b32.xlu1 %v1522_v4, %s1426_s9  ;;  %414 = vrot.lane.b32.xlu0 %v1527_v5, %s1426_s9  ;;  %v1394_v23 = vld [vmem:[%s1820_s1 + $0x38] ss:$28 sps:$4 sm:$0xff]  }
  0x96   : >> { %1237 = vmatpush3.bf16.msra.mxu0 %v261_v24  ;;  %v319_v25 = vpop.permute.xlu1 %318  ;;  %v317_v26 = vpop.permute.xlu0 %316  ;;  %v1400_v24 = vld [vmem:[%s1820_s1 + $0x14] ss:$28 sps:$4 sm:$0xff]  }
  0x97   : >> { %v322_v27 = vsel %vm320_vm1, %v317_v26, %v319_v25 }
  0x98   : >> { %504 = vrot.lane.b32.xlu1 %v1541_v6, %s1428_s11  ;;  %502 = vrot.lane.b32.xlu0 %v1546_v7, %s1428_s11 }
  0x99   : >> { %1238 = vmatprep.subr.bf16.mxu0 %v322_v27 }
  0x9a   : >> { %v259_v28 = vpop.permute.xlu1 %258  ;;  %v257_v30 = vpop.permute.xlu0 %256 }
  0x9b   : >> { %v262_v31 = vsel %vm260_vm2, %v257_v30, %v259_v28 }
  0x9c   : >> { %476 = vrot.lane.b32.xlu1 %v1541_v6, %s1425_s8  ;;  %474 = vrot.lane.b32.xlu0 %v1546_v7, %s1425_s8 }
  0x9d   : >> { %1239 = vmatpush3.bf16.msra.mxu0 %v262_v31 }
  0x9e   : >> { %v330_v32 = vpop.permute.xlu1 %329  ;;  %v328_v33 = vpop.permute.xlu0 %327 }
  0x9f   : >> { %v336_v34 = vsel %vm335_vm3, %v328_v33, %v330_v32 }
  0xa0   : >> { %584 = vrot.lane.b32.xlu1 %v1574_v9, %s1422_s5  ;;  %582 = vrot.lane.b32.xlu0 %v1579_v10, %s1422_s5 }
  0xa1   : >> { %1240 = vmatprep.subr.bf16.mxu0 %v336_v34 }
  0xa2   : >> { %v270_v35 = vpop.permute.xlu1 %269  ;;  %v268_v36 = vpop.permute.xlu0 %267 }
  0xa3   : >> { %v276_v37 = vsel %vm275_vm4, %v268_v36, %v270_v35 }
  0xa4   : >> { %420 = vrot.lane.b32.xlu1 %v1541_v6, %s1426_s9  ;;  %418 = vrot.lane.b32.xlu0 %v1546_v7, %s1426_s9 }
  0xa5   : >> { %1241 = vmatpush3.bf16.msra.mxu0 %v276_v37 }
  0xa6   : >> { %v334_v38 = vpop.permute.xlu1 %333  ;;  %v332_v39 = vpop.permute.xlu0 %331 }
  0xa7   : >> { %v337_v40 = vsel %vm335_vm3, %v332_v39, %v334_v38 }
  0xa8   : >> { %588 = vrot.lane.b32.xlu1 %v1592_v11, %s1422_s5  ;;  %586 = vrot.lane.b32.xlu0 %v1597_v12, %s1422_s5 }
  0xa9   : >> { %1242 = vmatprep.subr.bf16.mxu0 %v337_v40 }
  0xaa   : >> { %v431_v41 = vpop.permute.xlu1 %430  ;;  %v429_v42 = vpop.permute.xlu0 %428 }
  0xab   : >> { %v436_v43 = vsel %vm290_vm5, %v429_v42, %v431_v41 }
  0xac   : >> { %612 = vrot.lane.b32.xlu1 %v1574_v9, %s1425_s8  ;;  %610 = vrot.lane.b32.xlu0 %v1579_v10, %s1425_s8 }
  0xad   : >> { %1260 = vmatprep.subr.bf16.mxu1 %v436_v43 }
  0xae   : >> { %v274_v44 = vpop.permute.xlu1 %273  ;;  %v272_v45 = vpop.permute.xlu0 %271 }
  0xaf   : >> { %v277_v46 = vsel %vm275_vm4, %v272_v45, %v274_v44 }
  0xb0   : >> { %598 = vrot.lane.b32.xlu1 %v1574_v9, %s1423_s6  ;;  %596 = vrot.lane.b32.xlu0 %v1579_v10, %s1423_s6 }
  0xb1   : >> { %1243 = vmatpush3.bf16.msra.mxu0 %v277_v46 }
  0xb2   : >> { %v360_v47 = vpop.permute.xlu1 %359  ;;  %v358_v48 = vpop.permute.xlu0 %357 }
  0xb3   : >> { %v366_v49 = vsel %vm365_vm6, %v358_v48, %v360_v47 }
  0xb4   : >> { %616 = vrot.lane.b32.xlu1 %v1592_v11, %s1425_s8  ;;  %614 = vrot.lane.b32.xlu0 %v1597_v12, %s1425_s8 }
  0xb5   : >> { %1261 = vmatpush3.bf16.msra.mxu1 %v366_v49 }
  0xb6   : >> { %v345_v50 = vpop.permute.xlu1 %344  ;;  %v343_v51 = vpop.permute.xlu0 %342 }
  0xb7   : >> { %v351_v52 = vsel %vm350_vm7, %v343_v51, %v345_v50 }
  0xb8   : >> { %542 = vrot.lane.b32.xlu1 %v1574_v9, %s1424_s7  ;;  %540 = vrot.lane.b32.xlu0 %v1579_v10, %s1424_s7 }
  0xb9   : >> { %1244 = vmatprep.subr.bf16.mxu0 %v351_v52 }
  0xba   : >> { %v435_v53 = vpop.permute.xlu1 %434  ;;  %v433_v54 = vpop.permute.xlu0 %432 }
  0xbb   : >> { %v437_v55 = vsel %vm290_vm5, %v433_v54, %v435_v53 }
  0xbc   : >> { %602 = vrot.lane.b32.xlu1 %v1592_v11, %s1423_s6  ;;  %600 = vrot.lane.b32.xlu0 %v1597_v12, %s1423_s6 }
  0xbd   : >> { %1262 = vmatprep.subr.bf16.mxu1 %v437_v55 }
  0xbe   : >> { %v285_v56 = vpop.permute.xlu1 %284  ;;  %v283_v57 = vpop.permute.xlu0 %282 }
  0xbf   : >> { %v291_v58 = vsel %vm290_vm5, %v283_v57, %v285_v56 }
  0xc0   : >> { %626 = vrot.lane.b32.xlu1 %v1574_v9, %s1429_s12  ;;  %624 = vrot.lane.b32.xlu0 %v1579_v10, %s1429_s12 }
  0xc1   : >> { %1245 = vmatpush3.bf16.msra.mxu0 %v291_v58 }
  0xc2   : >> { %v364_v59 = vpop.permute.xlu1 %363  ;;  %v362_v60 = vpop.permute.xlu0 %361 }
  0xc3   : >> { %v367_v61 = vsel %vm365_vm6, %v362_v60, %v364_v59 }
  0xc4   : >> { %546 = vrot.lane.b32.xlu1 %v1592_v11, %s1424_s7  ;;  %544 = vrot.lane.b32.xlu0 %v1597_v12, %s1424_s7  ;;  %s1206_s7 = sshll.u32 %s1420_s28, 4  ;;  %s224_s28 = sadd.s32 1, %s1420_s28  }
  0xc5   : >> { %1263 = vmatpush3.bf16.msra.mxu1 %v367_v61  ;;  %s1021_s8 = scalar_lea.vmem %s1467_s21, %s1206_s7  ;;  %s1055_s9 = scalar_lea.vmem %s1472_s24, %s1206_s7 }
  0xc6   : >> { %v349_v62 = vpop.permute.xlu1 %348  ;;  %v347_v63 = vpop.permute.xlu0 %346  ;;  %p221_p4 = scmp.ge.s32.totalorder %s224_s28, 4  }
  0xc7   : >> { %v352_v0 = vsel %vm350_vm7, %v347_v63, %v349_v62 }
  0xc8   : >> { %630 = vrot.lane.b32.xlu1 %v1592_v11, %s1429_s12  ;;  %628 = vrot.lane.b32.xlu0 %v1597_v12, %s1429_s12 }
  0xc9   : >> { %1246 = vmatprep.subr.bf16.mxu0 %v352_v0 }
  0xca   : >> { %v445_v1 = vpop.permute.xlu1 %444  ;;  %v443_v3 = vpop.permute.xlu0 %442 }
  0xcb   : >> { %v450_v4 = vsel %vm305_vm0, %v443_v3, %v445_v1 }
  0xcc   : >> { %640 = vrot.lane.b32.xlu1 %v1574_v9, %s1428_s11  ;;  %638 = vrot.lane.b32.xlu0 %v1579_v10, %s1428_s11  ;;  %v1392_v9 = vld [vmem:[%s1820_s1 + $0x3c] ss:$28 sps:$4 sm:$0xff]  }
  0xcd   : >> { %1264 = vmatprep.subr.bf16.mxu1 %v450_v4 }
  0xce   : >> { %v289_v6 = vpop.permute.xlu1 %288  ;;  %1265 = vmatpush3.bf16.msra.mxu1 %v1527_v5  ;;  %v287_v8 = vpop.permute.xlu0 %286  ;;  %v723_v5 = vld [vmem:[%s1821_s2 + $0x8] sm:$0xff] }
  0xcf   : >> { %v292_v13 = vsel %vm290_vm5, %v287_v8, %v289_v6 }
  0xd0   : >> { %644 = vrot.lane.b32.xlu1 %v1592_v11, %s1428_s11  ;;  %642 = vrot.lane.b32.xlu0 %v1597_v12, %s1428_s11 }
  0xd1   : >> { %1247 = vmatpush3.bf16.msra.mxu0 %v292_v13 }
  0xd2   : >> { %v449_v15 = vpop.permute.xlu1 %448  ;;  %v447_v11 = vpop.permute.xlu0 %446 }
  0xd3   : >> { %v451_v17 = vsel %vm305_vm0, %v447_v11, %v449_v15 }
  0xd4   : >> { %856 = vmatmul.mubr.bf16.vlgmr.msra.gmra.mrb[0].mxu0 %v1386_v14  ;;  %733 = vperm.xlu1 %1367, %v723_v5   ;;  %v1389_v14 = vld [vmem:[%s1820_s1 + $0x8] ss:$28 sps:$4 sm:$0xff]  }
  0xd5   : >> { %1266 = vmatprep.subr.bf16.mxu1 %v451_v17  ;;  %863 = vmatprep.mubr.bf16.mxu0 %v1392_v9  ;;  %v1395_v9 = vld [vmem:[%s1820_s1 + $0x44] ss:$28 sps:$4 sm:$0xff]  }
  0xd6   : >> { %v557_v19 = vpop.permute.xlu1 %556  ;;  %1267 = vmatpush3.bf16.msra.mxu1 %v1546_v7  ;;  %728 = vperm.xlu0 %1366, %v722_v16   ;;  %v555_v20 = vpop.permute.xlu0 %554 }
  0xd7   : >> { %v562_v22 = vsel %vm275_vm4, %v555_v20, %v557_v19  ;;  %v1404_v19 = vld [vmem:[%s1820_s1 + $0x18] ss:$28 sps:$4 sm:$0xff]  }
  0xd8   : >> { %738 = vperm.xlu1 %1367, %v724_v18   ;;  %1288 = vmatprep.subr.bf16.mxu0 %v562_v22  ;;  %v1397_v18 = vld [vmem:[%s1820_s1 + $0x40] ss:$28 sps:$4 sm:$0xff]  }
  0xda   : >> { %v487_v25 = vpop.permute.xlu1 %486  ;;  %743 = vperm.xlu0 %1366, %v725_v21   ;;  %v485_v7 = vpop.permute.xlu0 %484 }
  0xdb   : >> { %v492_v26 = vsel %vm350_vm7, %v485_v7, %v487_v25 }
  0xdc   : >> { %864 = vmatmul.mubr.bf16.gmra.mrb[4].mxu0 %v1394_v23 }
  0xdd   : >> { %1289 = vmatpush3.bf16.msra.mxu0 %v492_v26  ;;  %953 = vmatprep.mubr.bf16.mxu0 %v1400_v24 }
  0xde   : >> { %v459_v27 = vpop.permute.xlu1 %458  ;;  %v457_v28 = vpop.permute.xlu0 %456 }
  0xdf   : >> { %v464_v29 = vsel %vm320_vm1, %v457_v28, %v459_v27 }
  0xe0   : >> { %1268 = vmatprep.subr.bf16.mxu1 %v464_v29 }
  0xe2   : >> { %v561_v30 = vpop.permute.xlu1 %560  ;;  %v559_v31 = vpop.permute.xlu0 %558 }
  0xe3   : >> { %v563_v32 = vsel %vm275_vm4, %v559_v31, %v561_v30 }
  0xe4   : >> { %1290 = vmatprep.subr.bf16.mxu0 %v563_v32 }
  0xe6   : >> { %v403_v33 = vpop.permute.xlu1 %402  ;;  %v401_v34 = vpop.permute.xlu0 %400 }
  0xe7   : >> { %v408_v35 = vsel %vm260_vm2, %v401_v34, %v403_v33 }
  0xe8   : >> { %1269 = vmatpush3.bf16.msra.mxu1 %v408_v35 }
  0xea   : >> { %v491_v36 = vpop.permute.xlu1 %490  ;;  %v489_v37 = vpop.permute.xlu0 %488 }
  0xeb   : >> { %v493_v38 = vsel %vm350_vm7, %v489_v37, %v491_v36  ;;  %v1398_v36 = vld [vmem:[%s1820_s1 + $0x10] ss:$28 sps:$4 sm:$0xff]  }
  0xec   : >> { %1291 = vmatpush3.bf16.msra.mxu0 %v493_v38  ;;  %v1401_v37 = vld [vmem:[%s1820_s1 + $0x4c] ss:$28 sps:$4 sm:$0xff]  }
  0xee   : >> { %v463_v39 = vpop.permute.xlu1 %462  ;;  %v461_v40 = vpop.permute.xlu0 %460 }
  0xef   : >> { %v465_v41 = vsel %vm320_vm1, %v461_v40, %v463_v39 }
  0xf0   : >> { %1270 = vmatprep.subr.bf16.mxu1 %v465_v41 }
  0xf2   : >> { %v571_v42 = vpop.permute.xlu1 %570  ;;  %v569_v43 = vpop.permute.xlu0 %568 }
  0xf3   : >> { %v576_v44 = vsel %vm290_vm5, %v569_v43, %v571_v42 }
  0xf4   : >> { %1292 = vmatprep.subr.bf16.mxu0 %v576_v44  ;;  %v1403_v44 = vld [vmem:[%s1820_s1 + $0x48] ss:$28 sps:$4 sm:$0xff]  }
  0xf6   : >> { %v407_v45 = vpop.permute.xlu1 %406  ;;  %v405_v46 = vpop.permute.xlu0 %404 }
  0xf7   : >> { %v409_v47 = vsel %vm260_vm2, %v405_v46, %v407_v45 }
  0xf8   : >> { %1271 = vmatpush3.bf16.msra.mxu1 %v409_v47 }
  0xfa   : >> { %v501_v48 = vpop.permute.xlu1 %500  ;;  %v499_v49 = vpop.permute.xlu0 %498 }
  0xfb   : >> { %v506_v50 = vsel %vm365_vm6, %v499_v49, %v501_v48  ;;  %v1405_v48 = vld [vmem:[%s1820_s1 + $0x50] ss:$28 sps:$4 sm:$0xff]  }
  0xfc   : >> { %1293 = vmatpush3.bf16.msra.mxu0 %v506_v50 }
  0xfe   : >> { %v473_v51 = vpop.permute.xlu1 %472  ;;  %v471_v52 = vpop.permute.xlu0 %470 }
  0xff   : >> { %v478_v53 = vsel %vm335_vm3, %v471_v52, %v473_v51 }
 0x100   : >> { %1272 = vmatprep.subr.bf16.mxu1 %v478_v53 }
 0x102   : >> { %v575_v54 = vpop.permute.xlu1 %574  ;;  %v573_v55 = vpop.permute.xlu0 %572 }
 0x103   : >> { %v577_v56 = vsel %vm290_vm5, %v573_v55, %v575_v54 }
 0x104   : >> { %1294 = vmatprep.subr.bf16.mxu0 %v577_v56 }
 0x106   : >> { %v417_v57 = vpop.permute.xlu1 %416  ;;  %v415_v58 = vpop.permute.xlu0 %414 }
 0x107   : >> { %v422_v59 = vsel %vm275_vm4, %v415_v58, %v417_v57 }
 0x108   : >> { %1273 = vmatpush3.bf16.msra.mxu1 %v422_v59 }
 0x10a   : >> { %v505_v60 = vpop.permute.xlu1 %504  ;;  %v503_v61 = vpop.permute.xlu0 %502 }
 0x10b   : >> { %v507_v62 = vsel %vm365_vm6, %v503_v61, %v505_v60 }
 0x10c   : >> { %1295 = vmatpush3.bf16.msra.mxu0 %v507_v62 }
 0x10e   : >> { %v477_v63 = vpop.permute.xlu1 %476  ;;  %v475_v0 = vpop.permute.xlu0 %474 }
 0x10f   : >> { %v479_v1 = vsel %vm335_vm3, %v475_v0, %v477_v63 }
 0x110   : >> { %1274 = vmatprep.subr.bf16.mxu1 %v479_v1 }
 0x112   : >> { %v585_v2 = vpop.permute.xlu1 %584  ;;  %v583_v3 = vpop.permute.xlu0 %582 }
 0x113   : >> { %v590_v4 = vsel %vm305_vm0, %v583_v3, %v585_v2 }
 0x114   : >> { %1296 = vmatprep.subr.bf16.mxu0 %v590_v4 }
 0x115   : >> { %1297 = vmatpush3.bf16.msra.mxu0 %v1579_v10 }
 0x116   : >> { %v421_v6 = vpop.permute.xlu1 %420  ;;  %v419_v8 = vpop.permute.xlu0 %418 }
 0x117   : >> { %v423_v13 = vsel %vm275_vm4, %v419_v8, %v421_v6 }
 0x118   : >> { %1275 = vmatpush3.bf16.msra.mxu1 %v423_v13 }
 0x11a   : >> { %v589_v5 = vpop.permute.xlu1 %588  ;;  %v587_v15 = vpop.permute.xlu0 %586 }
 0x11b   : >> { %905 = vmatmul.mubr.bf16.vlgmr.msra.gmra.mrb[0].mxu1 %v1389_v14  ;;  %v591_v11 = vsel %vm305_vm0, %v587_v15, %v589_v5 }
 0x11c   : >> { %1298 = vmatprep.subr.bf16.mxu0 %v591_v11  ;;  %912 = vmatprep.mubr.bf16.mxu1 %v1395_v9 }
 0x11d   : >> { %1299 = vmatpush3.bf16.msra.mxu0 %v1597_v12 }
 0x11e   : >> { %v613_v10 = vpop.permute.xlu1 %612  ;;  %v611_v16 = vpop.permute.xlu0 %610 }
 0x11f   : >> { %v618_v17 = vsel %vm335_vm3, %v611_v16, %v613_v10 }
 0x120   : >> { %1324 = vmatprep.subr.bf16.mxu1 %v618_v17 }
 0x121   : >> { %1325 = vmatpush3.bf16.msra.mxu1 %v618_v17 }
 0x122   : >> { %v599_v20 = vpop.permute.xlu1 %598  ;;  %v597_v21 = vpop.permute.xlu0 %596 }
 0x123   : >> { %v604_v22 = vsel %vm320_vm1, %v597_v21, %v599_v20  ;;  %913 = vmatmul.mubr.bf16.gmra.mrb[4].mxu1 %v1397_v18 }
 0x124   : >> { %1300 = vmatprep.subr.bf16.mxu0 %v604_v22  ;;  %1336 = vmatprep.mubr.msk.bf16.mxu1 %vm816_vm8, %v1404_v19 }
 0x126   : >> { %v617_v12 = vpop.permute.xlu1 %616  ;;  %v615_v23 = vpop.permute.xlu0 %614 }
 0x127   : >> { %v619_v24 = vsel %vm335_vm3, %v615_v23, %v617_v12 }
 0x128   : >> { %1326 = vmatprep.subr.bf16.mxu1 %v619_v24 }
 0x129   : >> { %1327 = vmatpush3.bf16.msra.mxu1 %v619_v24 }
 0x12a   : >> { %v543_v25 = vpop.permute.xlu1 %542  ;;  %v541_v7 = vpop.permute.xlu0 %540 }
 0x12b   : >> { %v548_v26 = vsel %vm260_vm2, %v541_v7, %v543_v25 }
 0x12c   : >> { %1301 = vmatpush3.bf16.msra.mxu0 %v548_v26 }
 0x12e   : >> { %v603_v27 = vpop.permute.xlu1 %602  ;;  %v601_v28 = vpop.permute.xlu0 %600 }
 0x12f   : >> { %v605_v29 = vsel %vm320_vm1, %v601_v28, %v603_v27 }
 0x130   : >> { %1302 = vmatprep.subr.bf16.mxu0 %v605_v29 }
 0x132   : >> { %v627_v30 = vpop.permute.xlu1 %626  ;;  %v625_v31 = vpop.permute.xlu0 %624 }
 0x133   : >> { %v632_v32 = vsel %vm350_vm7, %v625_v31, %v627_v30  ;;  %v1230_v31 = vld [vmem:[%s1021_s8 + $0x8] sm:$0xff]  }
 0x134   : >> { %1328 = vmatprep.subr.bf16.mxu1 %v632_v32 }
 0x135   : >> { %1329 = vmatpush3.bf16.msra.mxu1 %v632_v32 }
 0x136   : >> { %v547_v33 = vpop.permute.xlu1 %546  ;;  %v545_v34 = vpop.permute.xlu0 %544 }
 0x137   : >> { %v549_v35 = vsel %vm260_vm2, %v545_v34, %v547_v33  ;;  %v1213_v34 = vld [vmem:[%s1021_s8] sm:$0xff]  }
 0x138   : >> { %1303 = vmatpush3.bf16.msra.mxu0 %v549_v35 }
 0x13a   : >> { %v631_v38 = vpop.permute.xlu1 %630  ;;  %v629_v39 = vpop.permute.xlu0 %628 }
 0x13b   : >> { %954 = vmatmul.mubr.bf16.vlgmr.msra.gmra.mrb[8].mxu0 %v1398_v36  ;;  %v633_v40 = vsel %vm350_vm7, %v629_v39, %v631_v38  ;;  %v1218_v38 = vunpack.c.l.bf16 %v1230_v31 }
 0x13c   : >> { %1330 = vmatprep.subr.bf16.mxu1 %v633_v40  ;;  %961 = vmatprep.mubr.bf16.mxu0 %v1401_v37 }
 0x13d   : >> { %1331 = vmatpush3.bf16.msra.mxu1 %v633_v40  ;;  %v1214_v40 = vunpack.c.l.bf16 %v1213_v34 }
 0x13e   : >> { %v641_v41 = vpop.permute.xlu1 %640  ;;  %v639_v42 = vpop.permute.xlu0 %638 }
 0x13f   : >> { %v646_v43 = vsel %vm365_vm6, %v639_v42, %v641_v41 }
 0x140   : >> { %1332 = vmatprep.subr.bf16.mxu1 %v646_v43 }
 0x141   : >> { %1333 = vmatpush3.bf16.msra.mxu1 %v646_v43 }
 0x142   : >> { %v645_v45 = vpop.permute.xlu1 %644  ;;  %v643_v46 = vpop.permute.xlu0 %642 }
 0x143   : >> { %962 = vmatmul.mubr.bf16.gmra.mrb[12].mxu0 %v1403_v44  ;;  %v647_v47 = vsel %vm365_vm6, %v643_v46, %v645_v45  ;;  %v1219_v44 = vunpack.c.h.bf16 %v1230_v31 }
 0x144   : >> { %1334 = vmatprep.subr.bf16.mxu1 %v647_v47 }
 0x145   : >> { %1335 = vmatpush3.bf16.msra.mxu1 %v647_v47  ;;  %v1215_v47 = vunpack.c.h.bf16 %v1213_v34 }
 0x148   : >> { %1337 = vmatmul.mubr.msk.bf16.vlgmr.msra.gmra.mrb[8].mxu1 %vm816_vm8, %v1405_v48 }
 0x153   : >> { %v734_v62 = vpop.permute.xlu1 %733 }
 0x155   : >> { %v729_v61 = vpop.permute.xlu0 %728 }
 0x157   : >> { %v739_v14 = vpop.permute.xlu1 %738 }
 0x159   : >> { %v744_v5 = vpop.permute.xlu0 %743 }
 0x1a7   : >> { %v1248_v49 = vpop.f32.mrb[0].mxu0 }
 0x1a8   : >> { %v1249_v50 = vpop.f32.mrb[1].mxu0 }
 0x1a9   : >> { %v1250_v51 = vadd.f32 %v1249_v50, %v1248_v49  ;;  %v1251_v52 = vpop.f32.mrb[2].mxu0 }
 0x1aa   : >> { %v1252_v53 = vpop.f32.mrb[3].mxu0 }
 0x1ab   : >> { %v1253_v54 = vadd.f32 %v1252_v53, %v1251_v52  ;;  %v858_v0 = vadd.f32 %v1250_v51, %v729_v61 }
 0x1ad   : >> { %v861_v4 = vadd.f32 %v1253_v54, %v734_v62 }
 0x1af   : >> { %v1254_v55 = vpop.f32.mrb[4].mxu0 }
 0x1b0   : >> { %v1255_v56 = vpop.f32.mrb[5].mxu0 }
 0x1b1   : >> { %v1256_v57 = vadd.f32 %v1255_v56, %v1254_v55  ;;  %v1257_v58 = vpop.f32.mrb[6].mxu0 }
 0x1b2   : >> { %v1258_v59 = vpop.f32.mrb[7].mxu0 }
 0x1b3   : >> { %v1259_v60 = vadd.f32 %v1258_v59, %v1257_v58  ;;  %v866_v11 = vadd.f32 %v1256_v57, %v739_v14 }
 0x1b5   : >> { %v869_v18 = vadd.f32 %v1259_v60, %v744_v5 }
 0x1ee   : >> { %v1276_v63 = vpop.f32.mrb[0].mxu1 }
 0x1ef   : >> { %v1277_v1 = vpop.f32.mrb[1].mxu1 }
 0x1f0   : >> { %v1278_v2 = vadd.f32 %v1277_v1, %v1276_v63  ;;  %v1279_v3 = vpop.f32.mrb[2].mxu1 }
 0x1f1   : >> { %v1280_v6 = vpop.f32.mrb[3].mxu1 }
 0x1f2   : >> { %v1281_v8 = vadd.f32 %v1280_v6, %v1279_v3  ;;  %v907_v13 = vadd.f32 %v1278_v2, %v858_v0 }
 0x1f4   : >> { %v910_v9 = vadd.f32 %v1281_v8, %v861_v4 }
 0x1f6   : >> { %v1282_v15 = vpop.f32.mrb[4].mxu1 }
 0x1f7   : >> { %v1283_v10 = vpop.f32.mrb[5].mxu1 }
 0x1f8   : >> { %v1284_v16 = vadd.f32 %v1283_v10, %v1282_v15  ;;  %v1285_v17 = vpop.f32.mrb[6].mxu1 }
 0x1f9   : >> { %v1286_v19 = vpop.f32.mrb[7].mxu1 }
 0x1fa   : >> { %v915_v20 = vadd.f32 %v1284_v16, %v866_v11  ;;  %v1287_v21 = vadd.f32 %v1286_v19, %v1285_v17 }
 0x1fc   : >> { %v918_v22 = vadd.f32 %v1287_v21, %v869_v18 }
 0x20e   : >> { %v1304_v12 = vpop.f32.mrb[8].mxu0 }
 0x20f   : >> { %v1305_v23 = vpop.f32.mrb[9].mxu0 }
 0x210   : >> { %v1306_v24 = vadd.f32 %v1305_v23, %v1304_v12  ;;  %v1307_v25 = vpop.f32.mrb[10].mxu0 }
 0x211   : >> { %v1308_v7 = vpop.f32.mrb[11].mxu0 }
 0x212   : >> { %v1309_v26 = vadd.f32 %v1308_v7, %v1307_v25  ;;  %v956_v27 = vadd.f32 %v1306_v24, %v907_v13 }
 0x214   : >> { %v959_v28 = vadd.f32 %v1309_v26, %v910_v9 }
 0x216   : >> { %v1310_v29 = vpop.f32.mrb[12].mxu0 }
 0x217   : >> { %v1311_v30 = vpop.f32.mrb[13].mxu0 }
 0x218   : >> { %v1312_v32 = vadd.f32 %v1311_v30, %v1310_v29  ;;  %v1313_v33 = vpop.f32.mrb[14].mxu0 }
 0x219   : >> { %v1314_v35 = vpop.f32.mrb[15].mxu0 }
 0x21a   : >> { %v1315_v36 = vadd.f32 %v1314_v35, %v1313_v33  ;;  %v964_v37 = vadd.f32 %v1312_v32, %v915_v20 }
 0x21b   : >> { %v1338_v39 = vpop.f32.mrb[8].mxu1 }
 0x21c   : >> { %v1013_v41 = vadd.f32 %v1338_v39, %v964_v37  ;;  %v1004_v42 = vpop.f32.mrb[9].mxu1  ;;  %v967_v43 = vadd.f32 %v1315_v36, %v918_v22 }
 0x21d   : >> { %v1005_v45 = vadd.f32 %v1004_v42, %v956_v27  ;;  %v1339_v46 = vpop.f32.mrb[10].mxu1 }
 0x21e   : >> { %v1032_v48 = vadd.f32 %v1218_v38, %v1013_v41  ;;  %v1016_v49 = vadd.f32 %v1339_v46, %v967_v43  ;;  %v1007_v50 = vpop.f32.mrb[11].mxu1 }
 0x21f   : >> { %v1030_v51 = vadd.f32 %v1214_v40, %v1005_v45  ;;  %v1008_v52 = vadd.f32 %v1007_v50, %v959_v28 }
 0x220   : >> { %v1033_v53 = vadd.f32 %v1219_v44, %v1016_v49  ;;  %v1036_v55 = vmax.f32 %v1032_v48, 0.0 }
 0x221   : >> { %v1031_v54 = vadd.f32 %v1215_v47, %v1008_v52  ;;  %v1034_v57 = vmax.f32 %v1030_v51, 0.0  ;;  %223 = sbr.rel (!%p221_p4) target bundleno = 17 (0x11), region = 81 }
 0x222   : >> { %v1037_v56 = vmax.f32 %v1033_v53, 0.0 }
 0x223   : >> { %v1035_v58 = vmax.f32 %v1031_v54, 0.0 }
 0x224   : >> { %v1228_v59 = vpack.c.bf16 %v1037_v56, %v1036_v55 }
 0x225   : >> { %v1223_v60 = vpack.c.bf16 %v1035_v58, %v1034_v57 }
 0x226   : >> { %1231 = vst [vmem:[%s1055_s9 + $0x8] sm:$0xff] %v1228_v59  }
 0x227   : >> { %1224 = vst [vmem:[%s1055_s9] sm:$0xff] %v1223_v60  }
 0x228 PF: > { %s14_s15 = sadd.s32 1, %s1416_s15  }
 0x229   : > { %p11_p5 = scmp.ge.s32.totalorder %s14_s15, 6  }
 0x22b   :  { %13 = sbr.rel (!%p11_p5) target bundleno = 1 (0x1), region = 92 }

// kernel: medicalnet_l1_forward.19
= control target key start
LH: loop header
LB: loop body
LE: loop exit
PB: predicated region body
PF: predicated region fallthrough
CT: control target
= control target key end

     0   :  { %7 = vsyncpa [#allocation3], 0  ;;  %vm172_vm0 = vcmask 130048   ;;  %s1788_s0 = inlined_call_operand.vmem [shape: bf16[8,32,16], index: 0, kind: input, shape index: {}]   ;;  %s1789_s1 = inlined_call_operand.vmem [shape: bf16[8,32,16], index: 1, kind: input, shape index: {}]   ;;  %s1790_s2 = inlined_call_operand.hbm [shape: f32[1,1], index: 2, kind: output, shape index: {}]  }
   0x1   :  { %v775_v0 = vld [vmem:[%s1788_s0] sm:$0xff]   ;;  %v902_v1 = vld [vmem:[%s1788_s0 + $0x8] sm:$0xff]   ;;  %v903_v2 = vld [vmem:[%s1788_s0 + $0x10] sm:$0xff]  }
   0x2   :  { %v904_v3 = vld [vmem:[%s1788_s0 + $0x18] sm:$0xff]   ;;  %v905_v4 = vld [vmem:[%s1788_s0 + $0x20] sm:$0xff]   ;;  %v1054_v5 = vunpack.c.l.bf16 %v775_v0  ;;  %v906_v6 = vld [vmem:[%s1788_s0 + $0x28] sm:$0xff]   ;;  %v1062_v8 = vunpack.c.h.bf16 %v775_v0  ;;  %v1064_v9 = vunpack.c.l.bf16 %v902_v1  ;;  %v1066_v10 = vunpack.c.h.bf16 %v902_v1 }
   0x3   :  { %v907_v7 = vld [vmem:[%s1788_s0 + $0x30] sm:$0xff]   ;;  %v1068_v11 = vunpack.c.l.bf16 %v903_v2  ;;  %v908_v12 = vld [vmem:[%s1788_s0 + $0x38] sm:$0xff]   ;;  %v909_v13 = vld [vmem:[%s1788_s0 + $0x40] sm:$0xff]   ;;  %v1076_v14 = vunpack.c.h.bf16 %v903_v2  ;;  %v1078_v15 = vunpack.c.l.bf16 %v904_v3  ;;  %v1080_v16 = vunpack.c.h.bf16 %v904_v3 }
   0x4   :  { %1834 = vst [vmem:[#allocation5_spill] sm:$0xff] %v1054_v5  ;;  %1835 = vst [vmem:[#allocation6_spill] sm:$0xff] %v1062_v8  ;;  %v1082_v17 = vunpack.c.l.bf16 %v905_v4  ;;  %v910_v18 = vld [vmem:[%s1788_s0 + $0x48] sm:$0xff]   ;;  %v911_v19 = vld [vmem:[%s1788_s0 + $0x50] sm:$0xff]   ;;  %v1090_v20 = vunpack.c.h.bf16 %v905_v4  ;;  %v1092_v21 = vunpack.c.l.bf16 %v906_v6  ;;  %v1094_v22 = vunpack.c.h.bf16 %v906_v6 }
   0x5   :  { %1836 = vst [vmem:[#allocation7_spill] sm:$0xff] %v1064_v9  ;;  %1837 = vst [vmem:[#allocation8_spill] sm:$0xff] %v1066_v10  ;;  %v1096_v23 = vunpack.c.l.bf16 %v907_v7  ;;  %v912_v24 = vld [vmem:[%s1788_s0 + $0x58] sm:$0xff]   ;;  %v913_v25 = vld [vmem:[%s1788_s0 + $0x60] sm:$0xff]   ;;  %v1104_v26 = vunpack.c.h.bf16 %v907_v7  ;;  %v1106_v27 = vunpack.c.l.bf16 %v908_v12  ;;  %v1108_v28 = vunpack.c.h.bf16 %v908_v12 }
   0x6   :  { %1838 = vst [vmem:[#allocation9_spill] sm:$0xff] %v1068_v11  ;;  %1839 = vst [vmem:[#allocation10_spill] sm:$0xff] %v1076_v14  ;;  %v1110_v29 = vunpack.c.l.bf16 %v909_v13  ;;  %v914_v30 = vld [vmem:[%s1788_s0 + $0x68] sm:$0xff]   ;;  %v915_v31 = vld [vmem:[%s1788_s0 + $0x70] sm:$0xff]   ;;  %v1118_v32 = vunpack.c.h.bf16 %v909_v13  ;;  %v1120_v33 = vunpack.c.l.bf16 %v910_v18  ;;  %v1122_v34 = vunpack.c.h.bf16 %v910_v18 }
   0x7   :  { %1840 = vst [vmem:[#allocation11_spill] sm:$0xff] %v1078_v15  ;;  %1841 = vst [vmem:[#allocation12_spill] sm:$0xff] %v1080_v16  ;;  %v1124_v35 = vunpack.c.l.bf16 %v911_v19  ;;  %v916_v36 = vld [vmem:[%s1788_s0 + $0x78] sm:$0xff]   ;;  %v1129_v37 = vunpack.c.h.bf16 %v911_v19  ;;  %v1131_v38 = vunpack.c.l.bf16 %v912_v24  ;;  %v1133_v39 = vunpack.c.h.bf16 %v912_v24  ;;  %v839_v41 = vld [vmem:[%s1789_s1] sm:$0xff]  }
   0x8   :  { %1842 = vst [vmem:[#allocation13_spill] sm:$0xff] %v1082_v17  ;;  %1843 = vst [vmem:[#allocation14_spill] sm:$0xff] %v1090_v20  ;;  %v1135_v40 = vunpack.c.l.bf16 %v913_v25  ;;  %v917_v42 = vld [vmem:[%s1789_s1 + $0x8] sm:$0xff]   ;;  %v1143_v43 = vunpack.c.h.bf16 %v913_v25  ;;  %v1145_v44 = vunpack.c.l.bf16 %v914_v30  ;;  %v1147_v45 = vunpack.c.h.bf16 %v914_v30  ;;  %v918_v47 = vld [vmem:[%s1789_s1 + $0x10] sm:$0xff]  }
   0x9   :  { %1844 = vst [vmem:[#allocation15_spill] sm:$0xff] %v1092_v21  ;;  %1845 = vst [vmem:[#allocation16_spill] sm:$0xff] %v1094_v22  ;;  %v1149_v46 = vunpack.c.l.bf16 %v915_v31  ;;  %v919_v48 = vld [vmem:[%s1789_s1 + $0x18] sm:$0xff]   ;;  %v1157_v49 = vunpack.c.h.bf16 %v915_v31  ;;  %v1159_v50 = vunpack.c.l.bf16 %v916_v36  ;;  %v920_v51 = vld [vmem:[%s1789_s1 + $0x20] sm:$0xff]   ;;  %v140_v52 = vmul.f32 %v1054_v5, %v1054_v5 }
   0xa   :  { %1846 = vst [vmem:[#allocation17_spill] sm:$0xff] %v1096_v23  ;;  %1847 = vst [vmem:[#allocation18_spill] sm:$0xff] %v1104_v26  ;;  %v141_v53 = vmul.f32 %v1062_v8, %v1062_v8  ;;  %v1168_v54 = vunpack.c.h.bf16 %v916_v36  ;;  %v1170_v55 = vunpack.c.l.bf16 %v839_v41  ;;  %v1172_v56 = vunpack.c.h.bf16 %v839_v41  ;;  %v921_v62 = vld [vmem:[%s1789_s1 + $0x28] sm:$0xff]   ;;  %v922_v1 = vld [vmem:[%s1789_s1 + $0x30] sm:$0xff]  }
   0xb   :  { %1848 = vst [vmem:[#allocation19_spill] sm:$0xff] %v1106_v27  ;;  %1849 = vst [vmem:[#allocation20_spill] sm:$0xff] %v1108_v28  ;;  %v1174_v57 = vunpack.c.l.bf16 %v917_v42  ;;  %v1176_v58 = vunpack.c.h.bf16 %v917_v42  ;;  %v1178_v59 = vunpack.c.l.bf16 %v918_v47  ;;  %v1180_v60 = vunpack.c.h.bf16 %v918_v47  ;;  %v923_v2 = vld [vmem:[%s1789_s1 + $0x38] sm:$0xff]   ;;  %v924_v24 = vld [vmem:[%s1789_s1 + $0x40] sm:$0xff]  }
   0xc   :  { %1850 = vst [vmem:[#allocation21_spill] sm:$0xff] %v1110_v29  ;;  %1851 = vst [vmem:[#allocation22_spill] sm:$0xff] %v1118_v32  ;;  %v1182_v61 = vunpack.c.l.bf16 %v919_v48  ;;  %v1187_v63 = vunpack.c.h.bf16 %v919_v48  ;;  %v1189_v0 = vunpack.c.l.bf16 %v920_v51  ;;  %v144_v3 = vmul.f32 %v1068_v11, %v1068_v11  ;;  %v925_v47 = vld [vmem:[%s1789_s1 + $0x48] sm:$0xff]  }
   0xd   :  { %1852 = vst [vmem:[#allocation23_spill] sm:$0xff] %v1120_v33  ;;  %1853 = vst [vmem:[#allocation24_spill] sm:$0xff] %v1122_v34  ;;  %v145_v4 = vmul.f32 %v1076_v14, %v1076_v14  ;;  %v1201_v6 = vunpack.c.h.bf16 %v920_v51  ;;  %v142_v7 = vmul.f32 %v1064_v9, %v1064_v9  ;;  %v173_v12 = vsel %vm172_vm0, %v140_v52, 0.0 }
   0xe   :  { %1854 = vst [vmem:[#allocation25_spill] sm:$0xff] %v1124_v35  ;;  %1855 = vst [vmem:[#allocation26_spill] sm:$0xff] %v1129_v37  ;;  %v174_v13 = vsel %vm172_vm0, %v141_v53, 0.0  ;;  %v1207_v18 = vunpack.c.l.bf16 %v921_v62  ;;  %v1209_v19 = vunpack.c.h.bf16 %v921_v62  ;;  %v148_v25 = vmul.f32 %v1082_v17, %v1082_v17 }
   0xf   :  { %1856 = vst [vmem:[#allocation27_spill] sm:$0xff] %v1131_v38  ;;  %1857 = vst [vmem:[#allocation28_spill] sm:$0xff] %v1133_v39  ;;  %v149_v30 = vmul.f32 %v1090_v20, %v1090_v20  ;;  %v1218_v31 = vunpack.c.l.bf16 %v922_v1  ;;  %v1220_v36 = vunpack.c.h.bf16 %v922_v1  ;;  %v1222_v41 = vunpack.c.l.bf16 %v923_v2 }
  0x10   :  { %1858 = vst [vmem:[#allocation29_spill] sm:$0xff] %v1135_v40  ;;  %1859 = vst [vmem:[#allocation30_spill] sm:$0xff] %v1143_v43  ;;  %v1224_v42 = vunpack.c.h.bf16 %v923_v2  ;;  %v146_v48 = vmul.f32 %v1078_v15, %v1078_v15  ;;  %v175_v51 = vadd.f32 %v174_v13, %v173_v12  ;;  %v186_v52 = vsel %vm172_vm0, %v144_v3, 0.0  ;;  %v926_v2 = vld [vmem:[%s1789_s1 + $0x50] sm:$0xff]   ;;  %v927_v3 = vld [vmem:[%s1789_s1 + $0x58] sm:$0xff]  }
  0x11   :  { %1860 = vst [vmem:[#allocation31_spill] sm:$0xff] %v1145_v44  ;;  %1861 = vst [vmem:[#allocation32_spill] sm:$0xff] %v1147_v45  ;;  %v187_v53 = vsel %vm172_vm0, %v145_v4, 0.0  ;;  %v1233_v62 = vunpack.c.l.bf16 %v924_v24  ;;  %v1235_v1 = vunpack.c.h.bf16 %v924_v24  ;;  %v143_v20 = vmul.f32 %v1066_v10, %v1066_v10 }
  0x12   :  { %1862 = vst [vmem:[#allocation33_spill] sm:$0xff] %v1149_v46  ;;  %1863 = vst [vmem:[#allocation34_spill] sm:$0xff] %v1157_v49  ;;  %v176_v17 = vsel %vm172_vm0, %v142_v7, 0.0  ;;  %v1243_v14 = vunpack.c.l.bf16 %v925_v47  ;;  %v150_v4 = vmul.f32 %v1092_v21, %v1092_v21  ;;  %v199_v12 = vsel %vm172_vm0, %v148_v25, 0.0 }
  0x13   :  { %1864 = vst [vmem:[#allocation35_spill] sm:$0xff] %v1159_v50  ;;  %1865 = vst [vmem:[#allocation36_spill] sm:$0xff] %v1168_v54  ;;  %v200_v13 = vsel %vm172_vm0, %v149_v30, 0.0  ;;  %v1252_v24 = vunpack.c.h.bf16 %v925_v47  ;;  %v152_v15 = vmul.f32 %v1096_v23, %v1096_v23  ;;  %v153_v7 = vmul.f32 %v1104_v26, %v1104_v26  ;;  %v928_v47 = vld [vmem:[%s1789_s1 + $0x60] sm:$0xff]  }
  0x14   :  { %1866 = vst [vmem:[#allocation37_spill] sm:$0xff] %v1176_v58  ;;  %1867 = vst [vmem:[#allocation38_spill] sm:$0xff] %v1178_v59  ;;  %v188_v11 = vadd.f32 %v187_v53, %v186_v52  ;;  %v1258_v10 = vunpack.c.l.bf16 %v926_v2  ;;  %v147_v9 = vmul.f32 %v1080_v16, %v1080_v16  ;;  %v177_v8 = vadd.f32 %v176_v17, %v175_v51  ;;  %v929_v52 = vld [vmem:[%s1789_s1 + $0x68] sm:$0xff]  }
  0x15   :  { %1868 = vst [vmem:[#allocation39_spill] sm:$0xff] %v1180_v60  ;;  %1869 = vst [vmem:[#allocation40_spill] sm:$0xff] %v1182_v61  ;;  %v189_v21 = vsel %vm172_vm0, %v146_v48, 0.0  ;;  %v1263_v25 = vunpack.c.h.bf16 %v926_v2  ;;  %v1265_v30 = vunpack.c.l.bf16 %v927_v3  ;;  %v178_v23 = vsel %vm172_vm0, %v143_v20, 0.0 }
  0x16   :  { %1870 = vst [vmem:[#allocation41_spill] sm:$0xff] %v1187_v63  ;;  %1871 = vst [vmem:[#allocation42_spill] sm:$0xff] %v1189_v0  ;;  %v201_v26 = vadd.f32 %v200_v13, %v199_v12  ;;  %v151_v17 = vmul.f32 %v1094_v22, %v1094_v22  ;;  %v154_v48 = vmul.f32 %v1106_v27, %v1106_v27  ;;  %v202_v53 = vsel %vm172_vm0, %v150_v4, 0.0 }
  0x17   :  { %1872 = vst [vmem:[#allocation43_spill] sm:$0xff] %v1201_v6  ;;  %1873 = vst [vmem:[#allocation44_spill] sm:$0xff] %v1207_v18  ;;  %v156_v51 = vmul.f32 %v1110_v29, %v1110_v29  ;;  %v157_v2 = vmul.f32 %v1118_v32, %v1118_v32  ;;  %v190_v20 = vadd.f32 %v189_v21, %v188_v11  ;;  %v212_v12 = vsel %vm172_vm0, %v152_v15, 0.0  ;;  %v930_v11 = vld [vmem:[%s1789_s1 + $0x70] sm:$0xff]   ;;  %v931_v15 = vld [vmem:[%s1789_s1 + $0x78] sm:$0xff]   ;;  %s1023_s1 = smov [#allocation2]  }
  0x18   :  { %1874 = vst [vmem:[#allocation45_spill] sm:$0xff] %v1265_v30  ;;  %v213_v13 = vsel %vm172_vm0, %v153_v7, 0.0  ;;  %v1285_v16 = vunpack.c.h.bf16 %v927_v3  ;;  %v1287_v5 = vunpack.c.l.bf16 %v928_v47  ;;  %v179_v22 = vadd.f32 %v178_v23, %v177_v8  ;;  %s766_s16 = sshll.u32 %s1023_s1, 4  ;;  %s767_s16 = int_to_ptr.vmem [resolvable:$true] %s766_s16 }
  0x19   :  { %v191_v27 = vsel %vm172_vm0, %v147_v9, 0.0  ;;  %v1290_v30 = vunpack.c.h.bf16 %v928_v47  ;;  %v1292_v29 = vunpack.c.l.bf16 %v929_v52  ;;  %v1294_v4 = vunpack.c.h.bf16 %v929_v52  ;;  %s999_s17 = scalar_lea.vmem %s767_s16, 16  ;;  %s1003_s18 = scalar_lea.vmem %s767_s16, 32 }
  0x1a   :  { %v203_v21 = vadd.f32 %v202_v53, %v201_v26  ;;  %v155_v8 = vmul.f32 %v1108_v28, %v1108_v28  ;;  %v158_v9 = vmul.f32 %v1120_v33, %v1120_v33  ;;  %v204_v23 = vsel %vm172_vm0, %v151_v17, 0.0  ;;  %p1000_p0 = scmp.ne.s32.totalorder %s767_s16, %s999_s17  ;;  %p1004_p1 = scmp.lt.s32.totalorder %s767_s16, %s767_s16 }
  0x1b   :  { %1875 = vst [vmem:[#allocation46_spill] sm:$0xff] %v1292_v29  ;;  %1876 = vst [vmem:[#allocation47_spill] sm:$0xff] %v1294_v4  ;;  %v214_v3 = vadd.f32 %v213_v13, %v212_v12  ;;  %v192_v7 = vadd.f32 %v191_v27, %v190_v20  ;;  %v215_v47 = vsel %vm172_vm0, %v154_v48, 0.0  ;;  %v225_v52 = vsel %vm172_vm0, %v156_v51, 0.0  ;;  %p1005_p2 = scmp.lt.s32.totalorder %s1003_s18, %s999_s17 }
  0x1c   :  { %v226_v32 = vsel %vm172_vm0, %v157_v2, 0.0  ;;  %v1310_v4 = vunpack.c.l.bf16 %v930_v11  ;;  %v1312_v29 = vunpack.c.h.bf16 %v930_v11  ;;  %v1314_v26 = vunpack.c.l.bf16 %v931_v15 }
  0x1d   :  { %v180_v53 = vrot.slane %v179_v22, 4  ;;  %v1316_v28 = vunpack.c.h.bf16 %v931_v15  ;;  %v160_v17 = vmul.f32 %v1124_v35, %v1124_v35  ;;  %v161_v27 = vmul.f32 %v1129_v37, %v1129_v37  ;;  %p1006_p3 = por %p1005_p2, %p1004_p1 }
  0x1e   :  { %v205_v48 = vadd.f32 %v204_v23, %v203_v21  ;;  %v159_v51 = vmul.f32 %v1122_v34, %v1122_v34  ;;  %v162_v2 = vmul.f32 %v1131_v38, %v1131_v38  ;;  %v216_v20 = vadd.f32 %v215_v47, %v214_v3 }
  0x1f   :  { %v227_v12 = vadd.f32 %v226_v32, %v225_v52  ;;  %v163_v13 = vmul.f32 %v1133_v39, %v1133_v39  ;;  %v193_v11 = vrot.slane %v192_v7, 4  ;;  %v217_v15 = vsel %vm172_vm0, %v155_v8, 0.0  ;;  %p1007_p4 = pnand %p1006_p3, %p1000_p0 }
  0x20   :  { %v228_v35 = vsel %vm172_vm0, %v158_v9, 0.0  ;;  %v164_v37 = vmul.f32 %v1135_v40, %v1135_v40  ;;  %v165_v21 = vmul.f32 %v1143_v43, %v1143_v43  ;;  %v166_v23 = vmul.f32 %v1145_v44, %v1145_v44 }
  0x21   :  { %v181_v38 = vadd.f32 %v180_v53, %v179_v22  ;;  %v1338_v32 = vmul.f32 %v1147_v45, %v1147_v45  ;;  %v206_v3 = vrot.slane %v205_v48, 4  ;;  %v238_v47 = vsel %vm172_vm0, %v160_v17, 0.0 }
  0x22   :  { %v239_v8 = vsel %vm172_vm0, %v161_v27, 0.0  ;;  %v1344_v9 = vmul.f32 %v1149_v46, %v1149_v46  ;;  %v1348_v52 = vmul.f32 %v1157_v49, %v1157_v49  ;;  %v218_v43 = vadd.f32 %v217_v15, %v216_v20 }
  0x23   :  { %v229_v44 = vadd.f32 %v228_v35, %v227_v12  ;;  %v1352_v22 = vmul.f32 %v1159_v50, %v1159_v50  ;;  %v1356_v53 = vmul.f32 %v1168_v54, %v1168_v54  ;;  %v194_v17 = vadd.f32 %v193_v11, %v192_v7 }
  0x24   :  { %v230_v27 = vsel %vm172_vm0, %v159_v51, 0.0  ;;  %v182_v45 = vrot.slane %v181_v38, 2  ;;  %v240_v46 = vadd.f32 %v239_v8, %v238_v47  ;;  %v241_v40 = vsel %vm172_vm0, %v162_v2, 0.0 }
  0x25   :  { %v243_v49 = vsel %vm172_vm0, %v163_v13, 0.0  ;;  %v207_v39 = vadd.f32 %v206_v3, %v205_v48  ;;  %v349_v35 = vmul.f32 %v1170_v55, %v1170_v55  ;;  %v350_v20 = vmul.f32 %v1172_v56, %v1172_v56 }
  0x26   :  { %v351_v12 = vmul.f32 %v1174_v57, %v1174_v57  ;;  %v219_v15 = vrot.slane %v218_v43, 4  ;;  %v231_v7 = vadd.f32 %v230_v27, %v229_v44  ;;  %v251_v51 = vsel %vm172_vm0, %v164_v37, 0.0 }
  0x27   :  { %v353_v11 = vmul.f32 %v1178_v59, %v1178_v59  ;;  %v252_v2 = vsel %vm172_vm0, %v165_v21, 0.0  ;;  %v352_v48 = vmul.f32 %v1176_v58, %v1176_v58  ;;  %v354_v13 = vmul.f32 %v1180_v60, %v1180_v60 }
  0x28   :  { %v355_v3 = vmul.f32 %v1182_v61, %v1182_v61  ;;  %v195_v47 = vrot.slane %v194_v17, 2  ;;  %v356_v44 = vmul.f32 %v1187_v63, %v1187_v63  ;;  %v357_v37 = vmul.f32 %v1189_v0, %v1189_v0 }
  0x29   :  { %v358_v8 = vmul.f32 %v1201_v6, %v1201_v6  ;;  %v359_v21 = vmul.f32 %v1207_v18, %v1207_v18  ;;  %v381_v27 = vsel %vm172_vm0, %v349_v35, 0.0  ;;  %v382_v54 = vsel %vm172_vm0, %v350_v20, 0.0 }
  0x2a   :  { %v384_v50 = vsel %vm172_vm0, %v351_v12, 0.0  ;;  %v242_v34 = vadd.f32 %v241_v40, %v240_v46  ;;  %v253_v33 = vadd.f32 %v252_v2, %v251_v51  ;;  %v383_v61 = vadd.f32 %v382_v54, %v381_v27 }
  0x2b   :  { %v394_v63 = vsel %vm172_vm0, %v353_v11, 0.0  ;;  %v254_v60 = vsel %vm172_vm0, %v166_v23, 0.0  ;;  %v386_v0 = vsel %vm172_vm0, %v352_v48, 0.0  ;;  %v395_v6 = vsel %vm172_vm0, %v354_v13, 0.0 }
  0x2c   :  { %v397_v59 = vsel %vm172_vm0, %v355_v3, 0.0  ;;  %v385_v18 = vadd.f32 %v384_v50, %v383_v61  ;;  %v396_v58 = vadd.f32 %v395_v6, %v394_v63  ;;  %v407_v35 = vsel %vm172_vm0, %v357_v37, 0.0 }
  0x2d   :  { %v408_v20 = vsel %vm172_vm0, %v358_v8, 0.0  ;;  %v360_v40 = vmul.f32 %v1209_v19, %v1209_v19  ;;  %v399_v46 = vsel %vm172_vm0, %v356_v44, 0.0  ;;  %v410_v23 = vsel %vm172_vm0, %v359_v21, 0.0 }
  0x2e   :  { %v409_v54 = vadd.f32 %v408_v20, %v407_v35  ;;  %v361_v12 = vmul.f32 %v1218_v31, %v1218_v31  ;;  %v362_v51 = vmul.f32 %v1220_v36, %v1220_v36  ;;  %v387_v50 = vadd.f32 %v386_v0, %v385_v18 }
  0x2f   :  { %v398_v61 = vadd.f32 %v397_v59, %v396_v58  ;;  %v183_v63 = vadd.f32 %v182_v45, %v181_v38  ;;  %v208_v6 = vrot.slane %v207_v39, 2  ;;  %v220_v11 = vadd.f32 %v219_v15, %v218_v43 }
  0x30   :  { %v232_v2 = vrot.slane %v231_v7, 4  ;;  %v196_v48 = vadd.f32 %v195_v47, %v194_v17  ;;  %v388_v13 = vrot.slane %v387_v50, 4  ;;  %v411_v37 = vadd.f32 %v410_v23, %v409_v54 }
  0x31   :  { %v400_v3 = vadd.f32 %v399_v46, %v398_v61  ;;  %v244_v44 = vadd.f32 %v243_v49, %v242_v34  ;;  %v255_v8 = vadd.f32 %v254_v60, %v253_v33  ;;  %v363_v21 = vmul.f32 %v1222_v41, %v1222_v41 }
  0x32   :  { %v412_v27 = vsel %vm172_vm0, %v360_v40, 0.0  ;;  %v389_v35 = vadd.f32 %v388_v13, %v387_v50  ;;  %v420_v0 = vsel %vm172_vm0, %v361_v12, 0.0  ;;  %v421_v38 = vsel %vm172_vm0, %v362_v51, 0.0 }
  0x33   :  { %v401_v20 = vrot.slane %v400_v3, 4  ;;  %v184_v45 = vrot.slane %v183_v63, 1  ;;  %v209_v43 = vadd.f32 %v208_v6, %v207_v39  ;;  %v221_v58 = vrot.slane %v220_v11, 2 }
  0x34   :  { %v256_v59 = vsel %vm172_vm0, %v1338_v32, 0.0  ;;  %v233_v18 = vadd.f32 %v232_v2, %v231_v7  ;;  %v365_v33 = vmul.f32 %v1233_v62, %v1233_v62  ;;  %v366_v34 = vmul.f32 %v1235_v1, %v1235_v1 }
  0x35   :  { %v413_v49 = vadd.f32 %v412_v27, %v411_v37  ;;  %v197_v60 = vrot.slane %v196_v48, 1  ;;  %v390_v17 = vrot.slane %v389_v35, 2  ;;  %v402_v15 = vadd.f32 %v401_v20, %v400_v3 }
  0x36   :  { %v422_v47 = vadd.f32 %v421_v38, %v420_v0  ;;  %v245_v40 = vrot.slane %v244_v44, 4  ;;  %v257_v46 = vadd.f32 %v256_v59, %v255_v8  ;;  %v364_v39 = vmul.f32 %v1224_v42, %v1224_v42 }
  0x37   :  { %v423_v54 = vsel %vm172_vm0, %v363_v21, 0.0  ;;  %v1417_v32 = vadd.f32 %v184_v45, %v183_v63  ;;  %v210_v7 = vrot.slane %v209_v43, 1  ;;  %v264_v23 = vsel %vm172_vm0, %v1344_v9, 0.0 }
  0x38   :  { %v265_v12 = vsel %vm172_vm0, %v1348_v52, 0.0  ;;  %v367_v51 = vmul.f32 %v1243_v14, %v1243_v14  ;;  %v414_v50 = vrot.slane %v413_v49, 4  ;;  %v433_v61 = vsel %vm172_vm0, %v365_v33, 0.0 }
  0x39   :  { %v434_v6 = vsel %vm172_vm0, %v366_v34, 0.0  ;;  %v222_v2 = vadd.f32 %v221_v58, %v220_v11  ;;  %v391_v13 = vadd.f32 %v390_v17, %v389_v35  ;;  %v403_v3 = vrot.slane %v402_v15, 2 }
  0x3a   :  { %v424_v63 = vadd.f32 %v423_v54, %v422_v47  ;;  %v246_v37 = vadd.f32 %v245_v40, %v244_v44  ;;  %v258_v8 = vrot.slane %v257_v46, 4  ;;  %v266_v21 = vadd.f32 %v265_v12, %v264_v23  ;;  %v1877_v40 = vld [vmem:[#allocation45_spill] sm:$0xff] }
  0x3b   :  { %v425_v9 = vsel %vm172_vm0, %v364_v39, 0.0  ;;  %v267_v52 = vsel %vm172_vm0, %v1352_v22, 0.0  ;;  %v369_v27 = vmul.f32 %v1258_v10, %v1258_v10  ;;  %v370_v20 = vmul.f32 %v1263_v25, %v1263_v25 }
  0x3c   :  { %v435_v0 = vadd.f32 %v434_v6, %v433_v61  ;;  %v234_v38 = vrot.slane %v233_v18, 2  ;;  %v368_v11 = vmul.f32 %v1252_v24, %v1252_v24  ;;  %v415_v35 = vadd.f32 %v414_v50, %v413_v49 }
  0x3d   :  { %v436_v44 = vsel %vm172_vm0, %v367_v51, 0.0  ;;  %v1437_v45 = vadd.f32 %v197_v60, %v196_v48  ;;  %v392_v58 = vrot.slane %v391_v13, 1  ;;  %v404_v59 = vadd.f32 %v403_v3, %v402_v15 }
  0x3e   :  { %v426_v33 = vadd.f32 %v425_v9, %v424_v63  ;;  %v1439_v22 = vadd.f32 %v210_v7, %v209_v43  ;;  %v247_v34 = vrot.slane %v246_v37, 2  ;;  %v259_v17 = vadd.f32 %v258_v8, %v257_v46 }
  0x3f   :  { %v268_v47 = vadd.f32 %v267_v52, %v266_v21  ;;  %v371_v39 = vmul.f32 %v1877_v40, %v1877_v40  ;;  %v437_v54 = vadd.f32 %v436_v44, %v435_v0  ;;  %v446_v23 = vsel %vm172_vm0, %v369_v27, 0.0 }
  0x40   :  { %v447_v49 = vsel %vm172_vm0, %v370_v20, 0.0  ;;  %v235_v12 = vadd.f32 %v234_v38, %v233_v18  ;;  %v269_v48 = vsel %vm172_vm0, %v1356_v53, 0.0  ;;  %v416_v60 = vrot.slane %v415_v35, 2 }
  0x41   :  { %v438_v15 = vsel %vm172_vm0, %v368_v11, 0.0  ;;  %935 = vrsqrt.f32 %v1417_v32  ;;  %v1449_v43 = vadd.f32 %v392_v58, %v391_v13  ;;  %v405_v46 = vrot.slane %v404_v59, 1 }
  0x42   :  { %v427_v7 = vrot.slane %v426_v33, 4  ;;  %v223_v51 = vrot.slane %v222_v2, 1  ;;  %v248_v50 = vadd.f32 %v247_v34, %v246_v37  ;;  %v260_v61 = vrot.slane %v259_v17, 2 }
  0x43   :  { %v448_v6 = vadd.f32 %v447_v49, %v446_v23  ;;  %v270_v3 = vadd.f32 %v269_v48, %v268_v47  ;;  %v372_v18 = vmul.f32 %v1285_v16, %v1285_v16  ;;  %v439_v63 = vadd.f32 %v438_v15, %v437_v54  ;;  %v1879_v15 = vld [vmem:[#allocation47_spill] sm:$0xff] }
  0x44   :  { %v449_v53 = vsel %vm172_vm0, %v371_v39, 0.0  ;;  %937 = vrsqrt.f32 %v1437_v45  ;;  %v373_v8 = vmul.f32 %v1287_v5, %v1287_v5  ;;  %v374_v13 = vmul.f32 %v1290_v30, %v1290_v30 }
  0x45   :  { %v417_v21 = vadd.f32 %v416_v60, %v415_v35  ;;  %v236_v9 = vrot.slane %v235_v12, 1  ;;  %v1459_v37 = vadd.f32 %v405_v46, %v404_v59  ;;  %v428_v52 = vadd.f32 %v427_v7, %v426_v33  ;;  %v1878_v35 = vld [vmem:[#allocation46_spill] sm:$0xff] }
  0x46   :  { %939 = vrsqrt.f32 %v1449_v43  ;;  %v1462_v27 = vadd.f32 %v223_v51, %v222_v2  ;;  %v249_v20 = vrot.slane %v248_v50, 1  ;;  %v261_v0 = vadd.f32 %v260_v61, %v259_v17 }
  0x47   :  { %v450_v38 = vadd.f32 %v449_v53, %v448_v6  ;;  %v271_v11 = vrot.slane %v270_v3, 4  ;;  %vm279_vm1 = vcmp.eq.f32.partialorder %v1417_v32, inf  ;;  %941 = vrsqrt.f32 %v1439_v22 }
  0x48   :  { %v440_v44 = vrot.slane %v439_v63, 4  ;;  %v451_v58 = vsel %vm172_vm0, %v372_v18, 0.0  ;;  %v375_v59 = vmul.f32 %v1878_v35, %v1878_v35  ;;  %v418_v34 = vrot.slane %v417_v21, 1 }
  0x49   :  { %v459_v33 = vsel %vm172_vm0, %v373_v8, 0.0  ;;  %v460_v2 = vsel %vm172_vm0, %v374_v13, 0.0  ;;  %v1471_v47 = vadd.f32 %v236_v9, %v235_v12  ;;  %v282_v17 = vand.u32 2147483648, %v1417_v32 }
  0x4a   :  { %v429_v39 = vrot.slane %v428_v52, 2  ;;  %943 = vrsqrt.f32 %v1459_v37  ;;  %v1475_v54 = vadd.f32 %v249_v20, %v248_v50  ;;  %v262_v23 = vrot.slane %v261_v0, 1 }
  0x4b   :  { %vm281_vm2 = vcmp.eq.f32.partialorder %v1417_v32, 0.0  ;;  %945 = vrsqrt.f32 %v1462_v27  ;;  %v452_v49 = vadd.f32 %v451_v58, %v450_v38  ;;  %v936_v48 = vpop.eup %935  ;;  %v272_v60 = vadd.f32 %v271_v11, %v270_v3 }
  0x4c   :  { %v376_v46 = vmul.f32 %v1879_v15, %v1879_v15  ;;  %v441_v12 = vadd.f32 %v440_v44, %v439_v63  ;;  %v461_v7 = vadd.f32 %v460_v2, %v459_v33  ;;  %v377_v51 = vmul.f32 %v1310_v4, %v1310_v4 }
  0x4d   :  { %v378_v50 = vmul.f32 %v1312_v29, %v1312_v29  ;;  %v1485_v61 = vadd.f32 %v418_v34, %v417_v21  ;;  %v462_v6 = vsel %vm172_vm0, %v375_v59, 0.0  ;;  %vm286_vm3 = vcmp.eq.f32.partialorder %v1437_v45, inf }
  0x4e   :  { %v289_v18 = vand.u32 2147483648, %v1437_v45  ;;  %947 = vrsqrt.f32 %v1471_v47  ;;  %v430_v3 = vadd.f32 %v429_v39, %v428_v52  ;;  %v938_v53 = vpop.eup %937  ;;  %v1491_v63 = vadd.f32 %v262_v23, %v261_v0 }
  0x4f   :  { %v278_v8 = vmul.f32 %v936_v48, %v1417_v32  ;;  %949 = vrsqrt.f32 %v1475_v54  ;;  %v453_v13 = vrot.slane %v452_v49, 4  ;;  %v273_v21 = vrot.slane %v272_v60, 2 }
  0x50   :  { %v940_v9 = vpop.eup %939  ;;  %vm288_vm4 = vcmp.eq.f32.partialorder %v1437_v45, 0.0  ;;  %v379_v20 = vmul.f32 %v1314_v26, %v1314_v26  ;;  %v442_v38 = vrot.slane %v441_v12, 2  ;;  %v463_v11 = vadd.f32 %v462_v6, %v461_v7 }
  0x51   :  { %v464_v44 = vsel %vm172_vm0, %v376_v46, 0.0  ;;  %v472_v52 = vsel %vm172_vm0, %v377_v51, 0.0  ;;  %v473_v0 = vsel %vm172_vm0, %v378_v50, 0.0  ;;  %951 = vrsqrt.f32 %v1485_v61  ;;  %v942_v58 = vpop.eup %941 }
  0x52   :  { %v285_v59 = vmul.f32 %v938_v53, %v1437_v45  ;;  %vm293_vm5 = vcmp.eq.f32.partialorder %v1439_v22, inf  ;;  %v296_v34 = vand.u32 2147483648, %v1439_v22  ;;  %v431_v2 = vrot.slane %v430_v3, 1 }
  0x53   :  { %v280_v39 = vsel %vm279_vm1, %v1417_v32, %v278_v8  ;;  %vm300_vm6 = vcmp.eq.f32.partialorder %v1462_v27, inf  ;;  %v454_v48 = vadd.f32 %v453_v13, %v452_v49  ;;  %v486_v46 = vmul.f32 %v940_v9, %v1449_v43 }
  0x54   :  { %v944_v7 = vpop.eup %943  ;;  %vm307_vm7 = vcmp.eq.f32.partialorder %v1471_v47, inf  ;;  %v443_v51 = vadd.f32 %v442_v38, %v441_v12  ;;  %v465_v50 = vadd.f32 %v464_v44, %v463_v11  ;;  %v474_v6 = vadd.f32 %v473_v0, %v472_v52 }
  0x55   :  { %vm487_vm8 = vcmp.eq.f32.partialorder %v1449_v43, inf  ;;  %v946_v53 = vpop.eup %945  ;;  %v274_v33 = vadd.f32 %v273_v21, %v272_v60  ;;  %953 = vrsqrt.f32 %v1491_v63  ;;  %v380_v8 = vmul.f32 %v1316_v28, %v1316_v28 }
  0x56   :  { %v475_v23 = vsel %vm172_vm0, %v379_v20, 0.0  ;;  %v283_v49 = vsel %vm281_vm2, %v282_v17, %v280_v39  ;;  %v287_v12 = vsel %vm286_vm3, %v1437_v45, %v285_v59  ;;  %v1523_v13 = vadd.f32 %v431_v2, %v430_v3 }
  0x57   :  { %v490_v9 = vand.u32 2147483648, %v1449_v43  ;;  %vm295_vm9 = vcmp.eq.f32.partialorder %v1439_v22, 0.0  ;;  %v455_v60 = vrot.slane %v454_v48, 2  ;;  %v488_v21 = vsel %vm487_vm8, %v1449_v43, %v486_v46 }
  0x58   :  { %vm489_vm10 = vcmp.eq.f32.partialorder %v1449_v43, 0.0  ;;  %v493_v20 = vmul.f32 %v944_v7, %v1459_v37  ;;  %v948_v38 = vpop.eup %947  ;;  %vm302_vm11 = vcmp.eq.f32.partialorder %v1462_v27, 0.0  ;;  %vm309_vm12 = vcmp.eq.f32.partialorder %v1471_v47, 0.0 }
  0x59   :  { %v444_v32 = vrot.slane %v443_v51, 1  ;;  %v466_v17 = vrot.slane %v465_v50, 4  ;;  %v476_v3 = vadd.f32 %v475_v23, %v474_v6  ;;  %vm494_vm13 = vcmp.eq.f32.partialorder %v1459_v37, inf  ;;  %v950_v11 = vpop.eup %949 }
  0x5a   :  { %v275_v44 = vrot.slane %v274_v33, 1  ;;  %v292_v52 = vmul.f32 %v942_v58, %v1439_v22  ;;  %v333_v0 = vadd.f32 1e-10, %v283_v49  ;;  %v477_v59 = vsel %vm172_vm0, %v380_v8, 0.0 }
  0x5b   :  { %v299_v43 = vmul.f32 %v946_v53, %v1462_v27  ;;  %v491_v2 = vsel %vm489_vm10, %v490_v9, %v488_v21  ;;  %v497_v39 = vand.u32 2147483648, %v1459_v37  ;;  %955 = vrsqrt.f32 %v1523_v13  ;;  %v952_v46 = vpop.eup %951 }
  0x5c   :  { %v290_v23 = vsel %vm288_vm4, %v289_v18, %v287_v12  ;;  %v306_v7 = vmul.f32 %v948_v38, %v1471_v47  ;;  %v495_v58 = vsel %vm494_vm13, %v1459_v37, %v493_v20  ;;  %vm496_vm14 = vcmp.eq.f32.partialorder %v1459_v37, 0.0 }
  0x5d   :  { %v1545_v6 = vadd.f32 %v444_v32, %v443_v51  ;;  %v456_v53 = vadd.f32 %v455_v60, %v454_v48  ;;  %v467_v8 = vadd.f32 %v466_v17, %v465_v50  ;;  %v478_v49 = vadd.f32 %v477_v59, %v476_v3 }
  0x5e   :  { %v1547_v9 = vadd.f32 %v275_v44, %v274_v33  ;;  %v294_v21 = vsel %vm293_vm5, %v1439_v22, %v292_v52  ;;  %vm314_vm15 = vcmp.eq.f32.partialorder %v1475_v54, inf  ;;  %v541_v45 = vadd.f32 1e-10, %v491_v2 }
  0x5f   :  { %v301_v18 = vsel %vm300_vm6, %v1462_v27, %v299_v43  ;;  %v313_v37 = vmul.f32 %v950_v11, %v1475_v54  ;;  %v498_v51 = vsel %vm496_vm14, %v497_v39, %v495_v58  ;;  %v500_v48 = vmul.f32 %v952_v46, %v1485_v61  ;;  %v954_v50 = vpop.eup %953 }
  0x60   :  { %v308_v33 = vsel %vm307_vm7, %v1471_v47, %v306_v7  ;;  %v334_v12 = vadd.f32 1e-10, %v290_v23  ;;  %957 = vrcp.f32 %v333_v0  ;;  %vm501_vm1 = vcmp.eq.f32.partialorder %v1485_v61, inf }
  0x61   :  { %v457_v60 = vrot.slane %v456_v53, 1  ;;  %v468_v20 = vrot.slane %v467_v8, 2  ;;  %v479_v38 = vrot.slane %v478_v49, 4  ;;  %959 = vrsqrt.f32 %v1545_v6 }
  0x62   :  { %v317_v32 = vand.u32 2147483648, %v1475_v54  ;;  %v504_v17 = vand.u32 2147483648, %v1485_v61  ;;  %v542_v3 = vadd.f32 1e-10, %v498_v51  ;;  %961 = vrcp.f32 %v541_v45 }
  0x63   :  { %v297_v11 = vsel %vm295_vm9, %v296_v34, %v294_v21  ;;  %963 = vrsqrt.f32 %v1547_v9  ;;  %v502_v44 = vsel %vm501_vm1, %v1485_v61, %v500_v48  ;;  %vm503_vm2 = vcmp.eq.f32.partialorder %v1485_v61, 0.0 }
  0x64   :  { %v1880_v52 = vand.u32 2147483648, %v1462_v27  ;;  %v1881_v59 = vand.u32 2147483648, %v1471_v47  ;;  %v315_v22 = vsel %vm314_vm15, %v1475_v54, %v313_v37  ;;  %vm316_vm3 = vcmp.eq.f32.partialorder %v1475_v54, 0.0 }
  0x65   :  { %v956_v34 = vpop.eup %955  ;;  %965 = vrcp.f32 %v334_v12  ;;  %v1584_v2 = vadd.f32 %v457_v60, %v456_v53  ;;  %v469_v61 = vadd.f32 %v468_v20, %v467_v8  ;;  %v480_v39 = vadd.f32 %v479_v38, %v478_v49 }
  0x66   :  { %v304_v0 = vsel %vm302_vm11, %v1880_v52, %v301_v18  ;;  %v311_v43 = vsel %vm309_vm12, %v1881_v59, %v308_v33  ;;  %v335_v46 = vadd.f32 1e-10, %v297_v11  ;;  %v505_v27 = vsel %vm503_vm2, %v504_v17, %v502_v44  ;;  %v1882_v17 = vld [vmem:[#allocation5_spill] sm:$0xff]  ;;  %v1883_v11 = vld [vmem:[#allocation6_spill] sm:$0xff]  ;;  %v1884_v52 = vld [vmem:[#allocation7_spill] sm:$0xff] }
  0x67   :  { %967 = vrcp.f32 %v542_v3  ;;  %v318_v23 = vsel %vm316_vm3, %v317_v32, %v315_v22  ;;  %vm321_vm4 = vcmp.eq.f32.partialorder %v1491_v63, inf  ;;  %v336_v47 = vadd.f32 1e-10, %v304_v0 }
  0x68   :  { %v320_v7 = vmul.f32 %v954_v50, %v1491_v63  ;;  %v337_v58 = vadd.f32 1e-10, %v311_v43  ;;  %v507_v21 = vmul.f32 %v956_v34, %v1523_v13  ;;  %vm508_vm5 = vcmp.eq.f32.partialorder %v1523_v13, inf }
  0x69   :  { %v470_v54 = vrot.slane %v469_v61, 1  ;;  %v481_v45 = vrot.slane %v480_v39, 2  ;;  %969 = vrsqrt.f32 %v1584_v2  ;;  %v543_v53 = vadd.f32 1e-10, %v505_v27 }
  0x6a   :  { %v958_v8 = vpop.eup %957  ;;  %vm323_vm6 = vcmp.eq.f32.partialorder %v1491_v63, 0.0  ;;  %v324_v49 = vand.u32 2147483648, %v1491_v63  ;;  %vm328_vm7 = vcmp.eq.f32.partialorder %v1547_v9, inf  ;;  %971 = vrcp.f32 %v335_v46 }
  0x6b   :  { %v960_v18 = vpop.eup %959  ;;  %v331_v37 = vand.u32 2147483648, %v1547_v9  ;;  %v338_v51 = vadd.f32 1e-10, %v318_v23  ;;  %973 = vrcp.f32 %v336_v47  ;;  %v511_v48 = vand.u32 2147483648, %v1523_v13  ;;  %v1885_v23 = vld [vmem:[#allocation8_spill] sm:$0xff] }
  0x6c   :  { %v962_v50 = vpop.eup %961  ;;  %v322_v33 = vsel %vm321_vm4, %v1491_v63, %v320_v7  ;;  %975 = vrcp.f32 %v337_v58  ;;  %v509_v12 = vsel %vm508_vm5, %v1523_v13, %v507_v21  ;;  %vm510_vm8 = vcmp.eq.f32.partialorder %v1523_v13, 0.0  ;;  %v1886_v7 = vld [vmem:[#allocation37_spill] sm:$0xff] }
  0x6d   :  { %v964_v60 = vpop.eup %963  ;;  %v1603_v20 = vadd.f32 %v470_v54, %v469_v61  ;;  %v482_v38 = vadd.f32 %v481_v45, %v480_v39  ;;  %vm515_vm9 = vcmp.eq.f32.partialorder %v1545_v6, inf  ;;  %977 = vrcp.f32 %v543_v53  ;;  %v1887_v58 = vld [vmem:[#allocation9_spill] sm:$0xff]  ;;  %v1888_v45 = vld [vmem:[#allocation38_spill] sm:$0xff] }
  0x6e   :  { %v514_v32 = vmul.f32 %v960_v18, %v1545_v6  ;;  %v557_v3 = vmul.f32 %v958_v8, %v1882_v17  ;;  %v558_v44 = vmul.f32 %v958_v8, %v1883_v11  ;;  %v559_v0 = vmul.f32 %v958_v8, %v1884_v52  ;;  %v1890_v17 = vld [vmem:[#allocation11_spill] sm:$0xff] }
  0x6f   :  { %v966_v59 = vpop.eup %965  ;;  %v512_v43 = vsel %vm510_vm8, %v511_v48, %v509_v12  ;;  %v589_v22 = vmul.f32 %v962_v50, %v1170_v55  ;;  %v590_v13 = vmul.f32 %v962_v50, %v1172_v56  ;;  %v591_v34 = vmul.f32 %v962_v50, %v1174_v57  ;;  %v1891_v11 = vld [vmem:[#allocation39_spill] sm:$0xff] }
  0x70   :  { %v325_v39 = vsel %vm323_vm6, %v324_v49, %v322_v33  ;;  %v327_v46 = vmul.f32 %v964_v60, %v1547_v9  ;;  %979 = vrcp.f32 %v338_v51  ;;  %vm517_vm10 = vcmp.eq.f32.partialorder %v1545_v6, 0.0  ;;  %v1889_v33 = vld [vmem:[#allocation10_spill] sm:$0xff] }
  0x71   :  { %v968_v61 = vpop.eup %967  ;;  %v483_v27 = vrot.slane %v482_v38, 1  ;;  %981 = vrsqrt.f32 %v1603_v20  ;;  %v560_v47 = vmul.f32 %v958_v8, %v1885_v23  ;;  %v592_v55 = vmul.f32 %v962_v50, %v1886_v7 }
  0x72   :  { %v516_v56 = vsel %vm515_vm9, %v1545_v6, %v514_v32  ;;  %v518_v57 = vand.u32 2147483648, %v1545_v6  ;;  %v544_v63 = vadd.f32 1e-10, %v512_v43  ;;  %v561_v21 = vmul.f32 %v966_v59, %v1887_v58  ;;  %v1894_v58 = vld [vmem:[#allocation13_spill] sm:$0xff] }
  0x73   :  { %v970_v54 = vpop.eup %969  ;;  %v593_v53 = vmul.f32 %v968_v61, %v1888_v45  ;;  %v621_v49 = vsub.f32 %v557_v3, %v589_v22  ;;  %v622_v18 = vsub.f32 %v558_v44, %v590_v13  ;;  %v623_v51 = vsub.f32 %v559_v0, %v591_v34  ;;  %v1892_v13 = vld [vmem:[#allocation40_spill] sm:$0xff]  ;;  %v1895_v6 = vld [vmem:[#allocation41_spill] sm:$0xff] }
  0x74   :  { %v972_v48 = vpop.eup %971  ;;  %v1629_v8 = vsel %vm328_vm7, %v1547_v9, %v327_v46  ;;  %v1631_v50 = vadd.f32 1e-10, %v325_v39  ;;  %vm522_vm11 = vcmp.eq.f32.partialorder %v1584_v2, inf  ;;  %v562_v12 = vmul.f32 %v966_v59, %v1889_v33 }
  0x75   :  { %v1635_v60 = vpop.eup %973  ;;  %v1637_v32 = vadd.f32 %v483_v27, %v482_v38  ;;  %v563_v3 = vmul.f32 %v966_v59, %v1890_v17  ;;  %v594_v44 = vmul.f32 %v968_v61, %v1891_v11  ;;  %v624_v52 = vsub.f32 %v560_v47, %v592_v55  ;;  %v1893_v47 = vld [vmem:[#allocation12_spill] sm:$0xff] }
  0x76   :  { %v1641_v0 = vpop.eup %975  ;;  %v519_v43 = vsel %vm517_vm10, %v518_v57, %v516_v56  ;;  %v521_v22 = vmul.f32 %v970_v54, %v1584_v2  ;;  %983 = vrcp.f32 %v544_v63  ;;  %v595_v34 = vmul.f32 %v968_v61, %v1892_v13 }
  0x77   :  { %v978_v39 = vpop.eup %977  ;;  %v625_v46 = vsub.f32 %v561_v21, %v593_v53  ;;  %v653_v23 = vand.u32 2147483647, %v621_v49  ;;  %v654_v38 = vand.u32 2147483647, %v622_v18  ;;  %v655_v27 = vand.u32 2147483647, %v623_v51 }
  0x78   :  { %vm524_vm12 = vcmp.eq.f32.partialorder %v1584_v2, 0.0  ;;  %v525_v7 = vand.u32 2147483648, %v1584_v2  ;;  %v564_v55 = vmul.f32 %v966_v59, %v1893_v47  ;;  %v565_v45 = vmul.f32 %v972_v48, %v1894_v58  ;;  %v1896_v49 = vld [vmem:[#allocation42_spill] sm:$0xff] }
  0x79   :  { %985 = vrsqrt.f32 %v1637_v32  ;;  %v596_v56 = vmul.f32 %v968_v61, %v1895_v6  ;;  %v626_v57 = vsub.f32 %v562_v12, %v594_v44  ;;  %v656_v63 = vand.u32 2147483647, %v624_v52  ;;  %v1897_v12 = vld [vmem:[#allocation14_spill] sm:$0xff]  ;;  %v1898_v52 = vld [vmem:[#allocation15_spill] sm:$0xff] }
  0x7a   :  { %v1653_v54 = vpop.eup %979  ;;  %v523_v21 = vsel %vm522_vm11, %v1584_v2, %v521_v22  ;;  %v545_v53 = vadd.f32 1e-10, %v519_v43  ;;  %v597_v18 = vmul.f32 %v978_v39, %v1896_v49  ;;  %v627_v51 = vsub.f32 %v563_v3, %v595_v34  ;;  %v1899_v22 = vld [vmem:[#allocation43_spill] sm:$0xff] }
  0x7b   :  { %v982_v33 = vpop.eup %981  ;;  %v657_v59 = vand.u32 2147483647, %v625_v46  ;;  %v685_v17 = vsel %vm172_vm0, %v653_v23, 0.0  ;;  %v686_v11 = vsel %vm172_vm0, %v654_v38, 0.0  ;;  %v688_v61 = vsel %vm172_vm0, %v655_v27, 0.0  ;;  %v1900_v38 = vld [vmem:[#allocation44_spill] sm:$0xff] }
  0x7c   :  { %vm529_vm13 = vcmp.eq.f32.partialorder %v1603_v20, inf  ;;  %v566_v44 = vmul.f32 %v972_v48, %v1897_v12  ;;  %v567_v13 = vmul.f32 %v972_v48, %v1898_v52  ;;  %v687_v47 = vadd.f32 %v686_v11, %v685_v17 }
  0x7d   :  { %v598_v43 = vmul.f32 %v978_v39, %v1899_v22  ;;  %v628_v58 = vsub.f32 %v564_v55, %v596_v56  ;;  %v658_v6 = vand.u32 2147483647, %v626_v57  ;;  %v690_v3 = vsel %vm172_vm0, %v656_v63, 0.0  ;;  %v1901_v56 = vld [vmem:[#allocation16_spill] sm:$0xff]  ;;  %v1904_v22 = vld [vmem:[#allocation19_spill] sm:$0xff] }
  0x7e   :  { %v526_v34 = vsel %vm524_vm12, %v525_v7, %v523_v21  ;;  %v528_v46 = vmul.f32 %v982_v33, %v1603_v20  ;;  %987 = vrcp.f32 %v545_v53  ;;  %v689_v23 = vadd.f32 %v688_v61, %v687_v47 }
  0x7f   :  { %v599_v27 = vmul.f32 %v978_v39, %v1900_v38  ;;  %v629_v49 = vsub.f32 %v565_v45, %v597_v18  ;;  %v659_v12 = vand.u32 2147483647, %v627_v51  ;;  %v692_v52 = vsel %vm172_vm0, %v657_v59, 0.0  ;;  %v1902_v51 = vld [vmem:[#allocation17_spill] sm:$0xff] }
  0x80   :  { %v984_v17 = vpop.eup %983  ;;  %vm531_vm14 = vcmp.eq.f32.partialorder %v1603_v20, 0.0  ;;  %v532_v55 = vand.u32 2147483648, %v1603_v20  ;;  %v568_v57 = vmul.f32 %v972_v48, %v1901_v56  ;;  %v691_v63 = vadd.f32 %v690_v3, %v689_v23  ;;  %v1905_v56 = vld [vmem:[#allocation20_spill] sm:$0xff] }
  0x81   :  { %vm330_vm15 = vcmp.eq.f32.partialorder %v1547_v9, 0.0  ;;  %v600_v2 = vmul.f32 %v978_v39, %v1209_v19  ;;  %v630_v7 = vsub.f32 %v566_v44, %v598_v43  ;;  %v660_v21 = vand.u32 2147483647, %v628_v58  ;;  %v1903_v39 = vld [vmem:[#allocation18_spill] sm:$0xff] }
  0x82   :  { %v694_v53 = vsel %vm172_vm0, %v658_v6, 0.0  ;;  %v530_v45 = vsel %vm529_vm13, %v1603_v20, %v528_v46  ;;  %v546_v18 = vadd.f32 1e-10, %v526_v34  ;;  %v569_v33 = vmul.f32 %v1635_v60, %v1902_v51 }
  0x83   :  { %v693_v59 = vadd.f32 %v692_v52, %v691_v63  ;;  %v986_v11 = vpop.eup %985  ;;  %v601_v48 = vmul.f32 %v984_v17, %v1218_v31  ;;  %v631_v61 = vsub.f32 %v567_v13, %v599_v27  ;;  %v661_v47 = vand.u32 2147483647, %v629_v49 }
  0x84   :  { %v696_v19 = vsel %vm172_vm0, %v659_v12, 0.0  ;;  %vm536_vm1 = vcmp.eq.f32.partialorder %v1637_v32, inf  ;;  %v570_v44 = vmul.f32 %v1635_v60, %v1903_v39  ;;  %v571_v43 = vmul.f32 %v1635_v60, %v1904_v22 }
  0x85   :  { %v695_v58 = vadd.f32 %v694_v53, %v693_v59  ;;  %v602_v6 = vmul.f32 %v984_v17, %v1220_v36  ;;  %v632_v3 = vsub.f32 %v568_v57, %v600_v2  ;;  %v662_v34 = vand.u32 2147483647, %v630_v7  ;;  %v1906_v53 = vld [vmem:[#allocation21_spill] sm:$0xff] }
  0x86   :  { %v698_v46 = vsel %vm172_vm0, %v660_v21, 0.0  ;;  %v533_v31 = vsel %vm531_vm14, %v532_v55, %v530_v45  ;;  %v535_v13 = vmul.f32 %v986_v11, %v1637_v32  ;;  %989 = vrcp.f32 %v546_v18 }
  0x87   :  { %v697_v23 = vadd.f32 %v696_v19, %v695_v58  ;;  %v603_v38 = vmul.f32 %v984_v17, %v1222_v41  ;;  %v633_v27 = vsub.f32 %v569_v33, %v601_v48  ;;  %v663_v49 = vand.u32 2147483647, %v631_v61 }
  0x88   :  { %v700_v12 = vsel %vm172_vm0, %v661_v47, 0.0  ;;  %v988_v52 = vpop.eup %987  ;;  %vm538_vm2 = vcmp.eq.f32.partialorder %v1637_v32, 0.0  ;;  %v539_v36 = vand.u32 2147483648, %v1637_v32  ;;  %v572_v57 = vmul.f32 %v1635_v60, %v1905_v56 }
  0x89   :  { %v699_v20 = vadd.f32 %v698_v46, %v697_v23  ;;  %v604_v55 = vmul.f32 %v984_v17, %v1224_v42  ;;  %v634_v63 = vsub.f32 %v570_v44, %v602_v6  ;;  %v664_v2 = vand.u32 2147483647, %v632_v3  ;;  %v1907_v17 = vld [vmem:[#allocation22_spill] sm:$0xff]  ;;  %v1908_v44 = vld [vmem:[#allocation23_spill] sm:$0xff]  ;;  %v1909_v6 = vld [vmem:[#allocation24_spill] sm:$0xff] }
  0x8a   :  { %v702_v7 = vsel %vm172_vm0, %v662_v34, 0.0  ;;  %v537_v41 = vsel %vm536_vm1, %v1637_v32, %v535_v13  ;;  %v547_v21 = vadd.f32 1e-10, %v533_v31  ;;  %v573_v45 = vmul.f32 %v1641_v0, %v1906_v53 }
  0x8b   :  { %v701_v18 = vadd.f32 %v700_v12, %v699_v20  ;;  %v605_v51 = vmul.f32 %v988_v52, %v1233_v62  ;;  %v635_v33 = vsub.f32 %v571_v43, %v603_v38  ;;  %v665_v60 = vand.u32 2147483647, %v633_v27  ;;  %v1910_v38 = vld [vmem:[#allocation25_spill] sm:$0xff] }
  0x8c   :  { %v704_v59 = vsel %vm172_vm0, %v663_v49, 0.0  ;;  %v332_v42 = vsel %vm330_vm15, %v331_v37, %v1629_v8  ;;  %991 = vrcp.f32 %v1631_v50  ;;  %v574_v11 = vmul.f32 %v1641_v0, %v1907_v17 }
  0x8d   :  { %v703_v48 = vadd.f32 %v702_v7, %v701_v18  ;;  %v606_v61 = vmul.f32 %v988_v52, %v1235_v1  ;;  %v636_v47 = vsub.f32 %v572_v57, %v604_v55  ;;  %v666_v62 = vand.u32 2147483647, %v634_v63  ;;  %v1912_v7 = vld [vmem:[#allocation27_spill] sm:$0xff] }
  0x8e   :  { %v706_v19 = vsel %vm172_vm0, %v664_v2, 0.0  ;;  %v540_v39 = vsel %vm538_vm2, %v539_v36, %v537_v41  ;;  %993 = vrcp.f32 %v547_v21  ;;  %v575_v9 = vmul.f32 %v1641_v0, %v1908_v44  ;;  %v1915_v44 = vld [vmem:[#allocation30_spill] sm:$0xff] }
  0x8f   :  { %v705_v37 = vadd.f32 %v704_v59, %v703_v48  ;;  %v607_v8 = vmul.f32 %v988_v52, %v1243_v14  ;;  %v637_v50 = vsub.f32 %v573_v45, %v605_v51  ;;  %v667_v22 = vand.u32 2147483647, %v635_v33  ;;  %v1913_v33 = vld [vmem:[#allocation28_spill] sm:$0xff]  ;;  %v1914_v48 = vld [vmem:[#allocation29_spill] sm:$0xff] }
  0x90   :  { %v708_v43 = vsel %vm172_vm0, %v665_v60, 0.0  ;;  %v990_v58 = vpop.eup %989  ;;  %v340_v1 = vadd.f32 1e-10, %v332_v42  ;;  %v576_v3 = vmul.f32 %v1641_v0, %v1909_v6  ;;  %v608_v32 = vmul.f32 %v988_v52, %v1252_v24  ;;  %v1911_v0 = vld [vmem:[#allocation26_spill] sm:$0xff] }
  0x91   :  { %v707_v34 = vadd.f32 %v706_v19, %v705_v37  ;;  %v638_v46 = vsub.f32 %v574_v11, %v606_v61  ;;  %v668_v31 = vand.u32 2147483647, %v636_v47  ;;  %v710_v13 = vsel %vm172_vm0, %v666_v62, 0.0 }
  0x92   :  { %v548_v23 = vadd.f32 1e-10, %v540_v39  ;;  %v577_v14 = vmul.f32 %v1653_v54, %v1910_v38  ;;  %v609_v49 = vmul.f32 %v990_v58, %v1258_v10  ;;  %v639_v12 = vsub.f32 %v575_v9, %v607_v8 }
  0x93   :  { %v709_v27 = vadd.f32 %v708_v43, %v707_v34  ;;  %v669_v36 = vand.u32 2147483647, %v637_v50  ;;  %v712_v56 = vsel %vm172_vm0, %v667_v22, 0.0  ;;  %995 = vrcp.f32 %v340_v1  ;;  %v1916_v43 = vld [vmem:[#allocation31_spill] sm:$0xff] }
  0x94   :  { %v578_v57 = vmul.f32 %v1653_v54, %v1911_v0  ;;  %v610_v52 = vmul.f32 %v990_v58, %v1263_v25  ;;  %v640_v20 = vsub.f32 %v576_v3, %v608_v32  ;;  %v670_v55 = vand.u32 2147483647, %v638_v46  ;;  %v1917_v46 = vld [vmem:[#allocation32_spill] sm:$0xff] }
  0x95   :  { %v711_v24 = vadd.f32 %v710_v13, %v709_v27  ;;  %v714_v63 = vsel %vm172_vm0, %v668_v31, 0.0  ;;  %997 = vrcp.f32 %v548_v23  ;;  %v579_v10 = vmul.f32 %v1653_v54, %v1912_v7  ;;  %v1918_v27 = vld [vmem:[#allocation33_spill] sm:$0xff] }
  0x96   :  { %v992_v2 = vpop.eup %991  ;;  %v611_v21 = vmul.f32 %v990_v58, %v1877_v40  ;;  %v641_v53 = vsub.f32 %v577_v14, %v609_v49  ;;  %v671_v45 = vand.u32 2147483647, %v639_v12  ;;  %v716_v18 = vsel %vm172_vm0, %v669_v36, 0.0 }
  0x97   :  { %v713_v41 = vadd.f32 %v712_v56, %v711_v24  ;;  %v580_v25 = vmul.f32 %v1653_v54, %v1913_v33  ;;  %v612_v59 = vmul.f32 %v990_v58, %v1285_v16  ;;  %v642_v42 = vsub.f32 %v578_v57, %v610_v52  ;;  %v1919_v57 = vld [vmem:[#allocation34_spill] sm:$0xff] }
  0x98   :  { %v994_v51 = vpop.eup %993  ;;  %v672_v17 = vand.u32 2147483647, %v640_v20  ;;  %v718_v11 = vsel %vm172_vm0, %v670_v55, 0.0  ;;  %v581_v61 = vmul.f32 %v992_v2, %v1914_v48  ;;  %v643_v62 = vsub.f32 %v579_v10, %v611_v21 }
  0x99   :  { %v715_v60 = vadd.f32 %v714_v63, %v713_v41  ;;  %v613_v40 = vmul.f32 %v994_v51, %v1287_v5  ;;  %v673_v19 = vand.u32 2147483647, %v641_v53  ;;  %v720_v39 = vsel %vm172_vm0, %v671_v45, 0.0  ;;  %v1921_v45 = vld [vmem:[#allocation36_spill] sm:$0xff] }
  0x9a   :  { %v582_v9 = vmul.f32 %v992_v2, %v1915_v44  ;;  %v614_v54 = vmul.f32 %v994_v51, %v1290_v30  ;;  %v644_v8 = vsub.f32 %v580_v25, %v612_v59  ;;  %v674_v16 = vand.u32 2147483647, %v642_v42 }
  0x9b   :  { %v717_v47 = vadd.f32 %v716_v18, %v715_v60  ;;  %v722_v50 = vsel %vm172_vm0, %v672_v17, 0.0  ;;  %v583_v58 = vmul.f32 %v992_v2, %v1916_v43  ;;  %v615_v6 = vmul.f32 %v994_v51, %v1878_v35 }
  0x9c   :  { %v645_v5 = vsub.f32 %v581_v61, %v613_v40  ;;  %v675_v3 = vand.u32 2147483647, %v643_v62  ;;  %v724_v34 = vsel %vm172_vm0, %v673_v19, 0.0  ;;  %v584_v31 = vmul.f32 %v992_v2, %v1917_v46  ;;  %v1920_v2 = vld [vmem:[#allocation35_spill] sm:$0xff] }
  0x9d   :  { %v719_v37 = vadd.f32 %v718_v11, %v717_v47  ;;  %v996_v22 = vpop.eup %995  ;;  %v616_v30 = vmul.f32 %v994_v51, %v1879_v15  ;;  %v646_v23 = vsub.f32 %v582_v9, %v614_v54  ;;  %v676_v38 = vand.u32 2147483647, %v644_v8 }
  0x9e   :  { %v726_v14 = vsel %vm172_vm0, %v674_v16, 0.0  ;;  %v585_v49 = vmul.f32 %v996_v22, %v1918_v27  ;;  %v647_v35 = vsub.f32 %v583_v58, %v615_v6  ;;  %v677_v56 = vand.u32 2147483647, %v645_v5 }
  0x9f   :  { %v721_v1 = vadd.f32 %v720_v39, %v719_v37  ;;  %v998_v32 = vpop.eup %997  ;;  %v728_v0 = vsel %vm172_vm0, %v675_v3, 0.0  ;;  %v586_v24 = vmul.f32 %v996_v22, %v1919_v57  ;;  %v648_v55 = vsub.f32 %v584_v31, %v616_v30 }
  0xa0   :  { %v617_v36 = vmul.f32 %v998_v32, %v1310_v4  ;;  %v618_v20 = vmul.f32 %v998_v32, %v1312_v29  ;;  %v678_v15 = vand.u32 2147483647, %v646_v23  ;;  %v730_v63 = vsel %vm172_vm0, %v676_v38, 0.0 }
  0xa1   :  { %v723_v13 = vadd.f32 %v722_v50, %v721_v1  ;;  %v587_v7 = vmul.f32 %v996_v22, %v1920_v2  ;;  %v619_v41 = vmul.f32 %v998_v32, %v1314_v26  ;;  %v679_v4 = vand.u32 2147483647, %v647_v35 }
  0xa2   :  { %v649_v21 = vsub.f32 %v585_v49, %v617_v36  ;;  %v732_v53 = vsel %vm172_vm0, %v677_v56, 0.0  ;;  %v588_v18 = vmul.f32 %v996_v22, %v1921_v45  ;;  %v620_v33 = vmul.f32 %v998_v32, %v1316_v28 }
  0xa3   :  { %v725_v12 = vadd.f32 %v724_v34, %v723_v13  ;;  %v650_v25 = vsub.f32 %v586_v24, %v618_v20  ;;  %v680_v29 = vand.u32 2147483647, %v648_v55  ;;  %v734_v60 = vsel %vm172_vm0, %v678_v15, 0.0 }
  0xa4   :  { %v651_v42 = vsub.f32 %v587_v7, %v619_v41  ;;  %v681_v17 = vand.u32 2147483647, %v649_v21  ;;  %v736_v11 = vsel %vm172_vm0, %v679_v4, 0.0  ;;  %v652_v26 = vsub.f32 %v588_v18, %v620_v33 }
  0xa5   :  { %v727_v52 = vadd.f32 %v726_v14, %v725_v12  ;;  %v682_v61 = vand.u32 2147483647, %v650_v25  ;;  %v738_v47 = vsel %vm172_vm0, %v680_v29, 0.0  ;;  %vm758_vm3 = vcmask 0  }
  0xa6   :  { %v683_v62 = vand.u32 2147483647, %v651_v42  ;;  %v740_v19 = vsel %vm172_vm0, %v681_v17, 0.0  ;;  %v684_v28 = vand.u32 2147483647, %v652_v26 }
  0xa7   :  { %v729_v10 = vadd.f32 %v728_v0, %v727_v52  ;;  %v742_v44 = vsel %vm172_vm0, %v682_v61, 0.0 }
  0xa8   :  { %v744_v37 = vsel %vm172_vm0, %v683_v62, 0.0  ;;  %v746_v8 = vsel %vm172_vm0, %v684_v28, 0.0 }
  0xa9   :  { %v731_v51 = vadd.f32 %v730_v63, %v729_v10 }
  0xab   :  { %v733_v59 = vadd.f32 %v732_v53, %v731_v51 }
  0xad   :  { %v735_v48 = vadd.f32 %v734_v60, %v733_v59 }
  0xaf   :  { %v737_v40 = vadd.f32 %v736_v11, %v735_v48 }
  0xb1   :  { %v739_v39 = vadd.f32 %v738_v47, %v737_v40 }
  0xb3   :  { %v741_v9 = vadd.f32 %v740_v19, %v739_v39 }
  0xb5   :  { %v743_v54 = vadd.f32 %v742_v44, %v741_v9 }
  0xb7   :  { %v745_v16 = vadd.f32 %v744_v37, %v743_v54 }
  0xb9   :  { %v747_v50 = vadd.f32 %v746_v8, %v745_v16 }
  0xbb   :  { %748 = vadd.xlane.f32.xlu0 %v747_v50 }
 0x148   :  { %v749_v22 = vpop.xlane.xlu0 %748 }
 0x149   :  { %v750_v43 = vrot.slane %v749_v22, 4 }
 0x14b   :  { %v751_v58 = vadd.f32 %v750_v43, %v749_v22 }
 0x14d   :  { %v752_v1 = vrot.slane %v751_v58, 2 }
 0x14f   :  { %v753_v6 = vadd.f32 %v752_v1, %v751_v58 }
 0x151   :  { %v754_v5 = vrot.slane %v753_v6, 1 }
 0x153   :  { %v755_v3 = vadd.f32 %v754_v5, %v753_v6 }
 0x155   :  { %932 = vpush %v755_v3 }
 0x186   :  { %s933_s0 = spop %932 }
 0x187   :  { %v757_v34 = vstv %s933_s0 }
 0x188   :  { %759 = vst.msk [vmem:[#allocation2] sm:$0x1] %vm758_vm3, %v757_v34 }
 0x189   :  { %1010 = shalt.err (!%p1007_p4)
}
 0x18a   :  { %s1011_s21 = scalar_lea.hbm %s1790_s2, 16 }
 0x18b   :  { %p1012_p5 = scmp.ne.s32.totalorder %s1790_s2, %s1011_s21  ;;  %p1015_p6 = scmp.lt.u32.totalorder %s1011_s21, %s1790_s2 }
 0x18d   :  { %p1017_p7 = pnand %p1015_p6, %p1012_p5 }
 0x18f   :  { %1020 = shalt.err (!%p1017_p7)
}
 0x190   :  { %769 = dma.vmem_to_hbm [thread:$0]  %s767_s16, 16, %s1790_s2, [#allocation3]  }
 0x191   :  { %1021 = dma.done.wait [#allocation3], 16  }
 0x192   :  { %1022 = vsyncadd [#allocation3], 4294967280 }
 0x193   :  { %773 = vsyncpa [#allocation3], 1 }

</bundles_post_ra>
